<compile_context>
chip_gen: v7x
topology: tpu7x:2x2x1
jax: 0.10.0
libtpu: 0.0.40
codegen_flags: <defaults>
</compile_context>

<pallas_src>
import jax
import jax.numpy as jnp
from jax.experimental import pallas as pl
from jax.experimental.pallas import tpu as pltpu


def down_3d(x, w1, g1, be1, m1, v1, w2, g2, be2, m2, v2, eps=1e-5):
    """Down_3D forward (eval mode).

    x: (N, Cin, D, H, W); conv weights in PyTorch layout (Cout, Cin, 3, 3, 3);
    BatchNorm gamma/beta/running_mean/running_var per channel.
    Returns (N, Cout, D//2, H//2, W//2).
    """
    N, Cin, D, H, W = x.shape
    Cmid = w1.shape[0]
    Cout = w2.shape[0]
    Dp, Hp, Wp = D // 2, H // 2, W // 2
    HW = Hp * Wp
    L = Dp * HW                      # flattened pooled volume per batch
    NL = N * L                       # batch folded into lanes
    Cp = ((max(Cin, Cmid) + 7) // 8) * 8   # sublane-padded channel count
    K = 27 * Cp                      # implicit-GEMM contraction depth
    P = 128 * ((HW + Wp + 1 + 127) // 128)  # lane pad >= largest |tap offset|

    # ---- MaxPool3d(2), floor mode, in the wrapper (cuts kernel input DMA 8x) --
    xf = x[:, :, :2 * Dp, :2 * Hp, :2 * Wp].astype(jnp.float32)
    pooled = jax.lax.reduce_window(
        xf, -jnp.inf, jax.lax.max,
        window_dimensions=(1, 1, 2, 2, 2),
        window_strides=(1, 1, 2, 2, 2),
        padding="VALID")                                  # (N, Cin, Dp, Hp, Wp)
    # channels on sublanes, batch folded into lanes: (Cp, N*L)
    x_flat = jnp.transpose(pooled.reshape(N, Cin, L), (1, 0, 2)).reshape(Cin, NL)
    x_flat = jnp.pad(x_flat, ((0, Cp - Cin), (0, 0)))

    # ---- fold eval-mode BatchNorm into the conv weights -----------------------
    s1 = g1 / jnp.sqrt(v1 + eps)
    s2 = g2 / jnp.sqrt(v2 + eps)
    w1f = w1.astype(jnp.float32) * s1[:, None, None, None, None]
    w2f = w2.astype(jnp.float32) * s2[:, None, None, None, None]

    def pack_w(wf, cin, cout, cout_p):
        # (cout, cin, 3,3,3) -> (cout_p, 27*Cp): tap-major / channel-minor K to
        # match the im2col row order; zero-padded channels and output rows;
        # bf16 MXU operand.
        w = wf.reshape(cout, cin, 27).transpose(0, 2, 1)      # (cout, 27, cin)
        w = jnp.pad(w, ((0, cout_p - cout), (0, 0), (0, Cp - cin)))
        return w.reshape(cout_p, K).astype(jnp.bfloat16)

    w1m = pack_w(w1f, Cin, Cmid, Cp)      # (Cp, K); padded rows -> y1 rows == 0
    w2m = pack_w(w2f, Cmid, Cout, Cout)   # (Cout, K)
    b1p = jnp.pad((be1 - m1 * s1).astype(jnp.float32).reshape(Cmid, 1),
                  ((0, Cp - Cmid), (0, 0)))
    b2p = (be2 - m2 * s2).astype(jnp.float32).reshape(Cout, 1)

    # ---- per-tap validity masks over the flattened (batch-folded) volume ------
    # z is included so dz taps never leak across the batch boundary in lanes.
    idx = jnp.arange(NL, dtype=jnp.int32) % L
    zc = idx // HW
    yc = (idx // Wp) % Hp
    xc = idx % Wp
    rows = []
    for dz in (-1, 0, 1):
        for dy in (-1, 0, 1):
            for dx in (-1, 0, 1):
                rows.append((zc + dz >= 0) & (zc + dz < Dp) &
                            (yc + dy >= 0) & (yc + dy < Hp) &
                            (xc + dx >= 0) & (xc + dx < Wp))
    masks = jnp.stack(rows).astype(jnp.float32).reshape(27, 1, NL)

    def kernel(x_ref, w1_ref, b1_ref, w2_ref, b2_ref, m_ref, o_ref, slab, col):
        # x_ref  : (Cp, NL)      pooled input, channel-padded, f32
        # w*_ref : (*, 27*Cp)    BN-folded weights, bf16 (tap-major K)
        # b*_ref : (*, 1)        BN-folded bias, f32
        # m_ref  : (27, 1, NL)   per-tap validity masks, f32
        # o_ref  : (Cout, NL)    lane-dense output
        # slab   : (Cp, NL+2P)   f32 scratch: zero lane pads + shifted reads
        # col    : (27*Cp, NL)   f32 scratch: im2col, cast to bf16 at the dot

        # Zero the lane pads once; the middle is always overwritten before use.
        slab[:, :P] = jnp.zeros((Cp, P), jnp.float32)
        slab[:, P + NL:] = jnp.zeros((Cp, P), jnp.float32)

        def conv3(w_ref, b_ref):
            # One implicit-GEMM 3x3x3 conv (padding=1): stack the 27 shifted +
            # masked tap slices along K, then a single (cout,K)@(K,NL) MXU dot.
            for t in range(27):
                dz = t // 9 - 1
                dy = (t // 3) % 3 - 1
                dx = t % 3 - 1
                start = P + dz * HW + dy * Wp + dx
                col[t * Cp:(t + 1) * Cp, :] = (
                    slab[:, start:start + NL] * m_ref[t])     # f32 elementwise
            acc = jnp.dot(w_ref[...], col[...].astype(jnp.bfloat16),
                          preferred_element_type=jnp.float32)
            y = acc + b_ref[...]                              # folded-BN bias
            return jnp.where(y >= 0, y, jnp.float32(0.01) * y)  # LeakyReLU

        slab[:, P:P + NL] = x_ref[...]
        y1 = conv3(w1_ref, b1_ref)            # (Cp, NL); padded rows are 0
        # TODO(synk): Dropout3d(p=0.2) is stochastic in training mode; identity
        # in eval mode, which is what we implement.
        slab[:, P:P + NL] = y1
        o_ref[...] = conv3(w2_ref, b2_ref)    # (Cout, NL)

    out_flat = pl.pallas_call(
        kernel,
        out_shape=jax.ShapeDtypeStruct((Cout, NL), jnp.float32),
        grid_spec=pltpu.PrefetchScalarGridSpec(
            num_scalar_prefetch=0,
            grid=(1,),
            in_specs=[
                pl.BlockSpec((Cp, NL), lambda i: (0, 0)),
                pl.BlockSpec((Cp, K), lambda i: (0, 0)),
                pl.BlockSpec((Cp, 1), lambda i: (0, 0)),
                pl.BlockSpec((Cout, K), lambda i: (0, 0)),
                pl.BlockSpec((Cout, 1), lambda i: (0, 0)),
                pl.BlockSpec((27, 1, NL), lambda i: (0, 0, 0)),
            ],
            out_specs=pl.BlockSpec((Cout, NL), lambda i: (0, 0)),
            scratch_shapes=[
                pltpu.VMEM((Cp, NL + 2 * P), jnp.float32),
                pltpu.VMEM((K, NL), jnp.float32),
            ]),
        compiler_params=pltpu.CompilerParams(
            dimension_semantics=("arbitrary",),
            vmem_limit_bytes=32 * 1024 * 1024),
    )(x_flat, w1m, b1p, w2m, b2p, masks)

    return jnp.transpose(out_flat.reshape(Cout, N, Dp, Hp, Wp),
                         (1, 0, 2, 3, 4))


def reference(x, w1, g1, be1, m1, v1, w2, g2, be2, m2, v2, eps=1e-5):
    """Pure-JAX reference mirroring the PyTorch Down_3D module in eval mode."""
    y = jax.lax.reduce_window(
        x, -jnp.inf, jax.lax.max,
        window_dimensions=(1, 1, 2, 2, 2),
        window_strides=(1, 1, 2, 2, 2),
        padding="VALID")

    def conv(x, w):
        return jax.lax.conv_general_dilated(
            x, w, window_strides=(1, 1, 1),
            padding=((1, 1), (1, 1), (1, 1)),
            dimension_numbers=("NCDHW", "OIDHW", "NCDHW"))

    def bn(x, g, b, m, v):
        c = lambda a: a[None, :, None, None, None]
        return (x - c(m)) / jnp.sqrt(c(v) + eps) * c(g) + c(b)

    def lrelu(x):
        return jnp.where(x >= 0, x, 0.01 * x)

    y = lrelu(bn(conv(y, w1), g1, be1, m1, v1))
    y = lrelu(bn(conv(y, w2), g2, be2, m2, v2))
    return y


if __name__ == "__main__":
    N, Cin, D, H, W = 2, 4, 16, 16, 16
    Cout = 8
    Cmid = Cout  # DoubleConv_3D default: mid_channels = out_channels

    key = jax.random.PRNGKey(0)
    ks = jax.random.split(key, 11)
    x = jax.random.normal(ks[0], (N, Cin, D, H, W), jnp.float32)
    w1 = jax.random.normal(ks[1], (Cmid, Cin, 3, 3, 3), jnp.float32) * 0.2
    g1 = jax.random.uniform(ks[2], (Cmid,), jnp.float32, 0.5, 1.5)
    be1 = jax.random.normal(ks[3], (Cmid,), jnp.float32) * 0.1
    m1 = jax.random.normal(ks[4], (Cmid,), jnp.float32) * 0.1
    v1 = jax.random.uniform(ks[5], (Cmid,), jnp.float32, 0.5, 1.5)
    w2 = jax.random.normal(ks[6], (Cout, Cmid, 3, 3, 3), jnp.float32) * 0.2
    g2 = jax.random.uniform(ks[7], (Cout,), jnp.float32, 0.5, 1.5)
    be2 = jax.random.normal(ks[8], (Cout,), jnp.float32) * 0.1
    m2 = jax.random.normal(ks[9], (Cout,), jnp.float32) * 0.1
    v2 = jax.random.uniform(ks[10], (Cout,), jnp.float32, 0.5, 1.5)

    out = down_3d(x, w1, g1, be1, m1, v1, w2, g2, be2, m2, v2)
    out = jax.block_until_ready(out)
    assert out.shape == (N, Cout, D // 2, H // 2, W // 2), out.shape

    ref = reference(x, w1, g1, be1, m1, v1, w2, g2, be2, m2, v2)
    ref = jax.block_until_ready(ref)

    scale = float(jnp.max(jnp.abs(ref)))
    max_err = float(jnp.max(jnp.abs(out - ref)))
    mean_err = float(jnp.mean(jnp.abs(out - ref)))
    # Tolerance covers bf16 MXU operands (matching TPU default matmul precision)
    # and the different accumulation order of the folded-BN implicit-GEMM path;
    # mean-error check guards against hidden moderate regressions.
    assert max_err <= 2e-2 * scale + 1e-3, (
        f"max abs error {max_err} vs reference (scale {scale})")
    assert mean_err <= 5e-3 * scale + 1e-4, (
        f"mean abs error {mean_err} vs reference (scale {scale})")

    print("KERNEL_OK")
</pallas_src>

<mosaic_0001>
module attributes {stable_mosaic.version = 11 : i64} {
  func.func @kernel(%arg0: i32, %arg1: memref<8x1024xf32, #tpu.memory_space<vmem>>, %arg2: memref<8x216xbf16, #tpu.memory_space<vmem>>, %arg3: memref<8x1xf32, #tpu.memory_space<vmem>>, %arg4: memref<8x216xbf16, #tpu.memory_space<vmem>>, %arg5: memref<8x1xf32, #tpu.memory_space<vmem>>, %arg6: memref<27x1x1024xf32, #tpu.memory_space<vmem>>, %arg7: memref<8x1024xf32, #tpu.memory_space<vmem>>, %arg8: memref<8x1280xf32, #tpu.memory_space<vmem>>, %arg9: memref<216x1024xf32, #tpu.memory_space<vmem>>) attributes {dimension_semantics = [#tpu.dimension_semantics<arbitrary>], iteration_bounds = array<i64: 1>, scalar_prefetch = 0 : i64, scratch_operands = 2 : i64, tpu.core_type = #tpu.core_type<tc>, window_params = [{pipeline_mode = #tpu.pipeline_mode<synchronous>, transform_indices = @transform_0, window_bounds = array<i64: 8, 1024>}, {pipeline_mode = #tpu.pipeline_mode<synchronous>, transform_indices = @transform_1, window_bounds = array<i64: 8, 216>}, {pipeline_mode = #tpu.pipeline_mode<synchronous>, transform_indices = @transform_2, window_bounds = array<i64: 8, 1>}, {pipeline_mode = #tpu.pipeline_mode<synchronous>, transform_indices = @transform_3, window_bounds = array<i64: 8, 216>}, {pipeline_mode = #tpu.pipeline_mode<synchronous>, transform_indices = @transform_4, window_bounds = array<i64: 8, 1>}, {pipeline_mode = #tpu.pipeline_mode<synchronous>, transform_indices = @transform_5, window_bounds = array<i64: 27, 1, 1024>}, {pipeline_mode = #tpu.pipeline_mode<synchronous>, transform_indices = @transform_6, window_bounds = array<i64: 8, 1024>}]} {
    %cst = arith.constant 0.000000e+00 : f32
    %0 = vector.broadcast %cst : f32 to vector<8x128xf32>
    %c0 = arith.constant 0 : index
    %c0_0 = arith.constant 0 : index
    %1 = vector.load %arg8[%c0, %c0_0] : memref<8x1280xf32, #tpu.memory_space<vmem>>, vector<8x128xf32>
    tpu.vector_store %arg8[%c0, %c0_0], %0 {strides = array<i32>} : memref<8x1280xf32, #tpu.memory_space<vmem>>, vector<8x128xf32>,
    %cst_1 = arith.constant 0.000000e+00 : f32
    %2 = vector.broadcast %cst_1 : f32 to vector<8x128xf32>
    %c0_2 = arith.constant 0 : index
    %c1152 = arith.constant 1152 : index
    %3 = vector.load %arg8[%c0_2, %c1152] : memref<8x1280xf32, #tpu.memory_space<vmem>>, vector<8x128xf32>
    tpu.vector_store %arg8[%c0_2, %c1152], %2 {strides = array<i32>} : memref<8x1280xf32, #tpu.memory_space<vmem>>, vector<8x128xf32>,
    %c0_3 = arith.constant 0 : index
    %c0_4 = arith.constant 0 : index
    %4 = vector.load %arg1[%c0_3, %c0_4] : memref<8x1024xf32, #tpu.memory_space<vmem>>, vector<8x1024xf32>
    %c0_5 = arith.constant 0 : index
    %c128 = arith.constant 128 : index
    %5 = vector.load %arg8[%c0_5, %c128] : memref<8x1280xf32, #tpu.memory_space<vmem>>, vector<8x1024xf32>
    tpu.vector_store %arg8[%c0_5, %c128], %4 {strides = array<i32>} : memref<8x1280xf32, #tpu.memory_space<vmem>>, vector<8x1024xf32>,
    %c0_6 = arith.constant 0 : index
    %c55 = arith.constant 55 : index
    %6 = vector.load %arg8[%c0_6, %c55] : memref<8x1280xf32, #tpu.memory_space<vmem>>, vector<8x1024xf32>
    %c0_7 = arith.constant 0 : index
    %c0_8 = arith.constant 0 : index
    %c0_9 = arith.constant 0 : index
    %7 = vector.load %arg6[%c0_7, %c0_8, %c0_9] : memref<27x1x1024xf32, #tpu.memory_space<vmem>>, vector<1x1x1024xf32>
    %8 = vector.shape_cast %7 : vector<1x1x1024xf32> to vector<1x1024xf32>
    %9 = vector.broadcast %8 : vector<1x1024xf32> to vector<8x1024xf32>
    %10 = arith.mulf %6, %9 : vector<8x1024xf32>
    %c0_10 = arith.constant 0 : index
    %c0_11 = arith.constant 0 : index
    %11 = vector.load %arg9[%c0_10, %c0_11] : memref<216x1024xf32, #tpu.memory_space<vmem>>, vector<8x1024xf32>
    tpu.vector_store %arg9[%c0_10, %c0_11], %10 {strides = array<i32>} : memref<216x1024xf32, #tpu.memory_space<vmem>>, vector<8x1024xf32>,
    %c0_12 = arith.constant 0 : index
    %c56 = arith.constant 56 : index
    %12 = vector.load %arg8[%c0_12, %c56] : memref<8x1280xf32, #tpu.memory_space<vmem>>, vector<8x1024xf32>
    %c1 = arith.constant 1 : index
    %c0_13 = arith.constant 0 : index
    %c0_14 = arith.constant 0 : index
    %13 = vector.load %arg6[%c1, %c0_13, %c0_14] : memref<27x1x1024xf32, #tpu.memory_space<vmem>>, vector<1x1x1024xf32>
    %14 = vector.shape_cast %13 : vector<1x1x1024xf32> to vector<1x1024xf32>
    %15 = vector.broadcast %14 : vector<1x1024xf32> to vector<8x1024xf32>
    %16 = arith.mulf %12, %15 : vector<8x1024xf32>
    %c8 = arith.constant 8 : index
    %c0_15 = arith.constant 0 : index
    %17 = vector.load %arg9[%c8, %c0_15] : memref<216x1024xf32, #tpu.memory_space<vmem>>, vector<8x1024xf32>
    tpu.vector_store %arg9[%c8, %c0_15], %16 {strides = array<i32>} : memref<216x1024xf32, #tpu.memory_space<vmem>>, vector<8x1024xf32>,
    %c0_16 = arith.constant 0 : index
    %c57 = arith.constant 57 : index
    %18 = vector.load %arg8[%c0_16, %c57] : memref<8x1280xf32, #tpu.memory_space<vmem>>, vector<8x1024xf32>
    %c2 = arith.constant 2 : index
    %c0_17 = arith.constant 0 : index
    %c0_18 = arith.constant 0 : index
    %19 = vector.load %arg6[%c2, %c0_17, %c0_18] : memref<27x1x1024xf32, #tpu.memory_space<vmem>>, vector<1x1x1024xf32>
    %20 = vector.shape_cast %19 : vector<1x1x1024xf32> to vector<1x1024xf32>
    %21 = vector.broadcast %20 : vector<1x1024xf32> to vector<8x1024xf32>
    %22 = arith.mulf %18, %21 : vector<8x1024xf32>
    %c16 = arith.constant 16 : index
    %c0_19 = arith.constant 0 : index
    %23 = vector.load %arg9[%c16, %c0_19] : memref<216x1024xf32, #tpu.memory_space<vmem>>, vector<8x1024xf32>
    tpu.vector_store %arg9[%c16, %c0_19], %22 {strides = array<i32>} : memref<216x1024xf32, #tpu.memory_space<vmem>>, vector<8x1024xf32>,
    %c0_20 = arith.constant 0 : index
    %c63 = arith.constant 63 : index
    %24 = vector.load %arg8[%c0_20, %c63] : memref<8x1280xf32, #tpu.memory_space<vmem>>, vector<8x1024xf32>
    %c3 = arith.constant 3 : index
    %c0_21 = arith.constant 0 : index
    %c0_22 = arith.constant 0 : index
    %25 = vector.load %arg6[%c3, %c0_21, %c0_22] : memref<27x1x1024xf32, #tpu.memory_space<vmem>>, vector<1x1x1024xf32>
    %26 = vector.shape_cast %25 : vector<1x1x1024xf32> to vector<1x1024xf32>
    %27 = vector.broadcast %26 : vector<1x1024xf32> to vector<8x1024xf32>
    %28 = arith.mulf %24, %27 : vector<8x1024xf32>
    %c24 = arith.constant 24 : index
    %c0_23 = arith.constant 0 : index
    %29 = vector.load %arg9[%c24, %c0_23] : memref<216x1024xf32, #tpu.memory_space<vmem>>, vector<8x1024xf32>
    tpu.vector_store %arg9[%c24, %c0_23], %28 {strides = array<i32>} : memref<216x1024xf32, #tpu.memory_space<vmem>>, vector<8x1024xf32>,
    %c0_24 = arith.constant 0 : index
    %c64 = arith.constant 64 : index
    %30 = vector.load %arg8[%c0_24, %c64] : memref<8x1280xf32, #tpu.memory_space<vmem>>, vector<8x1024xf32>
    %c4 = arith.constant 4 : index
    %c0_25 = arith.constant 0 : index
    %c0_26 = arith.constant 0 : index
    %31 = vector.load %arg6[%c4, %c0_25, %c0_26] : memref<27x1x1024xf32, #tpu.memory_space<vmem>>, vector<1x1x1024xf32>
    %32 = vector.shape_cast %31 : vector<1x1x1024xf32> to vector<1x1024xf32>
    %33 = vector.broadcast %32 : vector<1x1024xf32> to vector<8x1024xf32>
    %34 = arith.mulf %30, %33 : vector<8x1024xf32>
    %c32 = arith.constant 32 : index
    %c0_27 = arith.constant 0 : index
    %35 = vector.load %arg9[%c32, %c0_27] : memref<216x1024xf32, #tpu.memory_space<vmem>>, vector<8x1024xf32>
    tpu.vector_store %arg9[%c32, %c0_27], %34 {strides = array<i32>} : memref<216x1024xf32, #tpu.memory_space<vmem>>, vector<8x1024xf32>,
    %c0_28 = arith.constant 0 : index
    %c65 = arith.constant 65 : index
    %36 = vector.load %arg8[%c0_28, %c65] : memref<8x1280xf32, #tpu.memory_space<vmem>>, vector<8x1024xf32>
    %c5 = arith.constant 5 : index
    %c0_29 = arith.constant 0 : index
    %c0_30 = arith.constant 0 : index
    %37 = vector.load %arg6[%c5, %c0_29, %c0_30] : memref<27x1x1024xf32, #tpu.memory_space<vmem>>, vector<1x1x1024xf32>
    %38 = vector.shape_cast %37 : vector<1x1x1024xf32> to vector<1x1024xf32>
    %39 = vector.broadcast %38 : vector<1x1024xf32> to vector<8x1024xf32>
    %40 = arith.mulf %36, %39 : vector<8x1024xf32>
    %c40 = arith.constant 40 : index
    %c0_31 = arith.constant 0 : index
    %41 = vector.load %arg9[%c40, %c0_31] : memref<216x1024xf32, #tpu.memory_space<vmem>>, vector<8x1024xf32>
    tpu.vector_store %arg9[%c40, %c0_31], %40 {strides = array<i32>} : memref<216x1024xf32, #tpu.memory_space<vmem>>, vector<8x1024xf32>,
    %c0_32 = arith.constant 0 : index
    %c71 = arith.constant 71 : index
    %42 = vector.load %arg8[%c0_32, %c71] : memref<8x1280xf32, #tpu.memory_space<vmem>>, vector<8x1024xf32>
    %c6 = arith.constant 6 : index
    %c0_33 = arith.constant 0 : index
    %c0_34 = arith.constant 0 : index
    %43 = vector.load %arg6[%c6, %c0_33, %c0_34] : memref<27x1x1024xf32, #tpu.memory_space<vmem>>, vector<1x1x1024xf32>
    %44 = vector.shape_cast %43 : vector<1x1x1024xf32> to vector<1x1024xf32>
    %45 = vector.broadcast %44 : vector<1x1024xf32> to vector<8x1024xf32>
    %46 = arith.mulf %42, %45 : vector<8x1024xf32>
    %c48 = arith.constant 48 : index
    %c0_35 = arith.constant 0 : index
    %47 = vector.load %arg9[%c48, %c0_35] : memref<216x1024xf32, #tpu.memory_space<vmem>>, vector<8x1024xf32>
    tpu.vector_store %arg9[%c48, %c0_35], %46 {strides = array<i32>} : memref<216x1024xf32, #tpu.memory_space<vmem>>, vector<8x1024xf32>,
    %c0_36 = arith.constant 0 : index
    %c72 = arith.constant 72 : index
    %48 = vector.load %arg8[%c0_36, %c72] : memref<8x1280xf32, #tpu.memory_space<vmem>>, vector<8x1024xf32>
    %c7 = arith.constant 7 : index
    %c0_37 = arith.constant 0 : index
    %c0_38 = arith.constant 0 : index
    %49 = vector.load %arg6[%c7, %c0_37, %c0_38] : memref<27x1x1024xf32, #tpu.memory_space<vmem>>, vector<1x1x1024xf32>
    %50 = vector.shape_cast %49 : vector<1x1x1024xf32> to vector<1x1024xf32>
    %51 = vector.broadcast %50 : vector<1x1024xf32> to vector<8x1024xf32>
    %52 = arith.mulf %48, %51 : vector<8x1024xf32>
    %c56_39 = arith.constant 56 : index
    %c0_40 = arith.constant 0 : index
    %53 = vector.load %arg9[%c56_39, %c0_40] : memref<216x1024xf32, #tpu.memory_space<vmem>>, vector<8x1024xf32>
    tpu.vector_store %arg9[%c56_39, %c0_40], %52 {strides = array<i32>} : memref<216x1024xf32, #tpu.memory_space<vmem>>, vector<8x1024xf32>,
    %c0_41 = arith.constant 0 : index
    %c73 = arith.constant 73 : index
    %54 = vector.load %arg8[%c0_41, %c73] : memref<8x1280xf32, #tpu.memory_space<vmem>>, vector<8x1024xf32>
    %c8_42 = arith.constant 8 : index
    %c0_43 = arith.constant 0 : index
    %c0_44 = arith.constant 0 : index
    %55 = vector.load %arg6[%c8_42, %c0_43, %c0_44] : memref<27x1x1024xf32, #tpu.memory_space<vmem>>, vector<1x1x1024xf32>
    %56 = vector.shape_cast %55 : vector<1x1x1024xf32> to vector<1x1024xf32>
    %57 = vector.broadcast %56 : vector<1x1024xf32> to vector<8x1024xf32>
    %58 = arith.mulf %54, %57 : vector<8x1024xf32>
    %c64_45 = arith.constant 64 : index
    %c0_46 = arith.constant 0 : index
    %59 = vector.load %arg9[%c64_45, %c0_46] : memref<216x1024xf32, #tpu.memory_space<vmem>>, vector<8x1024xf32>
    tpu.vector_store %arg9[%c64_45, %c0_46], %58 {strides = array<i32>} : memref<216x1024xf32, #tpu.memory_space<vmem>>, vector<8x1024xf32>,
    %c0_47 = arith.constant 0 : index
    %c119 = arith.constant 119 : index
    %60 = vector.load %arg8[%c0_47, %c119] : memref<8x1280xf32, #tpu.memory_space<vmem>>, vector<8x1024xf32>
    %c9 = arith.constant 9 : index
    %c0_48 = arith.constant 0 : index
    %c0_49 = arith.constant 0 : index
    %61 = vector.load %arg6[%c9, %c0_48, %c0_49] : memref<27x1x1024xf32, #tpu.memory_space<vmem>>, vector<1x1x1024xf32>
    %62 = vector.shape_cast %61 : vector<1x1x1024xf32> to vector<1x1024xf32>
    %63 = vector.broadcast %62 : vector<1x1024xf32> to vector<8x1024xf32>
    %64 = arith.mulf %60, %63 : vector<8x1024xf32>
    %c72_50 = arith.constant 72 : index
    %c0_51 = arith.constant 0 : index
    %65 = vector.load %arg9[%c72_50, %c0_51] : memref<216x1024xf32, #tpu.memory_space<vmem>>, vector<8x1024xf32>
    tpu.vector_store %arg9[%c72_50, %c0_51], %64 {strides = array<i32>} : memref<216x1024xf32, #tpu.memory_space<vmem>>, vector<8x1024xf32>,
    %c0_52 = arith.constant 0 : index
    %c120 = arith.constant 120 : index
    %66 = vector.load %arg8[%c0_52, %c120] : memref<8x1280xf32, #tpu.memory_space<vmem>>, vector<8x1024xf32>
    %c10 = arith.constant 10 : index
    %c0_53 = arith.constant 0 : index
    %c0_54 = arith.constant 0 : index
    %67 = vector.load %arg6[%c10, %c0_53, %c0_54] : memref<27x1x1024xf32, #tpu.memory_space<vmem>>, vector<1x1x1024xf32>
    %68 = vector.shape_cast %67 : vector<1x1x1024xf32> to vector<1x1024xf32>
    %69 = vector.broadcast %68 : vector<1x1024xf32> to vector<8x1024xf32>
    %70 = arith.mulf %66, %69 : vector<8x1024xf32>
    %c80 = arith.constant 80 : index
    %c0_55 = arith.constant 0 : index
    %71 = vector.load %arg9[%c80, %c0_55] : memref<216x1024xf32, #tpu.memory_space<vmem>>, vector<8x1024xf32>
    tpu.vector_store %arg9[%c80, %c0_55], %70 {strides = array<i32>} : memref<216x1024xf32, #tpu.memory_space<vmem>>, vector<8x1024xf32>,
    %c0_56 = arith.constant 0 : index
    %c121 = arith.constant 121 : index
    %72 = vector.load %arg8[%c0_56, %c121] : memref<8x1280xf32, #tpu.memory_space<vmem>>, vector<8x1024xf32>
    %c11 = arith.constant 11 : index
    %c0_57 = arith.constant 0 : index
    %c0_58 = arith.constant 0 : index
    %73 = vector.load %arg6[%c11, %c0_57, %c0_58] : memref<27x1x1024xf32, #tpu.memory_space<vmem>>, vector<1x1x1024xf32>
    %74 = vector.shape_cast %73 : vector<1x1x1024xf32> to vector<1x1024xf32>
    %75 = vector.broadcast %74 : vector<1x1024xf32> to vector<8x1024xf32>
    %76 = arith.mulf %72, %75 : vector<8x1024xf32>
    %c88 = arith.constant 88 : index
    %c0_59 = arith.constant 0 : index
    %77 = vector.load %arg9[%c88, %c0_59] : memref<216x1024xf32, #tpu.memory_space<vmem>>, vector<8x1024xf32>
    tpu.vector_store %arg9[%c88, %c0_59], %76 {strides = array<i32>} : memref<216x1024xf32, #tpu.memory_space<vmem>>, vector<8x1024xf32>,
    %c0_60 = arith.constant 0 : index
    %c127 = arith.constant 127 : index
    %78 = vector.load %arg8[%c0_60, %c127] : memref<8x1280xf32, #tpu.memory_space<vmem>>, vector<8x1024xf32>
    %c12 = arith.constant 12 : index
    %c0_61 = arith.constant 0 : index
    %c0_62 = arith.constant 0 : index
    %79 = vector.load %arg6[%c12, %c0_61, %c0_62] : memref<27x1x1024xf32, #tpu.memory_space<vmem>>, vector<1x1x1024xf32>
    %80 = vector.shape_cast %79 : vector<1x1x1024xf32> to vector<1x1024xf32>
    %81 = vector.broadcast %80 : vector<1x1024xf32> to vector<8x1024xf32>
    %82 = arith.mulf %78, %81 : vector<8x1024xf32>
    %c96 = arith.constant 96 : index
    %c0_63 = arith.constant 0 : index
    %83 = vector.load %arg9[%c96, %c0_63] : memref<216x1024xf32, #tpu.memory_space<vmem>>, vector<8x1024xf32>
    tpu.vector_store %arg9[%c96, %c0_63], %82 {strides = array<i32>} : memref<216x1024xf32, #tpu.memory_space<vmem>>, vector<8x1024xf32>,
    %c0_64 = arith.constant 0 : index
    %c128_65 = arith.constant 128 : index
    %84 = vector.load %arg8[%c0_64, %c128_65] : memref<8x1280xf32, #tpu.memory_space<vmem>>, vector<8x1024xf32>
    %c13 = arith.constant 13 : index
    %c0_66 = arith.constant 0 : index
    %c0_67 = arith.constant 0 : index
    %85 = vector.load %arg6[%c13, %c0_66, %c0_67] : memref<27x1x1024xf32, #tpu.memory_space<vmem>>, vector<1x1x1024xf32>
    %86 = vector.shape_cast %85 : vector<1x1x1024xf32> to vector<1x1024xf32>
    %87 = vector.broadcast %86 : vector<1x1024xf32> to vector<8x1024xf32>
    %88 = arith.mulf %84, %87 : vector<8x1024xf32>
    %c104 = arith.constant 104 : index
    %c0_68 = arith.constant 0 : index
    %89 = vector.load %arg9[%c104, %c0_68] : memref<216x1024xf32, #tpu.memory_space<vmem>>, vector<8x1024xf32>
    tpu.vector_store %arg9[%c104, %c0_68], %88 {strides = array<i32>} : memref<216x1024xf32, #tpu.memory_space<vmem>>, vector<8x1024xf32>,
    %c0_69 = arith.constant 0 : index
    %c129 = arith.constant 129 : index
    %90 = vector.load %arg8[%c0_69, %c129] : memref<8x1280xf32, #tpu.memory_space<vmem>>, vector<8x1024xf32>
    %c14 = arith.constant 14 : index
    %c0_70 = arith.constant 0 : index
    %c0_71 = arith.constant 0 : index
    %91 = vector.load %arg6[%c14, %c0_70, %c0_71] : memref<27x1x1024xf32, #tpu.memory_space<vmem>>, vector<1x1x1024xf32>
    %92 = vector.shape_cast %91 : vector<1x1x1024xf32> to vector<1x1024xf32>
    %93 = vector.broadcast %92 : vector<1x1024xf32> to vector<8x1024xf32>
    %94 = arith.mulf %90, %93 : vector<8x1024xf32>
    %c112 = arith.constant 112 : index
    %c0_72 = arith.constant 0 : index
    %95 = vector.load %arg9[%c112, %c0_72] : memref<216x1024xf32, #tpu.memory_space<vmem>>, vector<8x1024xf32>
    tpu.vector_store %arg9[%c112, %c0_72], %94 {strides = array<i32>} : memref<216x1024xf32, #tpu.memory_space<vmem>>, vector<8x1024xf32>,
    %c0_73 = arith.constant 0 : index
    %c135 = arith.constant 135 : index
    %96 = vector.load %arg8[%c0_73, %c135] : memref<8x1280xf32, #tpu.memory_space<vmem>>, vector<8x1024xf32>
    %c15 = arith.constant 15 : index
    %c0_74 = arith.constant 0 : index
    %c0_75 = arith.constant 0 : index
    %97 = vector.load %arg6[%c15, %c0_74, %c0_75] : memref<27x1x1024xf32, #tpu.memory_space<vmem>>, vector<1x1x1024xf32>
    %98 = vector.shape_cast %97 : vector<1x1x1024xf32> to vector<1x1024xf32>
    %99 = vector.broadcast %98 : vector<1x1024xf32> to vector<8x1024xf32>
    %100 = arith.mulf %96, %99 : vector<8x1024xf32>
    %c120_76 = arith.constant 120 : index
    %c0_77 = arith.constant 0 : index
    %101 = vector.load %arg9[%c120_76, %c0_77] : memref<216x1024xf32, #tpu.memory_space<vmem>>, vector<8x1024xf32>
    tpu.vector_store %arg9[%c120_76, %c0_77], %100 {strides = array<i32>} : memref<216x1024xf32, #tpu.memory_space<vmem>>, vector<8x1024xf32>,
    %c0_78 = arith.constant 0 : index
    %c136 = arith.constant 136 : index
    %102 = vector.load %arg8[%c0_78, %c136] : memref<8x1280xf32, #tpu.memory_space<vmem>>, vector<8x1024xf32>
    %c16_79 = arith.constant 16 : index
    %c0_80 = arith.constant 0 : index
    %c0_81 = arith.constant 0 : index
    %103 = vector.load %arg6[%c16_79, %c0_80, %c0_81] : memref<27x1x1024xf32, #tpu.memory_space<vmem>>, vector<1x1x1024xf32>
    %104 = vector.shape_cast %103 : vector<1x1x1024xf32> to vector<1x1024xf32>
    %105 = vector.broadcast %104 : vector<1x1024xf32> to vector<8x1024xf32>
    %106 = arith.mulf %102, %105 : vector<8x1024xf32>
    %c128_82 = arith.constant 128 : index
    %c0_83 = arith.constant 0 : index
    %107 = vector.load %arg9[%c128_82, %c0_83] : memref<216x1024xf32, #tpu.memory_space<vmem>>, vector<8x1024xf32>
    tpu.vector_store %arg9[%c128_82, %c0_83], %106 {strides = array<i32>} : memref<216x1024xf32, #tpu.memory_space<vmem>>, vector<8x1024xf32>,
    %c0_84 = arith.constant 0 : index
    %c137 = arith.constant 137 : index
    %108 = vector.load %arg8[%c0_84, %c137] : memref<8x1280xf32, #tpu.memory_space<vmem>>, vector<8x1024xf32>
    %c17 = arith.constant 17 : index
    %c0_85 = arith.constant 0 : index
    %c0_86 = arith.constant 0 : index
    %109 = vector.load %arg6[%c17, %c0_85, %c0_86] : memref<27x1x1024xf32, #tpu.memory_space<vmem>>, vector<1x1x1024xf32>
    %110 = vector.shape_cast %109 : vector<1x1x1024xf32> to vector<1x1024xf32>
    %111 = vector.broadcast %110 : vector<1x1024xf32> to vector<8x1024xf32>
    %112 = arith.mulf %108, %111 : vector<8x1024xf32>
    %c136_87 = arith.constant 136 : index
    %c0_88 = arith.constant 0 : index
    %113 = vector.load %arg9[%c136_87, %c0_88] : memref<216x1024xf32, #tpu.memory_space<vmem>>, vector<8x1024xf32>
    tpu.vector_store %arg9[%c136_87, %c0_88], %112 {strides = array<i32>} : memref<216x1024xf32, #tpu.memory_space<vmem>>, vector<8x1024xf32>,
    %c0_89 = arith.constant 0 : index
    %c183 = arith.constant 183 : index
    %114 = vector.load %arg8[%c0_89, %c183] : memref<8x1280xf32, #tpu.memory_space<vmem>>, vector<8x1024xf32>
    %c18 = arith.constant 18 : index
    %c0_90 = arith.constant 0 : index
    %c0_91 = arith.constant 0 : index
    %115 = vector.load %arg6[%c18, %c0_90, %c0_91] : memref<27x1x1024xf32, #tpu.memory_space<vmem>>, vector<1x1x1024xf32>
    %116 = vector.shape_cast %115 : vector<1x1x1024xf32> to vector<1x1024xf32>
    %117 = vector.broadcast %116 : vector<1x1024xf32> to vector<8x1024xf32>
    %118 = arith.mulf %114, %117 : vector<8x1024xf32>
    %c144 = arith.constant 144 : index
    %c0_92 = arith.constant 0 : index
    %119 = vector.load %arg9[%c144, %c0_92] : memref<216x1024xf32, #tpu.memory_space<vmem>>, vector<8x1024xf32>
    tpu.vector_store %arg9[%c144, %c0_92], %118 {strides = array<i32>} : memref<216x1024xf32, #tpu.memory_space<vmem>>, vector<8x1024xf32>,
    %c0_93 = arith.constant 0 : index
    %c184 = arith.constant 184 : index
    %120 = vector.load %arg8[%c0_93, %c184] : memref<8x1280xf32, #tpu.memory_space<vmem>>, vector<8x1024xf32>
    %c19 = arith.constant 19 : index
    %c0_94 = arith.constant 0 : index
    %c0_95 = arith.constant 0 : index
    %121 = vector.load %arg6[%c19, %c0_94, %c0_95] : memref<27x1x1024xf32, #tpu.memory_space<vmem>>, vector<1x1x1024xf32>
    %122 = vector.shape_cast %121 : vector<1x1x1024xf32> to vector<1x1024xf32>
    %123 = vector.broadcast %122 : vector<1x1024xf32> to vector<8x1024xf32>
    %124 = arith.mulf %120, %123 : vector<8x1024xf32>
    %c152 = arith.constant 152 : index
    %c0_96 = arith.constant 0 : index
    %125 = vector.load %arg9[%c152, %c0_96] : memref<216x1024xf32, #tpu.memory_space<vmem>>, vector<8x1024xf32>
    tpu.vector_store %arg9[%c152, %c0_96], %124 {strides = array<i32>} : memref<216x1024xf32, #tpu.memory_space<vmem>>, vector<8x1024xf32>,
    %c0_97 = arith.constant 0 : index
    %c185 = arith.constant 185 : index
    %126 = vector.load %arg8[%c0_97, %c185] : memref<8x1280xf32, #tpu.memory_space<vmem>>, vector<8x1024xf32>
    %c20 = arith.constant 20 : index
    %c0_98 = arith.constant 0 : index
    %c0_99 = arith.constant 0 : index
    %127 = vector.load %arg6[%c20, %c0_98, %c0_99] : memref<27x1x1024xf32, #tpu.memory_space<vmem>>, vector<1x1x1024xf32>
    %128 = vector.shape_cast %127 : vector<1x1x1024xf32> to vector<1x1024xf32>
    %129 = vector.broadcast %128 : vector<1x1024xf32> to vector<8x1024xf32>
    %130 = arith.mulf %126, %129 : vector<8x1024xf32>
    %c160 = arith.constant 160 : index
    %c0_100 = arith.constant 0 : index
    %131 = vector.load %arg9[%c160, %c0_100] : memref<216x1024xf32, #tpu.memory_space<vmem>>, vector<8x1024xf32>
    tpu.vector_store %arg9[%c160, %c0_100], %130 {strides = array<i32>} : memref<216x1024xf32, #tpu.memory_space<vmem>>, vector<8x1024xf32>,
    %c0_101 = arith.constant 0 : index
    %c191 = arith.constant 191 : index
    %132 = vector.load %arg8[%c0_101, %c191] : memref<8x1280xf32, #tpu.memory_space<vmem>>, vector<8x1024xf32>
    %c21 = arith.constant 21 : index
    %c0_102 = arith.constant 0 : index
    %c0_103 = arith.constant 0 : index
    %133 = vector.load %arg6[%c21, %c0_102, %c0_103] : memref<27x1x1024xf32, #tpu.memory_space<vmem>>, vector<1x1x1024xf32>
    %134 = vector.shape_cast %133 : vector<1x1x1024xf32> to vector<1x1024xf32>
    %135 = vector.broadcast %134 : vector<1x1024xf32> to vector<8x1024xf32>
    %136 = arith.mulf %132, %135 : vector<8x1024xf32>
    %c168 = arith.constant 168 : index
    %c0_104 = arith.constant 0 : index
    %137 = vector.load %arg9[%c168, %c0_104] : memref<216x1024xf32, #tpu.memory_space<vmem>>, vector<8x1024xf32>
    tpu.vector_store %arg9[%c168, %c0_104], %136 {strides = array<i32>} : memref<216x1024xf32, #tpu.memory_space<vmem>>, vector<8x1024xf32>,
    %c0_105 = arith.constant 0 : index
    %c192 = arith.constant 192 : index
    %138 = vector.load %arg8[%c0_105, %c192] : memref<8x1280xf32, #tpu.memory_space<vmem>>, vector<8x1024xf32>
    %c22 = arith.constant 22 : index
    %c0_106 = arith.constant 0 : index
    %c0_107 = arith.constant 0 : index
    %139 = vector.load %arg6[%c22, %c0_106, %c0_107] : memref<27x1x1024xf32, #tpu.memory_space<vmem>>, vector<1x1x1024xf32>
    %140 = vector.shape_cast %139 : vector<1x1x1024xf32> to vector<1x1024xf32>
    %141 = vector.broadcast %140 : vector<1x1024xf32> to vector<8x1024xf32>
    %142 = arith.mulf %138, %141 : vector<8x1024xf32>
    %c176 = arith.constant 176 : index
    %c0_108 = arith.constant 0 : index
    %143 = vector.load %arg9[%c176, %c0_108] : memref<216x1024xf32, #tpu.memory_space<vmem>>, vector<8x1024xf32>
    tpu.vector_store %arg9[%c176, %c0_108], %142 {strides = array<i32>} : memref<216x1024xf32, #tpu.memory_space<vmem>>, vector<8x1024xf32>,
    %c0_109 = arith.constant 0 : index
    %c193 = arith.constant 193 : index
    %144 = vector.load %arg8[%c0_109, %c193] : memref<8x1280xf32, #tpu.memory_space<vmem>>, vector<8x1024xf32>
    %c23 = arith.constant 23 : index
    %c0_110 = arith.constant 0 : index
    %c0_111 = arith.constant 0 : index
    %145 = vector.load %arg6[%c23, %c0_110, %c0_111] : memref<27x1x1024xf32, #tpu.memory_space<vmem>>, vector<1x1x1024xf32>
    %146 = vector.shape_cast %145 : vector<1x1x1024xf32> to vector<1x1024xf32>
    %147 = vector.broadcast %146 : vector<1x1024xf32> to vector<8x1024xf32>
    %148 = arith.mulf %144, %147 : vector<8x1024xf32>
    %c184_112 = arith.constant 184 : index
    %c0_113 = arith.constant 0 : index
    %149 = vector.load %arg9[%c184_112, %c0_113] : memref<216x1024xf32, #tpu.memory_space<vmem>>, vector<8x1024xf32>
    tpu.vector_store %arg9[%c184_112, %c0_113], %148 {strides = array<i32>} : memref<216x1024xf32, #tpu.memory_space<vmem>>, vector<8x1024xf32>,
    %c0_114 = arith.constant 0 : index
    %c199 = arith.constant 199 : index
    %150 = vector.load %arg8[%c0_114, %c199] : memref<8x1280xf32, #tpu.memory_space<vmem>>, vector<8x1024xf32>
    %c24_115 = arith.constant 24 : index
    %c0_116 = arith.constant 0 : index
    %c0_117 = arith.constant 0 : index
    %151 = vector.load %arg6[%c24_115, %c0_116, %c0_117] : memref<27x1x1024xf32, #tpu.memory_space<vmem>>, vector<1x1x1024xf32>
    %152 = vector.shape_cast %151 : vector<1x1x1024xf32> to vector<1x1024xf32>
    %153 = vector.broadcast %152 : vector<1x1024xf32> to vector<8x1024xf32>
    %154 = arith.mulf %150, %153 : vector<8x1024xf32>
    %c192_118 = arith.constant 192 : index
    %c0_119 = arith.constant 0 : index
    %155 = vector.load %arg9[%c192_118, %c0_119] : memref<216x1024xf32, #tpu.memory_space<vmem>>, vector<8x1024xf32>
    tpu.vector_store %arg9[%c192_118, %c0_119], %154 {strides = array<i32>} : memref<216x1024xf32, #tpu.memory_space<vmem>>, vector<8x1024xf32>,
    %c0_120 = arith.constant 0 : index
    %c200 = arith.constant 200 : index
    %156 = vector.load %arg8[%c0_120, %c200] : memref<8x1280xf32, #tpu.memory_space<vmem>>, vector<8x1024xf32>
    %c25 = arith.constant 25 : index
    %c0_121 = arith.constant 0 : index
    %c0_122 = arith.constant 0 : index
    %157 = vector.load %arg6[%c25, %c0_121, %c0_122] : memref<27x1x1024xf32, #tpu.memory_space<vmem>>, vector<1x1x1024xf32>
    %158 = vector.shape_cast %157 : vector<1x1x1024xf32> to vector<1x1024xf32>
    %159 = vector.broadcast %158 : vector<1x1024xf32> to vector<8x1024xf32>
    %160 = arith.mulf %156, %159 : vector<8x1024xf32>
    %c200_123 = arith.constant 200 : index
    %c0_124 = arith.constant 0 : index
    %161 = vector.load %arg9[%c200_123, %c0_124] : memref<216x1024xf32, #tpu.memory_space<vmem>>, vector<8x1024xf32>
    tpu.vector_store %arg9[%c200_123, %c0_124], %160 {strides = array<i32>} : memref<216x1024xf32, #tpu.memory_space<vmem>>, vector<8x1024xf32>,
    %c0_125 = arith.constant 0 : index
    %c201 = arith.constant 201 : index
    %162 = vector.load %arg8[%c0_125, %c201] : memref<8x1280xf32, #tpu.memory_space<vmem>>, vector<8x1024xf32>
    %c26 = arith.constant 26 : index
    %c0_126 = arith.constant 0 : index
    %c0_127 = arith.constant 0 : index
    %163 = vector.load %arg6[%c26, %c0_126, %c0_127] : memref<27x1x1024xf32, #tpu.memory_space<vmem>>, vector<1x1x1024xf32>
    %164 = vector.shape_cast %163 : vector<1x1x1024xf32> to vector<1x1024xf32>
    %165 = vector.broadcast %164 : vector<1x1024xf32> to vector<8x1024xf32>
    %166 = arith.mulf %162, %165 : vector<8x1024xf32>
    %c208 = arith.constant 208 : index
    %c0_128 = arith.constant 0 : index
    %167 = vector.load %arg9[%c208, %c0_128] : memref<216x1024xf32, #tpu.memory_space<vmem>>, vector<8x1024xf32>
    tpu.vector_store %arg9[%c208, %c0_128], %166 {strides = array<i32>} : memref<216x1024xf32, #tpu.memory_space<vmem>>, vector<8x1024xf32>,
    %c0_129 = arith.constant 0 : index
    %c0_130 = arith.constant 0 : index
    %168 = vector.load %arg2[%c0_129, %c0_130] : memref<8x216xbf16, #tpu.memory_space<vmem>>, vector<8x216xbf16>
    %c0_131 = arith.constant 0 : index
    %c0_132 = arith.constant 0 : index
    %169 = vector.load %arg9[%c0_131, %c0_132] : memref<216x1024xf32, #tpu.memory_space<vmem>>, vector<216x1024xf32>
    %170 = arith.truncf %169 : vector<216x1024xf32> to vector<216x1024xbf16>
    %cst_133 = arith.constant dense<0.000000e+00> : vector<8x1024xf32>
    %171 = tpu.matmul %168, %170, %cst_133 {dimension_numbers = #tpu.dot_dimension_numbers<[1], [0], [0], [1], [0, 0, 1, 1], [], []>} : vector<8x216xbf16>, vector<216x1024xbf16>, vector<8x1024xf32> -> vector<8x1024xf32>
    %c0_134 = arith.constant 0 : index
    %c0_135 = arith.constant 0 : index
    %172 = vector.load %arg3[%c0_134, %c0_135] : memref<8x1xf32, #tpu.memory_space<vmem>>, vector<8x1xf32>
    %173 = vector.broadcast %172 : vector<8x1xf32> to vector<8x1024xf32>
    %174 = arith.addf %171, %173 : vector<8x1024xf32>
    %cst_136 = arith.constant 0.000000e+00 : f32
    %175 = vector.broadcast %cst_136 : f32 to vector<8x1024xf32>
    %176 = arith.cmpf oge, %174, %175 : vector<8x1024xf32>
    %cst_137 = arith.constant 0.00999999977 : f32
    %177 = vector.broadcast %cst_137 : f32 to vector<8x1024xf32>
    %178 = arith.mulf %177, %174 : vector<8x1024xf32>
    %179 = arith.select %176, %174, %178 : vector<8x1024xi1>, vector<8x1024xf32>
    %c0_138 = arith.constant 0 : index
    %c128_139 = arith.constant 128 : index
    %180 = vector.load %arg8[%c0_138, %c128_139] : memref<8x1280xf32, #tpu.memory_space<vmem>>, vector<8x1024xf32>
    tpu.vector_store %arg8[%c0_138, %c128_139], %179 {strides = array<i32>} : memref<8x1280xf32, #tpu.memory_space<vmem>>, vector<8x1024xf32>,
    %c0_140 = arith.constant 0 : index
    %c55_141 = arith.constant 55 : index
    %181 = vector.load %arg8[%c0_140, %c55_141] : memref<8x1280xf32, #tpu.memory_space<vmem>>, vector<8x1024xf32>
    %c0_142 = arith.constant 0 : index
    %c0_143 = arith.constant 0 : index
    %c0_144 = arith.constant 0 : index
    %182 = vector.load %arg6[%c0_142, %c0_143, %c0_144] : memref<27x1x1024xf32, #tpu.memory_space<vmem>>, vector<1x1x1024xf32>
    %183 = vector.shape_cast %182 : vector<1x1x1024xf32> to vector<1x1024xf32>
    %184 = vector.broadcast %183 : vector<1x1024xf32> to vector<8x1024xf32>
    %185 = arith.mulf %181, %184 : vector<8x1024xf32>
    %c0_145 = arith.constant 0 : index
    %c0_146 = arith.constant 0 : index
    %186 = vector.load %arg9[%c0_145, %c0_146] : memref<216x1024xf32, #tpu.memory_space<vmem>>, vector<8x1024xf32>
    tpu.vector_store %arg9[%c0_145, %c0_146], %185 {strides = array<i32>} : memref<216x1024xf32, #tpu.memory_space<vmem>>, vector<8x1024xf32>,
    %c0_147 = arith.constant 0 : index
    %c56_148 = arith.constant 56 : index
    %187 = vector.load %arg8[%c0_147, %c56_148] : memref<8x1280xf32, #tpu.memory_space<vmem>>, vector<8x1024xf32>
    %c1_149 = arith.constant 1 : index
    %c0_150 = arith.constant 0 : index
    %c0_151 = arith.constant 0 : index
    %188 = vector.load %arg6[%c1_149, %c0_150, %c0_151] : memref<27x1x1024xf32, #tpu.memory_space<vmem>>, vector<1x1x1024xf32>
    %189 = vector.shape_cast %188 : vector<1x1x1024xf32> to vector<1x1024xf32>
    %190 = vector.broadcast %189 : vector<1x1024xf32> to vector<8x1024xf32>
    %191 = arith.mulf %187, %190 : vector<8x1024xf32>
    %c8_152 = arith.constant 8 : index
    %c0_153 = arith.constant 0 : index
    %192 = vector.load %arg9[%c8_152, %c0_153] : memref<216x1024xf32, #tpu.memory_space<vmem>>, vector<8x1024xf32>
    tpu.vector_store %arg9[%c8_152, %c0_153], %191 {strides = array<i32>} : memref<216x1024xf32, #tpu.memory_space<vmem>>, vector<8x1024xf32>,
    %c0_154 = arith.constant 0 : index
    %c57_155 = arith.constant 57 : index
    %193 = vector.load %arg8[%c0_154, %c57_155] : memref<8x1280xf32, #tpu.memory_space<vmem>>, vector<8x1024xf32>
    %c2_156 = arith.constant 2 : index
    %c0_157 = arith.constant 0 : index
    %c0_158 = arith.constant 0 : index
    %194 = vector.load %arg6[%c2_156, %c0_157, %c0_158] : memref<27x1x1024xf32, #tpu.memory_space<vmem>>, vector<1x1x1024xf32>
    %195 = vector.shape_cast %194 : vector<1x1x1024xf32> to vector<1x1024xf32>
    %196 = vector.broadcast %195 : vector<1x1024xf32> to vector<8x1024xf32>
    %197 = arith.mulf %193, %196 : vector<8x1024xf32>
    %c16_159 = arith.constant 16 : index
    %c0_160 = arith.constant 0 : index
    %198 = vector.load %arg9[%c16_159, %c0_160] : memref<216x1024xf32, #tpu.memory_space<vmem>>, vector<8x1024xf32>
    tpu.vector_store %arg9[%c16_159, %c0_160], %197 {strides = array<i32>} : memref<216x1024xf32, #tpu.memory_space<vmem>>, vector<8x1024xf32>,
    %c0_161 = arith.constant 0 : index
    %c63_162 = arith.constant 63 : index
    %199 = vector.load %arg8[%c0_161, %c63_162] : memref<8x1280xf32, #tpu.memory_space<vmem>>, vector<8x1024xf32>
    %c3_163 = arith.constant 3 : index
    %c0_164 = arith.constant 0 : index
    %c0_165 = arith.constant 0 : index
    %200 = vector.load %arg6[%c3_163, %c0_164, %c0_165] : memref<27x1x1024xf32, #tpu.memory_space<vmem>>, vector<1x1x1024xf32>
    %201 = vector.shape_cast %200 : vector<1x1x1024xf32> to vector<1x1024xf32>
    %202 = vector.broadcast %201 : vector<1x1024xf32> to vector<8x1024xf32>
    %203 = arith.mulf %199, %202 : vector<8x1024xf32>
    %c24_166 = arith.constant 24 : index
    %c0_167 = arith.constant 0 : index
    %204 = vector.load %arg9[%c24_166, %c0_167] : memref<216x1024xf32, #tpu.memory_space<vmem>>, vector<8x1024xf32>
    tpu.vector_store %arg9[%c24_166, %c0_167], %203 {strides = array<i32>} : memref<216x1024xf32, #tpu.memory_space<vmem>>, vector<8x1024xf32>,
    %c0_168 = arith.constant 0 : index
    %c64_169 = arith.constant 64 : index
    %205 = vector.load %arg8[%c0_168, %c64_169] : memref<8x1280xf32, #tpu.memory_space<vmem>>, vector<8x1024xf32>
    %c4_170 = arith.constant 4 : index
    %c0_171 = arith.constant 0 : index
    %c0_172 = arith.constant 0 : index
    %206 = vector.load %arg6[%c4_170, %c0_171, %c0_172] : memref<27x1x1024xf32, #tpu.memory_space<vmem>>, vector<1x1x1024xf32>
    %207 = vector.shape_cast %206 : vector<1x1x1024xf32> to vector<1x1024xf32>
    %208 = vector.broadcast %207 : vector<1x1024xf32> to vector<8x1024xf32>
    %209 = arith.mulf %205, %208 : vector<8x1024xf32>
    %c32_173 = arith.constant 32 : index
    %c0_174 = arith.constant 0 : index
    %210 = vector.load %arg9[%c32_173, %c0_174] : memref<216x1024xf32, #tpu.memory_space<vmem>>, vector<8x1024xf32>
    tpu.vector_store %arg9[%c32_173, %c0_174], %209 {strides = array<i32>} : memref<216x1024xf32, #tpu.memory_space<vmem>>, vector<8x1024xf32>,
    %c0_175 = arith.constant 0 : index
    %c65_176 = arith.constant 65 : index
    %211 = vector.load %arg8[%c0_175, %c65_176] : memref<8x1280xf32, #tpu.memory_space<vmem>>, vector<8x1024xf32>
    %c5_177 = arith.constant 5 : index
    %c0_178 = arith.constant 0 : index
    %c0_179 = arith.constant 0 : index
    %212 = vector.load %arg6[%c5_177, %c0_178, %c0_179] : memref<27x1x1024xf32, #tpu.memory_space<vmem>>, vector<1x1x1024xf32>
    %213 = vector.shape_cast %212 : vector<1x1x1024xf32> to vector<1x1024xf32>
    %214 = vector.broadcast %213 : vector<1x1024xf32> to vector<8x1024xf32>
    %215 = arith.mulf %211, %214 : vector<8x1024xf32>
    %c40_180 = arith.constant 40 : index
    %c0_181 = arith.constant 0 : index
    %216 = vector.load %arg9[%c40_180, %c0_181] : memref<216x1024xf32, #tpu.memory_space<vmem>>, vector<8x1024xf32>
    tpu.vector_store %arg9[%c40_180, %c0_181], %215 {strides = array<i32>} : memref<216x1024xf32, #tpu.memory_space<vmem>>, vector<8x1024xf32>,
    %c0_182 = arith.constant 0 : index
    %c71_183 = arith.constant 71 : index
    %217 = vector.load %arg8[%c0_182, %c71_183] : memref<8x1280xf32, #tpu.memory_space<vmem>>, vector<8x1024xf32>
    %c6_184 = arith.constant 6 : index
    %c0_185 = arith.constant 0 : index
    %c0_186 = arith.constant 0 : index
    %218 = vector.load %arg6[%c6_184, %c0_185, %c0_186] : memref<27x1x1024xf32, #tpu.memory_space<vmem>>, vector<1x1x1024xf32>
    %219 = vector.shape_cast %218 : vector<1x1x1024xf32> to vector<1x1024xf32>
    %220 = vector.broadcast %219 : vector<1x1024xf32> to vector<8x1024xf32>
    %221 = arith.mulf %217, %220 : vector<8x1024xf32>
    %c48_187 = arith.constant 48 : index
    %c0_188 = arith.constant 0 : index
    %222 = vector.load %arg9[%c48_187, %c0_188] : memref<216x1024xf32, #tpu.memory_space<vmem>>, vector<8x1024xf32>
    tpu.vector_store %arg9[%c48_187, %c0_188], %221 {strides = array<i32>} : memref<216x1024xf32, #tpu.memory_space<vmem>>, vector<8x1024xf32>,
    %c0_189 = arith.constant 0 : index
    %c72_190 = arith.constant 72 : index
    %223 = vector.load %arg8[%c0_189, %c72_190] : memref<8x1280xf32, #tpu.memory_space<vmem>>, vector<8x1024xf32>
    %c7_191 = arith.constant 7 : index
    %c0_192 = arith.constant 0 : index
    %c0_193 = arith.constant 0 : index
    %224 = vector.load %arg6[%c7_191, %c0_192, %c0_193] : memref<27x1x1024xf32, #tpu.memory_space<vmem>>, vector<1x1x1024xf32>
    %225 = vector.shape_cast %224 : vector<1x1x1024xf32> to vector<1x1024xf32>
    %226 = vector.broadcast %225 : vector<1x1024xf32> to vector<8x1024xf32>
    %227 = arith.mulf %223, %226 : vector<8x1024xf32>
    %c56_194 = arith.constant 56 : index
    %c0_195 = arith.constant 0 : index
    %228 = vector.load %arg9[%c56_194, %c0_195] : memref<216x1024xf32, #tpu.memory_space<vmem>>, vector<8x1024xf32>
    tpu.vector_store %arg9[%c56_194, %c0_195], %227 {strides = array<i32>} : memref<216x1024xf32, #tpu.memory_space<vmem>>, vector<8x1024xf32>,
    %c0_196 = arith.constant 0 : index
    %c73_197 = arith.constant 73 : index
    %229 = vector.load %arg8[%c0_196, %c73_197] : memref<8x1280xf32, #tpu.memory_space<vmem>>, vector<8x1024xf32>
    %c8_198 = arith.constant 8 : index
    %c0_199 = arith.constant 0 : index
    %c0_200 = arith.constant 0 : index
    %230 = vector.load %arg6[%c8_198, %c0_199, %c0_200] : memref<27x1x1024xf32, #tpu.memory_space<vmem>>, vector<1x1x1024xf32>
    %231 = vector.shape_cast %230 : vector<1x1x1024xf32> to vector<1x1024xf32>
    %232 = vector.broadcast %231 : vector<1x1024xf32> to vector<8x1024xf32>
    %233 = arith.mulf %229, %232 : vector<8x1024xf32>
    %c64_201 = arith.constant 64 : index
    %c0_202 = arith.constant 0 : index
    %234 = vector.load %arg9[%c64_201, %c0_202] : memref<216x1024xf32, #tpu.memory_space<vmem>>, vector<8x1024xf32>
    tpu.vector_store %arg9[%c64_201, %c0_202], %233 {strides = array<i32>} : memref<216x1024xf32, #tpu.memory_space<vmem>>, vector<8x1024xf32>,
    %c0_203 = arith.constant 0 : index
    %c119_204 = arith.constant 119 : index
    %235 = vector.load %arg8[%c0_203, %c119_204] : memref<8x1280xf32, #tpu.memory_space<vmem>>, vector<8x1024xf32>
    %c9_205 = arith.constant 9 : index
    %c0_206 = arith.constant 0 : index
    %c0_207 = arith.constant 0 : index
    %236 = vector.load %arg6[%c9_205, %c0_206, %c0_207] : memref<27x1x1024xf32, #tpu.memory_space<vmem>>, vector<1x1x1024xf32>
    %237 = vector.shape_cast %236 : vector<1x1x1024xf32> to vector<1x1024xf32>
    %238 = vector.broadcast %237 : vector<1x1024xf32> to vector<8x1024xf32>
    %239 = arith.mulf %235, %238 : vector<8x1024xf32>
    %c72_208 = arith.constant 72 : index
    %c0_209 = arith.constant 0 : index
    %240 = vector.load %arg9[%c72_208, %c0_209] : memref<216x1024xf32, #tpu.memory_space<vmem>>, vector<8x1024xf32>
    tpu.vector_store %arg9[%c72_208, %c0_209], %239 {strides = array<i32>} : memref<216x1024xf32, #tpu.memory_space<vmem>>, vector<8x1024xf32>,
    %c0_210 = arith.constant 0 : index
    %c120_211 = arith.constant 120 : index
    %241 = vector.load %arg8[%c0_210, %c120_211] : memref<8x1280xf32, #tpu.memory_space<vmem>>, vector<8x1024xf32>
    %c10_212 = arith.constant 10 : index
    %c0_213 = arith.constant 0 : index
    %c0_214 = arith.constant 0 : index
    %242 = vector.load %arg6[%c10_212, %c0_213, %c0_214] : memref<27x1x1024xf32, #tpu.memory_space<vmem>>, vector<1x1x1024xf32>
    %243 = vector.shape_cast %242 : vector<1x1x1024xf32> to vector<1x1024xf32>
    %244 = vector.broadcast %243 : vector<1x1024xf32> to vector<8x1024xf32>
    %245 = arith.mulf %241, %244 : vector<8x1024xf32>
    %c80_215 = arith.constant 80 : index
    %c0_216 = arith.constant 0 : index
    %246 = vector.load %arg9[%c80_215, %c0_216] : memref<216x1024xf32, #tpu.memory_space<vmem>>, vector<8x1024xf32>
    tpu.vector_store %arg9[%c80_215, %c0_216], %245 {strides = array<i32>} : memref<216x1024xf32, #tpu.memory_space<vmem>>, vector<8x1024xf32>,
    %c0_217 = arith.constant 0 : index
    %c121_218 = arith.constant 121 : index
    %247 = vector.load %arg8[%c0_217, %c121_218] : memref<8x1280xf32, #tpu.memory_space<vmem>>, vector<8x1024xf32>
    %c11_219 = arith.constant 11 : index
    %c0_220 = arith.constant 0 : index
    %c0_221 = arith.constant 0 : index
    %248 = vector.load %arg6[%c11_219, %c0_220, %c0_221] : memref<27x1x1024xf32, #tpu.memory_space<vmem>>, vector<1x1x1024xf32>
    %249 = vector.shape_cast %248 : vector<1x1x1024xf32> to vector<1x1024xf32>
    %250 = vector.broadcast %249 : vector<1x1024xf32> to vector<8x1024xf32>
    %251 = arith.mulf %247, %250 : vector<8x1024xf32>
    %c88_222 = arith.constant 88 : index
    %c0_223 = arith.constant 0 : index
    %252 = vector.load %arg9[%c88_222, %c0_223] : memref<216x1024xf32, #tpu.memory_space<vmem>>, vector<8x1024xf32>
    tpu.vector_store %arg9[%c88_222, %c0_223], %251 {strides = array<i32>} : memref<216x1024xf32, #tpu.memory_space<vmem>>, vector<8x1024xf32>,
    %c0_224 = arith.constant 0 : index
    %c127_225 = arith.constant 127 : index
    %253 = vector.load %arg8[%c0_224, %c127_225] : memref<8x1280xf32, #tpu.memory_space<vmem>>, vector<8x1024xf32>
    %c12_226 = arith.constant 12 : index
    %c0_227 = arith.constant 0 : index
    %c0_228 = arith.constant 0 : index
    %254 = vector.load %arg6[%c12_226, %c0_227, %c0_228] : memref<27x1x1024xf32, #tpu.memory_space<vmem>>, vector<1x1x1024xf32>
    %255 = vector.shape_cast %254 : vector<1x1x1024xf32> to vector<1x1024xf32>
    %256 = vector.broadcast %255 : vector<1x1024xf32> to vector<8x1024xf32>
    %257 = arith.mulf %253, %256 : vector<8x1024xf32>
    %c96_229 = arith.constant 96 : index
    %c0_230 = arith.constant 0 : index
    %258 = vector.load %arg9[%c96_229, %c0_230] : memref<216x1024xf32, #tpu.memory_space<vmem>>, vector<8x1024xf32>
    tpu.vector_store %arg9[%c96_229, %c0_230], %257 {strides = array<i32>} : memref<216x1024xf32, #tpu.memory_space<vmem>>, vector<8x1024xf32>,
    %c0_231 = arith.constant 0 : index
    %c128_232 = arith.constant 128 : index
    %259 = vector.load %arg8[%c0_231, %c128_232] : memref<8x1280xf32, #tpu.memory_space<vmem>>, vector<8x1024xf32>
    %c13_233 = arith.constant 13 : index
    %c0_234 = arith.constant 0 : index
    %c0_235 = arith.constant 0 : index
    %260 = vector.load %arg6[%c13_233, %c0_234, %c0_235] : memref<27x1x1024xf32, #tpu.memory_space<vmem>>, vector<1x1x1024xf32>
    %261 = vector.shape_cast %260 : vector<1x1x1024xf32> to vector<1x1024xf32>
    %262 = vector.broadcast %261 : vector<1x1024xf32> to vector<8x1024xf32>
    %263 = arith.mulf %259, %262 : vector<8x1024xf32>
    %c104_236 = arith.constant 104 : index
    %c0_237 = arith.constant 0 : index
    %264 = vector.load %arg9[%c104_236, %c0_237] : memref<216x1024xf32, #tpu.memory_space<vmem>>, vector<8x1024xf32>
    tpu.vector_store %arg9[%c104_236, %c0_237], %263 {strides = array<i32>} : memref<216x1024xf32, #tpu.memory_space<vmem>>, vector<8x1024xf32>,
    %c0_238 = arith.constant 0 : index
    %c129_239 = arith.constant 129 : index
    %265 = vector.load %arg8[%c0_238, %c129_239] : memref<8x1280xf32, #tpu.memory_space<vmem>>, vector<8x1024xf32>
    %c14_240 = arith.constant 14 : index
    %c0_241 = arith.constant 0 : index
    %c0_242 = arith.constant 0 : index
    %266 = vector.load %arg6[%c14_240, %c0_241, %c0_242] : memref<27x1x1024xf32, #tpu.memory_space<vmem>>, vector<1x1x1024xf32>
    %267 = vector.shape_cast %266 : vector<1x1x1024xf32> to vector<1x1024xf32>
    %268 = vector.broadcast %267 : vector<1x1024xf32> to vector<8x1024xf32>
    %269 = arith.mulf %265, %268 : vector<8x1024xf32>
    %c112_243 = arith.constant 112 : index
    %c0_244 = arith.constant 0 : index
    %270 = vector.load %arg9[%c112_243, %c0_244] : memref<216x1024xf32, #tpu.memory_space<vmem>>, vector<8x1024xf32>
    tpu.vector_store %arg9[%c112_243, %c0_244], %269 {strides = array<i32>} : memref<216x1024xf32, #tpu.memory_space<vmem>>, vector<8x1024xf32>,
    %c0_245 = arith.constant 0 : index
    %c135_246 = arith.constant 135 : index
    %271 = vector.load %arg8[%c0_245, %c135_246] : memref<8x1280xf32, #tpu.memory_space<vmem>>, vector<8x1024xf32>
    %c15_247 = arith.constant 15 : index
    %c0_248 = arith.constant 0 : index
    %c0_249 = arith.constant 0 : index
    %272 = vector.load %arg6[%c15_247, %c0_248, %c0_249] : memref<27x1x1024xf32, #tpu.memory_space<vmem>>, vector<1x1x1024xf32>
    %273 = vector.shape_cast %272 : vector<1x1x1024xf32> to vector<1x1024xf32>
    %274 = vector.broadcast %273 : vector<1x1024xf32> to vector<8x1024xf32>
    %275 = arith.mulf %271, %274 : vector<8x1024xf32>
    %c120_250 = arith.constant 120 : index
    %c0_251 = arith.constant 0 : index
    %276 = vector.load %arg9[%c120_250, %c0_251] : memref<216x1024xf32, #tpu.memory_space<vmem>>, vector<8x1024xf32>
    tpu.vector_store %arg9[%c120_250, %c0_251], %275 {strides = array<i32>} : memref<216x1024xf32, #tpu.memory_space<vmem>>, vector<8x1024xf32>,
    %c0_252 = arith.constant 0 : index
    %c136_253 = arith.constant 136 : index
    %277 = vector.load %arg8[%c0_252, %c136_253] : memref<8x1280xf32, #tpu.memory_space<vmem>>, vector<8x1024xf32>
    %c16_254 = arith.constant 16 : index
    %c0_255 = arith.constant 0 : index
    %c0_256 = arith.constant 0 : index
    %278 = vector.load %arg6[%c16_254, %c0_255, %c0_256] : memref<27x1x1024xf32, #tpu.memory_space<vmem>>, vector<1x1x1024xf32>
    %279 = vector.shape_cast %278 : vector<1x1x1024xf32> to vector<1x1024xf32>
    %280 = vector.broadcast %279 : vector<1x1024xf32> to vector<8x1024xf32>
    %281 = arith.mulf %277, %280 : vector<8x1024xf32>
    %c128_257 = arith.constant 128 : index
    %c0_258 = arith.constant 0 : index
    %282 = vector.load %arg9[%c128_257, %c0_258] : memref<216x1024xf32, #tpu.memory_space<vmem>>, vector<8x1024xf32>
    tpu.vector_store %arg9[%c128_257, %c0_258], %281 {strides = array<i32>} : memref<216x1024xf32, #tpu.memory_space<vmem>>, vector<8x1024xf32>,
    %c0_259 = arith.constant 0 : index
    %c137_260 = arith.constant 137 : index
    %283 = vector.load %arg8[%c0_259, %c137_260] : memref<8x1280xf32, #tpu.memory_space<vmem>>, vector<8x1024xf32>
    %c17_261 = arith.constant 17 : index
    %c0_262 = arith.constant 0 : index
    %c0_263 = arith.constant 0 : index
    %284 = vector.load %arg6[%c17_261, %c0_262, %c0_263] : memref<27x1x1024xf32, #tpu.memory_space<vmem>>, vector<1x1x1024xf32>
    %285 = vector.shape_cast %284 : vector<1x1x1024xf32> to vector<1x1024xf32>
    %286 = vector.broadcast %285 : vector<1x1024xf32> to vector<8x1024xf32>
    %287 = arith.mulf %283, %286 : vector<8x1024xf32>
    %c136_264 = arith.constant 136 : index
    %c0_265 = arith.constant 0 : index
    %288 = vector.load %arg9[%c136_264, %c0_265] : memref<216x1024xf32, #tpu.memory_space<vmem>>, vector<8x1024xf32>
    tpu.vector_store %arg9[%c136_264, %c0_265], %287 {strides = array<i32>} : memref<216x1024xf32, #tpu.memory_space<vmem>>, vector<8x1024xf32>,
    %c0_266 = arith.constant 0 : index
    %c183_267 = arith.constant 183 : index
    %289 = vector.load %arg8[%c0_266, %c183_267] : memref<8x1280xf32, #tpu.memory_space<vmem>>, vector<8x1024xf32>
    %c18_268 = arith.constant 18 : index
    %c0_269 = arith.constant 0 : index
    %c0_270 = arith.constant 0 : index
    %290 = vector.load %arg6[%c18_268, %c0_269, %c0_270] : memref<27x1x1024xf32, #tpu.memory_space<vmem>>, vector<1x1x1024xf32>
    %291 = vector.shape_cast %290 : vector<1x1x1024xf32> to vector<1x1024xf32>
    %292 = vector.broadcast %291 : vector<1x1024xf32> to vector<8x1024xf32>
    %293 = arith.mulf %289, %292 : vector<8x1024xf32>
    %c144_271 = arith.constant 144 : index
    %c0_272 = arith.constant 0 : index
    %294 = vector.load %arg9[%c144_271, %c0_272] : memref<216x1024xf32, #tpu.memory_space<vmem>>, vector<8x1024xf32>
    tpu.vector_store %arg9[%c144_271, %c0_272], %293 {strides = array<i32>} : memref<216x1024xf32, #tpu.memory_space<vmem>>, vector<8x1024xf32>,
    %c0_273 = arith.constant 0 : index
    %c184_274 = arith.constant 184 : index
    %295 = vector.load %arg8[%c0_273, %c184_274] : memref<8x1280xf32, #tpu.memory_space<vmem>>, vector<8x1024xf32>
    %c19_275 = arith.constant 19 : index
    %c0_276 = arith.constant 0 : index
    %c0_277 = arith.constant 0 : index
    %296 = vector.load %arg6[%c19_275, %c0_276, %c0_277] : memref<27x1x1024xf32, #tpu.memory_space<vmem>>, vector<1x1x1024xf32>
    %297 = vector.shape_cast %296 : vector<1x1x1024xf32> to vector<1x1024xf32>
    %298 = vector.broadcast %297 : vector<1x1024xf32> to vector<8x1024xf32>
    %299 = arith.mulf %295, %298 : vector<8x1024xf32>
    %c152_278 = arith.constant 152 : index
    %c0_279 = arith.constant 0 : index
    %300 = vector.load %arg9[%c152_278, %c0_279] : memref<216x1024xf32, #tpu.memory_space<vmem>>, vector<8x1024xf32>
    tpu.vector_store %arg9[%c152_278, %c0_279], %299 {strides = array<i32>} : memref<216x1024xf32, #tpu.memory_space<vmem>>, vector<8x1024xf32>,
    %c0_280 = arith.constant 0 : index
    %c185_281 = arith.constant 185 : index
    %301 = vector.load %arg8[%c0_280, %c185_281] : memref<8x1280xf32, #tpu.memory_space<vmem>>, vector<8x1024xf32>
    %c20_282 = arith.constant 20 : index
    %c0_283 = arith.constant 0 : index
    %c0_284 = arith.constant 0 : index
    %302 = vector.load %arg6[%c20_282, %c0_283, %c0_284] : memref<27x1x1024xf32, #tpu.memory_space<vmem>>, vector<1x1x1024xf32>
    %303 = vector.shape_cast %302 : vector<1x1x1024xf32> to vector<1x1024xf32>
    %304 = vector.broadcast %303 : vector<1x1024xf32> to vector<8x1024xf32>
    %305 = arith.mulf %301, %304 : vector<8x1024xf32>
    %c160_285 = arith.constant 160 : index
    %c0_286 = arith.constant 0 : index
    %306 = vector.load %arg9[%c160_285, %c0_286] : memref<216x1024xf32, #tpu.memory_space<vmem>>, vector<8x1024xf32>
    tpu.vector_store %arg9[%c160_285, %c0_286], %305 {strides = array<i32>} : memref<216x1024xf32, #tpu.memory_space<vmem>>, vector<8x1024xf32>,
    %c0_287 = arith.constant 0 : index
    %c191_288 = arith.constant 191 : index
    %307 = vector.load %arg8[%c0_287, %c191_288] : memref<8x1280xf32, #tpu.memory_space<vmem>>, vector<8x1024xf32>
    %c21_289 = arith.constant 21 : index
    %c0_290 = arith.constant 0 : index
    %c0_291 = arith.constant 0 : index
    %308 = vector.load %arg6[%c21_289, %c0_290, %c0_291] : memref<27x1x1024xf32, #tpu.memory_space<vmem>>, vector<1x1x1024xf32>
    %309 = vector.shape_cast %308 : vector<1x1x1024xf32> to vector<1x1024xf32>
    %310 = vector.broadcast %309 : vector<1x1024xf32> to vector<8x1024xf32>
    %311 = arith.mulf %307, %310 : vector<8x1024xf32>
    %c168_292 = arith.constant 168 : index
    %c0_293 = arith.constant 0 : index
    %312 = vector.load %arg9[%c168_292, %c0_293] : memref<216x1024xf32, #tpu.memory_space<vmem>>, vector<8x1024xf32>
    tpu.vector_store %arg9[%c168_292, %c0_293], %311 {strides = array<i32>} : memref<216x1024xf32, #tpu.memory_space<vmem>>, vector<8x1024xf32>,
    %c0_294 = arith.constant 0 : index
    %c192_295 = arith.constant 192 : index
    %313 = vector.load %arg8[%c0_294, %c192_295] : memref<8x1280xf32, #tpu.memory_space<vmem>>, vector<8x1024xf32>
    %c22_296 = arith.constant 22 : index
    %c0_297 = arith.constant 0 : index
    %c0_298 = arith.constant 0 : index
    %314 = vector.load %arg6[%c22_296, %c0_297, %c0_298] : memref<27x1x1024xf32, #tpu.memory_space<vmem>>, vector<1x1x1024xf32>
    %315 = vector.shape_cast %314 : vector<1x1x1024xf32> to vector<1x1024xf32>
    %316 = vector.broadcast %315 : vector<1x1024xf32> to vector<8x1024xf32>
    %317 = arith.mulf %313, %316 : vector<8x1024xf32>
    %c176_299 = arith.constant 176 : index
    %c0_300 = arith.constant 0 : index
    %318 = vector.load %arg9[%c176_299, %c0_300] : memref<216x1024xf32, #tpu.memory_space<vmem>>, vector<8x1024xf32>
    tpu.vector_store %arg9[%c176_299, %c0_300], %317 {strides = array<i32>} : memref<216x1024xf32, #tpu.memory_space<vmem>>, vector<8x1024xf32>,
    %c0_301 = arith.constant 0 : index
    %c193_302 = arith.constant 193 : index
    %319 = vector.load %arg8[%c0_301, %c193_302] : memref<8x1280xf32, #tpu.memory_space<vmem>>, vector<8x1024xf32>
    %c23_303 = arith.constant 23 : index
    %c0_304 = arith.constant 0 : index
    %c0_305 = arith.constant 0 : index
    %320 = vector.load %arg6[%c23_303, %c0_304, %c0_305] : memref<27x1x1024xf32, #tpu.memory_space<vmem>>, vector<1x1x1024xf32>
    %321 = vector.shape_cast %320 : vector<1x1x1024xf32> to vector<1x1024xf32>
    %322 = vector.broadcast %321 : vector<1x1024xf32> to vector<8x1024xf32>
    %323 = arith.mulf %319, %322 : vector<8x1024xf32>
    %c184_306 = arith.constant 184 : index
    %c0_307 = arith.constant 0 : index
    %324 = vector.load %arg9[%c184_306, %c0_307] : memref<216x1024xf32, #tpu.memory_space<vmem>>, vector<8x1024xf32>
    tpu.vector_store %arg9[%c184_306, %c0_307], %323 {strides = array<i32>} : memref<216x1024xf32, #tpu.memory_space<vmem>>, vector<8x1024xf32>,
    %c0_308 = arith.constant 0 : index
    %c199_309 = arith.constant 199 : index
    %325 = vector.load %arg8[%c0_308, %c199_309] : memref<8x1280xf32, #tpu.memory_space<vmem>>, vector<8x1024xf32>
    %c24_310 = arith.constant 24 : index
    %c0_311 = arith.constant 0 : index
    %c0_312 = arith.constant 0 : index
    %326 = vector.load %arg6[%c24_310, %c0_311, %c0_312] : memref<27x1x1024xf32, #tpu.memory_space<vmem>>, vector<1x1x1024xf32>
    %327 = vector.shape_cast %326 : vector<1x1x1024xf32> to vector<1x1024xf32>
    %328 = vector.broadcast %327 : vector<1x1024xf32> to vector<8x1024xf32>
    %329 = arith.mulf %325, %328 : vector<8x1024xf32>
    %c192_313 = arith.constant 192 : index
    %c0_314 = arith.constant 0 : index
    %330 = vector.load %arg9[%c192_313, %c0_314] : memref<216x1024xf32, #tpu.memory_space<vmem>>, vector<8x1024xf32>
    tpu.vector_store %arg9[%c192_313, %c0_314], %329 {strides = array<i32>} : memref<216x1024xf32, #tpu.memory_space<vmem>>, vector<8x1024xf32>,
    %c0_315 = arith.constant 0 : index
    %c200_316 = arith.constant 200 : index
    %331 = vector.load %arg8[%c0_315, %c200_316] : memref<8x1280xf32, #tpu.memory_space<vmem>>, vector<8x1024xf32>
    %c25_317 = arith.constant 25 : index
    %c0_318 = arith.constant 0 : index
    %c0_319 = arith.constant 0 : index
    %332 = vector.load %arg6[%c25_317, %c0_318, %c0_319] : memref<27x1x1024xf32, #tpu.memory_space<vmem>>, vector<1x1x1024xf32>
    %333 = vector.shape_cast %332 : vector<1x1x1024xf32> to vector<1x1024xf32>
    %334 = vector.broadcast %333 : vector<1x1024xf32> to vector<8x1024xf32>
    %335 = arith.mulf %331, %334 : vector<8x1024xf32>
    %c200_320 = arith.constant 200 : index
    %c0_321 = arith.constant 0 : index
    %336 = vector.load %arg9[%c200_320, %c0_321] : memref<216x1024xf32, #tpu.memory_space<vmem>>, vector<8x1024xf32>
    tpu.vector_store %arg9[%c200_320, %c0_321], %335 {strides = array<i32>} : memref<216x1024xf32, #tpu.memory_space<vmem>>, vector<8x1024xf32>,
    %c0_322 = arith.constant 0 : index
    %c201_323 = arith.constant 201 : index
    %337 = vector.load %arg8[%c0_322, %c201_323] : memref<8x1280xf32, #tpu.memory_space<vmem>>, vector<8x1024xf32>
    %c26_324 = arith.constant 26 : index
    %c0_325 = arith.constant 0 : index
    %c0_326 = arith.constant 0 : index
    %338 = vector.load %arg6[%c26_324, %c0_325, %c0_326] : memref<27x1x1024xf32, #tpu.memory_space<vmem>>, vector<1x1x1024xf32>
    %339 = vector.shape_cast %338 : vector<1x1x1024xf32> to vector<1x1024xf32>
    %340 = vector.broadcast %339 : vector<1x1024xf32> to vector<8x1024xf32>
    %341 = arith.mulf %337, %340 : vector<8x1024xf32>
    %c208_327 = arith.constant 208 : index
    %c0_328 = arith.constant 0 : index
    %342 = vector.load %arg9[%c208_327, %c0_328] : memref<216x1024xf32, #tpu.memory_space<vmem>>, vector<8x1024xf32>
    tpu.vector_store %arg9[%c208_327, %c0_328], %341 {strides = array<i32>} : memref<216x1024xf32, #tpu.memory_space<vmem>>, vector<8x1024xf32>,
    %c0_329 = arith.constant 0 : index
    %c0_330 = arith.constant 0 : index
    %343 = vector.load %arg4[%c0_329, %c0_330] : memref<8x216xbf16, #tpu.memory_space<vmem>>, vector<8x216xbf16>
    %c0_331 = arith.constant 0 : index
    %c0_332 = arith.constant 0 : index
    %344 = vector.load %arg9[%c0_331, %c0_332] : memref<216x1024xf32, #tpu.memory_space<vmem>>, vector<216x1024xf32>
    %345 = arith.truncf %344 : vector<216x1024xf32> to vector<216x1024xbf16>
    %cst_333 = arith.constant dense<0.000000e+00> : vector<8x1024xf32>
    %346 = tpu.matmul %343, %345, %cst_333 {dimension_numbers = #tpu.dot_dimension_numbers<[1], [0], [0], [1], [0, 0, 1, 1], [], []>} : vector<8x216xbf16>, vector<216x1024xbf16>, vector<8x1024xf32> -> vector<8x1024xf32>
    %c0_334 = arith.constant 0 : index
    %c0_335 = arith.constant 0 : index
    %347 = vector.load %arg5[%c0_334, %c0_335] : memref<8x1xf32, #tpu.memory_space<vmem>>, vector<8x1xf32>
    %348 = vector.broadcast %347 : vector<8x1xf32> to vector<8x1024xf32>
    %349 = arith.addf %346, %348 : vector<8x1024xf32>
    %cst_336 = arith.constant 0.000000e+00 : f32
    %350 = vector.broadcast %cst_336 : f32 to vector<8x1024xf32>
    %351 = arith.cmpf oge, %349, %350 : vector<8x1024xf32>
    %cst_337 = arith.constant 0.00999999977 : f32
    %352 = vector.broadcast %cst_337 : f32 to vector<8x1024xf32>
    %353 = arith.mulf %352, %349 : vector<8x1024xf32>
    %354 = arith.select %351, %349, %353 : vector<8x1024xi1>, vector<8x1024xf32>
    %c0_338 = arith.constant 0 : index
    %c0_339 = arith.constant 0 : index
    %355 = vector.load %arg7[%c0_338, %c0_339] : memref<8x1024xf32, #tpu.memory_space<vmem>>, vector<8x1024xf32>
    tpu.vector_store %arg7[%c0_338, %c0_339], %354 {strides = array<i32>} : memref<8x1024xf32, #tpu.memory_space<vmem>>, vector<8x1024xf32>,
    return
  }
  func.func @transform_0(%arg0: i32) -> (i32, i32) {
    %c0_i32 = arith.constant 0 : i32
    %c0_i32_0 = arith.constant 0 : i32
    %c0_i32_1 = arith.constant 0 : i32
    return %c0_i32, %c0_i32_0 : i32, i32
  }
  func.func @transform_1(%arg0: i32) -> (i32, i32) {
    %c0_i32 = arith.constant 0 : i32
    %c0_i32_0 = arith.constant 0 : i32
    %c0_i32_1 = arith.constant 0 : i32
    return %c0_i32, %c0_i32_0 : i32, i32
  }
  func.func @transform_2(%arg0: i32) -> (i32, i32) {
    %c0_i32 = arith.constant 0 : i32
    %c0_i32_0 = arith.constant 0 : i32
    %c0_i32_1 = arith.constant 0 : i32
    return %c0_i32, %c0_i32_0 : i32, i32
  }
  func.func @transform_3(%arg0: i32) -> (i32, i32) {
    %c0_i32 = arith.constant 0 : i32
    %c0_i32_0 = arith.constant 0 : i32
    %c0_i32_1 = arith.constant 0 : i32
    return %c0_i32, %c0_i32_0 : i32, i32
  }
  func.func @transform_4(%arg0: i32) -> (i32, i32) {
    %c0_i32 = arith.constant 0 : i32
    %c0_i32_0 = arith.constant 0 : i32
    %c0_i32_1 = arith.constant 0 : i32
    return %c0_i32, %c0_i32_0 : i32, i32
  }
  func.func @transform_5(%arg0: i32) -> (i32, i32, i32) {
    %c0_i32 = arith.constant 0 : i32
    %c0_i32_0 = arith.constant 0 : i32
    %c0_i32_1 = arith.constant 0 : i32
    %c0_i32_2 = arith.constant 0 : i32
    return %c0_i32, %c0_i32_0, %c0_i32_1 : i32, i32, i32
  }
  func.func @transform_6(%arg0: i32) -> (i32, i32) {
    %c0_i32 = arith.constant 0 : i32
    %c0_i32_0 = arith.constant 0 : i32
    %c0_i32_1 = arith.constant 0 : i32
    return %c0_i32, %c0_i32_0 : i32, i32
  }
}

</mosaic_0001>

<bundles_post_ra>
// kernel: tpu_custom_call.1
= control target key start
LH: loop header
LB: loop body
LE: loop exit
PB: predicated region body
PF: predicated region fallthrough
CT: control target
= control target key end

     0   :  { %11 = vsyncpa [#allocation5], 0  ;;  %s13882_s0 = inlined_call_operand.hbm [shape: f32[8,1024], index: 0, kind: input, shape index: {}]   ;;  %s13883_s1 = inlined_call_operand.vmem [shape: bf16[8,216], index: 1, kind: input, shape index: {}]   ;;  %s13884_s2 = inlined_call_operand.vmem [shape: f32[8,1], index: 2, kind: input, shape index: {}]   ;;  %s13885_s3 = inlined_call_operand.vmem [shape: bf16[8,216], index: 3, kind: input, shape index: {}]   ;;  %s13886_s4 = inlined_call_operand.vmem [shape: f32[8,1], index: 4, kind: input, shape index: {}]   ;;  %s13887_s5 = inlined_call_operand.hbm [shape: f32[27,1,1024], index: 5, kind: input, shape index: {}]   ;;  %s13888_s6 = inlined_call_operand.hbm [shape: f32[8,1024], index: 6, kind: output, shape index: {}]  }
   0x1   :  { %12 = vsyncpa [#allocation8], 0 }
   0x2   :  { %13 = vsyncpa [#allocation6], 0  ;;  %s9595_s21 = smov [#allocation4]   ;;  %s9596_s23 = smov [#allocation7]  }
   0x3   :  { %s20_s22 = sshll.u32 %s9595_s21, 4  ;;  %s37_s24 = sshll.u32 %s9596_s23, 4  ;;  %s21_s22 = int_to_ptr.vmem [resolvable:$true] %s20_s22  ;;  %s9652_s24 = int_to_ptr.vmem [resolvable:$true] %s37_s24 }
   0x4   :  { %s9523_s27 = scalar_lea.hbm %s13882_s0, 1024 }
   0x5   :  { %p9524_p0 = scmp.ne.s32.totalorder %s13882_s0, %s9523_s27  ;;  %p9527_p1 = scmp.lt.u32.totalorder %s9523_s27, %s13882_s0 }
   0x7   :  { %p9529_p2 = pnand %p9527_p1, %p9524_p0 }
   0x9   :  { %9532 = shalt.err (!%p9529_p2)
}
   0xa   :  { %s9533_s8 = scalar_lea.vmem %s21_s22, 1024  ;;  %p9538_p4 = scmp.lt.s32.totalorder %s21_s22, %s21_s22 }
   0xb   :  { %p9534_p3 = scmp.ne.s32.totalorder %s21_s22, %s9533_s8  ;;  %p9539_p5 = scmp.lt.s32.totalorder %s9533_s8, %s9533_s8 }
   0xd   :  { %p9540_p6 = por %p9539_p5, %p9538_p4 }
   0xf   :  { %p9541_p7 = pnand %p9540_p6, %p9534_p3 }
  0x11   :  { %9544 = shalt.err (!%p9541_p7)
}
  0x12   :  { %23 = dma.hbm_to_vmem [thread:$0]  %s13882_s0, 1024, %s21_s22, [#allocation5]  }
  0x13   :  { %s9545_s13 = scalar_lea.hbm %s13887_s5, 3456 }
  0x14   :  { %p9546_p8 = scmp.ne.s32.totalorder %s13887_s5, %s9545_s13  ;;  %p9549_p9 = scmp.lt.u32.totalorder %s9545_s13, %s13887_s5 }
  0x16   :  { %p9551_p10 = pnand %p9549_p9, %p9546_p8 }
  0x18   :  { %9554 = shalt.err (!%p9551_p10)
}
  0x19   :  { %s9555_s18 = scalar_lea.vmem %s9652_s24, 3456  ;;  %p9560_p12 = scmp.lt.s32.totalorder %s9652_s24, %s9652_s24 }
  0x1a   :  { %p9556_p11 = scmp.ne.s32.totalorder %s9652_s24, %s9555_s18  ;;  %p9561_p13 = scmp.lt.s32.totalorder %s9555_s18, %s9555_s18 }
  0x1c   :  { %p9562_p0 = por %p9561_p13, %p9560_p12 }
  0x1e   :  { %p9563_p1 = pnand %p9562_p0, %p9556_p11 }
  0x20   :  { %9566 = shalt.err (!%p9563_p1)
}
  0x21   :  { %s9597_s0 = smov 128   ;;  %s9598_s19 = smov 8  }
  0x22   :  { %43 = dma.hbm_to_vmem [thread:$0]  %s13887_s5, 3456, %s9652_s24, [#allocation8], %s9597_s0, %s9597_s0, %s9598_s19  }
  0x23   :  { %9589 = dma.done.wait [#allocation5], 1024  }
  0x24   :  { %9590 = vsyncadd [#allocation5], 4294966272 }
  0x25   :  { %9591 = dma.done.wait [#allocation8], 3456  }
  0x26   :  { %9592 = vsyncadd [#allocation8], 4294963840  ;;  %v80_v0 = vlaneseq  ;;  %v78_v6 = vld [vmem:[#allocation7] sm:$0xff]  ;;  %s9599_s5 = smov 55   ;;  %v216_v19 = vld [vmem:[#allocation7 + $0x8] sm:$0xff]  ;;  %s9600_s22 = smov 56  }
  0x27   :  { %v354_v28 = vld [vmem:[#allocation7 + $0x10] sm:$0xff]  ;;  %s9601_s23 = smov 57   ;;  %v492_v37 = vld [vmem:[#allocation7 + $0x18] sm:$0xff]  ;;  %s9602_s24 = smov 63   ;;  %v630_v46 = vld [vmem:[#allocation7 + $0x20] sm:$0xff]  ;;  %vm128_vm0 = vcmask 449536  }
  0x28   :  { %v81_v1 = vshrl.u32 %v80_v0, 7  ;;  %s9603_s25 = smov 64   ;;  %v9778_v55 = vld [vmem:[#allocation7 + $0x28] sm:$0xff]  ;;  %s9604_s26 = smov 65   ;;  %v9795_v63 = vld [vmem:[#allocation4 + $0x38] sm:$0xff]  ;;  %vm266_vm1 = vcmask 457728  }
  0x29   :  { %s9605_s27 = smov 73   ;;  %s9606_s28 = smov 72   ;;  %vm404_vm2 = vcmask 465920   ;;  %vm542_vm3 = vcmask 515072   ;;  %vm13910_vm4 = vcmask 523264   ;;  %vm181_vm5 = vcmask 596992  }
  0x2a   :  { %v9684_v2 = vsub.s32 2, %v81_v1  ;;  %v9686_v3 = vsub.s32 0, %v81_v1  ;;  %v9688_v4 = vsub.s32 3, %v81_v1  ;;  %v9690_v5 = vsub.s32 1, %v81_v1  ;;  %s9607_s29 = smov 71   ;;  %s9608_s30 = smov 119  }
  0x2b   :  { %v9698_v11 = vsub.s32 5, %v81_v1  ;;  %v9700_v12 = vsub.s32 4, %v81_v1  ;;  %v9706_v15 = vsub.s32 7, %v81_v1  ;;  %v9708_v16 = vsub.s32 6, %v81_v1  ;;  %s9609_s7 = smov 9   ;;  %s9610_s8 = smov 120  }
  0x2c   :  { %v91_v7 = vrot.slane %v78_v6, %v9684_v2  ;;  %v83_v8 = vrot.slane %v78_v6, %v9686_v3  ;;  %v95_v9 = vrot.slane %v78_v6, %v9688_v4  ;;  %v87_v10 = vrot.slane %v78_v6, %v9690_v5  ;;  %s9611_s9 = smov 121   ;;  %s9612_s10 = smov 7  }
  0x2d   :  { %v103_v13 = vrot.slane %v78_v6, %v9698_v11  ;;  %v99_v14 = vrot.slane %v78_v6, %v9700_v12  ;;  %v111_v17 = vrot.slane %v78_v6, %v9706_v15  ;;  %v107_v18 = vrot.slane %v78_v6, %v9708_v16  ;;  %s9613_s11 = smov 127   ;;  %s9614_s12 = smov 1  }
  0x2e   :  { %116 = vrot.lane.b32.xlu1 %v91_v7, %s9599_s5  ;;  %112 = vrot.lane.b32.xlu0 %v83_v8, %s9599_s5  ;;  %v221_v20 = vrot.slane %v216_v19, %v9686_v3  ;;  %v225_v21 = vrot.slane %v216_v19, %v9690_v5  ;;  %v229_v22 = vrot.slane %v216_v19, %v9684_v2  ;;  %vm319_vm6 = vcmask 588800  }
  0x2f   :  { %v233_v23 = vrot.slane %v216_v19, %v9688_v4  ;;  %v237_v24 = vrot.slane %v216_v19, %v9700_v12  ;;  %v241_v25 = vrot.slane %v216_v19, %v9698_v11  ;;  %v245_v26 = vrot.slane %v216_v19, %v9708_v16 }
  0x30   :  { %v249_v27 = vrot.slane %v216_v19, %v9706_v15  ;;  %v363_v29 = vrot.slane %v354_v28, %v9690_v5  ;;  %v359_v30 = vrot.slane %v354_v28, %v9686_v3  ;;  %v371_v31 = vrot.slane %v354_v28, %v9688_v4 }
  0x31   :  { %v367_v32 = vrot.slane %v354_v28, %v9684_v2  ;;  %v379_v33 = vrot.slane %v354_v28, %v9698_v11  ;;  %v375_v34 = vrot.slane %v354_v28, %v9700_v12  ;;  %v387_v35 = vrot.slane %v354_v28, %v9706_v15 }
  0x32   :  { %118 = vrot.lane.b32.xlu1 %v95_v9, %s9599_s5  ;;  %114 = vrot.lane.b32.xlu0 %v87_v10, %s9599_s5  ;;  %v383_v36 = vrot.slane %v354_v28, %v9708_v16  ;;  %v497_v38 = vrot.slane %v492_v37, %v9686_v3  ;;  %v501_v39 = vrot.slane %v492_v37, %v9690_v5  ;;  %vm457_vm7 = vcmask 580608  }
  0x33   :  { %v505_v40 = vrot.slane %v492_v37, %v9684_v2  ;;  %v509_v41 = vrot.slane %v492_v37, %v9688_v4  ;;  %v513_v42 = vrot.slane %v492_v37, %v9700_v12  ;;  %v517_v43 = vrot.slane %v492_v37, %v9698_v11 }
  0x34   :  { %v521_v44 = vrot.slane %v492_v37, %v9708_v16  ;;  %v525_v45 = vrot.slane %v492_v37, %v9706_v15  ;;  %v639_v47 = vrot.slane %v630_v46, %v9690_v5  ;;  %v635_v48 = vrot.slane %v630_v46, %v9686_v3  ;;  %v9847_v37 = vld [vmem:[#allocation4 + $0x8] sm:$0xff] }
  0x35   :  { %v647_v49 = vrot.slane %v630_v46, %v9688_v4  ;;  %v643_v50 = vrot.slane %v630_v46, %v9684_v2  ;;  %v655_v51 = vrot.slane %v630_v46, %v9698_v11  ;;  %v651_v52 = vrot.slane %v630_v46, %v9700_v12 }
  0x36   :  { %122 = vrot.lane.b32.xlu1 %v103_v13, %s9599_s5  ;;  %120 = vrot.lane.b32.xlu0 %v99_v14, %s9599_s5  ;;  %v663_v53 = vrot.slane %v630_v46, %v9706_v15  ;;  %v659_v54 = vrot.slane %v630_v46, %v9708_v16  ;;  %v772_v56 = vrot.slane %v9778_v55, %v9686_v3  ;;  %vm595_vm8 = vcmask 531456  }
  0x37   :  { %vm13945_vm9 = vcmask 973824   ;;  %vm1414_vm10 = vcmask 72704   ;;  %vm13943_vm11 = vcmask 982016   ;;  %vm13947_vm12 = vcmask 990208  }
  0x38   :  { %vm1690_vm13 = vcmask 56320   ;;  %vm13963_vm14 = vcmask 64512   ;;  %vm13946_vm15 = vcmask 1039360  }
  0x3a   :  { %126 = vrot.lane.b32.xlu1 %v111_v17, %s9599_s5  ;;  %124 = vrot.lane.b32.xlu0 %v107_v18, %s9599_s5 }
  0x3e   :  { %250 = vrot.lane.b32.xlu1 %v221_v20, %s9600_s22  ;;  %252 = vrot.lane.b32.xlu0 %v225_v21, %s9600_s22 }
  0x42   :  { %254 = vrot.lane.b32.xlu1 %v229_v22, %s9600_s22  ;;  %256 = vrot.lane.b32.xlu0 %v233_v23, %s9600_s22 }
  0x46   :  { %258 = vrot.lane.b32.xlu1 %v237_v24, %s9600_s22  ;;  %260 = vrot.lane.b32.xlu0 %v241_v25, %s9600_s22 }
  0x4a   :  { %262 = vrot.lane.b32.xlu1 %v245_v26, %s9600_s22  ;;  %264 = vrot.lane.b32.xlu0 %v249_v27, %s9600_s22 }
  0x4e   :  { %390 = vrot.lane.b32.xlu1 %v363_v29, %s9601_s23  ;;  %388 = vrot.lane.b32.xlu0 %v359_v30, %s9601_s23 }
  0x52   :  { %394 = vrot.lane.b32.xlu1 %v371_v31, %s9601_s23  ;;  %392 = vrot.lane.b32.xlu0 %v367_v32, %s9601_s23 }
  0x56   :  { %398 = vrot.lane.b32.xlu1 %v379_v33, %s9601_s23  ;;  %396 = vrot.lane.b32.xlu0 %v375_v34, %s9601_s23 }
  0x5a   :  { %402 = vrot.lane.b32.xlu1 %v387_v35, %s9601_s23  ;;  %400 = vrot.lane.b32.xlu0 %v383_v36, %s9601_s23  ;;  %v9843_v35 = vld [vmem:[#allocation4 + $0x10] sm:$0xff] }
  0x5e   :  { %526 = vrot.lane.b32.xlu1 %v497_v38, %s9602_s24  ;;  %528 = vrot.lane.b32.xlu0 %v501_v39, %s9602_s24 }
  0x62   :  { %530 = vrot.lane.b32.xlu1 %v505_v40, %s9602_s24  ;;  %532 = vrot.lane.b32.xlu0 %v509_v41, %s9602_s24 }
  0x66   :  { %534 = vrot.lane.b32.xlu1 %v513_v42, %s9602_s24  ;;  %536 = vrot.lane.b32.xlu0 %v517_v43, %s9602_s24 }
  0x6a   :  { %538 = vrot.lane.b32.xlu1 %v521_v44, %s9602_s24  ;;  %540 = vrot.lane.b32.xlu0 %v525_v45, %s9602_s24  ;;  %v9859_v44 = vld [vmem:[#allocation4 + $0x28] sm:$0xff]  ;;  %v9861_v45 = vld [vmem:[#allocation4 + $0x30] sm:$0xff] }
  0x6e   :  { %666 = vrot.lane.b32.xlu1 %v639_v47, %s9603_s25  ;;  %664 = vrot.lane.b32.xlu0 %v635_v48, %s9603_s25 }
  0x72   :  { %670 = vrot.lane.b32.xlu1 %v647_v49, %s9603_s25  ;;  %668 = vrot.lane.b32.xlu0 %v643_v50, %s9603_s25 }
  0x76   :  { %674 = vrot.lane.b32.xlu1 %v655_v51, %s9603_s25  ;;  %672 = vrot.lane.b32.xlu0 %v651_v52, %s9603_s25  ;;  %v9871_v52 = vld [vmem:[#allocation4] sm:$0xff] }
  0x7a   :  { %678 = vrot.lane.b32.xlu1 %v663_v53, %s9603_s25  ;;  %676 = vrot.lane.b32.xlu0 %v659_v54, %s9603_s25 }
  0x7e   :  { %801 = vrot.lane.b32.xlu1 %v772_v56, %s9604_s26 }
  0xa0   :  { %v117_v57 = vpop.permute.xlu1 %116  ;;  %v9785_v58 = vpop.permute.xlu0 %112 }
  0xa4   :  { %v9787_v59 = vpop.permute.xlu1 %118  ;;  %v9789_v60 = vpop.permute.xlu0 %114 }
  0xa5   :  { %v131_v36 = vsel %vm128_vm0, %v117_v57, %v9787_v59  ;;  %v130_v38 = vsel %vm128_vm0, %v9789_v60, %v117_v57 }
  0xa6   :  { %v148_v41 = vmul.f32 %v131_v36, %v9843_v35  ;;  %v147_v42 = vmul.f32 %v130_v38, %v9847_v37 }
  0xa8   :  { %v9791_v61 = vpop.permute.xlu1 %122  ;;  %v9793_v62 = vpop.permute.xlu0 %120  ;;  %v8457_v51 = vpack.i.bf16 %v148_v41, %v147_v42 }
  0xac   :  { %v127_v0 = vpop.permute.xlu1 %126  ;;  %v125_v1 = vpop.permute.xlu0 %124 }
  0xad   :  { %v153_v6 = vmul.f32 %v127_v0, %v9795_v63  ;;  %v134_v46 = vsel %vm128_vm0, %v9791_v61, %v125_v1  ;;  %v135_v47 = vsel %vm128_vm0, %v125_v1, %v127_v0 }
  0xae   :  { %v151_v49 = vmul.f32 %v134_v46, %v9859_v44  ;;  %v152_v50 = vmul.f32 %v135_v47, %v9861_v45  ;;  %v145_v47 = vmul.f32 0.0, %v9785_v58 }
  0xaf   :  { %179 = vrot.lane.b32.xlu0 %v153_v6, %s9605_s27 }
  0xb0   :  { %v251_v7 = vpop.permute.xlu1 %250  ;;  %v9799_v8 = vpop.permute.xlu0 %252  ;;  %v8467_v0 = vpack.i.bf16 %v152_v50, %v151_v49  ;;  %v133_v50 = vsel %vm128_vm0, %v9793_v62, %v9791_v61 }
  0xb1   :  { %v267_v53 = vsel %vm266_vm1, %v251_v7, %v9799_v8  ;;  %v283_v56 = vmul.f32 0.0, %v251_v7  ;;  %v129_v7 = vsel %vm128_vm0, %v9785_v58, %v9789_v60  ;;  %v132_v60 = vsel %vm128_vm0, %v9787_v59, %v9793_v62 }
  0xb2   :  { %v284_v57 = vmul.f32 %v267_v53, %v9871_v52  ;;  %v146_v49 = vmul.f32 %v129_v7, %v9871_v52 }
  0xb4   :  { %v9801_v9 = vpop.permute.xlu1 %254  ;;  %v9803_v10 = vpop.permute.xlu0 %256 }
  0xb5   :  { %v269_v7 = vsel %vm266_vm1, %v9801_v9, %v9803_v10 }
  0xb8   :  { %v259_v13 = vpop.permute.xlu1 %258  ;;  %v9805_v14 = vpop.permute.xlu0 %260 }
  0xb9   :  { %v270_v1 = vsel %vm266_vm1, %v9803_v10, %v259_v13  ;;  %v271_v6 = vsel %vm266_vm1, %v259_v13, %v9805_v14  ;;  %v8472_v13 = vpack.i.bf16 %v284_v57, %v283_v56 }
  0xbc   :  { %v9807_v17 = vpop.permute.xlu1 %262  ;;  %v9809_v18 = vpop.permute.xlu0 %264 }
  0xbd   :  { %v291_v19 = vmul.f32 %v9809_v18, %v9795_v63 }
  0xbf   :  { %317 = vrot.lane.b32.xlu1 %v291_v19, %s9606_s28  ;;  %v9884_v19 = vld [vmem:[#allocation4 + $0x18] sm:$0xff] }
  0xc0   :  { %v9814_v20 = vpop.permute.xlu1 %390  ;;  %v9816_v21 = vpop.permute.xlu0 %388  ;;  %v287_v38 = vmul.f32 %v270_v1, %v9884_v19  ;;  %v149_v61 = vmul.f32 %v132_v60, %v9884_v19  ;;  %v268_v1 = vsel %vm266_vm1, %v9799_v8, %v9801_v9  ;;  %v272_v9 = vsel %vm266_vm1, %v9805_v14, %v9807_v17 }
  0xc1   :  { %v285_v8 = vmul.f32 %v268_v1, %v9847_v37  ;;  %v289_v14 = vmul.f32 %v272_v9, %v9859_v44 }
  0xc4   :  { %v9818_v22 = vpop.permute.xlu1 %394  ;;  %v393_v23 = vpop.permute.xlu0 %392 }
  0xc5   :  { %v407_v46 = vsel %vm404_vm2, %v393_v23, %v9818_v22 }
  0xc6   :  { %v424_v56 = vmul.f32 %v407_v46, %v9843_v35 }
  0xc8   :  { %v9820_v24 = vpop.permute.xlu1 %398  ;;  %v9822_v25 = vpop.permute.xlu0 %396 }
  0xc9   :  { %v408_v1 = vsel %vm404_vm2, %v9818_v22, %v9822_v25 }
  0xca   :  { %v425_v22 = vmul.f32 %v408_v1, %v9884_v19 }
  0xcc   :  { %v9824_v26 = vpop.permute.xlu1 %402  ;;  %v9826_v27 = vpop.permute.xlu0 %400 }
  0xcd   :  { %v429_v28 = vmul.f32 %v9824_v26, %v9795_v63  ;;  %v410_v58 = vsel %vm404_vm2, %v9820_v24, %v9826_v27  ;;  %v411_v59 = vsel %vm404_vm2, %v9826_v27, %v9824_v26 }
  0xce   :  { %v427_v26 = vmul.f32 %v410_v58, %v9859_v44  ;;  %v428_v27 = vmul.f32 %v411_v59, %v9861_v45 }
  0xcf   :  { %455 = vrot.lane.b32.xlu0 %v429_v28, %s9607_s29  ;;  %v9886_v28 = vld [vmem:[#allocation4 + $0x20] sm:$0xff] }
  0xd0   :  { %v9831_v29 = vpop.permute.xlu1 %526  ;;  %v9833_v30 = vpop.permute.xlu0 %528  ;;  %v288_v41 = vmul.f32 %v271_v6, %v9886_v28  ;;  %v150_v62 = vmul.f32 %v133_v50, %v9886_v28  ;;  %v8452_v6 = vpack.i.bf16 %v146_v49, %v145_v47  ;;  %v8507_v60 = vpack.i.bf16 %v428_v27, %v427_v26 }
  0xd1   :  { %v559_v46 = vmul.f32 0.0, %v9831_v29 }
  0xd2   :  { %v8482_v57 = vpack.i.bf16 %v288_v41, %v287_v38  ;;  %v543_v41 = vsel %vm542_vm3, %v9831_v29, %v9833_v30  ;;  %v8462_v10 = vpack.i.bf16 %v150_v62, %v149_v61  ;;  %v405_v29 = vsel %vm404_vm2, %v9816_v21, %v9814_v20 }
  0xd3   :  { %v560_v47 = vmul.f32 %v543_v41, %v9871_v52  ;;  %v421_v61 = vmul.f32 0.0, %v9816_v21 }
  0xd4   :  { %v9835_v31 = vpop.permute.xlu1 %530  ;;  %v9837_v32 = vpop.permute.xlu0 %532 }
  0xd8   :  { %v9839_v33 = vpop.permute.xlu1 %534  ;;  %v9841_v34 = vpop.permute.xlu0 %536 }
  0xd9   :  { %v546_v50 = vsel %vm542_vm3, %v9837_v32, %v9839_v33 }
  0xdc   :  { %v9851_v39 = vpop.permute.xlu1 %538  ;;  %v9853_v40 = vpop.permute.xlu0 %540 }
  0xdd   :  { %v567_v43 = vmul.f32 %v9853_v40, %v9795_v63 }
  0xdf   :  { %593 = vrot.lane.b32.xlu1 %v567_v43, %s9604_s26  ;;  %v406_v43 = vsel %vm404_vm2, %v9814_v20, %v393_v23  ;;  %v422_v20 = vmul.f32 %v405_v29, %v9871_v52 }
  0xe0   :  { %v9867_v48 = vpop.permute.xlu1 %666  ;;  %v9895_v42 = vpop.permute.xlu0 %664  ;;  %v423_v53 = vmul.f32 %v406_v43, %v9847_v37  ;;  %v273_v43 = vsel %vm266_vm1, %v9807_v17, %v9809_v18 }
  0xe1   :  { %v290_v17 = vmul.f32 %v273_v43, %v9861_v45 }
  0xe2   :  { %v8497_v38 = vpack.i.bf16 %v424_v56, %v423_v53  ;;  %v547_v53 = vsel %vm542_vm3, %v9839_v33, %v9841_v34  ;;  %v563_v56 = vmul.f32 %v546_v50, %v9884_v19 }
  0xe3   :  { %8458 = vrot.lane.b32.xlu1 %v8457_v51, %s9605_s27  ;;  %v8487_v62 = vpack.i.bf16 %v290_v17, %v289_v14 }
  0xe4   :  { %v9876_v54 = vpop.permute.xlu1 %670 }
  0xe7   :  { %8468 = vrot.lane.b32.xlu1 %v8467_v0, %s9605_s27  ;;  %v669_v0 = vpop.permute.xlu0 %668 }
  0xe8   :  { %v9888_v36 = vpop.permute.xlu1 %674  ;;  %v682_v33 = vsel %vm13910_vm4, %v9867_v48, %v669_v0  ;;  %v683_v58 = vsel %vm13910_vm4, %v669_v0, %v9876_v54  ;;  %v409_v0 = vsel %vm404_vm2, %v9822_v25, %v9820_v24  ;;  %v544_v24 = vsel %vm542_vm3, %v9833_v30, %v9835_v31 }
  0xe9   :  { %v426_v41 = vmul.f32 %v409_v0, %v9886_v28  ;;  %v545_v25 = vsel %vm542_vm3, %v9835_v31, %v9837_v32  ;;  %v549_v30 = vsel %vm542_vm3, %v9851_v39, %v9853_v40  ;;  %v780_v31 = vrot.slane %v9778_v55, %v9684_v2 }
  0xea   :  { %v697_v40 = vmul.f32 0.0, %v9895_v42 }
  0xeb   :  { %8473 = vrot.lane.b32.xlu1 %v8472_v13, %s9606_s28  ;;  %v286_v13 = vmul.f32 %v269_v7, %v9843_v35  ;;  %v673_v49 = vpop.permute.xlu0 %672  ;;  %v700_v7 = vmul.f32 %v683_v58, %v9843_v35 }
  0xec   :  { %v679_v51 = vpop.permute.xlu1 %678  ;;  %v684_v17 = vsel %vm13910_vm4, %v9876_v54, %v673_v49 }
  0xed   :  { %v705_v23 = vmul.f32 %v679_v51, %v9795_v63  ;;  %v8477_v18 = vpack.i.bf16 %v286_v13, %v285_v8  ;;  %v701_v29 = vmul.f32 %v684_v17, %v9884_v19 }
  0xef   :  { %731 = vrot.lane.b32.xlu0 %v705_v23, %s9603_s25  ;;  %8483 = vrot.lane.b32.xlu1 %v8482_v57, %s9606_s28  ;;  %v564_v23 = vmul.f32 %v547_v53, %v9886_v28  ;;  %v8512_v57 = vpack.i.bf16 %v560_v47, %v559_v46  ;;  %v677_v59 = vpop.permute.xlu0 %676  ;;  %v8502_v46 = vpack.i.bf16 %v426_v41, %v425_v22 }
  0xf0   :  { %v686_v27 = vsel %vm13910_vm4, %v9888_v36, %v677_v59  ;;  %v687_v21 = vsel %vm13910_vm4, %v677_v59, %v679_v51  ;;  %v561_v51 = vmul.f32 %v544_v24, %v9847_v37  ;;  %v548_v47 = vsel %vm542_vm3, %v9841_v34, %v9851_v39 }
  0xf1   :  { %v8522_v26 = vpack.i.bf16 %v564_v23, %v563_v56  ;;  %v703_v8 = vmul.f32 %v686_v27, %v9859_v44  ;;  %v704_v13 = vmul.f32 %v687_v21, %v9861_v45  ;;  %v565_v32 = vmul.f32 %v548_v47, %v9859_v44 }
  0xf2   :  { %v681_v34 = vsel %vm13910_vm4, %v9895_v42, %v9867_v48  ;;  %v788_v39 = vrot.slane %v9778_v55, %v9700_v12  ;;  %v796_v48 = vrot.slane %v9778_v55, %v9708_v16  ;;  %v792_v23 = vrot.slane %v9778_v55, %v9698_v11 }
  0xf3   :  { %8498 = vrot.lane.b32.xlu1 %v8497_v38, %s9607_s29  ;;  %8453 = vrot.lane.b32.xlu0 %v8452_v6, %s9605_s27  ;;  %v699_v6 = vmul.f32 %v682_v33, %v9847_v37  ;;  %v8492_v38 = vpack.i.bf16 %v422_v20, %v421_v61  ;;  %v8547_v43 = vpack.i.bf16 %v704_v13, %v703_v8  ;;  %v10042_v33 = vpop.permute.xlu1 %801 }
  0xf4   :  { %v698_v53 = vmul.f32 %v681_v34, %v9871_v52 }
  0xf5   :  { %v8537_v9 = vpack.i.bf16 %v700_v7, %v699_v6 }
  0xf6   :  { %v8532_v56 = vpack.i.bf16 %v698_v53, %v697_v40 }
  0xf7   :  { %8508 = vrot.lane.b32.xlu1 %v8507_v60, %s9607_s29  ;;  %8463 = vrot.lane.b32.xlu0 %v8462_v10, %s9605_s27  ;;  %v562_v10 = vmul.f32 %v545_v25, %v9843_v35  ;;  %v566_v60 = vmul.f32 %v549_v30, %v9861_v45 }
  0xf9   :  { %v8517_v50 = vpack.i.bf16 %v562_v10, %v561_v51  ;;  %v8527_v14 = vpack.i.bf16 %v566_v60, %v565_v32 }
  0xfb   :  { %8513 = vrot.lane.b32.xlu1 %v8512_v57, %s9604_s26  ;;  %8478 = vrot.lane.b32.xlu0 %v8477_v18, %s9606_s28  ;;  %v685_v18 = vsel %vm13910_vm4, %v673_v49, %v9888_v36  ;;  %v776_v36 = vrot.slane %v9778_v55, %v9690_v5  ;;  %v784_v49 = vrot.slane %v9778_v55, %v9688_v4 }
  0xfc   :  { %v702_v42 = vmul.f32 %v685_v18, %v9886_v28  ;;  %v800_v57 = vrot.slane %v9778_v55, %v9706_v15 }
  0xfe   :  { %v8542_v54 = vpack.i.bf16 %v702_v42, %v701_v29 }
  0xff   :  { %8523 = vrot.lane.b32.xlu1 %v8522_v26, %s9604_s26  ;;  %8488 = vrot.lane.b32.xlu0 %v8487_v62, %s9606_s28 }
 0x103   :  { %8538 = vrot.lane.b32.xlu1 %v8537_v9, %s9603_s25  ;;  %8493 = vrot.lane.b32.xlu0 %v8492_v38, %s9607_s29 }
 0x107   :  { %8548 = vrot.lane.b32.xlu1 %v8547_v43, %s9603_s25  ;;  %8503 = vrot.lane.b32.xlu0 %v8502_v46, %s9607_s29 }
 0x10b   :  { %8518 = vrot.lane.b32.xlu0 %v8517_v50, %s9604_s26  ;;  %805 = vrot.lane.b32.xlu1 %v780_v31, %s9604_s26 }
 0x10f   :  { %8528 = vrot.lane.b32.xlu0 %v8527_v14, %s9604_s26  ;;  %809 = vrot.lane.b32.xlu1 %v788_v39, %s9604_s26 }
 0x113   :  { %8533 = vrot.lane.b32.xlu0 %v8532_v56, %s9603_s25  ;;  %813 = vrot.lane.b32.xlu1 %v796_v48, %s9604_s26 }
 0x117   :  { %8543 = vrot.lane.b32.xlu0 %v8542_v54, %s9603_s25 }
 0x11b   :  { %803 = vrot.lane.b32.xlu0 %v776_v36, %s9604_s26 }
 0x11f   :  { %807 = vrot.lane.b32.xlu0 %v784_v49, %s9604_s26 }
 0x121   :  { %v10048_v20 = vpop.permute.xlu0 %179 }
 0x123   :  { %811 = vrot.lane.b32.xlu0 %v792_v23, %s9604_s26 }
 0x127   :  { %815 = vrot.lane.b32.xlu0 %v800_v57, %s9604_s26 }
 0x131   :  { %v10044_v58 = vpop.permute.xlu1 %317 }
 0x141   :  { %v10052_v1 = vpop.permute.xlu0 %455 }
 0x151   :  { %v10046_v59 = vpop.permute.xlu1 %593 }
 0x155   :  { %v8459_v61 = vpop.permute.xlu1 %8458 }
 0x156   :  { %v8461_v13 = vunpack.i.h.bf16 %v8459_v61  ;;  %v8460_v9 = vunpack.i.l.bf16 %v8459_v61 }
 0x158   :  { %v184_v39 = vsel %vm181_vm5, %v8460_v9, %v8461_v13 }
 0x159   :  { %v10050_v62 = vpop.permute.xlu1 %8468 }
 0x15d   :  { %v8474_v6 = vpop.permute.xlu1 %8473 }
 0x15e   :  { %v8476_v43 = vunpack.i.h.bf16 %v8474_v6  ;;  %v8475_v46 = vunpack.i.l.bf16 %v8474_v6 }
 0x160   :  { %v320_v42 = vsel %vm319_vm6, %v8475_v46, %v8476_v43 }
 0x161   :  { %v10054_v7 = vpop.permute.xlu0 %731  ;;  %v10056_v26 = vpop.permute.xlu1 %8483 }
 0x162   :  { %v13896_v27 = vunpack.i.h.bf16 %v10056_v26  ;;  %v8485_v21 = vunpack.i.l.bf16 %v10056_v26 }
 0x164   :  { %v10071_v51 = vsel %vm319_vm6, %v8485_v21, %v13896_v27 }
 0x165   :  { %v10058_v55 = vpop.permute.xlu1 %8498  ;;  %v8454_v0 = vpop.permute.xlu0 %8453 }
 0x166   :  { %v8456_v24 = vunpack.i.h.bf16 %v8454_v0  ;;  %v8455_v25 = vunpack.i.l.bf16 %v8454_v0 }
 0x168   :  { %v183_v50 = vsel %vm181_vm5, %v8456_v24, %v8460_v9  ;;  %v182_v34 = vsel %vm181_vm5, %v8455_v25, %v8456_v24 }
 0x169   :  { %v10062_v22 = vpop.permute.xlu1 %8508  ;;  %v10064_v38 = vpop.permute.xlu0 %8463  ;;  %v3905_v54 = vpack.c.bf16 %v320_v42, %v182_v34 }
 0x16a   :  { %v13893_v41 = vunpack.i.h.bf16 %v10064_v38  ;;  %v8465_v8 = vunpack.i.l.bf16 %v10064_v38 }
 0x16c   :  { %v10076_v10 = vsel %vm181_vm5, %v8465_v8, %v13893_v41  ;;  %v185_v53 = vsel %vm181_vm5, %v8461_v13, %v8465_v8  ;;  %v8500_v8 = vunpack.i.l.bf16 %v10058_v55 }
 0x16d   :  { %v8479_v47 = vpop.permute.xlu0 %8478  ;;  %v8514_v60 = vpop.permute.xlu1 %8513 }
 0x16e   :  { %v8481_v31 = vunpack.i.h.bf16 %v8479_v47  ;;  %v8480_v32 = vunpack.i.l.bf16 %v8479_v47  ;;  %v8515_v46 = vunpack.i.l.bf16 %v8514_v60 }
 0x170   :  { %v321_v40 = vsel %vm319_vm6, %v8476_v43, %v8480_v32  ;;  %v323_v14 = vsel %vm319_vm6, %v8481_v31, %v8485_v21  ;;  %v322_v17 = vsel %vm319_vm6, %v8480_v32, %v8481_v31  ;;  %v8501_v21 = vunpack.i.h.bf16 %v10058_v55 }
 0x171   :  { %v10087_v18 = vpop.permute.xlu0 %8488  ;;  %v3906_v48 = vpack.c.bf16 %v321_v40, %v183_v50  ;;  %v3908_v29 = vpack.c.bf16 %v323_v14, %v185_v53  ;;  %v3907_v56 = vpack.c.bf16 %v322_v17, %v184_v39  ;;  %v10090_v36 = vpop.permute.xlu1 %8523  ;;  %v8516_v43 = vunpack.i.h.bf16 %v8514_v60 }
 0x172   :  { %v13892_v23 = vunpack.i.h.bf16 %v10090_v36  ;;  %v8525_v57 = vunpack.i.l.bf16 %v10090_v36  ;;  %v460_v40 = vsel %vm457_vm7, %v8500_v8, %v8501_v21 }
 0x173   :  { %4058 = vmatprep.subr.bf16.mxu0 %v3906_v48  ;;  %4099 = vmatprep.subr.bf16.mxu1 %v3908_v29 }
 0x174   :  { %4059 = vmatpush1.bf16.msra.mxu0 %v3905_v54  ;;  %4100 = vmatpush1.bf16.msra.mxu1 %v3907_v56  ;;  %v10103_v24 = vsel %vm595_vm8, %v8525_v57, %v13892_v23  ;;  %v596_v56 = vsel %vm595_vm8, %v8515_v46, %v8516_v43 }
 0x175   :  { %v8494_v49 = vpop.permute.xlu0 %8493  ;;  %v10112_v50 = vpop.permute.xlu1 %8538 }
 0x176   :  { %v8496_v13 = vunpack.i.h.bf16 %v8494_v49  ;;  %v8495_v9 = vunpack.i.l.bf16 %v8494_v49 }
 0x178   :  { %v459_v34 = vsel %vm457_vm7, %v8496_v13, %v8500_v8  ;;  %v458_v39 = vsel %vm457_vm7, %v8495_v9, %v8496_v13 }
 0x179   :  { %v10094_v61 = vpop.permute.xlu0 %8503  ;;  %v3913_v49 = vpack.c.bf16 %v596_v56, %v458_v39  ;;  %v10124_v8 = vpop.permute.xlu1 %8548 }
 0x17a   :  { %v13891_v6 = vunpack.i.h.bf16 %v10094_v61  ;;  %v8505_v0 = vunpack.i.l.bf16 %v10094_v61 }
 0x17c   :  { %v10108_v25 = vsel %vm457_vm7, %v8505_v0, %v13891_v6  ;;  %v461_v14 = vsel %vm457_vm7, %v8501_v21, %v8505_v0 }
 0x17d   :  { %v8519_v47 = vpop.permute.xlu0 %8518 }
 0x17e   :  { %v8521_v32 = vunpack.i.h.bf16 %v8519_v47  ;;  %v8520_v55 = vunpack.i.l.bf16 %v8519_v47  ;;  %v833_v47 = vmul.f32 0.0, %v10042_v33 }
 0x180   :  { %v597_v53 = vsel %vm595_vm8, %v8516_v43, %v8520_v55  ;;  %v599_v60 = vsel %vm595_vm8, %v8521_v32, %v8525_v57  ;;  %v598_v17 = vsel %vm595_vm8, %v8520_v55, %v8521_v32  ;;  %v806_v57 = vpop.permute.xlu1 %805 }
 0x181   :  { %v10121_v48 = vpop.permute.xlu0 %8528  ;;  %v3914_v29 = vpack.c.bf16 %v597_v53, %v459_v34  ;;  %v3916_v42 = vpack.c.bf16 %v599_v60, %v461_v14  ;;  %v3915_v54 = vpack.c.bf16 %v598_v17, %v460_v40 }
 0x183   :  { %4060 = vmatprep.subr.bf16.mxu0 %v3914_v29  ;;  %4101 = vmatprep.subr.bf16.mxu1 %v3916_v42 }
 0x184   :  { %4061 = vmatpush1.bf16.msra.mxu0 %v3913_v49  ;;  %4102 = vmatpush1.bf16.msra.mxu1 %v3915_v54  ;;  %v810_v46 = vpop.permute.xlu1 %809 }
 0x185   :  { %v10126_v13 = vpop.permute.xlu0 %8533 }
 0x188   :  { %v814_v60 = vpop.permute.xlu1 %813 }
 0x189   :  { %v10128_v0 = vpop.permute.xlu0 %8543 }
 0x18d   :  { %v804_v21 = vpop.permute.xlu0 %803 }
 0x18e   :  { %v817_v9 = vsel %vm595_vm8, %v10042_v33, %v804_v21  ;;  %v818_v32 = vsel %vm595_vm8, %v804_v21, %v806_v57 }
 0x18f   :  { %v834_v43 = vmul.f32 %v817_v9, %v9871_v52  ;;  %v835_v40 = vmul.f32 %v818_v32, %v9847_v37 }
 0x191   :  { %v808_v55 = vpop.permute.xlu0 %807  ;;  %v8552_v34 = vpack.i.bf16 %v834_v43, %v833_v47  ;;  %v903_v43 = vld [vmem:[#allocation7 + $0x30] sm:$0xff] }
 0x192   :  { %v819_v39 = vsel %vm595_vm8, %v806_v57, %v808_v55  ;;  %v820_v14 = vsel %vm595_vm8, %v808_v55, %v810_v46  ;;  %v912_v55 = vrot.slane %v903_v43, %v9690_v5 }
 0x193   :  { %v836_v53 = vmul.f32 %v819_v39, %v9843_v35  ;;  %8553 = vrot.lane.b32.xlu1 %v8552_v34, %s9602_s24  ;;  %v837_v42 = vmul.f32 %v820_v14, %v9884_v19  ;;  %v908_v34 = vrot.slane %v903_v43, %v9686_v3  ;;  %v920_v39 = vrot.slane %v903_v43, %v9688_v4 }
 0x194   :  { %v924_v14 = vrot.slane %v903_v43, %v9700_v12 }
 0x195   :  { %v812_v17 = vpop.permute.xlu0 %811  ;;  %v8557_v33 = vpack.i.bf16 %v836_v53, %v835_v40  ;;  %v916_v40 = vrot.slane %v903_v43, %v9684_v2  ;;  %v928_v53 = vrot.slane %v903_v43, %v9698_v11 }
 0x196   :  { %v821_v29 = vsel %vm595_vm8, %v810_v46, %v812_v17  ;;  %v822_v54 = vsel %vm595_vm8, %v812_v17, %v814_v60  ;;  %v932_v17 = vrot.slane %v903_v43, %v9708_v16 }
 0x197   :  { %v838_v56 = vmul.f32 %v821_v29, %v9886_v28  ;;  %8558 = vrot.lane.b32.xlu0 %v8557_v33, %s9602_s24  ;;  %v839_v9 = vmul.f32 %v822_v54, %v9859_v44  ;;  %v8535_v54 = vunpack.i.l.bf16 %v10126_v13 }
 0x199   :  { %v816_v49 = vpop.permute.xlu0 %815  ;;  %v8562_v57 = vpack.i.bf16 %v838_v56, %v837_v42  ;;  %v8536_v56 = vunpack.i.h.bf16 %v10126_v13 }
 0x19a   :  { %v823_v21 = vsel %vm595_vm8, %v814_v60, %v816_v49  ;;  %v841_v46 = vmul.f32 %v816_v49, %v9795_v63  ;;  %v936_v60 = vrot.slane %v903_v43, %v9706_v15  ;;  %v13889_v43 = vunpack.i.h.bf16 %v10128_v0 }
 0x19b   :  { %v840_v47 = vmul.f32 %v823_v21, %v9861_v45  ;;  %8563 = vrot.lane.b32.xlu1 %v8562_v57, %s9602_s24  ;;  %v8540_v57 = vunpack.i.l.bf16 %v10112_v50 }
 0x19d   :  { %v8567_v32 = vpack.i.bf16 %v840_v47, %v839_v9 }
 0x19f   :  { %867 = vrot.lane.b32.xlu1 %v841_v46, %s9602_s24  ;;  %8568 = vrot.lane.b32.xlu0 %v8567_v32, %s9602_s24  ;;  %v8545_v46 = vunpack.i.l.bf16 %v10128_v0  ;;  %v734_v32 = vsel %vm13910_vm4, %v8536_v56, %v8540_v57 }
 0x1a3   :  { %939 = vrot.lane.b32.xlu1 %v912_v55, %s9607_s29  ;;  %937 = vrot.lane.b32.xlu0 %v908_v34, %s9607_s29  ;;  %v8541_v34 = vunpack.i.h.bf16 %v10112_v50 }
 0x1a7   :  { %943 = vrot.lane.b32.xlu1 %v920_v39, %s9607_s29  ;;  %941 = vrot.lane.b32.xlu0 %v916_v40, %s9607_s29  ;;  %v733_v40 = vsel %vm13910_vm4, %v8535_v54, %v8536_v56 }
 0x1ab   :  { %947 = vrot.lane.b32.xlu1 %v928_v53, %s9607_s29  ;;  %945 = vrot.lane.b32.xlu0 %v924_v14, %s9607_s29 }
 0x1af   :  { %951 = vrot.lane.b32.xlu1 %v936_v60, %s9607_s29  ;;  %949 = vrot.lane.b32.xlu0 %v932_v17, %s9607_s29 }
 0x205   :  { %v8554_v33 = vpop.permute.xlu1 %8553 }
 0x206   :  { %v8556_v29 = vunpack.i.h.bf16 %v8554_v33  ;;  %v8555_v42 = vunpack.i.l.bf16 %v8554_v33  ;;  %v10186_v33 = vsel %vm13910_vm4, %v8545_v46, %v13889_v43 }
 0x207   :  { %14065 = vst [vmem:[#allocation13_spill] sm:$0xff] %v10186_v33 }
 0x208   :  { %v869_v47 = vsel %vm542_vm3, %v8555_v42, %v8556_v29 }
 0x209   :  { %v8559_v49 = vpop.permute.xlu0 %8558  ;;  %v3921_v60 = vpack.c.bf16 %v869_v47, %v733_v40 }
 0x20a   :  { %v8560_v21 = vunpack.i.l.bf16 %v8559_v49  ;;  %v8561_v9 = vunpack.i.h.bf16 %v8559_v49 }
 0x20c   :  { %v870_v55 = vsel %vm542_vm3, %v8556_v29, %v8560_v21  ;;  %v871_v17 = vsel %vm542_vm3, %v8560_v21, %v8561_v9  ;;  %v736_v29 = vsel %vm13910_vm4, %v8541_v34, %v8545_v46  ;;  %v735_v21 = vsel %vm13910_vm4, %v8540_v57, %v8541_v34 }
 0x20d   :  { %v10177_v39 = vpop.permute.xlu1 %8563  ;;  %v3922_v13 = vpack.c.bf16 %v870_v55, %v734_v32  ;;  %v3923_v32 = vpack.c.bf16 %v871_v17, %v735_v21  ;;  %vm13962_vm4 = vcmask 7168  }
 0x20e   :  { %v13890_v53 = vunpack.i.h.bf16 %v10177_v39  ;;  %v8565_v14 = vunpack.i.l.bf16 %v10177_v39 }
 0x20f   :  { %4062 = vmatprep.subr.bf16.mxu0 %v3922_v13 }
 0x210   :  { %v10191_v50 = vsel %vm542_vm3, %v8565_v14, %v13890_v53  ;;  %4063 = vmatpush1.bf16.msra.mxu0 %v3921_v60  ;;  %v872_v42 = vsel %vm542_vm3, %v8561_v9, %v8565_v14 }
 0x211   :  { %14066 = vst [vmem:[#allocation14_spill] sm:$0xff] %v10191_v50  ;;  %v10195_v56 = vpop.permute.xlu1 %867  ;;  %v10197_v54 = vpop.permute.xlu0 %8568  ;;  %v3924_v49 = vpack.c.bf16 %v872_v42, %v736_v29 }
 0x213   :  { %4103 = vmatprep.subr.bf16.mxu1 %v3924_v49 }
 0x214   :  { %4104 = vmatpush1.bf16.msra.mxu1 %v3923_v32 }
 0x215   :  { %v940_v55 = vpop.permute.xlu1 %939  ;;  %v938_v13 = vpop.permute.xlu0 %937 }
 0x216   :  { %v953_v40 = vsel %vm457_vm7, %v938_v13, %v940_v55  ;;  %v969_v46 = vmul.f32 0.0, %v938_v13 }
 0x217   :  { %v970_v9 = vmul.f32 %v953_v40, %v9871_v52 }
 0x219   :  { %v944_v14 = vpop.permute.xlu1 %943  ;;  %v942_v60 = vpop.permute.xlu0 %941  ;;  %v8572_v31 = vpack.i.bf16 %v970_v9, %v969_v46 }
 0x21a   :  { %v954_v29 = vsel %vm457_vm7, %v940_v55, %v942_v60  ;;  %v955_v57 = vsel %vm457_vm7, %v942_v60, %v944_v14 }
 0x21b   :  { %v971_v34 = vmul.f32 %v954_v29, %v9847_v37  ;;  %v972_v17 = vmul.f32 %v955_v57, %v9843_v35  ;;  %8573 = vrot.lane.b32.xlu0 %v8572_v31, %s9601_s23 }
 0x21d   :  { %v948_v42 = vpop.permute.xlu1 %947  ;;  %v946_v49 = vpop.permute.xlu0 %945  ;;  %v8577_v21 = vpack.i.bf16 %v972_v17, %v971_v34 }
 0x21e   :  { %v956_v32 = vsel %vm457_vm7, %v944_v14, %v946_v49  ;;  %v957_v13 = vsel %vm457_vm7, %v946_v49, %v948_v42  ;;  %v1039_v14 = vld [vmem:[#allocation7 + $0x38] sm:$0xff] }
 0x21f   :  { %v973_v40 = vmul.f32 %v956_v32, %v9884_v19  ;;  %v974_v46 = vmul.f32 %v957_v13, %v9886_v28  ;;  %8578 = vrot.lane.b32.xlu1 %v8577_v21, %s9601_s23  ;;  %v1048_v21 = vrot.slane %v1039_v14, %v9690_v5  ;;  %v1056_v32 = vrot.slane %v1039_v14, %v9688_v4 }
 0x220   :  { %v1052_v13 = vrot.slane %v1039_v14, %v9684_v2 }
 0x221   :  { %v952_v55 = vpop.permute.xlu1 %951  ;;  %v950_v9 = vpop.permute.xlu0 %949  ;;  %v8582_v60 = vpack.i.bf16 %v974_v46, %v973_v40  ;;  %v1064_v40 = vrot.slane %v1039_v14, %v9698_v11  ;;  %v1060_v46 = vrot.slane %v1039_v14, %v9700_v12 }
 0x222   :  { %v958_v29 = vsel %vm457_vm7, %v948_v42, %v950_v9  ;;  %v959_v31 = vsel %vm457_vm7, %v950_v9, %v952_v55  ;;  %v977_v17 = vmul.f32 %v952_v55, %v9795_v63  ;;  %v1044_v42 = vrot.slane %v1039_v14, %v9686_v3 }
 0x223   :  { %v975_v57 = vmul.f32 %v958_v29, %v9859_v44  ;;  %v976_v34 = vmul.f32 %v959_v31, %v9861_v45  ;;  %8583 = vrot.lane.b32.xlu0 %v8582_v60, %s9601_s23  ;;  %v1072_v55 = vrot.slane %v1039_v14, %v9706_v15  ;;  %v1068_v9 = vrot.slane %v1039_v14, %v9708_v16 }
 0x225   :  { %v8587_v49 = vpack.i.bf16 %v976_v34, %v975_v57 }
 0x227   :  { %1003 = vrot.lane.b32.xlu0 %v977_v17, %s9601_s23  ;;  %8588 = vrot.lane.b32.xlu1 %v8587_v49, %s9601_s23 }
 0x22b   :  { %1075 = vrot.lane.b32.xlu0 %v1048_v21, %s9606_s28  ;;  %1073 = vrot.lane.b32.xlu1 %v1044_v42, %s9606_s28 }
 0x22f   :  { %1079 = vrot.lane.b32.xlu0 %v1056_v32, %s9606_s28  ;;  %1077 = vrot.lane.b32.xlu1 %v1052_v13, %s9606_s28 }
 0x233   :  { %1083 = vrot.lane.b32.xlu0 %v1064_v40, %s9606_s28  ;;  %1081 = vrot.lane.b32.xlu1 %v1060_v46, %s9606_s28 }
 0x237   :  { %1087 = vrot.lane.b32.xlu0 %v1072_v55, %s9606_s28  ;;  %1085 = vrot.lane.b32.xlu1 %v1068_v9, %s9606_s28 }
 0x28d   :  { %v10238_v60 = vpop.permute.xlu0 %8573 }
 0x291   :  { %v10240_v29 = vpop.permute.xlu1 %8578 }
 0x295   :  { %v10242_v31 = vpop.permute.xlu0 %8583 }
 0x296   :  { %14067 = vst [vmem:[#allocation15_spill] sm:$0xff] %v10242_v31 }
 0x299   :  { %v10244_v57 = vpop.permute.xlu1 %8588  ;;  %v10246_v34 = vpop.permute.xlu0 %1003 }
 0x29a   :  { %14068 = vst [vmem:[#allocation16_spill] sm:$0xff] %v10246_v34 }
 0x29d   :  { %v1074_v17 = vpop.permute.xlu1 %1073  ;;  %v1076_v49 = vpop.permute.xlu0 %1075 }
 0x29e   :  { %v1105_v21 = vmul.f32 0.0, %v1074_v17  ;;  %v1089_v42 = vsel %vm319_vm6, %v1074_v17, %v1076_v49 }
 0x29f   :  { %v1106_v14 = vmul.f32 %v1089_v42, %v9871_v52 }
 0x2a1   :  { %v8592_v32 = vpack.i.bf16 %v1106_v14, %v1105_v21  ;;  %v1078_v13 = vpop.permute.xlu1 %1077  ;;  %v1080_v40 = vpop.permute.xlu0 %1079 }
 0x2a2   :  { %v1090_v46 = vsel %vm319_vm6, %v1076_v49, %v1078_v13  ;;  %v1091_v55 = vsel %vm319_vm6, %v1078_v13, %v1080_v40 }
 0x2a3   :  { %v1107_v9 = vmul.f32 %v1090_v46, %v9847_v37  ;;  %v1108_v47 = vmul.f32 %v1091_v55, %v9843_v35  ;;  %8593 = vrot.lane.b32.xlu1 %v8592_v32, %s9600_s22 }
 0x2a5   :  { %v8597_v43 = vpack.i.bf16 %v1108_v47, %v1107_v9  ;;  %v1082_v53 = vpop.permute.xlu1 %1081  ;;  %v1084_v30 = vpop.permute.xlu0 %1083 }
 0x2a6   :  { %v1092_v17 = vsel %vm319_vm6, %v1080_v40, %v1082_v53  ;;  %v1093_v42 = vsel %vm319_vm6, %v1082_v53, %v1084_v30  ;;  %v1175_v53 = vld [vmem:[#allocation7 + $0x40] sm:$0xff] }
 0x2a7   :  { %v1109_v21 = vmul.f32 %v1092_v17, %v9884_v19  ;;  %v1110_v14 = vmul.f32 %v1093_v42, %v9886_v28  ;;  %8598 = vrot.lane.b32.xlu0 %v8597_v43, %s9600_s22  ;;  %v1184_v43 = vrot.slane %v1175_v53, %v9690_v5  ;;  %v1192_v42 = vrot.slane %v1175_v53, %v9688_v4 }
 0x2a9   :  { %v8602_v49 = vpack.i.bf16 %v1110_v14, %v1109_v21  ;;  %v1086_v13 = vpop.permute.xlu1 %1085  ;;  %v1088_v46 = vpop.permute.xlu0 %1087  ;;  %v1188_v21 = vrot.slane %v1175_v53, %v9684_v2  ;;  %v1196_v14 = vrot.slane %v1175_v53, %v9700_v12 }
 0x2aa   :  { %v1094_v55 = vsel %vm319_vm6, %v1084_v30, %v1086_v13  ;;  %v1095_v32 = vsel %vm319_vm6, %v1086_v13, %v1088_v46  ;;  %v1113_v40 = vmul.f32 %v1088_v46, %v9795_v63  ;;  %v1180_v30 = vrot.slane %v1175_v53, %v9686_v3 }
 0x2ab   :  { %v1111_v47 = vmul.f32 %v1094_v55, %v9859_v44  ;;  %v1112_v9 = vmul.f32 %v1095_v32, %v9861_v45  ;;  %8603 = vrot.lane.b32.xlu1 %v8602_v49, %s9600_s22  ;;  %v1200_v63 = vrot.slane %v1175_v53, %v9698_v11  ;;  %v1208_v49 = vrot.slane %v1175_v53, %v9706_v15 }
 0x2ac   :  { %v1204_v13 = vrot.slane %v1175_v53, %v9708_v16  ;;  %v13894_v53 = vunpack.i.h.bf16 %v10242_v31 }
 0x2ad   :  { %v8607_v17 = vpack.i.bf16 %v1112_v9, %v1111_v47  ;;  %v8580_v47 = vunpack.i.l.bf16 %v10240_v29  ;;  %v8576_v9 = vunpack.i.h.bf16 %v10238_v60 }
 0x2af   :  { %1139 = vrot.lane.b32.xlu1 %v1113_v40, %s9600_s22  ;;  %8608 = vrot.lane.b32.xlu0 %v8607_v17, %s9600_s22  ;;  %v8575_v40 = vunpack.i.l.bf16 %v10238_v60 }
 0x2b1   :  { %v1005_v60 = vsel %vm404_vm2, %v8575_v40, %v8576_v9 }
 0x2b3   :  { %1211 = vrot.lane.b32.xlu1 %v1184_v43, %s9605_s27  ;;  %1209 = vrot.lane.b32.xlu0 %v1180_v30, %s9605_s27 }
 0x2b7   :  { %1215 = vrot.lane.b32.xlu1 %v1192_v42, %s9605_s27  ;;  %1213 = vrot.lane.b32.xlu0 %v1188_v21, %s9605_s27  ;;  %v8585_v21 = vunpack.i.l.bf16 %v10242_v31 }
 0x2b9   :  { %v10302_v41 = vsel %vm404_vm2, %v8585_v21, %v13894_v53 }
 0x2ba   :  { %14069 = vst [vmem:[#allocation17_spill] sm:$0xff] %v10302_v41 }
 0x2bb   :  { %1219 = vrot.lane.b32.xlu1 %v1200_v63, %s9605_s27  ;;  %1217 = vrot.lane.b32.xlu0 %v1196_v14, %s9605_s27  ;;  %v1006_v63 = vsel %vm404_vm2, %v8576_v9, %v8580_v47 }
 0x2bf   :  { %1223 = vrot.lane.b32.xlu1 %v1208_v49, %s9605_s27  ;;  %1221 = vrot.lane.b32.xlu0 %v1204_v13, %s9605_s27  ;;  %v8581_v49 = vunpack.i.h.bf16 %v10240_v29 }
 0x315   :  { %v8594_v46 = vpop.permute.xlu1 %8593 }
 0x316   :  { %v8596_v55 = vunpack.i.h.bf16 %v8594_v46  ;;  %v8595_v32 = vunpack.i.l.bf16 %v8594_v46 }
 0x318   :  { %v1141_v42 = vsel %vm266_vm1, %v8595_v32, %v8596_v55 }
 0x319   :  { %v8599_v17 = vpop.permute.xlu0 %8598  ;;  %v3929_v32 = vpack.c.bf16 %v1141_v42, %v1005_v60 }
 0x31a   :  { %v8600_v43 = vunpack.i.l.bf16 %v8599_v17  ;;  %v8601_v30 = vunpack.i.h.bf16 %v8599_v17 }
 0x31c   :  { %v1142_v14 = vsel %vm266_vm1, %v8596_v55, %v8600_v43  ;;  %v1143_v23 = vsel %vm266_vm1, %v8600_v43, %v8601_v30  ;;  %v1008_v55 = vsel %vm404_vm2, %v8581_v49, %v8585_v21 }
 0x31d   :  { %v10293_v13 = vpop.permute.xlu1 %8603  ;;  %v3930_v46 = vpack.c.bf16 %v1142_v14, %v1006_v63  ;;  %v1007_v63 = vsel %vm404_vm2, %v8580_v47, %v8581_v49 }
 0x31e   :  { %v13895_v6 = vunpack.i.h.bf16 %v10293_v13  ;;  %v8605_v17 = vunpack.i.l.bf16 %v10293_v13 }
 0x31f   :  { %4064 = vmatprep.subr.bf16.mxu0 %v3930_v46  ;;  %v3931_v46 = vpack.c.bf16 %v1143_v23, %v1007_v63 }
 0x320   :  { %v10307_v29 = vsel %vm266_vm1, %v8605_v17, %v13895_v6  ;;  %4065 = vmatpush1.bf16.msra.mxu0 %v3929_v32  ;;  %v1144_v9 = vsel %vm266_vm1, %v8601_v30, %v8605_v17 }
 0x321   :  { %14070 = vst [vmem:[#allocation18_spill] sm:$0xff] %v10307_v29  ;;  %v10311_v40 = vpop.permute.xlu1 %1139  ;;  %v10313_v42 = vpop.permute.xlu0 %8608  ;;  %v3932_v43 = vpack.c.bf16 %v1144_v9, %v1008_v55 }
 0x322   :  { %14071 = vst [vmem:[#allocation19_spill] sm:$0xff] %v10311_v40 }
 0x323   :  { %4105 = vmatprep.subr.bf16.mxu1 %v3932_v43 }
 0x324   :  { %4106 = vmatpush1.bf16.msra.mxu1 %v3931_v46 }
 0x325   :  { %v1212_v60 = vpop.permute.xlu1 %1211  ;;  %v1210_v53 = vpop.permute.xlu0 %1209 }
 0x326   :  { %v1225_v32 = vsel %vm181_vm5, %v1210_v53, %v1212_v60  ;;  %v1241_v21 = vmul.f32 0.0, %v1210_v53 }
 0x327   :  { %v1242_v30 = vmul.f32 %v1225_v32, %v9871_v52 }
 0x329   :  { %v8612_v17 = vpack.i.bf16 %v1242_v30, %v1241_v21  ;;  %v1216_v6 = vpop.permute.xlu1 %1215  ;;  %v1214_v27 = vpop.permute.xlu0 %1213 }
 0x32a   :  { %v1226_v55 = vsel %vm181_vm5, %v1212_v60, %v1214_v27  ;;  %v1227_v47 = vsel %vm181_vm5, %v1214_v27, %v1216_v6 }
 0x32b   :  { %v1243_v49 = vmul.f32 %v1226_v55, %v9847_v37  ;;  %v1244_v23 = vmul.f32 %v1227_v47, %v9843_v35  ;;  %8613 = vrot.lane.b32.xlu0 %v8612_v17, %s9599_s5  ;;  %v10335_v55 = vld [vmem:[#allocation4 + $0x38] sm:$0xff] }
 0x32d   :  { %v8617_v9 = vpack.i.bf16 %v1244_v23, %v1243_v49  ;;  %v1220_v43 = vpop.permute.xlu1 %1219  ;;  %v1218_v63 = vpop.permute.xlu0 %1217 }
 0x32e   :  { %v1228_v53 = vsel %vm181_vm5, %v1216_v6, %v1218_v63  ;;  %v1229_v52 = vsel %vm181_vm5, %v1218_v63, %v1220_v43  ;;  %v1311_v6 = vld [vmem:[#allocation7 + $0x48] sm:$0xff] }
 0x32f   :  { %v1245_v46 = vmul.f32 %v1228_v53, %v9884_v19  ;;  %v1246_v32 = vmul.f32 %v1229_v52, %v9886_v28  ;;  %8618 = vrot.lane.b32.xlu1 %v8617_v9, %s9599_s5  ;;  %v1320_v47 = vrot.slane %v1311_v6, %v9690_v5  ;;  %v1316_v49 = vrot.slane %v1311_v6, %v9686_v3 }
 0x330   :  { %v1336_v23 = vrot.slane %v1311_v6, %v9698_v11  ;;  %v1332_v9 = vrot.slane %v1311_v6, %v9700_v12  ;;  %v1340_v63 = vrot.slane %v1311_v6, %v9708_v16 }
 0x331   :  { %v8622_v27 = vpack.i.bf16 %v1246_v32, %v1245_v46  ;;  %v1224_v60 = vpop.permute.xlu1 %1223  ;;  %v1222_v37 = vpop.permute.xlu0 %1221 }
 0x332   :  { %v1230_v35 = vsel %vm181_vm5, %v1220_v43, %v1222_v37  ;;  %v1231_v21 = vsel %vm181_vm5, %v1222_v37, %v1224_v60  ;;  %v1249_v19 = vmul.f32 %v10335_v55, %v1224_v60  ;;  %v1344_v43 = vrot.slane %v1311_v6, %v9706_v15 }
 0x333   :  { %v1247_v30 = vmul.f32 %v1230_v35, %v9859_v44  ;;  %v1248_v17 = vmul.f32 %v1231_v21, %v9861_v45  ;;  %8623 = vrot.lane.b32.xlu0 %v8622_v27, %s9599_s5  ;;  %v1328_v44 = vrot.slane %v1311_v6, %v9688_v4  ;;  %v1324_v45 = vrot.slane %v1311_v6, %v9684_v2 }
 0x335   :  { %v8627_v28 = vpack.i.bf16 %v1248_v17, %v1247_v30  ;;  %v10367_v30 = vld [vmem:[#allocation4] sm:$0xff] }
 0x337   :  { %1275 = vrot.lane.b32.xlu0 %v1249_v19, %s9599_s5  ;;  %8628 = vrot.lane.b32.xlu1 %v8627_v28, %s9599_s5 }
 0x33b   :  { %1347 = vrot.lane.b32.xlu0 %v1320_v47, %s9608_s30  ;;  %1345 = vrot.lane.b32.xlu1 %v1316_v49, %s9608_s30 }
 0x33f   :  { %1351 = vrot.lane.b32.xlu0 %v1328_v44, %s9608_s30  ;;  %1349 = vrot.lane.b32.xlu1 %v1324_v45, %s9608_s30  ;;  %v10372_v44 = vld [vmem:[#allocation4 + $0x8] sm:$0xff] }
 0x343   :  { %1355 = vrot.lane.b32.xlu0 %v1336_v23, %s9608_s30  ;;  %1353 = vrot.lane.b32.xlu1 %v1332_v9, %s9608_s30  ;;  %v10375_v23 = vld [vmem:[#allocation4 + $0x10] sm:$0xff] }
 0x347   :  { %1359 = vrot.lane.b32.xlu0 %v1344_v43, %s9608_s30  ;;  %1357 = vrot.lane.b32.xlu1 %v1340_v63, %s9608_s30 }
 0x39d   :  { %v10356_v53 = vpop.permute.xlu0 %8613 }
 0x3a1   :  { %v10358_v52 = vpop.permute.xlu1 %8618 }
 0x3a2   :  { %v8621_v29 = vunpack.i.h.bf16 %v10358_v52 }
 0x3a5   :  { %v10360_v46 = vpop.permute.xlu0 %8623 }
 0x3a6   :  { %14072 = vst [vmem:[#allocation20_spill] sm:$0xff] %v10360_v46  ;;  %v14076_v50 = vunpack.i.h.bf16 %v10360_v46 }
 0x3a9   :  { %v10362_v32 = vpop.permute.xlu1 %8628  ;;  %v10364_v27 = vpop.permute.xlu0 %1275 }
 0x3aa   :  { %14073 = vst [vmem:[#allocation21_spill] sm:$0xff] %v10362_v32  ;;  %14074 = vst [vmem:[#allocation22_spill] sm:$0xff] %v10364_v27  ;;  %v10393_v27 = vld [vmem:[#allocation4 + $0x30] sm:$0xff] }
 0x3ad   :  { %v1346_v60 = vpop.permute.xlu1 %1345  ;;  %v1348_v37 = vpop.permute.xlu0 %1347 }
 0x3ae   :  { %v1378_v35 = vmul.f32 0.0, %v1346_v60  ;;  %v1362_v21 = vsel %vm13945_vm9, %v1346_v60, %v1348_v37 }
 0x3af   :  { %v1379_v17 = vmul.f32 %v10367_v30, %v1362_v21  ;;  %v10381_v21 = vld [vmem:[#allocation4 + $0x18] sm:$0xff] }
 0x3b1   :  { %v8632_v6 = vpack.i.bf16 %v1379_v17, %v1378_v35  ;;  %v1350_v19 = vpop.permute.xlu1 %1349  ;;  %v1352_v28 = vpop.permute.xlu0 %1351 }
 0x3b2   :  { %v1363_v47 = vsel %vm13945_vm9, %v1348_v37, %v1350_v19  ;;  %v1364_v49 = vsel %vm13945_vm9, %v1350_v19, %v1352_v28  ;;  %v10384_v19 = vld [vmem:[#allocation4 + $0x20] sm:$0xff] }
 0x3b3   :  { %v1380_v45 = vmul.f32 %v10372_v44, %v1363_v47  ;;  %v1381_v9 = vmul.f32 %v10375_v23, %v1364_v49  ;;  %8633 = vrot.lane.b32.xlu1 %v8632_v6, %s9609_s7 }
 0x3b5   :  { %v8637_v43 = vpack.i.bf16 %v1381_v9, %v1380_v45  ;;  %v1354_v63 = vpop.permute.xlu1 %1353  ;;  %v1356_v60 = vpop.permute.xlu0 %1355 }
 0x3b6   :  { %v1365_v35 = vsel %vm13945_vm9, %v1352_v28, %v1354_v63  ;;  %v1366_v37 = vsel %vm13945_vm9, %v1354_v63, %v1356_v60  ;;  %v10390_v28 = vld [vmem:[#allocation4 + $0x28] sm:$0xff] }
 0x3b7   :  { %v1382_v17 = vmul.f32 %v10381_v21, %v1365_v35  ;;  %v1383_v47 = vmul.f32 %v10384_v19, %v1366_v37  ;;  %8638 = vrot.lane.b32.xlu0 %v8637_v43, %s9609_s7  ;;  %v1449_v37 = vld [vmem:[#allocation7 + $0x50] sm:$0xff] }
 0x3b9   :  { %v8642_v49 = vpack.i.bf16 %v1383_v47, %v1382_v17  ;;  %v1358_v14 = vpop.permute.xlu1 %1357  ;;  %v1360_v6 = vpop.permute.xlu0 %1359  ;;  %v1466_v47 = vrot.slane %v1449_v37, %v9688_v4 }
 0x3ba   :  { %v1367_v45 = vsel %vm13945_vm9, %v1356_v60, %v1358_v14  ;;  %v1368_v9 = vsel %vm13945_vm9, %v1358_v14, %v1360_v6  ;;  %v1386_v43 = vmul.f32 %v10335_v55, %v1360_v6  ;;  %v1458_v14 = vrot.slane %v1449_v37, %v9690_v5 }
 0x3bb   :  { %v1384_v63 = vmul.f32 %v10390_v28, %v1367_v45  ;;  %v1385_v35 = vmul.f32 %v10393_v27, %v1368_v9  ;;  %8643 = vrot.lane.b32.xlu1 %v8642_v49, %s9609_s7  ;;  %v1454_v60 = vrot.slane %v1449_v37, %v9686_v3  ;;  %v1462_v49 = vrot.slane %v1449_v37, %v9684_v2 }
 0x3bc   :  { %v1474_v6 = vrot.slane %v1449_v37, %v9698_v11  ;;  %v1470_v45 = vrot.slane %v1449_v37, %v9700_v12  ;;  %v1482_v9 = vrot.slane %v1449_v37, %v9706_v15 }
 0x3bd   :  { %v8647_v17 = vpack.i.bf16 %v1385_v35, %v1384_v63  ;;  %v1478_v63 = vrot.slane %v1449_v37, %v9708_v16 }
 0x3bf   :  { %1412 = vrot.lane.b32.xlu1 %v1386_v43, %s9609_s7  ;;  %8648 = vrot.lane.b32.xlu0 %v8647_v17, %s9609_s7 }
 0x3c3   :  { %1485 = vrot.lane.b32.xlu1 %v1458_v14, %s9610_s8  ;;  %1483 = vrot.lane.b32.xlu0 %v1454_v60, %s9610_s8  ;;  %v8620_v14 = vunpack.i.l.bf16 %v10358_v52  ;;  %v8616_v60 = vunpack.i.h.bf16 %v10356_v53 }
 0x3c7   :  { %1489 = vrot.lane.b32.xlu1 %v1466_v47, %s9610_s8  ;;  %1487 = vrot.lane.b32.xlu0 %v1462_v49, %s9610_s8  ;;  %v8615_v47 = vunpack.i.l.bf16 %v10356_v53 }
 0x3c9   :  { %v1277_v53 = vsel %vm128_vm0, %v8615_v47, %v8616_v60 }
 0x3cb   :  { %1493 = vrot.lane.b32.xlu1 %v1474_v6, %s9610_s8  ;;  %1491 = vrot.lane.b32.xlu0 %v1470_v45, %s9610_s8 }
 0x3cf   :  { %1497 = vrot.lane.b32.xlu1 %v1482_v9, %s9610_s8  ;;  %1495 = vrot.lane.b32.xlu0 %v1478_v63, %s9610_s8  ;;  %v8625_v9 = vunpack.i.l.bf16 %v10360_v46  ;;  %v1278_v63 = vsel %vm128_vm0, %v8616_v60, %v8620_v14 }
 0x3d1   :  { %v10434_v31 = vsel %vm128_vm0, %v8625_v9, %v14076_v50 }
 0x3d2   :  { %14077 = vst [vmem:[#allocation24_spill] sm:$0xff] %v10434_v31 }
 0x425   :  { %v8634_v35 = vpop.permute.xlu1 %8633 }
 0x426   :  { %v8636_v43 = vunpack.i.h.bf16 %v8634_v35  ;;  %v8635_v17 = vunpack.i.l.bf16 %v8634_v35 }
 0x428   :  { %v1415_v41 = vsel %vm1414_vm10, %v8635_v17, %v8636_v43 }
 0x429   :  { %v8639_v49 = vpop.permute.xlu0 %8638  ;;  %v3937_v17 = vpack.c.bf16 %v1415_v41, %v1277_v53 }
 0x42a   :  { %v8640_v6 = vunpack.i.l.bf16 %v8639_v49  ;;  %v8641_v45 = vunpack.i.h.bf16 %v8639_v49 }
 0x42c   :  { %v1416_v35 = vsel %vm1414_vm10, %v8636_v43, %v8640_v6  ;;  %v1417_v37 = vsel %vm1414_vm10, %v8640_v6, %v8641_v45  ;;  %v1280_v43 = vsel %vm128_vm0, %v8621_v29, %v8625_v9  ;;  %v1279_v6 = vsel %vm128_vm0, %v8620_v14, %v8621_v29 }
 0x42d   :  { %v10425_v34 = vpop.permute.xlu1 %8643  ;;  %v3938_v40 = vpack.c.bf16 %v1416_v35, %v1278_v63  ;;  %v3939_v63 = vpack.c.bf16 %v1417_v37, %v1279_v6 }
 0x42e   :  { %14075 = vst [vmem:[#allocation23_spill] sm:$0xff] %v10425_v34  ;;  %v13902_v33 = vunpack.i.h.bf16 %v10425_v34  ;;  %v8645_v49 = vunpack.i.l.bf16 %v10425_v34 }
 0x42f   :  { %4066 = vmatprep.subr.bf16.mxu0 %v3938_v40 }
 0x430   :  { %v10439_v52 = vsel %vm1414_vm10, %v8645_v49, %v13902_v33  ;;  %4067 = vmatpush1.bf16.msra.mxu0 %v3937_v17  ;;  %v1418_v60 = vsel %vm1414_vm10, %v8641_v45, %v8645_v49 }
 0x431   :  { %14078 = vst [vmem:[#allocation25_spill] sm:$0xff] %v10439_v52  ;;  %v10443_v47 = vpop.permute.xlu1 %1412  ;;  %v10445_v41 = vpop.permute.xlu0 %8648  ;;  %v3940_v40 = vpack.c.bf16 %v1418_v60, %v1280_v43 }
 0x432   :  { %14079 = vst [vmem:[#allocation26_spill] sm:$0xff] %v10443_v47 }
 0x433   :  { %4107 = vmatprep.subr.bf16.mxu1 %v3940_v40 }
 0x434   :  { %4108 = vmatpush1.bf16.msra.mxu1 %v3939_v63 }
 0x435   :  { %v1486_v35 = vpop.permute.xlu1 %1485  ;;  %v1484_v53 = vpop.permute.xlu0 %1483 }
 0x436   :  { %v1500_v9 = vsel %vm13943_vm11, %v1484_v53, %v1486_v35  ;;  %v1516_v17 = vmul.f32 0.0, %v1484_v53 }
 0x437   :  { %v1517_v45 = vmul.f32 %v10367_v30, %v1500_v9 }
 0x439   :  { %v1490_v49 = vpop.permute.xlu1 %1489  ;;  %v1488_v33 = vpop.permute.xlu0 %1487  ;;  %v8652_v47 = vpack.i.bf16 %v1517_v45, %v1516_v17 }
 0x43a   :  { %v1501_v43 = vsel %vm13943_vm11, %v1486_v35, %v1488_v33  ;;  %v1502_v29 = vsel %vm13943_vm11, %v1488_v33, %v1490_v49 }
 0x43b   :  { %v1518_v14 = vmul.f32 %v10372_v44, %v1501_v43  ;;  %v1519_v37 = vmul.f32 %v10375_v23, %v1502_v29  ;;  %8653 = vrot.lane.b32.xlu0 %v8652_v47, %s9598_s19 }
 0x43d   :  { %v1494_v60 = vpop.permute.xlu1 %1493  ;;  %v1492_v40 = vpop.permute.xlu0 %1491  ;;  %v8657_v6 = vpack.i.bf16 %v1519_v37, %v1518_v14 }
 0x43e   :  { %v1503_v63 = vsel %vm13943_vm11, %v1490_v49, %v1492_v40  ;;  %v1504_v53 = vsel %vm13943_vm11, %v1492_v40, %v1494_v60  ;;  %v1587_v49 = vld [vmem:[#allocation7 + $0x58] sm:$0xff] }
 0x43f   :  { %v1520_v9 = vmul.f32 %v10381_v21, %v1503_v63  ;;  %v1521_v17 = vmul.f32 %v10384_v19, %v1504_v53  ;;  %8658 = vrot.lane.b32.xlu1 %v8657_v6, %s9598_s19  ;;  %v1596_v6 = vrot.slane %v1587_v49, %v9690_v5  ;;  %v1604_v63 = vrot.slane %v1587_v49, %v9688_v4 }
 0x440   :  { %v1600_v53 = vrot.slane %v1587_v49, %v9684_v2 }
 0x441   :  { %v1498_v33 = vpop.permute.xlu1 %1497  ;;  %v1496_v35 = vpop.permute.xlu0 %1495  ;;  %v8662_v45 = vpack.i.bf16 %v1521_v17, %v1520_v9  ;;  %v1612_v9 = vrot.slane %v1587_v49, %v9698_v11  ;;  %v1608_v17 = vrot.slane %v1587_v49, %v9700_v12 }
 0x442   :  { %v1505_v43 = vsel %vm13943_vm11, %v1494_v60, %v1496_v35  ;;  %v1506_v47 = vsel %vm13943_vm11, %v1496_v35, %v1498_v33  ;;  %v1524_v37 = vmul.f32 %v10335_v55, %v1498_v33  ;;  %v1592_v60 = vrot.slane %v1587_v49, %v9686_v3 }
 0x443   :  { %v1522_v29 = vmul.f32 %v10390_v28, %v1505_v43  ;;  %v1523_v14 = vmul.f32 %v10393_v27, %v1506_v47  ;;  %8663 = vrot.lane.b32.xlu0 %v8662_v45, %s9598_s19  ;;  %v1620_v33 = vrot.slane %v1587_v49, %v9706_v15  ;;  %v1616_v35 = vrot.slane %v1587_v49, %v9708_v16 }
 0x445   :  { %v8667_v40 = vpack.i.bf16 %v1523_v14, %v1522_v29 }
 0x447   :  { %1550 = vrot.lane.b32.xlu0 %v1524_v37, %s9598_s19  ;;  %8668 = vrot.lane.b32.xlu1 %v8667_v40, %s9598_s19 }
 0x44b   :  { %1623 = vrot.lane.b32.xlu0 %v1596_v6, %s9611_s9  ;;  %1621 = vrot.lane.b32.xlu1 %v1592_v60, %s9611_s9 }
 0x44f   :  { %1627 = vrot.lane.b32.xlu0 %v1604_v63, %s9611_s9  ;;  %1625 = vrot.lane.b32.xlu1 %v1600_v53, %s9611_s9 }
 0x453   :  { %1631 = vrot.lane.b32.xlu0 %v1612_v9, %s9611_s9  ;;  %1629 = vrot.lane.b32.xlu1 %v1608_v17, %s9611_s9 }
 0x457   :  { %1635 = vrot.lane.b32.xlu0 %v1620_v33, %s9611_s9  ;;  %1633 = vrot.lane.b32.xlu1 %v1616_v35, %s9611_s9 }
 0x4ad   :  { %v10486_v45 = vpop.permute.xlu0 %8653 }
 0x4b1   :  { %v10488_v43 = vpop.permute.xlu1 %8658 }
 0x4b5   :  { %v10490_v47 = vpop.permute.xlu0 %8663 }
 0x4b6   :  { %14080 = vst [vmem:[#allocation27_spill] sm:$0xff] %v10490_v47  ;;  %v14084_v34 = vunpack.i.h.bf16 %v10490_v47 }
 0x4b9   :  { %v10492_v29 = vpop.permute.xlu1 %8668  ;;  %v10494_v14 = vpop.permute.xlu0 %1550 }
 0x4ba   :  { %14081 = vst [vmem:[#allocation28_spill] sm:$0xff] %v10492_v29  ;;  %14082 = vst [vmem:[#allocation29_spill] sm:$0xff] %v10494_v14 }
 0x4bd   :  { %v1622_v37 = vpop.permute.xlu1 %1621  ;;  %v1624_v40 = vpop.permute.xlu0 %1623 }
 0x4be   :  { %v1654_v6 = vmul.f32 0.0, %v1622_v37  ;;  %v1638_v49 = vsel %vm13947_vm12, %v1622_v37, %v1624_v40 }
 0x4bf   :  { %v1655_v60 = vmul.f32 %v10367_v30, %v1638_v49 }
 0x4c1   :  { %v8672_v63 = vpack.i.bf16 %v1655_v60, %v1654_v6  ;;  %v1626_v53 = vpop.permute.xlu1 %1625  ;;  %v1628_v9 = vpop.permute.xlu0 %1627 }
 0x4c2   :  { %v1639_v17 = vsel %vm13947_vm12, %v1624_v40, %v1626_v53  ;;  %v1640_v33 = vsel %vm13947_vm12, %v1626_v53, %v1628_v9 }
 0x4c3   :  { %v1656_v35 = vmul.f32 %v10372_v44, %v1639_v17  ;;  %v1657_v50 = vmul.f32 %v10375_v23, %v1640_v33  ;;  %8673 = vrot.lane.b32.xlu1 %v8672_v63, %s9612_s10 }
 0x4c5   :  { %v8677_v14 = vpack.i.bf16 %v1657_v50, %v1656_v35  ;;  %v1630_v31 = vpop.permute.xlu1 %1629  ;;  %v1632_v52 = vpop.permute.xlu0 %1631 }
 0x4c6   :  { %v1641_v37 = vsel %vm13947_vm12, %v1628_v9, %v1630_v31  ;;  %v1642_v6 = vsel %vm13947_vm12, %v1630_v31, %v1632_v52  ;;  %v1725_v31 = vld [vmem:[#allocation7 + $0x60] sm:$0xff] }
 0x4c7   :  { %v1658_v49 = vmul.f32 %v10381_v21, %v1641_v37  ;;  %v1659_v40 = vmul.f32 %v10384_v19, %v1642_v6  ;;  %8678 = vrot.lane.b32.xlu0 %v8677_v14, %s9612_s10  ;;  %v1734_v14 = vrot.slane %v1725_v31, %v9690_v5  ;;  %v1742_v6 = vrot.slane %v1725_v31, %v9688_v4 }
 0x4c9   :  { %v8682_v60 = vpack.i.bf16 %v1659_v40, %v1658_v49  ;;  %v1634_v53 = vpop.permute.xlu1 %1633  ;;  %v1636_v17 = vpop.permute.xlu0 %1635  ;;  %v1738_v49 = vrot.slane %v1725_v31, %v9684_v2  ;;  %v1750_v40 = vrot.slane %v1725_v31, %v9698_v11 }
 0x4ca   :  { %v1643_v33 = vsel %vm13947_vm12, %v1632_v52, %v1634_v53  ;;  %v1644_v63 = vsel %vm13947_vm12, %v1634_v53, %v1636_v17  ;;  %v1662_v9 = vmul.f32 %v10335_v55, %v1636_v17  ;;  %v1730_v52 = vrot.slane %v1725_v31, %v9686_v3 }
 0x4cb   :  { %v1660_v50 = vmul.f32 %v10390_v28, %v1643_v33  ;;  %v1661_v35 = vmul.f32 %v10393_v27, %v1644_v63  ;;  %8683 = vrot.lane.b32.xlu1 %v8682_v60, %s9612_s10  ;;  %v1746_v60 = vrot.slane %v1725_v31, %v9700_v12  ;;  %v1758_v53 = vrot.slane %v1725_v31, %v9706_v15 }
 0x4cc   :  { %v1754_v17 = vrot.slane %v1725_v31, %v9708_v16 }
 0x4cd   :  { %v8687_v37 = vpack.i.bf16 %v1661_v35, %v1660_v50  ;;  %v8660_v35 = vunpack.i.l.bf16 %v10488_v43 }
 0x4cf   :  { %1688 = vrot.lane.b32.xlu1 %v1662_v9, %s9612_s10  ;;  %8688 = vrot.lane.b32.xlu0 %v8687_v37, %s9612_s10  ;;  %v8656_v9 = vunpack.i.h.bf16 %v10486_v45  ;;  %v8655_v37 = vunpack.i.l.bf16 %v10486_v45 }
 0x4d1   :  { %v1553_v45 = vsel %vm13963_vm14, %v8655_v37, %v8656_v9 }
 0x4d3   :  { %1761 = vrot.lane.b32.xlu1 %v1734_v14, %s9613_s11  ;;  %1759 = vrot.lane.b32.xlu0 %v1730_v52, %s9613_s11 }
 0x4d7   :  { %1765 = vrot.lane.b32.xlu1 %v1742_v6, %s9613_s11  ;;  %1763 = vrot.lane.b32.xlu0 %v1738_v49, %s9613_s11 }
 0x4db   :  { %1769 = vrot.lane.b32.xlu1 %v1750_v40, %s9613_s11  ;;  %1767 = vrot.lane.b32.xlu0 %v1746_v60, %s9613_s11  ;;  %v8665_v40 = vunpack.i.l.bf16 %v10490_v47  ;;  %v1554_v60 = vsel %vm13963_vm14, %v8656_v9, %v8660_v35 }
 0x4dd   :  { %v10550_v32 = vsel %vm13963_vm14, %v8665_v40, %v14084_v34 }
 0x4de   :  { %14085 = vst [vmem:[#allocation31_spill] sm:$0xff] %v10550_v32 }
 0x4df   :  { %1773 = vrot.lane.b32.xlu1 %v1758_v53, %s9613_s11  ;;  %1771 = vrot.lane.b32.xlu0 %v1754_v17, %s9613_s11  ;;  %v8661_v17 = vunpack.i.h.bf16 %v10488_v43 }
 0x535   :  { %v8674_v33 = vpop.permute.xlu1 %8673 }
 0x536   :  { %v8676_v63 = vunpack.i.h.bf16 %v8674_v33  ;;  %v8675_v50 = vunpack.i.l.bf16 %v8674_v33 }
 0x538   :  { %v1691_v31 = vsel %vm1690_vm13, %v8675_v50, %v8676_v63 }
 0x539   :  { %v8679_v14 = vpop.permute.xlu0 %8678  ;;  %v3945_v50 = vpack.c.bf16 %v1691_v31, %v1553_v45  ;;  %v1555_v31 = vsel %vm13963_vm14, %v8660_v35, %v8661_v17 }
 0x53a   :  { %v8680_v52 = vunpack.i.l.bf16 %v8679_v14  ;;  %v8681_v6 = vunpack.i.h.bf16 %v8679_v14 }
 0x53c   :  { %v1692_v53 = vsel %vm1690_vm13, %v8676_v63, %v8680_v52  ;;  %v1693_v49 = vsel %vm1690_vm13, %v8680_v52, %v8681_v6  ;;  %v1556_v63 = vsel %vm13963_vm14, %v8661_v17, %v8665_v40 }
 0x53d   :  { %v10541_v33 = vpop.permute.xlu1 %8683  ;;  %v3946_v46 = vpack.c.bf16 %v1692_v53, %v1554_v60  ;;  %v3947_v60 = vpack.c.bf16 %v1693_v49, %v1555_v31 }
 0x53e   :  { %14083 = vst [vmem:[#allocation30_spill] sm:$0xff] %v10541_v33  ;;  %v13909_v29 = vunpack.i.h.bf16 %v10541_v33  ;;  %v8685_v14 = vunpack.i.l.bf16 %v10541_v33 }
 0x53f   :  { %4068 = vmatprep.subr.bf16.mxu0 %v3946_v46 }
 0x540   :  { %v10555_v43 = vsel %vm1690_vm13, %v8685_v14, %v13909_v29  ;;  %4069 = vmatpush1.bf16.msra.mxu0 %v3945_v50  ;;  %v1694_v9 = vsel %vm1690_vm13, %v8681_v6, %v8685_v14 }
 0x541   :  { %14086 = vst [vmem:[#allocation32_spill] sm:$0xff] %v10555_v43  ;;  %v10559_v37 = vpop.permute.xlu1 %1688  ;;  %v10561_v46 = vpop.permute.xlu0 %8688  ;;  %v3948_v52 = vpack.c.bf16 %v1694_v9, %v1556_v63 }
 0x542   :  { %14087 = vst [vmem:[#allocation33_spill] sm:$0xff] %v10559_v37  ;;  %14088 = vst [vmem:[#allocation34_spill] sm:$0xff] %v10561_v46 }
 0x543   :  { %4109 = vmatprep.subr.bf16.mxu1 %v3948_v52 }
 0x544   :  { %4110 = vmatpush1.bf16.msra.mxu1 %v3947_v60 }
 0x545   :  { %v1762_v53 = vpop.permute.xlu1 %1761  ;;  %v1760_v45 = vpop.permute.xlu0 %1759 }
 0x546   :  { %v1776_v40 = vsel %vm13946_vm15, %v1760_v45, %v1762_v53  ;;  %v1792_v50 = vmul.f32 0.0, %v1760_v45 }
 0x547   :  { %v1793_v6 = vmul.f32 %v10367_v30, %v1776_v40 }
 0x549   :  { %v8692_v14 = vpack.i.bf16 %v1793_v6, %v1792_v50  ;;  %v1766_v29 = vpop.permute.xlu1 %1765  ;;  %v1764_v37 = vpop.permute.xlu0 %1763 }
 0x54a   :  { %v1777_v63 = vsel %vm13946_vm15, %v1762_v53, %v1764_v37  ;;  %v1778_v35 = vsel %vm13946_vm15, %v1764_v37, %v1766_v29 }
 0x54b   :  { %v1794_v17 = vmul.f32 %v10372_v44, %v1777_v63  ;;  %v1795_v49 = vmul.f32 %v10375_v23, %v1778_v35  ;;  %8693 = vrot.lane.b32.xlu0 %v8692_v14, %s9614_s12 }
 0x54d   :  { %v8697_v9 = vpack.i.bf16 %v1795_v49, %v1794_v17  ;;  %v1770_v52 = vpop.permute.xlu1 %1769  ;;  %v1768_v31 = vpop.permute.xlu0 %1767 }
 0x54e   :  { %v1779_v60 = vsel %vm13946_vm15, %v1766_v29, %v1768_v31  ;;  %v1780_v45 = vsel %vm13946_vm15, %v1768_v31, %v1770_v52  ;;  %v1930_v29 = vld [vmem:[#allocation7 + $0x70] sm:$0xff] }
 0x54f   :  { %v1796_v40 = vmul.f32 %v10381_v21, %v1779_v60  ;;  %v1797_v53 = vmul.f32 %v10384_v19, %v1780_v45  ;;  %8698 = vrot.lane.b32.xlu1 %v8697_v9, %s9614_s12  ;;  %v1939_v9 = vrot.slane %v1930_v29, %v9690_v5  ;;  %v1947_v60 = vrot.slane %v1930_v29, %v9688_v4 }
 0x550   :  { %v1943_v45 = vrot.slane %v1930_v29, %v9684_v2 }
 0x551   :  { %v8702_v37 = vpack.i.bf16 %v1797_v53, %v1796_v40  ;;  %v1774_v50 = vpop.permute.xlu1 %1773  ;;  %v1772_v6 = vpop.permute.xlu0 %1771  ;;  %v1955_v40 = vrot.slane %v1930_v29, %v9698_v11  ;;  %v1951_v53 = vrot.slane %v1930_v29, %v9700_v12 }
 0x552   :  { %v1781_v63 = vsel %vm13946_vm15, %v1770_v52, %v1772_v6  ;;  %v1782_v14 = vsel %vm13946_vm15, %v1772_v6, %v1774_v50  ;;  %v1800_v49 = vmul.f32 %v10335_v55, %v1774_v50  ;;  %v1935_v52 = vrot.slane %v1930_v29, %v9686_v3  ;;  %v1862_v6 = vld [vmem:[#allocation7 + $0x68] sm:$0xff] }
 0x553   :  { %v1798_v35 = vmul.f32 %v10390_v28, %v1781_v63  ;;  %v1799_v17 = vmul.f32 %v10393_v27, %v1782_v14  ;;  %8703 = vrot.lane.b32.xlu0 %v8702_v37, %s9614_s12  ;;  %v1963_v37 = vrot.slane %v1930_v29, %v9706_v15  ;;  %v1959_v50 = vrot.slane %v1930_v29, %v9708_v16 }
 0x554   :  { %v1871_v14 = vrot.slane %v1862_v6, %v9690_v5  ;;  %v1883_v29 = vrot.slane %v1862_v6, %v9700_v12 }
 0x555   :  { %v8707_v31 = vpack.i.bf16 %v1799_v17, %v1798_v35  ;;  %v1867_v35 = vrot.slane %v1862_v6, %v9686_v3 }
 0x557   :  { %1826 = vrot.lane.b32.xlu0 %v1800_v49, %s9614_s12  ;;  %8708 = vrot.lane.b32.xlu1 %v8707_v31, %s9614_s12 }
 0x55b   :  { %1966 = vrot.lane.b32.xlu0 %v1939_v9, %s9614_s12  ;;  %1964 = vrot.lane.b32.xlu1 %v1935_v52, %s9614_s12  ;;  %v1905_v9 = vmul.f32 %v10372_v44, %v1871_v14  ;;  %v1879_v52 = vrot.slane %v1862_v6, %v9688_v4  ;;  %v10615_v14 = vmul.f32 %v10384_v19, %v1883_v29 }
 0x55d   :  { %v1907_v32 = vmul.f32 %v10381_v21, %v1879_v52  ;;  %14090 = vst [vmem:[#allocation36_spill] sm:$0xff] %v10615_v14 }
 0x55f   :  { %1970 = vrot.lane.b32.xlu0 %v1947_v60, %s9614_s12  ;;  %1968 = vrot.lane.b32.xlu1 %v1943_v45, %s9614_s12  ;;  %v1904_v45 = vmul.f32 %v10367_v30, %v1867_v35 }
 0x563   :  { %1974 = vrot.lane.b32.xlu0 %v1955_v40, %s9614_s12  ;;  %1972 = vrot.lane.b32.xlu1 %v1951_v53, %s9614_s12  ;;  %v1875_v40 = vrot.slane %v1862_v6, %v9684_v2 }
 0x565   :  { %v1906_v6 = vmul.f32 %v10375_v23, %v1875_v40 }
 0x567   :  { %1978 = vrot.lane.b32.xlu0 %v1963_v37, %s9614_s12  ;;  %1976 = vrot.lane.b32.xlu1 %v1959_v50, %s9614_s12 }
 0x5bd   :  { %v8694_v63 = vpop.permute.xlu0 %8693 }
 0x5be   :  { %v8696_v17 = vunpack.i.h.bf16 %v8694_v63  ;;  %v8695_v49 = vunpack.i.l.bf16 %v8694_v63 }
 0x5c0   :  { %v1829_v37 = vsel %vm13962_vm4, %v8695_v49, %v8696_v17 }
 0x5c1   :  { %v8699_v31 = vpop.permute.xlu1 %8698  ;;  %v3953_v35 = vpack.c.bf16 %v1904_v45, %v1829_v37 }
 0x5c2   :  { %v8700_v60 = vunpack.i.l.bf16 %v8699_v31  ;;  %v8701_v53 = vunpack.i.h.bf16 %v8699_v31 }
 0x5c4   :  { %v1830_v50 = vsel %vm13962_vm4, %v8696_v17, %v8700_v60  ;;  %v1831_v49 = vsel %vm13962_vm4, %v8700_v60, %v8701_v53 }
 0x5c5   :  { %v10611_v34 = vpop.permute.xlu0 %8703  ;;  %v3954_v63 = vpack.c.bf16 %v1905_v9, %v1830_v50  ;;  %v3955_v40 = vpack.c.bf16 %v1906_v6, %v1831_v49 }
 0x5c6   :  { %14089 = vst [vmem:[#allocation35_spill] sm:$0xff] %v10611_v34  ;;  %v13914_v43 = vunpack.i.h.bf16 %v10611_v34  ;;  %v8705_v47 = vunpack.i.l.bf16 %v10611_v34 }
 0x5c7   :  { %4070 = vmatprep.subr.bf16.mxu0 %v3954_v63 }
 0x5c8   :  { %v10624_v17 = vsel %vm13962_vm4, %v8705_v47, %v13914_v43  ;;  %4071 = vmatpush1.bf16.msra.mxu0 %v3953_v35  ;;  %v1832_v31 = vsel %vm13962_vm4, %v8701_v53, %v8705_v47 }
 0x5c9   :  { %14091 = vst [vmem:[#allocation37_spill] sm:$0xff] %v10624_v17  ;;  %v10627_v9 = vpop.permute.xlu1 %8708  ;;  %v10629_v52 = vpop.permute.xlu0 %1826  ;;  %v3956_v29 = vpack.c.bf16 %v1907_v32, %v1832_v31 }
 0x5ca   :  { %14092 = vst [vmem:[#allocation38_spill] sm:$0xff] %v10627_v9  ;;  %14093 = vst [vmem:[#allocation39_spill] sm:$0xff] %v10629_v52 }
 0x5cb   :  { %4111 = vmatprep.subr.bf16.mxu1 %v3956_v29 }
 0x5cc   :  { %4112 = vmatpush1.bf16.msra.mxu1 %v3955_v40 }
 0x5cd   :  { %v1965_v60 = vpop.permute.xlu1 %1964  ;;  %v1967_v37 = vpop.permute.xlu0 %1966 }
 0x5ce   :  { %v1996_v50 = vmul.f32 %v10367_v30, %v1965_v60  ;;  %v1980_v63 = vsel %vm13962_vm4, %v1965_v60, %v1967_v37 }
 0x5cf   :  { %v1997_v35 = vmul.f32 %v10372_v44, %v1980_v63 }
 0x5d1   :  { %v8712_v47 = vpack.i.bf16 %v1997_v35, %v1996_v50  ;;  %v1969_v53 = vpop.permute.xlu1 %1968  ;;  %v1971_v43 = vpop.permute.xlu0 %1970 }
 0x5d2   :  { %v1981_v52 = vsel %vm13962_vm4, %v1967_v37, %v1969_v53  ;;  %v1982_v32 = vsel %vm13962_vm4, %v1969_v53, %v1971_v43 }
 0x5d3   :  { %v1998_v31 = vmul.f32 %v10375_v23, %v1981_v52  ;;  %v1999_v6 = vmul.f32 %v10381_v21, %v1982_v32  ;;  %8713 = vrot.lane.b32.xlu1 %v8712_v47, %s9613_s11 }
 0x5d5   :  { %v8717_v49 = vpack.i.bf16 %v1999_v6, %v1998_v31  ;;  %v1973_v29 = vpop.permute.xlu1 %1972  ;;  %v1975_v40 = vpop.permute.xlu0 %1974 }
 0x5d6   :  { %v1983_v60 = vsel %vm13962_vm4, %v1971_v43, %v1973_v29  ;;  %v1984_v63 = vsel %vm13962_vm4, %v1973_v29, %v1975_v40  ;;  %v2066_v43 = vld [vmem:[#allocation7 + $0x78] sm:$0xff] }
 0x5d7   :  { %v2000_v50 = vmul.f32 %v10384_v19, %v1983_v60  ;;  %v2001_v35 = vmul.f32 %v10390_v28, %v1984_v63  ;;  %8718 = vrot.lane.b32.xlu0 %v8717_v49, %s9613_s11  ;;  %v2075_v49 = vrot.slane %v2066_v43, %v9690_v5  ;;  %v2071_v63 = vrot.slane %v2066_v43, %v9686_v3 }
 0x5d9   :  { %v8722_v37 = vpack.i.bf16 %v2001_v35, %v2000_v50  ;;  %v1977_v53 = vpop.permute.xlu1 %1976  ;;  %v1979_v52 = vpop.permute.xlu0 %1978  ;;  %v2079_v50 = vrot.slane %v2066_v43, %v9684_v2  ;;  %v2091_v35 = vrot.slane %v2066_v43, %v9698_v11 }
 0x5da   :  { %v1985_v32 = vsel %vm13962_vm4, %v1975_v40, %v1977_v53  ;;  %v1986_v47 = vsel %vm13962_vm4, %v1977_v53, %v1979_v52  ;;  %v2004_v29 = vmul.f32 0.0, %v1979_v52  ;;  %v2083_v40 = vrot.slane %v2066_v43, %v9688_v4 }
 0x5db   :  { %v2002_v31 = vmul.f32 %v10393_v27, %v1985_v32  ;;  %v2003_v6 = vmul.f32 %v10335_v55, %v1986_v47  ;;  %8723 = vrot.lane.b32.xlu1 %v8722_v37, %s9613_s11  ;;  %v2087_v37 = vrot.slane %v2066_v43, %v9700_v12  ;;  %v2099_v53 = vrot.slane %v2066_v43, %v9706_v15 }
 0x5dc   :  { %v2095_v52 = vrot.slane %v2066_v43, %v9708_v16 }
 0x5dd   :  { %v8727_v60 = vpack.i.bf16 %v2003_v6, %v2002_v31 }
 0x5df   :  { %2030 = vrot.lane.b32.xlu1 %v2004_v29, %s9613_s11  ;;  %8728 = vrot.lane.b32.xlu0 %v8727_v60, %s9613_s11 }
 0x5e3   :  { %2102 = vrot.lane.b32.xlu1 %v2075_v49, %s9612_s10  ;;  %2100 = vrot.lane.b32.xlu0 %v2071_v63, %s9612_s10 }
 0x5e7   :  { %2106 = vrot.lane.b32.xlu1 %v2083_v40, %s9612_s10  ;;  %2104 = vrot.lane.b32.xlu0 %v2079_v50, %s9612_s10 }
 0x5eb   :  { %2110 = vrot.lane.b32.xlu1 %v2091_v35, %s9612_s10  ;;  %2108 = vrot.lane.b32.xlu0 %v2087_v37, %s9612_s10 }
 0x5ef   :  { %2114 = vrot.lane.b32.xlu1 %v2099_v53, %s9612_s10  ;;  %2112 = vrot.lane.b32.xlu0 %v2095_v52, %s9612_s10 }
 0x645   :  { %v10669_v32 = vpop.permute.xlu1 %8713 }
 0x649   :  { %v10671_v47 = vpop.permute.xlu0 %8718 }
 0x64d   :  { %v10673_v31 = vpop.permute.xlu1 %8723 }
 0x64e   :  { %14094 = vst [vmem:[#allocation40_spill] sm:$0xff] %v10673_v31  ;;  %v14098_v33 = vunpack.i.h.bf16 %v10673_v31 }
 0x651   :  { %v10675_v6 = vpop.permute.xlu1 %2030  ;;  %v10677_v29 = vpop.permute.xlu0 %8728 }
 0x652   :  { %14095 = vst [vmem:[#allocation41_spill] sm:$0xff] %v10675_v6  ;;  %14096 = vst [vmem:[#allocation42_spill] sm:$0xff] %v10677_v29 }
 0x655   :  { %v2103_v60 = vpop.permute.xlu1 %2102  ;;  %v2101_v49 = vpop.permute.xlu0 %2100 }
 0x656   :  { %v2116_v63 = vsel %vm1690_vm13, %v2101_v49, %v2103_v60  ;;  %v2132_v43 = vmul.f32 %v10367_v30, %v2101_v49 }
 0x657   :  { %v2133_v40 = vmul.f32 %v10372_v44, %v2116_v63 }
 0x659   :  { %v8732_v50 = vpack.i.bf16 %v2133_v40, %v2132_v43  ;;  %v2107_v35 = vpop.permute.xlu1 %2106  ;;  %v2105_v37 = vpop.permute.xlu0 %2104 }
 0x65a   :  { %v2117_v53 = vsel %vm1690_vm13, %v2103_v60, %v2105_v37  ;;  %v2118_v52 = vsel %vm1690_vm13, %v2105_v37, %v2107_v35 }
 0x65b   :  { %v2134_v45 = vmul.f32 %v10375_v23, %v2117_v53  ;;  %v2135_v6 = vmul.f32 %v10381_v21, %v2118_v52  ;;  %8733 = vrot.lane.b32.xlu0 %v8732_v50, %s9611_s9 }
 0x65d   :  { %v8737_v17 = vpack.i.bf16 %v2135_v6, %v2134_v45  ;;  %v2111_v14 = vpop.permute.xlu1 %2110  ;;  %v2109_v29 = vpop.permute.xlu0 %2108 }
 0x65e   :  { %v2119_v49 = vsel %vm1690_vm13, %v2107_v35, %v2109_v29  ;;  %v2120_v63 = vsel %vm1690_vm13, %v2109_v29, %v2111_v14  ;;  %v2202_v29 = vld [vmem:[#allocation7 + $0x80] sm:$0xff] }
 0x65f   :  { %v2136_v43 = vmul.f32 %v10384_v19, %v2119_v49  ;;  %v2137_v40 = vmul.f32 %v10390_v28, %v2120_v63  ;;  %8738 = vrot.lane.b32.xlu1 %v8737_v17, %s9611_s9  ;;  %v2211_v17 = vrot.slane %v2202_v29, %v9690_v5  ;;  %v2207_v63 = vrot.slane %v2202_v29, %v9686_v3 }
 0x661   :  { %v8742_v60 = vpack.i.bf16 %v2137_v40, %v2136_v43  ;;  %v2115_v37 = vpop.permute.xlu1 %2114  ;;  %v2113_v53 = vpop.permute.xlu0 %2112  ;;  %v2227_v43 = vrot.slane %v2202_v29, %v9698_v11  ;;  %v2223_v40 = vrot.slane %v2202_v29, %v9700_v12 }
 0x662   :  { %v2121_v52 = vsel %vm1690_vm13, %v2111_v14, %v2113_v53  ;;  %v2122_v50 = vsel %vm1690_vm13, %v2113_v53, %v2115_v37  ;;  %v2140_v35 = vmul.f32 0.0, %v2115_v37  ;;  %v2219_v14 = vrot.slane %v2202_v29, %v9688_v4 }
 0x663   :  { %v2138_v45 = vmul.f32 %v10393_v27, %v2121_v52  ;;  %v2139_v6 = vmul.f32 %v10335_v55, %v2122_v50  ;;  %8743 = vrot.lane.b32.xlu0 %v8742_v60, %s9611_s9  ;;  %v2215_v55 = vrot.slane %v2202_v29, %v9684_v2  ;;  %v2235_v60 = vrot.slane %v2202_v29, %v9706_v15 }
 0x664   :  { %v2231_v37 = vrot.slane %v2202_v29, %v9708_v16 }
 0x665   :  { %v8747_v49 = vpack.i.bf16 %v2139_v6, %v2138_v45  ;;  %v8720_v45 = vunpack.i.l.bf16 %v10671_v47  ;;  %v8716_v6 = vunpack.i.h.bf16 %v10669_v32 }
 0x667   :  { %2166 = vrot.lane.b32.xlu0 %v2140_v35, %s9611_s9  ;;  %8748 = vrot.lane.b32.xlu1 %v8747_v49, %s9611_s9  ;;  %v8715_v35 = vunpack.i.l.bf16 %v10669_v32 }
 0x669   :  { %v2032_v32 = vsel %vm13946_vm15, %v8715_v35, %v8716_v6 }
 0x66b   :  { %2238 = vrot.lane.b32.xlu0 %v2211_v17, %s9598_s19  ;;  %2236 = vrot.lane.b32.xlu1 %v2207_v63, %s9598_s19 }
 0x66f   :  { %2242 = vrot.lane.b32.xlu0 %v2219_v14, %s9598_s19  ;;  %2240 = vrot.lane.b32.xlu1 %v2215_v55, %s9598_s19  ;;  %v8725_v55 = vunpack.i.l.bf16 %v10673_v31 }
 0x671   :  { %v10733_v9 = vsel %vm13946_vm15, %v8725_v55, %v14098_v33  ;;  %v10818_v33 = vld [vmem:[#allocation4 + $0x28] sm:$0xff] }
 0x672   :  { %14099 = vst [vmem:[#allocation44_spill] sm:$0xff] %v10733_v9 }
 0x673   :  { %2246 = vrot.lane.b32.xlu0 %v2227_v43, %s9598_s19  ;;  %2244 = vrot.lane.b32.xlu1 %v2223_v40, %s9598_s19  ;;  %v2033_v43 = vsel %vm13946_vm15, %v8716_v6, %v8720_v45 }
 0x677   :  { %2250 = vrot.lane.b32.xlu0 %v2235_v60, %s9598_s19  ;;  %2248 = vrot.lane.b32.xlu1 %v2231_v37, %s9598_s19  ;;  %v8721_v60 = vunpack.i.h.bf16 %v10671_v47 }
 0x6cd   :  { %v8734_v53 = vpop.permute.xlu0 %8733 }
 0x6ce   :  { %v8736_v52 = vunpack.i.h.bf16 %v8734_v53  ;;  %v8735_v50 = vunpack.i.l.bf16 %v8734_v53 }
 0x6d0   :  { %v2168_v14 = vsel %vm13947_vm12, %v8735_v50, %v8736_v52 }
 0x6d1   :  { %v8739_v49 = vpop.permute.xlu1 %8738  ;;  %v3961_v50 = vpack.c.bf16 %v2168_v14, %v2032_v32 }
 0x6d2   :  { %v8740_v17 = vunpack.i.l.bf16 %v8739_v49  ;;  %v8741_v63 = vunpack.i.h.bf16 %v8739_v49 }
 0x6d4   :  { %v2169_v40 = vsel %vm13947_vm12, %v8736_v52, %v8740_v17  ;;  %v2170_v29 = vsel %vm13947_vm12, %v8740_v17, %v8741_v63  ;;  %v2035_v52 = vsel %vm13946_vm15, %v8721_v60, %v8725_v55 }
 0x6d5   :  { %v10724_v37 = vpop.permute.xlu0 %8743  ;;  %v3962_v53 = vpack.c.bf16 %v2169_v40, %v2033_v43  ;;  %v2034_v43 = vsel %vm13946_vm15, %v8720_v45, %v8721_v60 }
 0x6d6   :  { %14097 = vst [vmem:[#allocation43_spill] sm:$0xff] %v10724_v37  ;;  %v13921_v34 = vunpack.i.h.bf16 %v10724_v37  ;;  %v8745_v49 = vunpack.i.l.bf16 %v10724_v37  ;;  %v3963_v40 = vpack.c.bf16 %v2170_v29, %v2034_v43 }
 0x6d7   :  { %4072 = vmatprep.subr.bf16.mxu0 %v3962_v53 }
 0x6d8   :  { %v10738_v47 = vsel %vm13947_vm12, %v8745_v49, %v13921_v34  ;;  %4073 = vmatpush1.bf16.msra.mxu0 %v3961_v50  ;;  %v2171_v6 = vsel %vm13947_vm12, %v8741_v63, %v8745_v49 }
 0x6d9   :  { %14100 = vst [vmem:[#allocation45_spill] sm:$0xff] %v10738_v47  ;;  %v10742_v35 = vpop.permute.xlu1 %8748  ;;  %v10744_v14 = vpop.permute.xlu0 %2166  ;;  %v3964_v17 = vpack.c.bf16 %v2171_v6, %v2035_v52 }
 0x6da   :  { %14101 = vst [vmem:[#allocation46_spill] sm:$0xff] %v10742_v35  ;;  %14102 = vst [vmem:[#allocation47_spill] sm:$0xff] %v10744_v14 }
 0x6db   :  { %4113 = vmatprep.subr.bf16.mxu1 %v3964_v17 }
 0x6dc   :  { %4114 = vmatpush1.bf16.msra.mxu1 %v3963_v40 }
 0x6dd   :  { %v2237_v53 = vpop.permute.xlu1 %2236  ;;  %v2239_v32 = vpop.permute.xlu0 %2238 }
 0x6de   :  { %v2268_v50 = vmul.f32 %v10367_v30, %v2237_v53  ;;  %v2252_v55 = vsel %vm13963_vm14, %v2237_v53, %v2239_v32 }
 0x6df   :  { %v2269_v63 = vmul.f32 %v10372_v44, %v2252_v55 }
 0x6e1   :  { %v8752_v49 = vpack.i.bf16 %v2269_v63, %v2268_v50  ;;  %v2241_v34 = vpop.permute.xlu1 %2240  ;;  %v2243_v14 = vpop.permute.xlu0 %2242  ;;  %v10765_v63 = vld [vmem:[#allocation4 + $0x38] sm:$0xff] }
 0x6e2   :  { %v2253_v52 = vsel %vm13963_vm14, %v2239_v32, %v2241_v34  ;;  %v2254_v45 = vsel %vm13963_vm14, %v2241_v34, %v2243_v14 }
 0x6e3   :  { %v2270_v60 = vmul.f32 %v10375_v23, %v2253_v52  ;;  %v2271_v29 = vmul.f32 %v10381_v21, %v2254_v45  ;;  %8753 = vrot.lane.b32.xlu1 %v8752_v49, %s9610_s8 }
 0x6e5   :  { %v8757_v6 = vpack.i.bf16 %v2271_v29, %v2270_v60  ;;  %v2245_v17 = vpop.permute.xlu1 %2244  ;;  %v2247_v30 = vpop.permute.xlu0 %2246 }
 0x6e6   :  { %v2255_v43 = vsel %vm13963_vm14, %v2243_v14, %v2245_v17  ;;  %v2256_v44 = vsel %vm13963_vm14, %v2245_v17, %v2247_v30 }
 0x6e7   :  { %v2272_v40 = vmul.f32 %v10384_v19, %v2255_v43  ;;  %v2273_v53 = vmul.f32 %v10390_v28, %v2256_v44  ;;  %8758 = vrot.lane.b32.xlu0 %v8757_v6, %s9610_s8  ;;  %v2338_v19 = vld [vmem:[#allocation7 + $0x88] sm:$0xff] }
 0x6e8   :  { %v2347_v52 = vrot.slane %v2338_v19, %v9690_v5  ;;  %v2343_v45 = vrot.slane %v2338_v19, %v9686_v3  ;;  %v2351_v60 = vrot.slane %v2338_v19, %v9684_v2  ;;  %v2363_v29 = vrot.slane %v2338_v19, %v9698_v11 }
 0x6e9   :  { %v8762_v34 = vpack.i.bf16 %v2273_v53, %v2272_v40  ;;  %v2249_v32 = vpop.permute.xlu1 %2248  ;;  %v2251_v23 = vpop.permute.xlu0 %2250  ;;  %v2359_v6 = vrot.slane %v2338_v19, %v9700_v12  ;;  %v2371_v17 = vrot.slane %v2338_v19, %v9706_v15 }
 0x6ea   :  { %v2257_v21 = vsel %vm13963_vm14, %v2247_v30, %v2249_v32  ;;  %v2258_v50 = vsel %vm13963_vm14, %v2249_v32, %v2251_v23  ;;  %v2276_v49 = vmul.f32 0.0, %v2251_v23  ;;  %v2367_v30 = vrot.slane %v2338_v19, %v9708_v16 }
 0x6eb   :  { %v2274_v55 = vmul.f32 %v10393_v27, %v2257_v21  ;;  %v2275_v14 = vmul.f32 %v10765_v63, %v2258_v50  ;;  %8763 = vrot.lane.b32.xlu1 %v8762_v34, %s9610_s8  ;;  %v2355_v27 = vrot.slane %v2338_v19, %v9688_v4  ;;  %v10798_v50 = vld [vmem:[#allocation4] sm:$0xff] }
 0x6ed   :  { %v8767_v28 = vpack.i.bf16 %v2275_v14, %v2274_v55  ;;  %v10801_v14 = vld [vmem:[#allocation4 + $0x8] sm:$0xff] }
 0x6ef   :  { %2302 = vrot.lane.b32.xlu1 %v2276_v49, %s9610_s8  ;;  %8768 = vrot.lane.b32.xlu0 %v8767_v28, %s9610_s8 }
 0x6f3   :  { %2374 = vrot.lane.b32.xlu1 %v2347_v52, %s9609_s7  ;;  %2372 = vrot.lane.b32.xlu0 %v2343_v45, %s9609_s7 }
 0x6f7   :  { %2378 = vrot.lane.b32.xlu1 %v2355_v27, %s9609_s7  ;;  %2376 = vrot.lane.b32.xlu0 %v2351_v60, %s9609_s7  ;;  %v10806_v60 = vld [vmem:[#allocation4 + $0x10] sm:$0xff] }
 0x6fb   :  { %2382 = vrot.lane.b32.xlu1 %v2363_v29, %s9609_s7  ;;  %2380 = vrot.lane.b32.xlu0 %v2359_v6, %s9609_s7  ;;  %v10809_v6 = vld [vmem:[#allocation4 + $0x18] sm:$0xff] }
 0x6ff   :  { %2386 = vrot.lane.b32.xlu1 %v2371_v17, %s9609_s7  ;;  %2384 = vrot.lane.b32.xlu0 %v2367_v30, %s9609_s7 }
 0x755   :  { %v10787_v43 = vpop.permute.xlu1 %8753 }
 0x759   :  { %v10789_v44 = vpop.permute.xlu0 %8758 }
 0x75d   :  { %v10791_v40 = vpop.permute.xlu1 %8763 }
 0x75e   :  { %14103 = vst [vmem:[#allocation48_spill] sm:$0xff] %v10791_v40  ;;  %v14107_v35 = vunpack.i.h.bf16 %v10791_v40 }
 0x761   :  { %v10793_v53 = vpop.permute.xlu1 %2302  ;;  %v10795_v34 = vpop.permute.xlu0 %8768 }
 0x762   :  { %14104 = vst [vmem:[#allocation49_spill] sm:$0xff] %v10793_v53  ;;  %14105 = vst [vmem:[#allocation50_spill] sm:$0xff] %v10795_v34 }
 0x765   :  { %v2375_v32 = vpop.permute.xlu1 %2374  ;;  %v2373_v23 = vpop.permute.xlu0 %2372 }
 0x766   :  { %v2388_v21 = vsel %vm1414_vm10, %v2373_v23, %v2375_v32  ;;  %v2404_v55 = vmul.f32 %v10798_v50, %v2373_v23 }
 0x767   :  { %v2405_v19 = vmul.f32 %v10801_v14, %v2388_v21 }
 0x769   :  { %v8772_v49 = vpack.i.bf16 %v2405_v19, %v2404_v55  ;;  %v2379_v28 = vpop.permute.xlu1 %2378  ;;  %v2377_v52 = vpop.permute.xlu0 %2376 }
 0x76a   :  { %v2389_v45 = vsel %vm1414_vm10, %v2375_v32, %v2377_v52  ;;  %v2390_v27 = vsel %vm1414_vm10, %v2377_v52, %v2379_v28  ;;  %v10815_v32 = vld [vmem:[#allocation4 + $0x20] sm:$0xff] }
 0x76b   :  { %v2406_v29 = vmul.f32 %v10806_v60, %v2389_v45  ;;  %v2407_v17 = vmul.f32 %v10809_v6, %v2390_v27  ;;  %8773 = vrot.lane.b32.xlu0 %v8772_v49, %s9608_s30 }
 0x76d   :  { %v8777_v30 = vpack.i.bf16 %v2407_v17, %v2406_v29  ;;  %v2383_v23 = vpop.permute.xlu1 %2382  ;;  %v2381_v21 = vpop.permute.xlu0 %2380 }
 0x76e   :  { %v2391_v55 = vsel %vm1414_vm10, %v2379_v28, %v2381_v21  ;;  %v2392_v19 = vsel %vm1414_vm10, %v2381_v21, %v2383_v23  ;;  %v10824_v28 = vld [vmem:[#allocation4 + $0x30] sm:$0xff] }
 0x76f   :  { %v2408_v52 = vmul.f32 %v10815_v32, %v2391_v55  ;;  %v2409_v45 = vmul.f32 %v10818_v33, %v2392_v19  ;;  %8778 = vrot.lane.b32.xlu1 %v8777_v30, %s9608_s30  ;;  %v2474_v55 = vld [vmem:[#allocation7 + $0x90] sm:$0xff] }
 0x770   :  { %v2483_v30 = vrot.slane %v2474_v55, %v9690_v5 }
 0x771   :  { %v8782_v27 = vpack.i.bf16 %v2409_v45, %v2408_v52  ;;  %v2387_v53 = vpop.permute.xlu1 %2386  ;;  %v2385_v49 = vpop.permute.xlu0 %2384  ;;  %v2491_v52 = vrot.slane %v2474_v55, %v9688_v4  ;;  %v2487_v45 = vrot.slane %v2474_v55, %v9684_v2 }
 0x772   :  { %v2393_v29 = vsel %vm1414_vm10, %v2383_v23, %v2385_v49  ;;  %v2394_v17 = vsel %vm1414_vm10, %v2385_v49, %v2387_v53  ;;  %v2412_v47 = vmul.f32 0.0, %v2387_v53  ;;  %v2479_v23 = vrot.slane %v2474_v55, %v9686_v3 }
 0x773   :  { %v2410_v21 = vmul.f32 %v10824_v28, %v2393_v29  ;;  %v2411_v9 = vmul.f32 %v10765_v63, %v2394_v17  ;;  %8783 = vrot.lane.b32.xlu0 %v8782_v27, %s9608_s30  ;;  %v2507_v53 = vrot.slane %v2474_v55, %v9706_v15  ;;  %v2503_v27 = vrot.slane %v2474_v55, %v9708_v16 }
 0x775   :  { %v8787_v19 = vpack.i.bf16 %v2411_v9, %v2410_v21  ;;  %v2499_v9 = vrot.slane %v2474_v55, %v9698_v11  ;;  %v8760_v21 = vunpack.i.l.bf16 %v10789_v44 }
 0x777   :  { %2438 = vrot.lane.b32.xlu0 %v2412_v47, %s9608_s30  ;;  %8788 = vrot.lane.b32.xlu1 %v8787_v19, %s9608_s30  ;;  %v2495_v47 = vrot.slane %v2474_v55, %v9700_v12  ;;  %v8756_v19 = vunpack.i.h.bf16 %v10787_v43 }
 0x77b   :  { %2510 = vrot.lane.b32.xlu0 %v2483_v30, %s9599_s5  ;;  %2508 = vrot.lane.b32.xlu1 %v2479_v23, %s9599_s5  ;;  %v8755_v30 = vunpack.i.l.bf16 %v10787_v43 }
 0x77d   :  { %v2304_v43 = vsel %vm13943_vm11, %v8755_v30, %v8756_v19 }
 0x77f   :  { %2514 = vrot.lane.b32.xlu0 %v2491_v52, %s9599_s5  ;;  %2512 = vrot.lane.b32.xlu1 %v2487_v45, %s9599_s5 }
 0x783   :  { %2518 = vrot.lane.b32.xlu0 %v2499_v9, %s9599_s5  ;;  %2516 = vrot.lane.b32.xlu1 %v2495_v47, %s9599_s5  ;;  %v8765_v47 = vunpack.i.l.bf16 %v10791_v40 }
 0x785   :  { %v10865_v46 = vsel %vm13943_vm11, %v8765_v47, %v14107_v35 }
 0x786   :  { %14108 = vst [vmem:[#allocation52_spill] sm:$0xff] %v10865_v46 }
 0x787   :  { %2522 = vrot.lane.b32.xlu0 %v2507_v53, %s9599_s5  ;;  %2520 = vrot.lane.b32.xlu1 %v2503_v27, %s9599_s5  ;;  %v2305_v53 = vsel %vm13943_vm11, %v8756_v19, %v8760_v21 }
 0x7dd   :  { %v8774_v49 = vpop.permute.xlu0 %8773 }
 0x7de   :  { %v8776_v29 = vunpack.i.h.bf16 %v8774_v49  ;;  %v8775_v17 = vunpack.i.l.bf16 %v8774_v49  ;;  %v8761_v49 = vunpack.i.h.bf16 %v10789_v44 }
 0x7e0   :  { %v2440_v9 = vsel %vm13945_vm9, %v8775_v17, %v8776_v29 }
 0x7e1   :  { %v8779_v23 = vpop.permute.xlu1 %8778  ;;  %v3969_v17 = vpack.c.bf16 %v2440_v9, %v2304_v43  ;;  %v2306_v9 = vsel %vm13943_vm11, %v8760_v21, %v8761_v49 }
 0x7e2   :  { %v8780_v52 = vunpack.i.l.bf16 %v8779_v23  ;;  %v8781_v45 = vunpack.i.h.bf16 %v8779_v23 }
 0x7e4   :  { %v2441_v27 = vsel %vm13945_vm9, %v8776_v29, %v8780_v52  ;;  %v2442_v55 = vsel %vm13945_vm9, %v8780_v52, %v8781_v45  ;;  %v2307_v29 = vsel %vm13943_vm11, %v8761_v49, %v8765_v47  ;;  %vm14130_vm11 = vcmask 523264  }
 0x7e5   :  { %v10856_v31 = vpop.permute.xlu0 %8783  ;;  %v3970_v34 = vpack.c.bf16 %v2441_v27, %v2305_v53  ;;  %v3971_v53 = vpack.c.bf16 %v2442_v55, %v2306_v9 }
 0x7e6   :  { %14106 = vst [vmem:[#allocation51_spill] sm:$0xff] %v10856_v31  ;;  %v13929_v37 = vunpack.i.h.bf16 %v10856_v31  ;;  %v8785_v23 = vunpack.i.l.bf16 %v10856_v31 }
 0x7e7   :  { %4074 = vmatprep.subr.bf16.mxu0 %v3970_v34 }
 0x7e8   :  { %v10870_v44 = vsel %vm13945_vm9, %v8785_v23, %v13929_v37  ;;  %4075 = vmatpush1.bf16.msra.mxu0 %v3969_v17  ;;  %v2443_v19 = vsel %vm13945_vm9, %v8781_v45, %v8785_v23  ;;  %vm14131_vm9 = vmmov %vm14130_vm11 }
 0x7e9   :  { %14109 = vst [vmem:[#allocation53_spill] sm:$0xff] %v10870_v44  ;;  %v10874_v30 = vpop.permute.xlu1 %8788  ;;  %v10876_v34 = vpop.permute.xlu0 %2438  ;;  %v3972_v52 = vpack.c.bf16 %v2443_v19, %v2307_v29  ;;  %vm14132_vm15 = vmmov %vm14131_vm9 }
 0x7ea   :  { %14110 = vst [vmem:[#allocation54_spill] sm:$0xff] %v10874_v30  ;;  %14111 = vst [vmem:[#allocation55_spill] sm:$0xff] %v10876_v34 }
 0x7eb   :  { %4115 = vmatprep.subr.bf16.mxu1 %v3972_v52  ;;  %vm14133_vm12 = vmmov %vm14131_vm9 }
 0x7ec   :  { %4116 = vmatpush1.bf16.msra.mxu1 %v3971_v53 }
 0x7ed   :  { %v2509_v27 = vpop.permute.xlu1 %2508  ;;  %v2511_v43 = vpop.permute.xlu0 %2510 }
 0x7ee   :  { %v2540_v17 = vmul.f32 %v10798_v50, %v2509_v27  ;;  %v2524_v47 = vsel %vm128_vm0, %v2509_v27, %v2511_v43 }
 0x7ef   :  { %v2541_v45 = vmul.f32 %v10801_v14, %v2524_v47 }
 0x7f1   :  { %v8792_v23 = vpack.i.bf16 %v2541_v45, %v2540_v17  ;;  %v2513_v37 = vpop.permute.xlu1 %2512  ;;  %v2515_v34 = vpop.permute.xlu0 %2514 }
 0x7f2   :  { %v2525_v29 = vsel %vm128_vm0, %v2511_v43, %v2513_v37  ;;  %v2526_v21 = vsel %vm128_vm0, %v2513_v37, %v2515_v34 }
 0x7f3   :  { %v2542_v49 = vmul.f32 %v10806_v60, %v2525_v29  ;;  %v2543_v55 = vmul.f32 %v10809_v6, %v2526_v21  ;;  %8793 = vrot.lane.b32.xlu1 %v8792_v23, %s9605_s27 }
 0x7f5   :  { %v8797_v19 = vpack.i.bf16 %v2543_v55, %v2542_v49  ;;  %v2517_v52 = vpop.permute.xlu1 %2516  ;;  %v2519_v9 = vpop.permute.xlu0 %2518 }
 0x7f6   :  { %v2527_v53 = vsel %vm128_vm0, %v2515_v34, %v2517_v52  ;;  %v2528_v27 = vsel %vm128_vm0, %v2517_v52, %v2519_v9  ;;  %v2610_v34 = vld [vmem:[#allocation7 + $0x98] sm:$0xff] }
 0x7f7   :  { %v2544_v17 = vmul.f32 %v10815_v32, %v2527_v53  ;;  %v2545_v47 = vmul.f32 %v10818_v33, %v2528_v27  ;;  %8798 = vrot.lane.b32.xlu0 %v8797_v19, %s9605_s27  ;;  %v2619_v19 = vrot.slane %v2610_v34, %v9690_v5  ;;  %v2615_v53 = vrot.slane %v2610_v34, %v9686_v3 }
 0x7f8   :  { %v2623_v27 = vrot.slane %v2610_v34, %v9684_v2 }
 0x7f9   :  { %v8802_v37 = vpack.i.bf16 %v2545_v47, %v2544_v17  ;;  %v2521_v43 = vpop.permute.xlu1 %2520  ;;  %v2523_v45 = vpop.permute.xlu0 %2522  ;;  %v2635_v17 = vrot.slane %v2610_v34, %v9698_v11  ;;  %v2631_v47 = vrot.slane %v2610_v34, %v9700_v12 }
 0x7fa   :  { %v2529_v29 = vsel %vm128_vm0, %v2519_v9, %v2521_v43  ;;  %v2530_v23 = vsel %vm128_vm0, %v2521_v43, %v2523_v45  ;;  %v2548_v55 = vmul.f32 0.0, %v2523_v45  ;;  %v2627_v9 = vrot.slane %v2610_v34, %v9688_v4 }
 0x7fb   :  { %v2546_v21 = vmul.f32 %v10824_v28, %v2529_v29  ;;  %v2547_v49 = vmul.f32 %v10765_v63, %v2530_v23  ;;  %8803 = vrot.lane.b32.xlu1 %v8802_v37, %s9605_s27  ;;  %v2643_v37 = vrot.slane %v2610_v34, %v9706_v15  ;;  %v2639_v43 = vrot.slane %v2610_v34, %v9708_v16 }
 0x7fd   :  { %v8807_v52 = vpack.i.bf16 %v2547_v49, %v2546_v21 }
 0x7ff   :  { %2574 = vrot.lane.b32.xlu1 %v2548_v55, %s9605_s27  ;;  %8808 = vrot.lane.b32.xlu0 %v8807_v52, %s9605_s27 }
 0x803   :  { %2646 = vrot.lane.b32.xlu1 %v2619_v19, %s9600_s22  ;;  %2644 = vrot.lane.b32.xlu0 %v2615_v53, %s9600_s22 }
 0x807   :  { %2650 = vrot.lane.b32.xlu1 %v2627_v9, %s9600_s22  ;;  %2648 = vrot.lane.b32.xlu0 %v2623_v27, %s9600_s22 }
 0x80b   :  { %2654 = vrot.lane.b32.xlu1 %v2635_v17, %s9600_s22  ;;  %2652 = vrot.lane.b32.xlu0 %v2631_v47, %s9600_s22 }
 0x80f   :  { %2658 = vrot.lane.b32.xlu1 %v2643_v37, %s9600_s22  ;;  %2656 = vrot.lane.b32.xlu0 %v2639_v43, %s9600_s22 }
 0x865   :  { %v10917_v45 = vpop.permute.xlu1 %8793 }
 0x869   :  { %v10919_v29 = vpop.permute.xlu0 %8798 }
 0x86d   :  { %v10921_v23 = vpop.permute.xlu1 %8803 }
 0x86e   :  { %14112 = vst [vmem:[#allocation56_spill] sm:$0xff] %v10921_v23  ;;  %v14116_v31 = vunpack.i.h.bf16 %v10921_v23 }
 0x871   :  { %v10923_v21 = vpop.permute.xlu1 %2574  ;;  %v10925_v49 = vpop.permute.xlu0 %8808 }
 0x872   :  { %14113 = vst [vmem:[#allocation57_spill] sm:$0xff] %v10923_v21  ;;  %14114 = vst [vmem:[#allocation58_spill] sm:$0xff] %v10925_v49 }
 0x875   :  { %v2647_v55 = vpop.permute.xlu1 %2646  ;;  %v2645_v52 = vpop.permute.xlu0 %2644 }
 0x876   :  { %v2660_v19 = vsel %vm266_vm1, %v2645_v52, %v2647_v55  ;;  %v2676_v34 = vmul.f32 %v10798_v50, %v2645_v52 }
 0x877   :  { %v2677_v53 = vmul.f32 %v10801_v14, %v2660_v19 }
 0x879   :  { %v8812_v9 = vpack.i.bf16 %v2677_v53, %v2676_v34  ;;  %v2651_v27 = vpop.permute.xlu1 %2650  ;;  %v2649_v17 = vpop.permute.xlu0 %2648 }
 0x87a   :  { %v2661_v47 = vsel %vm266_vm1, %v2647_v55, %v2649_v17  ;;  %v2662_v37 = vsel %vm266_vm1, %v2649_v17, %v2651_v27 }
 0x87b   :  { %v2678_v43 = vmul.f32 %v10806_v60, %v2661_v47  ;;  %v2679_v35 = vmul.f32 %v10809_v6, %v2662_v37  ;;  %8813 = vrot.lane.b32.xlu0 %v8812_v9, %s9606_s28 }
 0x87d   :  { %v8817_v21 = vpack.i.bf16 %v2679_v35, %v2678_v43  ;;  %v2655_v46 = vpop.permute.xlu1 %2654  ;;  %v2653_v44 = vpop.permute.xlu0 %2652 }
 0x87e   :  { %v2663_v52 = vsel %vm266_vm1, %v2651_v27, %v2653_v44  ;;  %v2664_v19 = vsel %vm266_vm1, %v2653_v44, %v2655_v46  ;;  %v2746_v44 = vld [vmem:[#allocation7 + $0xa0] sm:$0xff] }
 0x87f   :  { %v2680_v34 = vmul.f32 %v10815_v32, %v2663_v52  ;;  %v2681_v53 = vmul.f32 %v10818_v33, %v2664_v19  ;;  %8818 = vrot.lane.b32.xlu1 %v8817_v21, %s9606_s28  ;;  %v2755_v21 = vrot.slane %v2746_v44, %v9690_v5  ;;  %v2751_v19 = vrot.slane %v2746_v44, %v9686_v3 }
 0x881   :  { %v8822_v55 = vpack.i.bf16 %v2681_v53, %v2680_v34  ;;  %v2659_v17 = vpop.permute.xlu1 %2658  ;;  %v2657_v47 = vpop.permute.xlu0 %2656  ;;  %v2759_v34 = vrot.slane %v2746_v44, %v9684_v2  ;;  %v2771_v53 = vrot.slane %v2746_v44, %v9698_v11 }
 0x882   :  { %v2665_v37 = vsel %vm266_vm1, %v2655_v46, %v2657_v47  ;;  %v2666_v9 = vsel %vm266_vm1, %v2657_v47, %v2659_v17  ;;  %v2684_v27 = vmul.f32 0.0, %v2659_v17  ;;  %v2763_v46 = vrot.slane %v2746_v44, %v9688_v4 }
 0x883   :  { %v2682_v35 = vmul.f32 %v10824_v28, %v2665_v37  ;;  %v2683_v43 = vmul.f32 %v10765_v63, %v2666_v9  ;;  %8823 = vrot.lane.b32.xlu0 %v8822_v55, %s9606_s28  ;;  %v2767_v55 = vrot.slane %v2746_v44, %v9700_v12  ;;  %v2779_v17 = vrot.slane %v2746_v44, %v9706_v15 }
 0x884   :  { %v2775_v47 = vrot.slane %v2746_v44, %v9708_v16 }
 0x885   :  { %v8827_v52 = vpack.i.bf16 %v2683_v43, %v2682_v35  ;;  %v8800_v43 = vunpack.i.l.bf16 %v10919_v29 }
 0x887   :  { %2710 = vrot.lane.b32.xlu0 %v2684_v27, %s9606_s28  ;;  %8828 = vrot.lane.b32.xlu1 %v8827_v52, %s9606_s28  ;;  %v8796_v27 = vunpack.i.h.bf16 %v10917_v45  ;;  %v8795_v52 = vunpack.i.l.bf16 %v10917_v45 }
 0x889   :  { %v2576_v45 = vsel %vm181_vm5, %v8795_v52, %v8796_v27 }
 0x88b   :  { %2782 = vrot.lane.b32.xlu0 %v2755_v21, %s9601_s23  ;;  %2780 = vrot.lane.b32.xlu1 %v2751_v19, %s9601_s23 }
 0x88f   :  { %2786 = vrot.lane.b32.xlu0 %v2763_v46, %s9601_s23  ;;  %2784 = vrot.lane.b32.xlu1 %v2759_v34, %s9601_s23 }
 0x893   :  { %2790 = vrot.lane.b32.xlu0 %v2771_v53, %s9601_s23  ;;  %2788 = vrot.lane.b32.xlu1 %v2767_v55, %s9601_s23  ;;  %v8805_v53 = vunpack.i.l.bf16 %v10921_v23  ;;  %v2577_v55 = vsel %vm181_vm5, %v8796_v27, %v8800_v43 }
 0x895   :  { %v10981_v30 = vsel %vm181_vm5, %v8805_v53, %v14116_v31 }
 0x896   :  { %14117 = vst [vmem:[#allocation60_spill] sm:$0xff] %v10981_v30 }
 0x897   :  { %2794 = vrot.lane.b32.xlu0 %v2779_v17, %s9601_s23  ;;  %2792 = vrot.lane.b32.xlu1 %v2775_v47, %s9601_s23  ;;  %v8801_v47 = vunpack.i.h.bf16 %v10919_v29 }
 0x8ed   :  { %v8814_v37 = vpop.permute.xlu0 %8813 }
 0x8ee   :  { %v8816_v9 = vunpack.i.h.bf16 %v8814_v37  ;;  %v8815_v35 = vunpack.i.l.bf16 %v8814_v37 }
 0x8f0   :  { %v2712_v34 = vsel %vm319_vm6, %v8815_v35, %v8816_v9 }
 0x8f1   :  { %v8819_v21 = vpop.permute.xlu1 %8818  ;;  %v3977_v35 = vpack.c.bf16 %v2712_v34, %v2576_v45  ;;  %v2578_v34 = vsel %vm181_vm5, %v8800_v43, %v8801_v47 }
 0x8f2   :  { %v8820_v19 = vunpack.i.l.bf16 %v8819_v21  ;;  %v8821_v46 = vunpack.i.h.bf16 %v8819_v21 }
 0x8f4   :  { %v2713_v17 = vsel %vm319_vm6, %v8816_v9, %v8820_v19  ;;  %v2714_v44 = vsel %vm319_vm6, %v8820_v19, %v8821_v46  ;;  %v2579_v9 = vsel %vm181_vm5, %v8801_v47, %v8805_v53 }
 0x8f5   :  { %v10972_v37 = vpop.permute.xlu0 %8823  ;;  %v3978_v40 = vpack.c.bf16 %v2713_v17, %v2577_v55  ;;  %v3979_v55 = vpack.c.bf16 %v2714_v44, %v2578_v34 }
 0x8f6   :  { %14115 = vst [vmem:[#allocation59_spill] sm:$0xff] %v10972_v37  ;;  %v13936_v49 = vunpack.i.h.bf16 %v10972_v37  ;;  %v8825_v21 = vunpack.i.l.bf16 %v10972_v37 }
 0x8f7   :  { %4076 = vmatprep.subr.bf16.mxu0 %v3978_v40 }
 0x8f8   :  { %v10986_v29 = vsel %vm319_vm6, %v8825_v21, %v13936_v49  ;;  %4077 = vmatpush1.bf16.msra.mxu0 %v3977_v35  ;;  %v2715_v27 = vsel %vm319_vm6, %v8821_v46, %v8825_v21 }
 0x8f9   :  { %14118 = vst [vmem:[#allocation61_spill] sm:$0xff] %v10986_v29  ;;  %v10990_v52 = vpop.permute.xlu1 %8828  ;;  %v10992_v40 = vpop.permute.xlu0 %2710  ;;  %v3980_v19 = vpack.c.bf16 %v2715_v27, %v2579_v9 }
 0x8fa   :  { %14119 = vst [vmem:[#allocation62_spill] sm:$0xff] %v10990_v52  ;;  %14120 = vst [vmem:[#allocation63_spill] sm:$0xff] %v10992_v40 }
 0x8fb   :  { %4117 = vmatprep.subr.bf16.mxu1 %v3980_v19 }
 0x8fc   :  { %4118 = vmatpush1.bf16.msra.mxu1 %v3979_v55 }
 0x8fd   :  { %v2781_v17 = vpop.permute.xlu1 %2780  ;;  %v2783_v45 = vpop.permute.xlu0 %2782 }
 0x8fe   :  { %v2812_v35 = vmul.f32 %v10798_v50, %v2781_v17  ;;  %v2796_v53 = vsel %vm404_vm2, %v2781_v17, %v2783_v45 }
 0x8ff   :  { %v2813_v46 = vmul.f32 %v10801_v14, %v2796_v53 }
 0x901   :  { %v8832_v21 = vpack.i.bf16 %v2813_v46, %v2812_v35  ;;  %v2785_v49 = vpop.permute.xlu1 %2784  ;;  %v2787_v40 = vpop.permute.xlu0 %2786 }
 0x902   :  { %v2797_v9 = vsel %vm404_vm2, %v2783_v45, %v2785_v49  ;;  %v2798_v43 = vsel %vm404_vm2, %v2785_v49, %v2787_v40 }
 0x903   :  { %v2814_v47 = vmul.f32 %v10806_v60, %v2797_v9  ;;  %v2815_v44 = vmul.f32 %v10809_v6, %v2798_v43  ;;  %8833 = vrot.lane.b32.xlu1 %v8832_v21, %s9607_s29 }
 0x905   :  { %v8837_v27 = vpack.i.bf16 %v2815_v44, %v2814_v47  ;;  %v2789_v19 = vpop.permute.xlu1 %2788  ;;  %v2791_v34 = vpop.permute.xlu0 %2790 }
 0x906   :  { %v2799_v55 = vsel %vm404_vm2, %v2787_v40, %v2789_v19  ;;  %v2800_v17 = vsel %vm404_vm2, %v2789_v19, %v2791_v34  ;;  %v2882_v40 = vld [vmem:[#allocation7 + $0xa8] sm:$0xff] }
 0x907   :  { %v2816_v35 = vmul.f32 %v10815_v32, %v2799_v55  ;;  %v2817_v53 = vmul.f32 %v10818_v33, %v2800_v17  ;;  %8838 = vrot.lane.b32.xlu0 %v8837_v27, %s9607_s29  ;;  %v2891_v27 = vrot.slane %v2882_v40, %v9690_v5  ;;  %v2887_v55 = vrot.slane %v2882_v40, %v9686_v3 }
 0x908   :  { %v2895_v17 = vrot.slane %v2882_v40, %v9684_v2 }
 0x909   :  { %v8842_v49 = vpack.i.bf16 %v2817_v53, %v2816_v35  ;;  %v2793_v45 = vpop.permute.xlu1 %2792  ;;  %v2795_v46 = vpop.permute.xlu0 %2794  ;;  %v2907_v35 = vrot.slane %v2882_v40, %v9698_v11  ;;  %v2903_v53 = vrot.slane %v2882_v40, %v9700_v12 }
 0x90a   :  { %v2801_v9 = vsel %vm404_vm2, %v2791_v34, %v2793_v45  ;;  %v2802_v21 = vsel %vm404_vm2, %v2793_v45, %v2795_v46  ;;  %v2820_v44 = vmul.f32 0.0, %v2795_v46  ;;  %v2899_v34 = vrot.slane %v2882_v40, %v9688_v4 }
 0x90b   :  { %v2818_v43 = vmul.f32 %v10824_v28, %v2801_v9  ;;  %v2819_v47 = vmul.f32 %v10765_v63, %v2802_v21  ;;  %8843 = vrot.lane.b32.xlu1 %v8842_v49, %s9607_s29  ;;  %v2915_v49 = vrot.slane %v2882_v40, %v9706_v15  ;;  %v2911_v45 = vrot.slane %v2882_v40, %v9708_v16 }
 0x90d   :  { %v8847_v19 = vpack.i.bf16 %v2819_v47, %v2818_v43 }
 0x90f   :  { %2846 = vrot.lane.b32.xlu1 %v2820_v44, %s9607_s29  ;;  %8848 = vrot.lane.b32.xlu0 %v8847_v19, %s9607_s29 }
 0x913   :  { %2918 = vrot.lane.b32.xlu1 %v2891_v27, %s9602_s24  ;;  %2916 = vrot.lane.b32.xlu0 %v2887_v55, %s9602_s24 }
 0x917   :  { %2922 = vrot.lane.b32.xlu1 %v2899_v34, %s9602_s24  ;;  %2920 = vrot.lane.b32.xlu0 %v2895_v17, %s9602_s24 }
 0x91b   :  { %2926 = vrot.lane.b32.xlu1 %v2907_v35, %s9602_s24  ;;  %2924 = vrot.lane.b32.xlu0 %v2903_v53, %s9602_s24 }
 0x91f   :  { %2930 = vrot.lane.b32.xlu1 %v2915_v49, %s9602_s24  ;;  %2928 = vrot.lane.b32.xlu0 %v2911_v45, %s9602_s24 }
 0x975   :  { %v11033_v46 = vpop.permute.xlu1 %8833 }
 0x979   :  { %v11035_v9 = vpop.permute.xlu0 %8838 }
 0x97d   :  { %v11037_v21 = vpop.permute.xlu1 %8843 }
 0x97e   :  { %14121 = vst [vmem:[#allocation64_spill] sm:$0xff] %v11037_v21  ;;  %v14125_v37 = vunpack.i.h.bf16 %v11037_v21 }
 0x981   :  { %v11039_v43 = vpop.permute.xlu1 %2846  ;;  %v11041_v47 = vpop.permute.xlu0 %8848 }
 0x982   :  { %14122 = vst [vmem:[#allocation65_spill] sm:$0xff] %v11039_v43  ;;  %14123 = vst [vmem:[#allocation66_spill] sm:$0xff] %v11041_v47 }
 0x985   :  { %v2919_v44 = vpop.permute.xlu1 %2918  ;;  %v2917_v19 = vpop.permute.xlu0 %2916 }
 0x986   :  { %v2932_v27 = vsel %vm542_vm3, %v2917_v19, %v2919_v44  ;;  %v2948_v40 = vmul.f32 %v10798_v50, %v2917_v19 }
 0x987   :  { %v2949_v55 = vmul.f32 %v10801_v14, %v2932_v27 }
 0x989   :  { %v8852_v34 = vpack.i.bf16 %v2949_v55, %v2948_v40  ;;  %v2923_v17 = vpop.permute.xlu1 %2922  ;;  %v2921_v35 = vpop.permute.xlu0 %2920 }
 0x98a   :  { %v2933_v53 = vsel %vm542_vm3, %v2919_v44, %v2921_v35  ;;  %v2934_v49 = vsel %vm542_vm3, %v2921_v35, %v2923_v17 }
 0x98b   :  { %v2950_v45 = vmul.f32 %v10806_v60, %v2933_v53  ;;  %v2951_v31 = vmul.f32 %v10809_v6, %v2934_v49  ;;  %8853 = vrot.lane.b32.xlu0 %v8852_v34, %s9604_s26 }
 0x98d   :  { %v8857_v43 = vpack.i.bf16 %v2951_v31, %v2950_v45  ;;  %v2927_v30 = vpop.permute.xlu1 %2926  ;;  %v2925_v29 = vpop.permute.xlu0 %2924 }
 0x98e   :  { %v2935_v19 = vsel %vm542_vm3, %v2923_v17, %v2925_v29  ;;  %v2936_v27 = vsel %vm542_vm3, %v2925_v29, %v2927_v30  ;;  %v3018_v29 = vld [vmem:[#allocation7 + $0xb0] sm:$0xff] }
 0x98f   :  { %v2952_v40 = vmul.f32 %v10815_v32, %v2935_v19  ;;  %v2953_v55 = vmul.f32 %v10818_v33, %v2936_v27  ;;  %8858 = vrot.lane.b32.xlu1 %v8857_v43, %s9604_s26  ;;  %v3027_v43 = vrot.slane %v3018_v29, %v9690_v5  ;;  %v3023_v27 = vrot.slane %v3018_v29, %v9686_v3 }
 0x991   :  { %v8862_v44 = vpack.i.bf16 %v2953_v55, %v2952_v40  ;;  %v2931_v35 = vpop.permute.xlu1 %2930  ;;  %v2929_v53 = vpop.permute.xlu0 %2928  ;;  %v3031_v40 = vrot.slane %v3018_v29, %v9684_v2  ;;  %v3043_v55 = vrot.slane %v3018_v29, %v9698_v11 }
 0x992   :  { %v2937_v49 = vsel %vm542_vm3, %v2927_v30, %v2929_v53  ;;  %v2938_v34 = vsel %vm542_vm3, %v2929_v53, %v2931_v35  ;;  %v2956_v17 = vmul.f32 0.0, %v2931_v35  ;;  %v3035_v30 = vrot.slane %v3018_v29, %v9688_v4 }
 0x993   :  { %v2954_v31 = vmul.f32 %v10824_v28, %v2937_v49  ;;  %v2955_v45 = vmul.f32 %v10765_v63, %v2938_v34  ;;  %8863 = vrot.lane.b32.xlu0 %v8862_v44, %s9604_s26  ;;  %v3039_v44 = vrot.slane %v3018_v29, %v9700_v12  ;;  %v3051_v35 = vrot.slane %v3018_v29, %v9706_v15 }
 0x994   :  { %v3047_v53 = vrot.slane %v3018_v29, %v9708_v16 }
 0x995   :  { %v8867_v19 = vpack.i.bf16 %v2955_v45, %v2954_v31  ;;  %v8840_v45 = vunpack.i.l.bf16 %v11035_v9 }
 0x997   :  { %2982 = vrot.lane.b32.xlu0 %v2956_v17, %s9604_s26  ;;  %8868 = vrot.lane.b32.xlu1 %v8867_v19, %s9604_s26  ;;  %v8836_v17 = vunpack.i.h.bf16 %v11033_v46  ;;  %v8835_v19 = vunpack.i.l.bf16 %v11033_v46 }
 0x999   :  { %v2848_v46 = vsel %vm457_vm7, %v8835_v19, %v8836_v17 }
 0x99b   :  { %3054 = vrot.lane.b32.xlu0 %v3027_v43, %s9603_s25  ;;  %3052 = vrot.lane.b32.xlu1 %v3023_v27, %s9603_s25 }
 0x99f   :  { %3058 = vrot.lane.b32.xlu0 %v3035_v30, %s9603_s25  ;;  %3056 = vrot.lane.b32.xlu1 %v3031_v40, %s9603_s25 }
 0x9a3   :  { %3062 = vrot.lane.b32.xlu0 %v3043_v55, %s9603_s25  ;;  %3060 = vrot.lane.b32.xlu1 %v3039_v44, %s9603_s25  ;;  %v8845_v55 = vunpack.i.l.bf16 %v11037_v21  ;;  %v2849_v44 = vsel %vm457_vm7, %v8836_v17, %v8840_v45 }
 0x9a5   :  { %v11097_v52 = vsel %vm457_vm7, %v8845_v55, %v14125_v37 }
 0x9a6   :  { %14126 = vst [vmem:[#allocation68_spill] sm:$0xff] %v11097_v52 }
 0x9a7   :  { %3066 = vrot.lane.b32.xlu0 %v3051_v35, %s9603_s25  ;;  %3064 = vrot.lane.b32.xlu1 %v3047_v53, %s9603_s25  ;;  %v8841_v53 = vunpack.i.h.bf16 %v11035_v9 }
 0x9fd   :  { %v8854_v49 = vpop.permute.xlu0 %8853 }
 0x9fe   :  { %v8856_v34 = vunpack.i.h.bf16 %v8854_v49  ;;  %v8855_v31 = vunpack.i.l.bf16 %v8854_v49 }
 0xa00   :  { %v2984_v40 = vsel %vm595_vm8, %v8855_v31, %v8856_v34 }
 0xa01   :  { %v8859_v43 = vpop.permute.xlu1 %8858  ;;  %v3985_v31 = vpack.c.bf16 %v2984_v40, %v2848_v46  ;;  %v2850_v40 = vsel %vm457_vm7, %v8840_v45, %v8841_v53 }
 0xa02   :  { %v8860_v27 = vunpack.i.l.bf16 %v8859_v43  ;;  %v8861_v30 = vunpack.i.h.bf16 %v8859_v43 }
 0xa04   :  { %v2985_v35 = vsel %vm595_vm8, %v8856_v34, %v8860_v27  ;;  %v2986_v29 = vsel %vm595_vm8, %v8860_v27, %v8861_v30  ;;  %v2851_v34 = vsel %vm457_vm7, %v8841_v53, %v8845_v55 }
 0xa05   :  { %v11088_v49 = vpop.permute.xlu0 %8863  ;;  %v3986_v23 = vpack.c.bf16 %v2985_v35, %v2849_v44  ;;  %v3987_v44 = vpack.c.bf16 %v2986_v29, %v2850_v40 }
 0xa06   :  { %14124 = vst [vmem:[#allocation67_spill] sm:$0xff] %v11088_v49  ;;  %v13944_v47 = vunpack.i.h.bf16 %v11088_v49  ;;  %v8865_v43 = vunpack.i.l.bf16 %v11088_v49 }
 0xa07   :  { %4078 = vmatprep.subr.bf16.mxu0 %v3986_v23 }
 0xa08   :  { %v11102_v9 = vsel %vm595_vm8, %v8865_v43, %v13944_v47  ;;  %4079 = vmatpush1.bf16.msra.mxu0 %v3985_v31  ;;  %v2987_v17 = vsel %vm595_vm8, %v8861_v30, %v8865_v43 }
 0xa09   :  { %14127 = vst [vmem:[#allocation69_spill] sm:$0xff] %v11102_v9  ;;  %v11106_v19 = vpop.permute.xlu1 %8868  ;;  %v11108_v23 = vpop.permute.xlu0 %2982  ;;  %v3988_v27 = vpack.c.bf16 %v2987_v17, %v2851_v34 }
 0xa0a   :  { %14128 = vst [vmem:[#allocation70_spill] sm:$0xff] %v11106_v19  ;;  %14129 = vst [vmem:[#allocation71_spill] sm:$0xff] %v11108_v23 }
 0xa0b   :  { %4119 = vmatprep.subr.bf16.mxu1 %v3988_v27 }
 0xa0c   :  { %4120 = vmatpush1.bf16.msra.mxu1 %v3987_v44 }
 0xa0d   :  { %v3053_v35 = vpop.permute.xlu1 %3052  ;;  %v3055_v46 = vpop.permute.xlu0 %3054 }
 0xa0e   :  { %v3084_v31 = vmul.f32 %v10798_v50, %v3053_v35  ;;  %v3068_v55 = vsel %vm14130_vm11, %v3053_v35, %v3055_v46  ;;  %vm14134_vm11 = vmmov %vm14131_vm9 }
 0xa0f   :  { %v3085_v30 = vmul.f32 %v10801_v14, %v3068_v55 }
 0xa11   :  { %v8872_v43 = vpack.i.bf16 %v3085_v30, %v3084_v31  ;;  %v3057_v47 = vpop.permute.xlu1 %3056  ;;  %v3059_v23 = vpop.permute.xlu0 %3058 }
 0xa12   :  { %v3069_v34 = vsel %vm14131_vm9, %v3055_v46, %v3057_v47  ;;  %v3070_v45 = vsel %vm14132_vm15, %v3057_v47, %v3059_v23  ;;  %vm14135_vm15 = vmmov %vm14131_vm9 }
 0xa13   :  { %v3086_v53 = vmul.f32 %v10806_v60, %v3069_v34  ;;  %v3087_v29 = vmul.f32 %v10809_v6, %v3070_v45  ;;  %8873 = vrot.lane.b32.xlu1 %v8872_v43, %s9603_s25 }
 0xa15   :  { %v8877_v17 = vpack.i.bf16 %v3087_v29, %v3086_v53  ;;  %v3061_v27 = vpop.permute.xlu1 %3060  ;;  %v3063_v40 = vpop.permute.xlu0 %3062 }
 0xa16   :  { %v3071_v44 = vsel %vm14133_vm12, %v3059_v23, %v3061_v27  ;;  %v3072_v35 = vsel %vm14134_vm11, %v3061_v27, %v3063_v40  ;;  %v3154_v23 = vld [vmem:[#allocation7 + $0xb8] sm:$0xff]  ;;  %vm14139_vm12 = vmmov %vm14131_vm9 }
 0xa17   :  { %v3088_v31 = vmul.f32 %v10815_v32, %v3071_v44  ;;  %v3089_v55 = vmul.f32 %v10818_v33, %v3072_v35  ;;  %8878 = vrot.lane.b32.xlu0 %v8877_v17, %s9603_s25  ;;  %v3163_v17 = vrot.slane %v3154_v23, %v9690_v5  ;;  %v3159_v44 = vrot.slane %v3154_v23, %v9686_v3  ;;  %vm14141_vm11 = vmmov %vm14131_vm9 }
 0xa18   :  { %v3167_v35 = vrot.slane %v3154_v23, %v9684_v2 }
 0xa19   :  { %v8882_v47 = vpack.i.bf16 %v3089_v55, %v3088_v31  ;;  %v3065_v46 = vpop.permute.xlu1 %3064  ;;  %v3067_v30 = vpop.permute.xlu0 %3066  ;;  %v3179_v31 = vrot.slane %v3154_v23, %v9698_v11  ;;  %v3175_v55 = vrot.slane %v3154_v23, %v9700_v12 }
 0xa1a   :  { %v3073_v34 = vsel %vm14131_vm9, %v3063_v40, %v3065_v46  ;;  %v3074_v43 = vsel %vm14135_vm15, %v3065_v46, %v3067_v30  ;;  %v3092_v29 = vmul.f32 0.0, %v3067_v30  ;;  %v3171_v40 = vrot.slane %v3154_v23, %v9688_v4  ;;  %vm14145_vm15 = vmmov %vm14131_vm9 }
 0xa1b   :  { %v3090_v45 = vmul.f32 %v10824_v28, %v3073_v34  ;;  %v3091_v53 = vmul.f32 %v10765_v63, %v3074_v43  ;;  %8883 = vrot.lane.b32.xlu1 %v8882_v47, %s9603_s25  ;;  %v3187_v47 = vrot.slane %v3154_v23, %v9706_v15  ;;  %v3183_v46 = vrot.slane %v3154_v23, %v9708_v16 }
 0xa1d   :  { %v8887_v27 = vpack.i.bf16 %v3091_v53, %v3090_v45 }
 0xa1f   :  { %3118 = vrot.lane.b32.xlu1 %v3092_v29, %s9603_s25  ;;  %8888 = vrot.lane.b32.xlu0 %v8887_v27, %s9603_s25 }
 0xa23   :  { %3190 = vrot.lane.b32.xlu1 %v3163_v17, %s9604_s26  ;;  %3188 = vrot.lane.b32.xlu0 %v3159_v44, %s9604_s26 }
 0xa27   :  { %3194 = vrot.lane.b32.xlu1 %v3171_v40, %s9604_s26  ;;  %3192 = vrot.lane.b32.xlu0 %v3167_v35, %s9604_s26 }
 0xa2b   :  { %3198 = vrot.lane.b32.xlu1 %v3179_v31, %s9604_s26  ;;  %3196 = vrot.lane.b32.xlu0 %v3175_v55, %s9604_s26 }
 0xa2f   :  { %3202 = vrot.lane.b32.xlu1 %v3187_v47, %s9604_s26  ;;  %3200 = vrot.lane.b32.xlu0 %v3183_v46, %s9604_s26 }
 0xa85   :  { %v11149_v30 = vpop.permute.xlu1 %8873 }
 0xa89   :  { %v11151_v34 = vpop.permute.xlu0 %8878 }
 0xa8d   :  { %v11153_v43 = vpop.permute.xlu1 %8883 }
 0xa8e   :  { %14136 = vst [vmem:[#allocation72_spill] sm:$0xff] %v11153_v43 }
 0xa91   :  { %v11155_v45 = vpop.permute.xlu1 %3118  ;;  %v11157_v53 = vpop.permute.xlu0 %8888 }
 0xa92   :  { %14137 = vst [vmem:[#allocation73_spill] sm:$0xff] %v11155_v45  ;;  %14138 = vst [vmem:[#allocation74_spill] sm:$0xff] %v11157_v53  ;;  %v14142_v53 = vunpack.i.h.bf16 %v11153_v43 }
 0xa95   :  { %v3191_v29 = vpop.permute.xlu1 %3190  ;;  %v3189_v27 = vpop.permute.xlu0 %3188 }
 0xa96   :  { %v3204_v17 = vsel %vm595_vm8, %v3189_v27, %v3191_v29  ;;  %v3220_v23 = vmul.f32 %v10798_v50, %v3189_v27 }
 0xa97   :  { %v3221_v44 = vmul.f32 %v10801_v14, %v3204_v17 }
 0xa99   :  { %v8892_v40 = vpack.i.bf16 %v3221_v44, %v3220_v23  ;;  %v3195_v35 = vpop.permute.xlu1 %3194  ;;  %v3193_v31 = vpop.permute.xlu0 %3192 }
 0xa9a   :  { %v3205_v55 = vsel %vm595_vm8, %v3191_v29, %v3193_v31  ;;  %v3206_v47 = vsel %vm595_vm8, %v3193_v31, %v3195_v35 }
 0xa9b   :  { %v3222_v46 = vmul.f32 %v10806_v60, %v3205_v55  ;;  %v3223_v37 = vmul.f32 %v10809_v6, %v3206_v47  ;;  %8893 = vrot.lane.b32.xlu0 %v8892_v40, %s9602_s24 }
 0xa9d   :  { %v8897_v45 = vpack.i.bf16 %v3223_v37, %v3222_v46  ;;  %v3199_v52 = vpop.permute.xlu1 %3198  ;;  %v3197_v9 = vpop.permute.xlu0 %3196 }
 0xa9e   :  { %v3207_v27 = vsel %vm595_vm8, %v3195_v35, %v3197_v9  ;;  %v3208_v17 = vsel %vm595_vm8, %v3197_v9, %v3199_v52  ;;  %v3290_v9 = vld [vmem:[#allocation7 + $0xc0] sm:$0xff] }
 0xa9f   :  { %v3224_v23 = vmul.f32 %v10815_v32, %v3207_v27  ;;  %v3225_v44 = vmul.f32 %v10818_v33, %v3208_v17  ;;  %8898 = vrot.lane.b32.xlu1 %v8897_v45, %s9602_s24  ;;  %v3299_v45 = vrot.slane %v3290_v9, %v9690_v5  ;;  %v3295_v17 = vrot.slane %v3290_v9, %v9686_v3 }
 0xaa1   :  { %v8902_v29 = vpack.i.bf16 %v3225_v44, %v3224_v23  ;;  %v3203_v31 = vpop.permute.xlu1 %3202  ;;  %v3201_v55 = vpop.permute.xlu0 %3200  ;;  %v3315_v23 = vrot.slane %v3290_v9, %v9698_v11  ;;  %v3311_v44 = vrot.slane %v3290_v9, %v9700_v12 }
 0xaa2   :  { %v3209_v47 = vsel %vm595_vm8, %v3199_v52, %v3201_v55  ;;  %v3210_v40 = vsel %vm595_vm8, %v3201_v55, %v3203_v31  ;;  %v3228_v35 = vmul.f32 0.0, %v3203_v31  ;;  %v3307_v52 = vrot.slane %v3290_v9, %v9688_v4 }
 0xaa3   :  { %v3226_v37 = vmul.f32 %v10824_v28, %v3209_v47  ;;  %v3227_v46 = vmul.f32 %v10765_v63, %v3210_v40  ;;  %8903 = vrot.lane.b32.xlu0 %v8902_v29, %s9602_s24  ;;  %v3303_v63 = vrot.slane %v3290_v9, %v9684_v2  ;;  %v3323_v29 = vrot.slane %v3290_v9, %v9706_v15 }
 0xaa4   :  { %v3319_v31 = vrot.slane %v3290_v9, %v9708_v16 }
 0xaa5   :  { %v8907_v27 = vpack.i.bf16 %v3227_v46, %v3226_v37  ;;  %v8880_v37 = vunpack.i.l.bf16 %v11151_v34  ;;  %v8876_v46 = vunpack.i.h.bf16 %v11149_v30 }
 0xaa7   :  { %3254 = vrot.lane.b32.xlu0 %v3228_v35, %s9602_s24  ;;  %8908 = vrot.lane.b32.xlu1 %v8907_v27, %s9602_s24  ;;  %v8875_v35 = vunpack.i.l.bf16 %v11149_v30 }
 0xaa9   :  { %v3120_v30 = vsel %vm14141_vm11, %v8875_v35, %v8876_v46  ;;  %vm13961_vm11 = vcmask 719872  }
 0xaab   :  { %3326 = vrot.lane.b32.xlu0 %v3299_v45, %s9607_s29  ;;  %3324 = vrot.lane.b32.xlu1 %v3295_v17, %s9607_s29 }
 0xaaf   :  { %3330 = vrot.lane.b32.xlu0 %v3307_v52, %s9607_s29  ;;  %3328 = vrot.lane.b32.xlu1 %v3303_v63, %s9607_s29  ;;  %v8885_v63 = vunpack.i.l.bf16 %v11153_v43 }
 0xab1   :  { %v11213_v49 = vsel %vm14131_vm9, %v8885_v63, %v14142_v53  ;;  %v11298_v53 = vld [vmem:[#allocation4 + $0x28] sm:$0xff] }
 0xab2   :  { %14143 = vst [vmem:[#allocation76_spill] sm:$0xff] %v11213_v49 }
 0xab3   :  { %3334 = vrot.lane.b32.xlu0 %v3315_v23, %s9607_s29  ;;  %3332 = vrot.lane.b32.xlu1 %v3311_v44, %s9607_s29  ;;  %v3121_v23 = vsel %vm14139_vm12, %v8876_v46, %v8880_v37  ;;  %vm14148_vm12 = vmmov %vm14131_vm9  ;;  %vm4033_vm9 = vcmask 1043456  }
 0xab7   :  { %3338 = vrot.lane.b32.xlu0 %v3323_v29, %s9607_s29  ;;  %3336 = vrot.lane.b32.xlu1 %v3319_v31, %s9607_s29  ;;  %v8881_v29 = vunpack.i.h.bf16 %v11151_v34 }
 0xb0d   :  { %v8894_v55 = vpop.permute.xlu0 %8893 }
 0xb0e   :  { %v8896_v47 = vunpack.i.h.bf16 %v8894_v55  ;;  %v8895_v40 = vunpack.i.l.bf16 %v8894_v55 }
 0xb10   :  { %v3256_v52 = vsel %vm542_vm3, %v8895_v40, %v8896_v47 }
 0xb11   :  { %v8899_v27 = vpop.permute.xlu1 %8898  ;;  %v3993_v40 = vpack.c.bf16 %v3256_v52, %v3120_v30 }
 0xb12   :  { %v8900_v45 = vunpack.i.l.bf16 %v8899_v27  ;;  %v8901_v17 = vunpack.i.h.bf16 %v8899_v27 }
 0xb14   :  { %v3257_v44 = vsel %vm542_vm3, %v8896_v47, %v8900_v45  ;;  %v3258_v9 = vsel %vm542_vm3, %v8900_v45, %v8901_v17  ;;  %v3123_v47 = vsel %vm14145_vm15, %v8881_v29, %v8885_v63  ;;  %vm14159_vm15 = vmmov %vm14148_vm12 }
 0xb15   :  { %v11204_v31 = vpop.permute.xlu0 %8903  ;;  %v3994_v55 = vpack.c.bf16 %v3257_v44, %v3121_v23  ;;  %v3122_v23 = vsel %vm14148_vm12, %v8880_v37, %v8881_v29 }
 0xb16   :  { %14140 = vst [vmem:[#allocation75_spill] sm:$0xff] %v11204_v31  ;;  %v13953_v21 = vunpack.i.h.bf16 %v11204_v31  ;;  %v8905_v27 = vunpack.i.l.bf16 %v11204_v31  ;;  %v3995_v44 = vpack.c.bf16 %v3258_v9, %v3122_v23 }
 0xb17   :  { %4080 = vmatprep.subr.bf16.mxu0 %v3994_v55 }
 0xb18   :  { %v11218_v34 = vsel %vm542_vm3, %v8905_v27, %v13953_v21  ;;  %4081 = vmatpush1.bf16.msra.mxu0 %v3993_v40  ;;  %v3259_v46 = vsel %vm542_vm3, %v8901_v17, %v8905_v27 }
 0xb19   :  { %14144 = vst [vmem:[#allocation77_spill] sm:$0xff] %v11218_v34  ;;  %v11222_v35 = vpop.permute.xlu1 %8908  ;;  %v11224_v52 = vpop.permute.xlu0 %3254  ;;  %v3996_v45 = vpack.c.bf16 %v3259_v46, %v3123_v47 }
 0xb1a   :  { %14146 = vst [vmem:[#allocation78_spill] sm:$0xff] %v11222_v35  ;;  %14147 = vst [vmem:[#allocation79_spill] sm:$0xff] %v11224_v52 }
 0xb1b   :  { %4121 = vmatprep.subr.bf16.mxu1 %v3996_v45 }
 0xb1c   :  { %4122 = vmatpush1.bf16.msra.mxu1 %v3995_v44 }
 0xb1d   :  { %v3325_v55 = vpop.permute.xlu1 %3324  ;;  %v3327_v30 = vpop.permute.xlu0 %3326 }
 0xb1e   :  { %v3356_v40 = vmul.f32 %v10798_v50, %v3325_v55  ;;  %v3340_v63 = vsel %vm457_vm7, %v3325_v55, %v3327_v30 }
 0xb1f   :  { %v3357_v17 = vmul.f32 %v10801_v14, %v3340_v63 }
 0xb21   :  { %v8912_v27 = vpack.i.bf16 %v3357_v17, %v3356_v40  ;;  %v3329_v21 = vpop.permute.xlu1 %3328  ;;  %v3331_v52 = vpop.permute.xlu0 %3330  ;;  %v11245_v17 = vld [vmem:[#allocation4 + $0x38] sm:$0xff] }
 0xb22   :  { %v3341_v47 = vsel %vm457_vm7, %v3327_v30, %v3329_v21  ;;  %v3342_v37 = vsel %vm457_vm7, %v3329_v21, %v3331_v52 }
 0xb23   :  { %v3358_v29 = vmul.f32 %v10806_v60, %v3341_v47  ;;  %v3359_v9 = vmul.f32 %v10809_v6, %v3342_v37  ;;  %8913 = vrot.lane.b32.xlu1 %v8912_v27, %s9601_s23 }
 0xb25   :  { %v8917_v46 = vpack.i.bf16 %v3359_v9, %v3358_v29  ;;  %v3333_v45 = vpop.permute.xlu1 %3332  ;;  %v3335_v50 = vpop.permute.xlu0 %3334 }
 0xb26   :  { %v3343_v23 = vsel %vm457_vm7, %v3331_v52, %v3333_v45  ;;  %v3344_v14 = vsel %vm457_vm7, %v3333_v45, %v3335_v50 }
 0xb27   :  { %v3360_v44 = vmul.f32 %v10815_v32, %v3343_v23  ;;  %v3361_v55 = vmul.f32 %v10818_v33, %v3344_v14  ;;  %8918 = vrot.lane.b32.xlu0 %v8917_v46, %s9601_s23  ;;  %v3426_v32 = vld [vmem:[#allocation7 + $0xc8] sm:$0xff] }
 0xb28   :  { %v3435_v47 = vrot.slane %v3426_v32, %v9690_v5  ;;  %v3431_v37 = vrot.slane %v3426_v32, %v9686_v3  ;;  %v3439_v29 = vrot.slane %v3426_v32, %v9684_v2  ;;  %v3451_v9 = vrot.slane %v3426_v32, %v9698_v11 }
 0xb29   :  { %v8922_v21 = vpack.i.bf16 %v3361_v55, %v3360_v44  ;;  %v3337_v30 = vpop.permute.xlu1 %3336  ;;  %v3339_v60 = vpop.permute.xlu0 %3338  ;;  %v3447_v46 = vrot.slane %v3426_v32, %v9700_v12  ;;  %v3459_v45 = vrot.slane %v3426_v32, %v9706_v15 }
 0xb2a   :  { %v3345_v6 = vsel %vm457_vm7, %v3335_v50, %v3337_v30  ;;  %v3346_v40 = vsel %vm457_vm7, %v3337_v30, %v3339_v60  ;;  %v3364_v27 = vmul.f32 0.0, %v3339_v60  ;;  %v3455_v50 = vrot.slane %v3426_v32, %v9708_v16 }
 0xb2b   :  { %v3362_v63 = vmul.f32 %v10824_v28, %v3345_v6  ;;  %v3363_v52 = vmul.f32 %v11245_v17, %v3346_v40  ;;  %8923 = vrot.lane.b32.xlu1 %v8922_v21, %s9601_s23  ;;  %v3443_v28 = vrot.slane %v3426_v32, %v9688_v4  ;;  %v11278_v40 = vld [vmem:[#allocation4] sm:$0xff] }
 0xb2d   :  { %v8927_v33 = vpack.i.bf16 %v3363_v52, %v3362_v63  ;;  %v11281_v52 = vld [vmem:[#allocation4 + $0x8] sm:$0xff] }
 0xb2f   :  { %3390 = vrot.lane.b32.xlu1 %v3364_v27, %s9601_s23  ;;  %8928 = vrot.lane.b32.xlu0 %v8927_v33, %s9601_s23 }
 0xb33   :  { %3462 = vrot.lane.b32.xlu1 %v3435_v47, %s9606_s28  ;;  %3460 = vrot.lane.b32.xlu0 %v3431_v37, %s9606_s28 }
 0xb37   :  { %3466 = vrot.lane.b32.xlu1 %v3443_v28, %s9606_s28  ;;  %3464 = vrot.lane.b32.xlu0 %v3439_v29, %s9606_s28  ;;  %v11286_v29 = vld [vmem:[#allocation4 + $0x10] sm:$0xff] }
 0xb3b   :  { %3470 = vrot.lane.b32.xlu1 %v3451_v9, %s9606_s28  ;;  %3468 = vrot.lane.b32.xlu0 %v3447_v46, %s9606_s28  ;;  %v11289_v46 = vld [vmem:[#allocation4 + $0x18] sm:$0xff] }
 0xb3f   :  { %3474 = vrot.lane.b32.xlu1 %v3459_v45, %s9606_s28  ;;  %3472 = vrot.lane.b32.xlu0 %v3455_v50, %s9606_s28 }
 0xb95   :  { %v11267_v23 = vpop.permute.xlu1 %8913 }
 0xb99   :  { %v11269_v14 = vpop.permute.xlu0 %8918 }
 0xb9d   :  { %v11271_v44 = vpop.permute.xlu1 %8923 }
 0xb9e   :  { %v14151_v35 = vunpack.i.h.bf16 %v11271_v44 }
 0xba1   :  { %v11273_v55 = vpop.permute.xlu1 %3390  ;;  %v11275_v21 = vpop.permute.xlu0 %8928 }
 0xba2   :  { %14149 = vst [vmem:[#allocation80_spill] sm:$0xff] %v11273_v55  ;;  %14150 = vst [vmem:[#allocation81_spill] sm:$0xff] %v11275_v21 }
 0xba5   :  { %v3463_v30 = vpop.permute.xlu1 %3462  ;;  %v3461_v60 = vpop.permute.xlu0 %3460 }
 0xba6   :  { %v3476_v6 = vsel %vm319_vm6, %v3461_v60, %v3463_v30  ;;  %v3492_v63 = vmul.f32 %v11278_v40, %v3461_v60 }
 0xba7   :  { %v3493_v32 = vmul.f32 %v11281_v52, %v3476_v6 }
 0xba9   :  { %v8932_v27 = vpack.i.bf16 %v3493_v32, %v3492_v63  ;;  %v3467_v33 = vpop.permute.xlu1 %3466  ;;  %v3465_v47 = vpop.permute.xlu0 %3464 }
 0xbaa   :  { %v3477_v37 = vsel %vm319_vm6, %v3463_v30, %v3465_v47  ;;  %v3478_v28 = vsel %vm319_vm6, %v3465_v47, %v3467_v33  ;;  %v11295_v30 = vld [vmem:[#allocation4 + $0x20] sm:$0xff] }
 0xbab   :  { %v3494_v9 = vmul.f32 %v11286_v29, %v3477_v37  ;;  %v3495_v45 = vmul.f32 %v11289_v46, %v3478_v28  ;;  %8933 = vrot.lane.b32.xlu0 %v8932_v27, %s9600_s22 }
 0xbad   :  { %v8937_v50 = vpack.i.bf16 %v3495_v45, %v3494_v9  ;;  %v3471_v60 = vpop.permute.xlu1 %3470  ;;  %v3469_v6 = vpop.permute.xlu0 %3468 }
 0xbae   :  { %v3479_v63 = vsel %vm319_vm6, %v3467_v33, %v3469_v6  ;;  %v3480_v32 = vsel %vm319_vm6, %v3469_v6, %v3471_v60  ;;  %v11304_v33 = vld [vmem:[#allocation4 + $0x30] sm:$0xff] }
 0xbaf   :  { %v3496_v47 = vmul.f32 %v11295_v30, %v3479_v63  ;;  %v3497_v37 = vmul.f32 %v11298_v53, %v3480_v32  ;;  %8938 = vrot.lane.b32.xlu1 %v8937_v50, %s9600_s22  ;;  %v3562_v63 = vld [vmem:[#allocation7 + $0xd0] sm:$0xff] }
 0xbb0   :  { %v3571_v50 = vrot.slane %v3562_v63, %v9690_v5 }
 0xbb1   :  { %v8942_v28 = vpack.i.bf16 %v3497_v37, %v3496_v47  ;;  %v3475_v55 = vpop.permute.xlu1 %3474  ;;  %v3473_v27 = vpop.permute.xlu0 %3472  ;;  %v3579_v47 = vrot.slane %v3562_v63, %v9688_v4  ;;  %v3575_v37 = vrot.slane %v3562_v63, %v9684_v2 }
 0xbb2   :  { %v3481_v9 = vsel %vm319_vm6, %v3471_v60, %v3473_v27  ;;  %v3482_v45 = vsel %vm319_vm6, %v3473_v27, %v3475_v55  ;;  %v3500_v34 = vmul.f32 0.0, %v3475_v55  ;;  %v3567_v60 = vrot.slane %v3562_v63, %v9686_v3 }
 0xbb3   :  { %v3498_v6 = vmul.f32 %v11304_v33, %v3481_v9  ;;  %v3499_v49 = vmul.f32 %v11245_v17, %v3482_v45  ;;  %8943 = vrot.lane.b32.xlu0 %v8942_v28, %s9600_s22  ;;  %v3595_v55 = vrot.slane %v3562_v63, %v9706_v15  ;;  %v3591_v28 = vrot.slane %v3562_v63, %v9708_v16 }
 0xbb5   :  { %v8947_v32 = vpack.i.bf16 %v3499_v49, %v3498_v6  ;;  %v3587_v49 = vrot.slane %v3562_v63, %v9698_v11  ;;  %v8920_v6 = vunpack.i.l.bf16 %v11269_v14 }
 0xbb7   :  { %3526 = vrot.lane.b32.xlu0 %v3500_v34, %s9600_s22  ;;  %8948 = vrot.lane.b32.xlu1 %v8947_v32, %s9600_s22  ;;  %v3583_v34 = vrot.slane %v3562_v63, %v9700_v12  ;;  %v8916_v32 = vunpack.i.h.bf16 %v11267_v23 }
 0xbbb   :  { %3598 = vrot.lane.b32.xlu0 %v3571_v50, %s9605_s27  ;;  %3596 = vrot.lane.b32.xlu1 %v3567_v60, %s9605_s27  ;;  %v8915_v50 = vunpack.i.l.bf16 %v11267_v23 }
 0xbbd   :  { %v3392_v23 = vsel %vm404_vm2, %v8915_v50, %v8916_v32 }
 0xbbf   :  { %3602 = vrot.lane.b32.xlu0 %v3579_v47, %s9605_s27  ;;  %3600 = vrot.lane.b32.xlu1 %v3575_v37, %s9605_s27 }
 0xbc3   :  { %3606 = vrot.lane.b32.xlu0 %v3587_v49, %s9605_s27  ;;  %3604 = vrot.lane.b32.xlu1 %v3583_v34, %s9605_s27  ;;  %v8925_v34 = vunpack.i.l.bf16 %v11271_v44 }
 0xbc5   :  { %v11345_v19 = vsel %vm404_vm2, %v8925_v34, %v14151_v35 }
 0xbc7   :  { %3610 = vrot.lane.b32.xlu0 %v3595_v55, %s9605_s27  ;;  %3608 = vrot.lane.b32.xlu1 %v3591_v28, %s9605_s27  ;;  %v3393_v55 = vsel %vm404_vm2, %v8916_v32, %v8920_v6 }
 0xc1d   :  { %v8934_v27 = vpop.permute.xlu0 %8933 }
 0xc1e   :  { %v8936_v9 = vunpack.i.h.bf16 %v8934_v27  ;;  %v8935_v45 = vunpack.i.l.bf16 %v8934_v27  ;;  %v8921_v27 = vunpack.i.h.bf16 %v11269_v14 }
 0xc20   :  { %v3528_v49 = vsel %vm266_vm1, %v8935_v45, %v8936_v9 }
 0xc21   :  { %v8939_v60 = vpop.permute.xlu1 %8938  ;;  %v4001_v45 = vpack.c.bf16 %v3528_v49, %v3392_v23  ;;  %v3394_v49 = vsel %vm404_vm2, %v8920_v6, %v8921_v27 }
 0xc22   :  { %v8940_v47 = vunpack.i.l.bf16 %v8939_v60  ;;  %v8941_v37 = vunpack.i.h.bf16 %v8939_v60 }
 0xc24   :  { %v3529_v28 = vsel %vm266_vm1, %v8936_v9, %v8940_v47  ;;  %v3530_v63 = vsel %vm266_vm1, %v8940_v47, %v8941_v37  ;;  %v3395_v9 = vsel %vm404_vm2, %v8921_v27, %v8925_v34 }
 0xc25   :  { %v11336_v43 = vpop.permute.xlu0 %8943  ;;  %v4002_v21 = vpack.c.bf16 %v3529_v28, %v3393_v55  ;;  %v4003_v55 = vpack.c.bf16 %v3530_v63, %v3394_v49 }
 0xc26   :  { %v8946_v31 = vunpack.i.h.bf16 %v11336_v43  ;;  %v8945_v60 = vunpack.i.l.bf16 %v11336_v43 }
 0xc27   :  { %4082 = vmatprep.subr.bf16.mxu0 %v4002_v21 }
 0xc28   :  { %v11350_v14 = vsel %vm266_vm1, %v8945_v60, %v8946_v31  ;;  %4083 = vmatpush1.bf16.msra.mxu0 %v4001_v45  ;;  %v3531_v32 = vsel %vm266_vm1, %v8941_v37, %v8945_v60  ;;  %v11367_v60 = vld [vmem:[%s13883_s1] sm:$0xff] }
 0xc29   :  { %v11354_v50 = vpop.permute.xlu1 %8948  ;;  %v11356_v21 = vpop.permute.xlu0 %3526  ;;  %v4004_v47 = vpack.c.bf16 %v3531_v32, %v3395_v9  ;;  %v11371_v6 = vcombine.high %v11367_v60, %v11367_v60 }
 0xc2b   :  { %4123 = vmatprep.subr.bf16.mxu1 %v4004_v47  ;;  %8413 = vmatprep.mubr.msk.bf16.mxu0 %vm13961_vm11, %v11371_v6 }
 0xc2c   :  { %4124 = vmatpush1.bf16.msra.mxu1 %v4003_v55  ;;  %8415 = vmatprep.mubr.msk.bf16.mxu1 %vm13961_vm11, %v11371_v6 }
 0xc2d   :  { %v3597_v28 = vpop.permute.xlu1 %3596  ;;  %v3599_v23 = vpop.permute.xlu0 %3598 }
 0xc2e   :  { %v3628_v45 = vmul.f32 %v11278_v40, %v3597_v28  ;;  %v3612_v34 = vsel %vm181_vm5, %v3597_v28, %v3599_v23 }
 0xc2f   :  { %v3629_v37 = vmul.f32 %v11281_v52, %v3612_v34 }
 0xc31   :  { %v8952_v63 = vpack.i.bf16 %v3629_v37, %v3628_v45  ;;  %v3601_v27 = vpop.permute.xlu1 %3600  ;;  %v3603_v9 = vpop.permute.xlu0 %3602 }
 0xc32   :  { %v3613_v32 = vsel %vm181_vm5, %v3599_v23, %v3601_v27  ;;  %v3614_v40 = vsel %vm181_vm5, %v3601_v27, %v3603_v9 }
 0xc33   :  { %v3630_v52 = vmul.f32 %v11286_v29, %v3613_v32  ;;  %v3631_v47 = vmul.f32 %v11289_v46, %v3614_v40  ;;  %8953 = vrot.lane.b32.xlu1 %v8952_v63, %s9599_s5 }
 0xc35   :  { %v8957_v49 = vpack.i.bf16 %v3631_v47, %v3630_v52  ;;  %v3605_v55 = vpop.permute.xlu1 %3604  ;;  %v3607_v28 = vpop.permute.xlu0 %3606  ;;  %v4263_v47 = vld [vmem:[#allocation7] sm:$0xff] }
 0xc36   :  { %v3615_v45 = vsel %vm181_vm5, %v3603_v9, %v3605_v55  ;;  %v3616_v23 = vsel %vm181_vm5, %v3605_v55, %v3607_v28  ;;  %v4276_v55 = vrot.slane %v4263_v47, %v9684_v2 }
 0xc37   :  { %v3632_v34 = vmul.f32 %v11295_v30, %v3615_v45  ;;  %v3633_v37 = vmul.f32 %v11298_v53, %v3616_v23  ;;  %8958 = vrot.lane.b32.xlu0 %v8957_v49, %s9599_s5  ;;  %v4017_v30 = vld [vmem:[%s13884_s2] sm:$0xff]  ;;  %v9615_v49 = vmov 0   ;;  %v4284_v45 = vrot.slane %v4263_v47, %v9700_v12 }
 0xc38   :  { %8972 = vset.pattern.permute.xlu0 %v9615_v49  ;;  %v4280_v23 = vrot.slane %v4263_v47, %v9688_v4  ;;  %v8470_v49 = vunpack.i.l.bf16 %v10050_v62 }
 0xc39   :  { %v8962_v27 = vpack.i.bf16 %v3633_v37, %v3632_v34  ;;  %v3609_v35 = vpop.permute.xlu1 %3608  ;;  %v3611_v29 = vpop.permute.xlu0 %3610  ;;  %v4292_v34 = vrot.slane %v4263_v47, %v9708_v16  ;;  %v4288_v37 = vrot.slane %v4263_v47, %v9698_v11 }
 0xc3a   :  { %v3617_v46 = vsel %vm181_vm5, %v3607_v28, %v3609_v35  ;;  %v3618_v63 = vsel %vm181_vm5, %v3609_v35, %v3611_v29  ;;  %v3636_v9 = vmul.f32 0.0, %v3611_v29  ;;  %v4268_v35 = vrot.slane %v4263_v47, %v9686_v3 }
 0xc3b   :  { %v3634_v32 = vmul.f32 %v11304_v33, %v3617_v46  ;;  %v3635_v40 = vmul.f32 %v11245_v17, %v3618_v63  ;;  %8963 = vrot.lane.b32.xlu1 %v8962_v27, %s9599_s5  ;;  %v4272_v28 = vrot.slane %v4263_v47, %v9690_v5  ;;  %v4296_v27 = vrot.slane %v4263_v47, %v9706_v15 }
 0xc3d   :  { %v8967_v52 = vpack.i.bf16 %v3635_v40, %v3634_v32  ;;  %v8490_v32 = vunpack.i.l.bf16 %v10087_v18 }
 0xc3f   :  { %8968 = vrot.lane.b32.xlu0 %v8967_v52, %s9599_s5  ;;  %3662 = vrot.lane.b32.xlu1 %v3636_v9, %s9599_s5 }
 0xc43   :  { %4020 = vperm.xlu0 %8972, %v4017_v30   ;;  %4297 = vrot.lane.b32.xlu1 %v4268_v35, %s9599_s5  ;;  %v8491_v35 = vunpack.i.h.bf16 %v10087_v18  ;;  %v8471_v18 = vunpack.i.h.bf16 %v10050_v62  ;;  %v8570_v62 = vunpack.i.l.bf16 %v10197_v54 }
 0xc47   :  { %4301 = vrot.lane.b32.xlu0 %v4276_v55, %s9599_s5  ;;  %4299 = vrot.lane.b32.xlu1 %v4272_v28, %s9599_s5  ;;  %v14152_v28 = vunpack.i.h.bf16 %v10056_v26  ;;  %v8510_v26 = vunpack.i.l.bf16 %v10062_v22 }
 0xc49   :  { %v325_v47 = vsel %vm319_vm6, %v14152_v28, %v8490_v32 }
 0xc4b   :  { %4305 = vrot.lane.b32.xlu0 %v4284_v45, %s9599_s5  ;;  %4303 = vrot.lane.b32.xlu1 %v4280_v23, %s9599_s5  ;;  %v8530_v45 = vunpack.i.l.bf16 %v10121_v48 }
 0xc4f   :  { %4309 = vrot.lane.b32.xlu0 %v4292_v34, %s9599_s5  ;;  %4307 = vrot.lane.b32.xlu1 %v4288_v37, %s9599_s5 }
 0xc53   :  { %4311 = vrot.lane.b32.xlu1 %v4296_v27, %s9599_s5 }
 0xca5   :  { %v8954_v29 = vpop.permute.xlu1 %8953 }
 0xca6   :  { %v8956_v46 = vunpack.i.h.bf16 %v8954_v29  ;;  %v8955_v63 = vunpack.i.l.bf16 %v8954_v29  ;;  %v14153_v29 = vunpack.i.h.bf16 %v10064_v38  ;;  %v327_v38 = vsel %vm319_vm6, %v8491_v35, %v10044_v58 }
 0xca7   :  { %v14155_v58 = vunpack.i.h.bf16 %v10094_v61  ;;  %v14156_v61 = vpack.c.bf16 %v10071_v51, %v10076_v10 }
 0xca8   :  { %v3664_v40 = vsel %vm128_vm0, %v8955_v63, %v8956_v46  ;;  %v187_v63 = vsel %vm181_vm5, %v14153_v29, %v8470_v49  ;;  %v326_v29 = vsel %vm319_vm6, %v8490_v32, %v8491_v35  ;;  %v8610_v32 = vunpack.i.l.bf16 %v10313_v42 }
 0xca9   :  { %v8959_v9 = vpop.permute.xlu0 %8958  ;;  %v4009_v55 = vpack.c.bf16 %v3664_v40, %v3664_v40 }
 0xcaa   :  { %v8961_v52 = vunpack.i.h.bf16 %v8959_v9  ;;  %v8960_v30 = vunpack.i.l.bf16 %v8959_v9  ;;  %v3910_v9 = vpack.c.bf16 %v325_v47, %v187_v63  ;;  %v189_v63 = vsel %vm181_vm5, %v8471_v18, %v10048_v20 }
 0xcab   :  { %v14157_v20 = vunpack.i.h.bf16 %v10177_v39 }
 0xcac   :  { %v3665_v23 = vsel %vm128_vm0, %v8956_v46, %v8960_v30  ;;  %v3666_v34 = vsel %vm128_vm0, %v8960_v30, %v8961_v52  ;;  %v4035_v46 = vsel %vm4033_vm9, %v4009_v55, 0  ;;  %v11435_v30 = vcombine.low %v11367_v60, %v11367_v60 }
 0xcad   :  { %v11423_v37 = vpop.permute.xlu1 %8963  ;;  %v4010_v27 = vpack.c.bf16 %v3665_v23, %v3665_v23  ;;  %v4011_v28 = vpack.c.bf16 %v3666_v34, %v3666_v34  ;;  %v8531_v23 = vunpack.i.h.bf16 %v10121_v48  ;;  %v8511_v34 = vunpack.i.h.bf16 %v10062_v22 }
 0xcae   :  { %v8965_v40 = vunpack.i.l.bf16 %v11423_v37  ;;  %v463_v48 = vsel %vm457_vm7, %v14155_v58, %v8510_v26  ;;  %v8571_v22 = vunpack.i.h.bf16 %v10197_v54  ;;  %v874_v35 = vsel %vm542_vm3, %v14157_v20, %v8570_v62 }
 0xcaf   :  { %8412 = vmatprep.subr.msk.bf16.mxu0 %vm4033_vm9, %v4010_v27  ;;  %v14154_v27 = vunpack.i.h.bf16 %v10090_v36  ;;  %v4041_v36 = vsel %vm4033_vm9, %v4011_v28, 0  ;;  %v188_v28 = vsel %vm181_vm5, %v8470_v49, %v8471_v18  ;;  %v8590_v54 = vunpack.i.l.bf16 %v10244_v57 }
 0xcb0   :  { %4085 = vmatpush1.bf16.msra.mxu0 %v4035_v46  ;;  %v3667_v47 = vsel %vm128_vm0, %v8961_v52, %v8965_v40  ;;  %v8550_v46 = vunpack.i.l.bf16 %v10124_v8  ;;  %v465_v10 = vsel %vm457_vm7, %v8511_v34, %v10052_v1  ;;  %v8611_v49 = vunpack.i.h.bf16 %v10313_v42 }
 0xcb1   :  { %v601_v55 = vsel %vm595_vm8, %v14154_v27, %v8530_v45  ;;  %4140 = vmatprep.subr.bf16.mxu0 %v3910_v9  ;;  %v4012_v60 = vpack.c.bf16 %v3667_v47, %v3667_v47  ;;  %v3912_v9 = vpack.c.bf16 %v327_v38, %v189_v63  ;;  %v603_v47 = vsel %vm595_vm8, %v8531_v23, %v10046_v59 }
 0xcb2   :  { %v3918_v52 = vpack.c.bf16 %v601_v55, %v463_v48  ;;  %v8551_v38 = vunpack.i.h.bf16 %v10124_v8  ;;  %v3911_v27 = vpack.c.bf16 %v326_v29, %v188_v28  ;;  %v14158_v55 = vunpack.i.h.bf16 %v10128_v0  ;;  %v14173_v28 = vld [vmem:[#allocation16_spill] sm:$0xff] }
 0xcb3   :  { %4091 = vmatmul.mubr.bf16.vlgmr.msra.gmra.mrb[0].mxu0 %v11435_v30  ;;  %8414 = vmatprep.subr.msk.bf16.mxu1 %vm4033_vm9, %v4012_v60  ;;  %v602_v59 = vsel %vm595_vm8, %v8530_v45, %v8531_v23  ;;  %v3920_v39 = vpack.c.bf16 %v603_v47, %v465_v10  ;;  %v8650_v18 = vunpack.i.l.bf16 %v10445_v41  ;;  %v14160_v0 = vpack.c.bf16 %v10103_v24, %v10108_v25  ;;  %v14162_v25 = vld [vmem:[#allocation21_spill] sm:$0xff]  ;;  %v14172_v47 = vld [vmem:[#allocation19_spill] sm:$0xff]  ;;  %v14175_v10 = vld [vmem:[#allocation20_spill] sm:$0xff] }
 0xcb4   :  { %4126 = vmatpush1.bf16.msra.mxu1 %v4041_v36  ;;  %4141 = vmatpush1.bf16.msra.mxu0 %v14156_v61  ;;  %v738_v51 = vsel %vm14159_vm15, %v14158_v55, %v8550_v46  ;;  %v14161_v1 = vunpack.i.h.bf16 %v10293_v13  ;;  %v876_v45 = vsel %vm542_vm3, %v8571_v22, %v10195_v56  ;;  %v464_v23 = vsel %vm457_vm7, %v8510_v26, %v8511_v34  ;;  %v14163_v13 = vld [vmem:[#allocation15_spill] sm:$0xff]  ;;  %vm14165_vm15 = vmmov %vm14148_vm12  ;;  %v14174_v55 = vld [vmem:[#allocation28_spill] sm:$0xff] }
 0xcb5   :  { %4142 = vmatprep.subr.bf16.mxu0 %v3918_v52  ;;  %4181 = vmatprep.subr.bf16.mxu1 %v3912_v9  ;;  %v3926_v8 = vpack.c.bf16 %v874_v35, %v738_v51  ;;  %v8591_v29 = vunpack.i.h.bf16 %v10244_v57  ;;  %v740_v42 = vsel %vm14148_vm12, %v8551_v38, %v10054_v7  ;;  %v875_v24 = vsel %vm542_vm3, %v8570_v62, %v8571_v22  ;;  %v14166_v52 = vld [vmem:[#allocation34_spill] sm:$0xff]  ;;  %v14168_v62 = vld [vmem:[#allocation13_spill] sm:$0xff]  ;;  %v14170_v61 = vld [vmem:[#allocation23_spill] sm:$0xff] }
 0xcb6   :  { %8417 = vmatprep.mubr.msk.bf16.mxu0 %vm13961_vm11, %v11371_v6  ;;  %v1146_v60 = vsel %vm266_vm1, %v14161_v1, %v8610_v32  ;;  %v8630_v58 = vunpack.i.l.bf16 %v14162_v25  ;;  %v3919_v48 = vpack.c.bf16 %v602_v59, %v464_v23  ;;  %v14164_v63 = vunpack.i.h.bf16 %v14163_v13  ;;  %v14167_v9 = vld [vmem:[#allocation14_spill] sm:$0xff] }
 0xcb7   :  { %4132 = vmatmul.mubr.bf16.vlgmr.msra.gmra.mrb[0].mxu1 %v11435_v30  ;;  %v739_v56 = vsel %vm14165_vm15, %v8550_v46, %v8551_v38  ;;  %v3928_v26 = vpack.c.bf16 %v876_v45, %v740_v42  ;;  %v8651_v34 = vunpack.i.h.bf16 %v10445_v41  ;;  %v8690_v7 = vunpack.i.l.bf16 %v14166_v52  ;;  %v14177_v42 = vld [vmem:[#allocation38_spill] sm:$0xff] }
 0xcb8   :  { %4143 = vmatpush1.bf16.msra.mxu0 %v14160_v0  ;;  %4182 = vmatpush1.bf16.msra.mxu1 %v3911_v27  ;;  %v1010_v36 = vsel %vm404_vm2, %v14164_v63, %v8590_v54  ;;  %v14169_v22 = vpack.c.bf16 %v14167_v9, %v14168_v62  ;;  %v14171_v20 = vunpack.i.h.bf16 %v14170_v61  ;;  %v1012_v46 = vsel %vm404_vm2, %v8591_v29, %v14173_v28  ;;  %v14185_v9 = vld [vmem:[#allocation27_spill] sm:$0xff]  ;;  %v14187_v28 = vld [vmem:[#allocation46_spill] sm:$0xff] }
 0xcb9   :  { %4144 = vmatprep.subr.bf16.mxu0 %v3926_v8  ;;  %4183 = vmatprep.subr.bf16.mxu1 %v3920_v39  ;;  %v3934_v57 = vpack.c.bf16 %v1146_v60, %v1010_v36  ;;  %v3927_v41 = vpack.c.bf16 %v875_v24, %v739_v56  ;;  %v1147_v38 = vsel %vm266_vm1, %v8610_v32, %v8611_v49  ;;  %v8631_v27 = vunpack.i.h.bf16 %v14162_v25  ;;  %v9521_v60 = vld [vmem:[#allocation7 + $0x68] sm:$0xff]  ;;  %v14178_v32 = vld [vmem:[#allocation18_spill] sm:$0xff] }
 0xcba   :  { %8419 = vmatprep.mubr.msk.bf16.mxu1 %vm13961_vm11, %v11371_v6  ;;  %v1420_v35 = vsel %vm1414_vm10, %v14171_v20, %v8650_v18  ;;  %v1148_v6 = vsel %vm266_vm1, %v8611_v49, %v14172_v47  ;;  %v8670_v51 = vunpack.i.l.bf16 %v14174_v55  ;;  %v14176_v59 = vunpack.i.h.bf16 %v14175_v10  ;;  %v14179_v49 = vld [vmem:[#allocation17_spill] sm:$0xff]  ;;  %v14183_v36 = vld [vmem:[#allocation26_spill] sm:$0xff] }
 0xcbb   :  { %v1011_v39 = vsel %vm404_vm2, %v8590_v54, %v8591_v29  ;;  %v3936_v1 = vpack.c.bf16 %v1148_v6, %v1012_v46  ;;  %v1887_v45 = vrot.slane %v9521_v60, %v9698_v11  ;;  %v8691_v23 = vunpack.i.h.bf16 %v14166_v52  ;;  %v14184_v56 = vld [vmem:[#allocation22_spill] sm:$0xff] }
 0xcbc   :  { %4145 = vmatpush1.bf16.msra.mxu0 %v14169_v22  ;;  %4184 = vmatpush1.bf16.msra.mxu1 %v3919_v48  ;;  %v1282_v8 = vsel %vm128_vm0, %v14176_v59, %v8630_v58  ;;  %v8710_v24 = vunpack.i.l.bf16 %v14177_v42  ;;  %v14180_v25 = vpack.c.bf16 %v14178_v32, %v14179_v49  ;;  %v14181_v48 = vld [vmem:[#allocation30_spill] sm:$0xff]  ;;  %v1422_v54 = vsel %vm1414_vm10, %v8651_v34, %v14183_v36  ;;  %v14193_v59 = vld [vmem:[#allocation33_spill] sm:$0xff] }
 0xcbd   :  { %4146 = vmatprep.subr.bf16.mxu0 %v3934_v57  ;;  %4185 = vmatprep.subr.bf16.mxu1 %v3928_v26  ;;  %v3942_v0 = vpack.c.bf16 %v1420_v35, %v1282_v8  ;;  %v14182_v13 = vunpack.i.h.bf16 %v14181_v48  ;;  %v3935_v29 = vpack.c.bf16 %v1147_v38, %v1011_v39  ;;  %v1284_v57 = vsel %vm128_vm0, %v8631_v27, %v14184_v56  ;;  %v14189_v38 = vld [vmem:[#allocation24_spill] sm:$0xff] }
 0xcbe   :  { %v1421_v26 = vsel %vm1414_vm10, %v8650_v18, %v8651_v34  ;;  %v8671_v52 = vunpack.i.h.bf16 %v14174_v55  ;;  %v14186_v62 = vunpack.i.h.bf16 %v14185_v9  ;;  %v1895_v61 = vrot.slane %v9521_v60, %v9706_v15  ;;  %v14191_v18 = vld [vmem:[#allocation35_spill] sm:$0xff] }
 0xcbf   :  { %v1696_v63 = vsel %vm1690_vm13, %v14182_v13, %v8690_v7  ;;  %v3944_v35 = vpack.c.bf16 %v1422_v54, %v1284_v57  ;;  %v1909_v47 = vmul.f32 %v11298_v53, %v1887_v45  ;;  %v8711_v6 = vunpack.i.h.bf16 %v14177_v42  ;;  %v14195_v45 = vld [vmem:[#allocation42_spill] sm:$0xff]  ;;  %v14201_v57 = vld [vmem:[#allocation43_spill] sm:$0xff] }
 0xcc0   :  { %4147 = vmatpush1.bf16.msra.mxu0 %v14180_v25  ;;  %4186 = vmatpush1.bf16.msra.mxu1 %v3927_v41  ;;  %v1558_v22 = vsel %vm13963_vm14, %v14186_v62, %v8670_v51  ;;  %v8750_v46 = vunpack.i.l.bf16 %v14187_v28  ;;  %v14188_v41 = vld [vmem:[#allocation25_spill] sm:$0xff]  ;;  %v14192_v34 = vunpack.i.h.bf16 %v14191_v18  ;;  %v1698_v8 = vsel %vm1690_vm13, %v8691_v23, %v14193_v59  ;;  %v14209_v18 = vld [vmem:[#allocation62_spill] sm:$0xff] }
 0xcc1   :  { %4148 = vmatprep.subr.bf16.mxu0 %v3942_v0  ;;  %4187 = vmatprep.subr.bf16.mxu1 %v3936_v1  ;;  %v3950_v20 = vpack.c.bf16 %v1696_v63, %v1558_v22  ;;  %v14190_v10 = vpack.c.bf16 %v14188_v41, %v14189_v38  ;;  %v1283_v39 = vsel %vm128_vm0, %v8630_v58, %v8631_v27  ;;  %v14194_v0 = vld [vmem:[#allocation29_spill] sm:$0xff]  ;;  %v8730_v42 = vunpack.i.l.bf16 %v14195_v45  ;;  %v14196_v63 = vld [vmem:[#allocation39_spill] sm:$0xff]  ;;  %v14197_v27 = vld [vmem:[#allocation54_spill] sm:$0xff] }
 0xcc2   :  { %v1834_v55 = vsel %vm13962_vm4, %v14192_v34, %v8710_v24  ;;  %v1891_v53 = vrot.slane %v9521_v60, %v9708_v16  ;;  %v1560_v1 = vsel %vm13963_vm14, %v8671_v52, %v14194_v0  ;;  %v3943_v32 = vpack.c.bf16 %v1421_v26, %v1283_v39  ;;  %v14198_v60 = vld [vmem:[#allocation32_spill] sm:$0xff]  ;;  %v14204_v22 = vld [vmem:[#allocation50_spill] sm:$0xff]  ;;  %v14216_v39 = vld [vmem:[#allocation41_spill] sm:$0xff] }
 0xcc3   :  { %v1697_v49 = vsel %vm1690_vm13, %v8690_v7, %v8691_v23  ;;  %v1911_v25 = vmul.f32 %v11245_v17, %v1895_v61  ;;  %v3958_v48 = vpack.c.bf16 %v1909_v47, %v1834_v55  ;;  %v3952_v13 = vpack.c.bf16 %v1698_v8, %v1560_v1  ;;  %v14210_v55 = vld [vmem:[#allocation36_spill] sm:$0xff] }
 0xcc4   :  { %4149 = vmatpush1.bf16.msra.mxu0 %v14190_v10  ;;  %4188 = vmatpush1.bf16.msra.mxu1 %v3935_v29  ;;  %v1836_v36 = vsel %vm13962_vm4, %v8711_v6, %v14196_v63  ;;  %v8751_v58 = vunpack.i.h.bf16 %v14187_v28  ;;  %v8790_v54 = vunpack.i.l.bf16 %v14197_v27  ;;  %v14199_v29 = vld [vmem:[#allocation31_spill] sm:$0xff]  ;;  %v14202_v26 = vunpack.i.h.bf16 %v14201_v57  ;;  %v14223_v57 = vld [vmem:[#allocation70_spill] sm:$0xff] }
 0xcc5   :  { %4150 = vmatprep.subr.bf16.mxu0 %v3950_v20  ;;  %4189 = vmatprep.subr.bf16.mxu1 %v3944_v35  ;;  %v14200_v56 = vpack.c.bf16 %v14198_v60, %v14199_v29  ;;  %vm14203_vm12 = vcmask 990208   ;;  %v1559_v17 = vsel %vm13963_vm14, %v8670_v51, %v8671_v52  ;;  %v8731_v23 = vunpack.i.h.bf16 %v14195_v45  ;;  %v14205_v35 = vld [vmem:[#allocation40_spill] sm:$0xff]  ;;  %v14208_v10 = vld [vmem:[#allocation47_spill] sm:$0xff] }
 0xcc6   :  { %v2173_v7 = vsel %vm14203_vm12, %v14202_v26, %v8750_v46  ;;  %v1910_v9 = vmul.f32 %v11304_v33, %v1891_v53  ;;  %v1835_v62 = vsel %vm13962_vm4, %v8710_v24, %v8711_v6  ;;  %v8770_v61 = vunpack.i.l.bf16 %v14204_v22  ;;  %v14211_v33 = vld [vmem:[#allocation37_spill] sm:$0xff]  ;;  %v14213_v24 = vld [vmem:[#allocation51_spill] sm:$0xff] }
 0xcc7   :  { %v3951_v20 = vpack.c.bf16 %v1697_v49, %v1559_v17  ;;  %v14206_v47 = vunpack.i.h.bf16 %v14205_v35  ;;  %vm14207_vm15 = vcmask 1039360   ;;  %v3960_v41 = vpack.c.bf16 %v1911_v25, %v1836_v36  ;;  %v14218_v25 = vld [vmem:[#allocation48_spill] sm:$0xff]  ;;  %v14222_v60 = vld [vmem:[#allocation55_spill] sm:$0xff] }
 0xcc8   :  { %4151 = vmatpush1.bf16.msra.mxu0 %v14200_v56  ;;  %4190 = vmatpush1.bf16.msra.mxu1 %v3943_v32  ;;  %v2175_v51 = vsel %vm14203_vm12, %v8751_v58, %v14208_v10  ;;  %v8791_v52 = vunpack.i.h.bf16 %v14197_v27  ;;  %v8830_v34 = vunpack.i.l.bf16 %v14209_v18  ;;  %v14212_v59 = vpack.c.bf16 %v14210_v55, %v14211_v33  ;;  %v14217_v32 = vld [vmem:[#allocation58_spill] sm:$0xff]  ;;  %vm14221_vm14 = vmmov %vm14207_vm15  ;;  %v14227_v17 = vld [vmem:[#allocation59_spill] sm:$0xff] }
 0xcc9   :  { %4152 = vmatprep.subr.bf16.mxu0 %v3958_v48  ;;  %4191 = vmatprep.subr.bf16.mxu1 %v3952_v13  ;;  %v2037_v28 = vsel %vm14207_vm15, %v14206_v47, %v8730_v42  ;;  %v14214_v6 = vunpack.i.h.bf16 %v14213_v24  ;;  %vm14215_vm11 = vcmask 973824   ;;  %v2039_v53 = vsel %vm14207_vm15, %v8731_v23, %v14216_v39  ;;  %v14232_v47 = vld [vmem:[#allocation66_spill] sm:$0xff]  ;;  %v14236_v33 = vld [vmem:[#allocation63_spill] sm:$0xff] }
 0xcca   :  { %v3966_v38 = vpack.c.bf16 %v2173_v7, %v2037_v28  ;;  %v3959_v0 = vpack.c.bf16 %v1910_v9, %v1835_v62  ;;  %v2174_v1 = vsel %vm14203_vm12, %v8750_v46, %v8751_v58  ;;  %v8771_v45 = vunpack.i.h.bf16 %v14204_v22  ;;  %v14224_v46 = vld [vmem:[#allocation45_spill] sm:$0xff]  ;;  %v14225_v58 = vld [vmem:[#allocation44_spill] sm:$0xff] }
 0xccb   :  { %v2445_v8 = vsel %vm14215_vm11, %v14214_v6, %v8790_v54  ;;  %v8810_v49 = vunpack.i.l.bf16 %v14217_v32  ;;  %v14219_v48 = vunpack.i.h.bf16 %v14218_v25  ;;  %vm14220_vm4 = vcmask 982016   ;;  %v14237_v6 = vld [vmem:[#allocation78_spill] sm:$0xff] }
 0xccc   :  { %4153 = vmatpush1.bf16.msra.mxu0 %v14212_v59  ;;  %4192 = vmatpush1.bf16.msra.mxu1 %v3951_v20  ;;  %v2038_v63 = vsel %vm14221_vm14, %v8730_v42, %v8731_v23  ;;  %v3968_v36 = vpack.c.bf16 %v2175_v51, %v2039_v53  ;;  %v2447_v29 = vsel %vm14215_vm11, %v8791_v52, %v14222_v60  ;;  %v8831_v56 = vunpack.i.h.bf16 %v14209_v18  ;;  %v14230_v20 = vld [vmem:[#allocation49_spill] sm:$0xff]  ;;  %v14241_v53 = vld [vmem:[#allocation67_spill] sm:$0xff] }
 0xccd   :  { %4154 = vmatprep.subr.bf16.mxu0 %v3966_v38  ;;  %4193 = vmatprep.subr.bf16.mxu1 %v3960_v41  ;;  %v2309_v13 = vsel %vm14220_vm4, %v14219_v48, %v8770_v61  ;;  %v8870_v26 = vunpack.i.l.bf16 %v14223_v57  ;;  %v14226_v7 = vpack.c.bf16 %v14224_v46, %v14225_v58  ;;  %v14228_v9 = vunpack.i.h.bf16 %v14227_v17  ;;  %vm14229_vm4 = vmmov %vm14215_vm11  ;;  %v14233_v41 = vld [vmem:[#allocation56_spill] sm:$0xff] }
 0xcce   :  { %v3974_v27 = vpack.c.bf16 %v2445_v8, %v2309_v13  ;;  %v8811_v42 = vunpack.i.h.bf16 %v14217_v32  ;;  %v3967_v23 = vpack.c.bf16 %v2174_v1, %v2038_v63  ;;  %v2446_v22 = vsel %vm14229_vm4, %v8790_v54, %v8791_v52  ;;  %v14238_v52 = vld [vmem:[#allocation53_spill] sm:$0xff]  ;;  %v14239_v8 = vld [vmem:[#allocation52_spill] sm:$0xff]  ;;  %v14244_v13 = vld [vmem:[#allocation74_spill] sm:$0xff] }
 0xccf   :  { %v2717_v62 = vsel %vm319_vm6, %v14228_v9, %v8830_v34  ;;  %vm14231_vm14 = vcmask 982016   ;;  %v8850_v28 = vunpack.i.l.bf16 %v14232_v47  ;;  %v14234_v38 = vunpack.i.h.bf16 %v14233_v41  ;;  %v14243_v32 = vld [vmem:[#allocation57_spill] sm:$0xff] }
 0xcd0   :  { %4155 = vmatpush1.bf16.msra.mxu0 %v14226_v7  ;;  %4194 = vmatpush1.bf16.msra.mxu1 %v3959_v0  ;;  %v2311_v35 = vsel %vm14231_vm14, %v8771_v45, %v14230_v20  ;;  %vm14235_vm15 = vmmov %vm14231_vm14  ;;  %v2719_v59 = vsel %vm319_vm6, %v8831_v56, %v14236_v33  ;;  %v8871_v24 = vunpack.i.h.bf16 %v14223_v57  ;;  %v8910_v54 = vunpack.i.l.bf16 %v14237_v6  ;;  %v14247_v7 = vld [vmem:[#allocation71_spill] sm:$0xff]  ;;  %v14253_v41 = vld [vmem:[#allocation65_spill] sm:$0xff] }
 0xcd1   :  { %4156 = vmatprep.subr.bf16.mxu0 %v3974_v27  ;;  %4195 = vmatprep.subr.bf16.mxu1 %v3968_v36  ;;  %v2581_v10 = vsel %vm181_vm5, %v14234_v38, %v8810_v49  ;;  %v2310_v51 = vsel %vm14235_vm15, %v8770_v61, %v8771_v45  ;;  %v3976_v18 = vpack.c.bf16 %v2447_v29, %v2311_v35  ;;  %v14242_v0 = vunpack.i.h.bf16 %v14241_v53  ;;  %v14245_v36 = vld [vmem:[#allocation64_spill] sm:$0xff]  ;;  %v8969_v35 = vpop.permute.xlu0 %8968  ;;  %v14254_v38 = vld [vmem:[#allocation81_spill] sm:$0xff] }
 0xcd2   :  { %v3982_v55 = vpack.c.bf16 %v2717_v62, %v2581_v10  ;;  %v14240_v39 = vpack.c.bf16 %v14238_v52, %v14239_v8  ;;  %v2583_v61 = vsel %vm181_vm5, %v8811_v42, %v14243_v32  ;;  %v3975_v45 = vpack.c.bf16 %v2446_v22, %v2310_v51  ;;  %v14255_v51 = vld [vmem:[#allocation72_spill] sm:$0xff] }
 0xcd3   :  { %v2989_v1 = vsel %vm595_vm8, %v14242_v0, %v8870_v26  ;;  %v2718_v25 = vsel %vm319_vm6, %v8830_v34, %v8831_v56  ;;  %v8851_v48 = vunpack.i.h.bf16 %v14232_v47  ;;  %v8890_v63 = vunpack.i.l.bf16 %v14244_v13  ;;  %v14248_v34 = vld [vmem:[#allocation61_spill] sm:$0xff]  ;;  %v14249_v56 = vld [vmem:[#allocation60_spill] sm:$0xff] }
 0xcd4   :  { %4157 = vmatpush1.bf16.msra.mxu0 %v14240_v39  ;;  %4196 = vmatpush1.bf16.msra.mxu1 %v3967_v23  ;;  %v14246_v27 = vunpack.i.h.bf16 %v14245_v36  ;;  %v3984_v29 = vpack.c.bf16 %v2719_v59, %v2583_v61  ;;  %v8911_v57 = vunpack.i.h.bf16 %v14237_v6  ;;  %v2582_v58 = vsel %vm181_vm5, %v8810_v49, %v8811_v42  ;;  %v14251_v23 = vld [vmem:[#allocation75_spill] sm:$0xff]  ;;  %v14260_v32 = vld [vmem:[#allocation68_spill] sm:$0xff] }
 0xcd5   :  { %4158 = vmatprep.subr.bf16.mxu0 %v3982_v55  ;;  %4197 = vmatprep.subr.bf16.mxu1 %v3976_v18  ;;  %v2991_v17 = vsel %vm595_vm8, %v8871_v24, %v14247_v7  ;;  %v8950_v9 = vunpack.i.l.bf16 %v11354_v50  ;;  %v14250_v62 = vpack.c.bf16 %v14248_v34, %v14249_v56  ;;  %v14252_v22 = vunpack.i.h.bf16 %v14251_v23  ;;  %v14258_v6 = vld [vmem:[#allocation79_spill] sm:$0xff] }
 0xcd6   :  { %v2853_v60 = vsel %vm457_vm7, %v14246_v27, %v8850_v28  ;;  %v3983_v47 = vpack.c.bf16 %v2718_v25, %v2582_v58  ;;  %v2855_v49 = vsel %vm457_vm7, %v8851_v48, %v14253_v41  ;;  %v8891_v42 = vunpack.i.h.bf16 %v14244_v13 }
 0xcd7   :  { %v3990_v46 = vpack.c.bf16 %v2989_v1, %v2853_v60  ;;  %v3261_v20 = vsel %vm542_vm3, %v14252_v22, %v8910_v54  ;;  %v8930_v10 = vunpack.i.l.bf16 %v14254_v38  ;;  %v14256_v18 = vunpack.i.h.bf16 %v14255_v51  ;;  %v14259_v1 = vld [vmem:[#allocation69_spill] sm:$0xff] }
 0xcd8   :  { %4159 = vmatpush1.bf16.msra.mxu0 %v14250_v62  ;;  %4198 = vmatpush1.bf16.msra.mxu1 %v3975_v45  ;;  %vm14257_vm12 = vcmask 523264   ;;  %v2990_v33 = vsel %vm595_vm8, %v8870_v26, %v8871_v24  ;;  %v3992_v59 = vpack.c.bf16 %v2991_v17, %v2855_v49  ;;  %v3263_v52 = vsel %vm542_vm3, %v8911_v57, %v14258_v6  ;;  %v14262_v24 = vld [vmem:[#allocation73_spill] sm:$0xff]  ;;  %v11694_v49 = vpop.permute.xlu0 %4020 }
 0xcd9   :  { %4160 = vmatprep.subr.bf16.mxu0 %v3990_v46  ;;  %4199 = vmatprep.subr.bf16.mxu1 %v3984_v29  ;;  %v3125_v55 = vsel %vm14257_vm12, %v14256_v18, %v8890_v63  ;;  %v8951_v39 = vunpack.i.h.bf16 %v11354_v50  ;;  %v8966_v53 = vunpack.i.h.bf16 %v11423_v37  ;;  %v8970_v0 = vunpack.i.l.bf16 %v8969_v35  ;;  %vm14263_vm11 = vmmov %vm14257_vm12  ;;  %v14266_v46 = vld [vmem:[#allocation76_spill] sm:$0xff] }
 0xcda   :  { %v3998_v8 = vpack.c.bf16 %v3261_v20, %v3125_v55  ;;  %v14261_v61 = vpack.c.bf16 %v14259_v1, %v14260_v32  ;;  %v3533_v45 = vsel %vm266_vm1, %v8946_v31, %v8950_v9  ;;  %v2854_v26 = vsel %vm457_vm7, %v8850_v28, %v8851_v48  ;;  %v14265_v48 = vld [vmem:[#allocation77_spill] sm:$0xff]  ;;  %vm14268_vm4 = vmmov %vm14263_vm11 }
 0xcdb   :  { %v3127_v25 = vsel %vm14263_vm11, %v8891_v42, %v14262_v24  ;;  %v8931_v50 = vunpack.i.h.bf16 %v14254_v38  ;;  %v3991_v13 = vpack.c.bf16 %v2990_v33, %v2854_v26  ;;  %v14264_v36 = vunpack.i.h.bf16 %v11271_v44 }
 0xcdc   :  { %4161 = vmatpush1.bf16.msra.mxu0 %v14261_v61  ;;  %4200 = vmatpush1.bf16.msra.mxu1 %v3983_v47  ;;  %v3262_v60 = vsel %vm542_vm3, %v8910_v54, %v8911_v57  ;;  %v4000_v29 = vpack.c.bf16 %v3263_v52, %v3127_v25  ;;  %v3535_v31 = vsel %vm266_vm1, %v8951_v39, %v11356_v21  ;;  %v8971_v28 = vunpack.i.h.bf16 %v8969_v35  ;;  %v3663_v54 = vpop.permute.xlu1 %3662  ;;  %v14269_v57 = vld [vmem:[#allocation80_spill] sm:$0xff]  ;;  %v4302_v52 = vpop.permute.xlu0 %4301 }
 0xcdd   :  { %4162 = vmatprep.subr.bf16.mxu0 %v3998_v8  ;;  %4201 = vmatprep.subr.bf16.mxu1 %v3992_v59  ;;  %v3397_v27 = vsel %vm404_vm2, %v14264_v36, %v8930_v10  ;;  %v14267_v58 = vpack.c.bf16 %v14265_v48, %v14266_v46  ;;  %v3669_v7 = vsel %vm128_vm0, %v8966_v53, %v8970_v0 }
 0xcde   :  { %v4006_v43 = vpack.c.bf16 %v3533_v45, %v3397_v27  ;;  %v3668_v44 = vsel %vm128_vm0, %v8965_v40, %v8966_v53  ;;  %v3126_v17 = vsel %vm14268_vm4, %v8890_v63, %v8891_v42  ;;  %v3399_v21 = vsel %vm404_vm2, %v8931_v50, %v14269_v57 }
 0xcdf   :  { %v3999_v34 = vpack.c.bf16 %v3262_v60, %v3126_v17  ;;  %v3534_v56 = vsel %vm266_vm1, %v8950_v9, %v8951_v39  ;;  %v4008_v62 = vpack.c.bf16 %v3535_v31, %v3399_v21  ;;  %v4014_v23 = vpack.c.bf16 %v3669_v7, %v3669_v7 }
 0xce0   :  { %4163 = vmatpush1.bf16.msra.mxu0 %v14267_v58  ;;  %4202 = vmatpush1.bf16.msra.mxu1 %v3991_v13  ;;  %v4013_v22 = vpack.c.bf16 %v3668_v44, %v3668_v44  ;;  %v3671_v20 = vsel %vm128_vm0, %v8971_v28, %v3663_v54  ;;  %v14270_v37 = vpack.c.bf16 %v11350_v14, %v11345_v19  ;;  %v4298_v14 = vpop.permute.xlu1 %4297  ;;  %v4306_v46 = vpop.permute.xlu0 %4305 }
 0xce1   :  { %4164 = vmatprep.subr.bf16.mxu0 %v4006_v43  ;;  %4203 = vmatprep.subr.bf16.mxu1 %v4000_v29  ;;  %v3670_v40 = vsel %vm128_vm0, %v8970_v0, %v8971_v28  ;;  %v3398_v63 = vsel %vm404_vm2, %v8930_v10, %v8931_v50  ;;  %v4016_v47 = vpack.c.bf16 %v3671_v20, %v3671_v20  ;;  %v4329_v8 = vmul.f32 0.0, %v4298_v14 }
 0xce2   :  { %v4007_v35 = vpack.c.bf16 %v3534_v56, %v3398_v63  ;;  %v4047_v9 = vsel %vm4033_vm9, %v4013_v22, 0  ;;  %v4015_v41 = vpack.c.bf16 %v3670_v40, %v3670_v40 }
 0xce4   :  { %4165 = vmatpush1.bf16.msra.mxu0 %v14270_v37  ;;  %4204 = vmatpush1.bf16.msra.mxu1 %v3999_v34  ;;  %v4053_v19 = vsel %vm4033_vm9, %v4015_v41, 0  ;;  %v4300_v42 = vpop.permute.xlu1 %4299 }
 0xce5   :  { %8416 = vmatprep.subr.msk.bf16.mxu0 %vm4033_vm9, %v4014_v23  ;;  %4205 = vmatprep.subr.bf16.mxu1 %v4008_v62  ;;  %v4313_v6 = vsel %vm128_vm0, %v4298_v14, %v4300_v42  ;;  %v4314_v45 = vsel %vm128_vm0, %v4300_v42, %v4302_v52  ;;  %v4310_v23 = vpop.permute.xlu0 %4309 }
 0xce8   :  { %4167 = vmatpush1.bf16.msra.mxu0 %v4047_v9  ;;  %4206 = vmatpush1.bf16.msra.mxu1 %v4007_v35  ;;  %v4304_v53 = vpop.permute.xlu1 %4303 }
 0xce9   :  { %8418 = vmatprep.subr.msk.bf16.mxu1 %vm4033_vm9, %v4016_v47  ;;  %v4315_v13 = vsel %vm128_vm0, %v4302_v52, %v4304_v53  ;;  %v4316_v17 = vsel %vm128_vm0, %v4304_v53, %v4306_v46 }
 0xceb   :  { %4173 = vmatmul.mubr.bf16.vlgmr.msra.gmra.mrb[4].mxu0 %v11435_v30 }
 0xcec   :  { %4208 = vmatpush1.bf16.msra.mxu1 %v4053_v19  ;;  %v4308_v28 = vpop.permute.xlu1 %4307 }
 0xced   :  { %v4317_v62 = vsel %vm128_vm0, %v4306_v46, %v4308_v28  ;;  %v4318_v41 = vsel %vm128_vm0, %v4308_v28, %v4310_v23 }
 0xcef   :  { %4214 = vmatmul.mubr.bf16.vlgmr.msra.gmra.mrb[4].mxu1 %v11435_v30 }
 0xcf0   :  { %v4312_v37 = vpop.permute.xlu1 %4311 }
 0xd86   :  { %v4092_v38 = vpop.f32.mrb[0].mxu0 }
 0xd87   :  { %v4093_v10 = vadd.f32 %v4092_v38, %v11694_v49  ;;  %v4094_v51 = vpop.f32.mrb[1].mxu0 }
 0xd88   :  { %v4095_v18 = vadd.f32 %v4094_v51, %v11694_v49  ;;  %v4096_v55 = vpop.f32.mrb[2].mxu0  ;;  %v4319_v51 = vsel %vm128_vm0, %v4310_v23, %v4312_v37 }
 0xd89   :  { %vm4222_vm14 = vcmp.ge.f32.partialorder %v4093_v10, 0.0  ;;  %v4230_v33 = vmul.f32 0.01, %v4093_v10  ;;  %v4097_v59 = vpop.f32.mrb[3].mxu0 }
 0xd8a   :  { %vm4223_vm15 = vcmp.ge.f32.partialorder %v4095_v18, 0.0  ;;  %v4231_v30 = vmul.f32 0.01, %v4095_v18  ;;  %v4133_v39 = vpop.f32.mrb[0].mxu1 }
 0xd8b   :  { %v11699_v0 = vsel %vm4222_vm14, %v4093_v10, %v4230_v33  ;;  %v4134_v1 = vadd.f32 %v4133_v39, %v11694_v49  ;;  %v4135_v32 = vpop.f32.mrb[1].mxu1 }
 0xd8c   :  { %v4330_v61 = vmul.f32 %v4313_v6, %v11699_v0  ;;  %v4137_v26 = vpop.f32.mrb[2].mxu1  ;;  %v11704_v24 = vsel %vm4223_vm15, %v4095_v18, %v4231_v30  ;;  %v4136_v31 = vadd.f32 %v4135_v32, %v11694_v49 }
 0xd8d   :  { %vm4224_vm12 = vcmp.ge.f32.partialorder %v4134_v1, 0.0  ;;  %v4232_v25 = vmul.f32 0.01, %v4134_v1  ;;  %v4138_v50 = vpop.f32.mrb[3].mxu1  ;;  %v4331_v60 = vmul.f32 %v4314_v45, %v11704_v24 }
 0xd8e   :  { %v8973_v36 = vpack.i.bf16 %v4330_v61, %v4329_v8  ;;  %v4233_v48 = vmul.f32 0.01, %v4136_v31  ;;  %vm4225_vm11 = vcmp.ge.f32.partialorder %v4136_v31, 0.0  ;;  %v4398_v8 = vld [vmem:[#allocation7 + $0x8] sm:$0xff] }
 0xd8f   :  { %v11707_v27 = vsel %vm4224_vm12, %v4134_v1, %v4232_v25  ;;  %v4403_v39 = vrot.slane %v4398_v8, %v9686_v3  ;;  %v4407_v53 = vrot.slane %v4398_v8, %v9690_v5  ;;  %v4411_v1 = vrot.slane %v4398_v8, %v9684_v2 }
 0xd90   :  { %v4332_v29 = vmul.f32 %v4315_v13, %v11707_v27  ;;  %8974 = vrot.lane.b32.xlu0 %v8973_v36, %s9605_s27  ;;  %v11717_v21 = vsel %vm4225_vm11, %v4136_v31, %v4233_v48  ;;  %v4415_v32 = vrot.slane %v4398_v8, %v9688_v4  ;;  %v4419_v61 = vrot.slane %v4398_v8, %v9700_v12 }
 0xd91   :  { %v4333_v47 = vmul.f32 %v4316_v17, %v11717_v21  ;;  %v4423_v45 = vrot.slane %v4398_v8, %v9698_v11  ;;  %v4427_v26 = vrot.slane %v4398_v8, %v9708_v16  ;;  %v4431_v25 = vrot.slane %v4398_v8, %v9706_v15 }
 0xd92   :  { %v8978_v43 = vpack.i.bf16 %v4332_v29, %v4331_v60  ;;  %vm14287_vm11 = vcmask 523264  }
 0xd94   :  { %8979 = vrot.lane.b32.xlu1 %v8978_v43, %s9605_s27 }
 0xdbe   :  { %v4174_v58 = vpop.f32.mrb[4].mxu0 }
 0xdbf   :  { %v4175_v7 = vadd.f32 %v4174_v58, %v11694_v49  ;;  %v4176_v44 = vpop.f32.mrb[5].mxu0 }
 0xdc0   :  { %v4177_v54 = vadd.f32 %v4176_v44, %v11694_v49  ;;  %v4178_v57 = vpop.f32.mrb[6].mxu0 }
 0xdc1   :  { %vm4226_vm4 = vcmp.ge.f32.partialorder %v4175_v7, 0.0  ;;  %v4234_v34 = vmul.f32 0.01, %v4175_v7  ;;  %v4179_v56 = vpop.f32.mrb[7].mxu0 }
 0xdc2   :  { %vm4227_vm14 = vcmp.ge.f32.partialorder %v4177_v54, 0.0  ;;  %v4235_v22 = vmul.f32 0.01, %v4177_v54  ;;  %v4215_v20 = vpop.f32.mrb[4].mxu1 }
 0xdc3   :  { %v11720_v40 = vsel %vm4226_vm4, %v4175_v7, %v4234_v34  ;;  %v4216_v63 = vadd.f32 %v4215_v20, %v11694_v49  ;;  %v4217_v35 = vpop.f32.mrb[5].mxu1  ;;  %vm14288_vm4 = vmmov %vm14287_vm11 }
 0xdc4   :  { %v4334_v9 = vmul.f32 %v4317_v62, %v11720_v40  ;;  %v4218_v19 = vadd.f32 %v4217_v35, %v11694_v49  ;;  %v4219_v14 = vpop.f32.mrb[6].mxu1  ;;  %v11727_v42 = vsel %vm4227_vm14, %v4177_v54, %v4235_v22  ;;  %vm14289_vm14 = vmmov %vm14288_vm4 }
 0xdc5   :  { %vm4228_vm15 = vcmp.ge.f32.partialorder %v4216_v63, 0.0  ;;  %v4236_v38 = vmul.f32 0.01, %v4216_v63  ;;  %v4220_v10 = vpop.f32.mrb[7].mxu1  ;;  %v4335_v59 = vmul.f32 %v4318_v41, %v11727_v42 }
 0xdc6   :  { %v8983_v18 = vpack.i.bf16 %v4334_v9, %v4333_v47  ;;  %vm4229_vm12 = vcmp.ge.f32.partialorder %v4218_v19, 0.0  ;;  %v4237_v55 = vmul.f32 0.01, %v4218_v19  ;;  %v4533_v10 = vld [vmem:[#allocation7 + $0x10] sm:$0xff] }
 0xdc7   :  { %v11730_v33 = vsel %vm4228_vm15, %v4216_v63, %v4236_v38  ;;  %v4558_v8 = vrot.slane %v4533_v10, %v9698_v11  ;;  %vm14290_vm15 = vmmov %vm14288_vm4 }
 0xdc8   :  { %v11733_v6 = vsel %vm4229_vm12, %v4218_v19, %v4237_v55  ;;  %v4336_v52 = vmul.f32 %v4319_v51, %v11730_v33  ;;  %8984 = vrot.lane.b32.xlu0 %v8983_v18, %s9605_s27  ;;  %v4542_v55 = vrot.slane %v4533_v10, %v9690_v5  ;;  %vm14291_vm12 = vmmov %vm14288_vm4 }
 0xdc9   :  { %v4337_v49 = vmul.f32 %v4312_v37, %v11733_v6 }
 0xdca   :  { %v8988_v30 = vpack.i.bf16 %v4336_v52, %v4335_v59  ;;  %v4538_v59 = vrot.slane %v4533_v10, %v9686_v3  ;;  %v4550_v52 = vrot.slane %v4533_v10, %v9688_v4 }
 0xdcc   :  { %8989 = vrot.lane.b32.xlu1 %v8988_v30, %s9605_s27  ;;  %4363 = vrot.lane.b32.xlu0 %v4337_v49, %s9605_s27  ;;  %v4546_v49 = vrot.slane %v4533_v10, %v9684_v2  ;;  %v4554_v30 = vrot.slane %v4533_v10, %v9700_v12 }
 0xdd0   :  { %4432 = vrot.lane.b32.xlu1 %v4403_v39, %s9600_s22  ;;  %4434 = vrot.lane.b32.xlu0 %v4407_v53, %s9600_s22  ;;  %v4566_v39 = vrot.slane %v4533_v10, %v9706_v15  ;;  %v4562_v53 = vrot.slane %v4533_v10, %v9708_v16 }
 0xdd4   :  { %4436 = vrot.lane.b32.xlu1 %v4411_v1, %s9600_s22  ;;  %4438 = vrot.lane.b32.xlu0 %v4415_v32, %s9600_s22 }
 0xdd8   :  { %4440 = vrot.lane.b32.xlu1 %v4419_v61, %s9600_s22  ;;  %4442 = vrot.lane.b32.xlu0 %v4423_v45, %s9600_s22 }
 0xddc   :  { %4444 = vrot.lane.b32.xlu1 %v4427_v26, %s9600_s22  ;;  %4446 = vrot.lane.b32.xlu0 %v4431_v25, %s9600_s22 }
 0xe02   :  { %v11756_v50 = vpop.permute.xlu0 %8974 }
 0xe03   :  { %v8977_v26 = vunpack.i.h.bf16 %v11756_v50  ;;  %v8976_v25 = vunpack.i.l.bf16 %v11756_v50 }
 0xe06   :  { %v11758_v13 = vpop.permute.xlu1 %8979 }
 0xe07   :  { %v8981_v45 = vunpack.i.l.bf16 %v11758_v13 }
 0xe3a   :  { %v11760_v36 = vpop.permute.xlu0 %8984 }
 0xe3b   :  { %14271 = vst [vmem:[#allocation21_spill] sm:$0xff] %v11760_v36 }
 0xe3e   :  { %v11762_v60 = vpop.permute.xlu1 %8989  ;;  %v11764_v29 = vpop.permute.xlu0 %4363 }
 0xe3f   :  { %14272 = vst [vmem:[#allocation15_spill] sm:$0xff] %v11762_v60  ;;  %14273 = vst [vmem:[#allocation34_spill] sm:$0xff] %v11764_v29 }
 0xe42   :  { %v4433_v43 = vpop.permute.xlu1 %4432  ;;  %v4435_v31 = vpop.permute.xlu0 %4434 }
 0xe43   :  { %v4464_v28 = vmul.f32 0.0, %v4433_v43  ;;  %v4448_v48 = vsel %vm266_vm1, %v4433_v43, %v4435_v31 }
 0xe44   :  { %v4465_v46 = vmul.f32 %v4448_v48, %v11699_v0 }
 0xe46   :  { %v8993_v58 = vpack.i.bf16 %v4465_v46, %v4464_v28  ;;  %v4437_v7 = vpop.permute.xlu1 %4436  ;;  %v4439_v44 = vpop.permute.xlu0 %4438  ;;  %v13968_v46 = vunpack.i.h.bf16 %v11760_v36 }
 0xe47   :  { %v4449_v17 = vsel %vm266_vm1, %v4435_v31, %v4437_v7  ;;  %v4450_v54 = vsel %vm266_vm1, %v4437_v7, %v4439_v44  ;;  %v4366_v7 = vsel %vm181_vm5, %v8977_v26, %v8981_v45 }
 0xe48   :  { %v4466_v57 = vmul.f32 %v4449_v17, %v11704_v24  ;;  %v4467_v34 = vmul.f32 %v4450_v54, %v11707_v27  ;;  %8994 = vrot.lane.b32.xlu1 %v8993_v58, %s9606_s28  ;;  %v8986_v58 = vunpack.i.l.bf16 %v11760_v36  ;;  %v4365_v17 = vsel %vm181_vm5, %v8976_v25, %v8977_v26 }
 0xe49   :  { %v8982_v54 = vunpack.i.h.bf16 %v11758_v13 }
 0xe4a   :  { %v8998_v56 = vpack.i.bf16 %v4467_v34, %v4466_v57  ;;  %v4441_v62 = vpop.permute.xlu1 %4440  ;;  %v4443_v23 = vpop.permute.xlu0 %4442 }
 0xe4b   :  { %v4451_v22 = vsel %vm266_vm1, %v4439_v44, %v4441_v62  ;;  %v4452_v20 = vsel %vm266_vm1, %v4441_v62, %v4443_v23 }
 0xe4c   :  { %v4468_v37 = vmul.f32 %v4451_v22, %v11717_v21  ;;  %v4469_v63 = vmul.f32 %v4452_v20, %v11720_v40  ;;  %8999 = vrot.lane.b32.xlu0 %v8998_v56, %s9606_s28  ;;  %v11820_v22 = vsel %vm181_vm5, %v8986_v58, %v13968_v46  ;;  %v4368_v20 = vsel %vm181_vm5, %v8982_v54, %v8986_v58 }
 0xe4d   :  { %14275 = vst [vmem:[#allocation13_spill] sm:$0xff] %v11820_v22 }
 0xe4e   :  { %v9003_v35 = vpack.i.bf16 %v4469_v63, %v4468_v37  ;;  %v4445_v47 = vpop.permute.xlu1 %4444  ;;  %v4447_v9 = vpop.permute.xlu0 %4446  ;;  %v4367_v63 = vsel %vm181_vm5, %v8981_v45, %v8982_v54 }
 0xe4f   :  { %v4453_v41 = vsel %vm266_vm1, %v4443_v23, %v4445_v47  ;;  %v4454_v19 = vsel %vm266_vm1, %v4445_v47, %v4447_v9  ;;  %v4472_v51 = vmul.f32 %v4447_v9, %v11733_v6 }
 0xe50   :  { %v4470_v14 = vmul.f32 %v4453_v41, %v11727_v42  ;;  %v4471_v38 = vmul.f32 %v4454_v19, %v11730_v33  ;;  %9004 = vrot.lane.b32.xlu1 %v9003_v35, %s9606_s28 }
 0xe52   :  { %v9008_v18 = vpack.i.bf16 %v4471_v38, %v4470_v14 }
 0xe54   :  { %4498 = vrot.lane.b32.xlu1 %v4472_v51, %s9606_s28  ;;  %9009 = vrot.lane.b32.xlu0 %v9008_v18, %s9606_s28 }
 0xe58   :  { %4569 = vrot.lane.b32.xlu1 %v4542_v55, %s9601_s23  ;;  %4567 = vrot.lane.b32.xlu0 %v4538_v59, %s9601_s23 }
 0xe5c   :  { %4573 = vrot.lane.b32.xlu1 %v4550_v52, %s9601_s23  ;;  %4571 = vrot.lane.b32.xlu0 %v4546_v49, %s9601_s23 }
 0xe60   :  { %4577 = vrot.lane.b32.xlu1 %v4558_v8, %s9601_s23  ;;  %4575 = vrot.lane.b32.xlu0 %v4554_v30, %s9601_s23 }
 0xe64   :  { %4581 = vrot.lane.b32.xlu1 %v4566_v39, %s9601_s23  ;;  %4579 = vrot.lane.b32.xlu0 %v4562_v53, %s9601_s23 }
 0xeba   :  { %v8995_v1 = vpop.permute.xlu1 %8994 }
 0xebb   :  { %v8997_v32 = vunpack.i.h.bf16 %v8995_v1  ;;  %v8996_v61 = vunpack.i.l.bf16 %v8995_v1 }
 0xebd   :  { %v4500_v28 = vsel %vm319_vm6, %v8996_v61, %v8997_v32 }
 0xebe   :  { %v9000_v43 = vpop.permute.xlu0 %8999  ;;  %v8047_v62 = vpack.c.bf16 %v4500_v28, %v4365_v17  ;;  %v4668_v17 = vld [vmem:[#allocation7 + $0x18] sm:$0xff] }
 0xebf   :  { %v9001_v31 = vunpack.i.l.bf16 %v9000_v43  ;;  %v9002_v48 = vunpack.i.h.bf16 %v9000_v43 }
 0xec1   :  { %v4501_v44 = vsel %vm319_vm6, %v8997_v32, %v9001_v31  ;;  %v4502_v23 = vsel %vm319_vm6, %v9001_v31, %v9002_v48 }
 0xec2   :  { %v11812_v57 = vpop.permute.xlu1 %9004  ;;  %v8048_v50 = vpack.c.bf16 %v4501_v44, %v4366_v7  ;;  %v8049_v19 = vpack.c.bf16 %v4502_v23, %v4367_v63  ;;  %v4685_v23 = vrot.slane %v4668_v17, %v9688_v4  ;;  %v4689_v63 = vrot.slane %v4668_v17, %v9700_v12 }
 0xec3   :  { %14274 = vst [vmem:[#allocation14_spill] sm:$0xff] %v11812_v57  ;;  %v13969_v34 = vunpack.i.h.bf16 %v11812_v57  ;;  %v9006_v56 = vunpack.i.l.bf16 %v11812_v57 }
 0xec4   :  { %8198 = vmatprep.subr.bf16.mxu0 %v8048_v50 }
 0xec5   :  { %v11825_v13 = vsel %vm319_vm6, %v9006_v56, %v13969_v34  ;;  %8199 = vmatpush1.bf16.msra.mxu0 %v8047_v62  ;;  %v4503_v37 = vsel %vm319_vm6, %v9002_v48, %v9006_v56  ;;  %v4677_v56 = vrot.slane %v4668_v17, %v9690_v5  ;;  %v4673_v62 = vrot.slane %v4668_v17, %v9686_v3 }
 0xec6   :  { %14276 = vst [vmem:[#allocation23_spill] sm:$0xff] %v11825_v13  ;;  %v11830_v35 = vpop.permute.xlu1 %4498  ;;  %v11832_v47 = vpop.permute.xlu0 %9009  ;;  %v8050_v9 = vpack.c.bf16 %v4503_v37, %v4368_v20  ;;  %v4681_v20 = vrot.slane %v4668_v17, %v9684_v2  ;;  %v4693_v37 = vrot.slane %v4668_v17, %v9698_v11 }
 0xec7   :  { %14277 = vst [vmem:[#allocation19_spill] sm:$0xff] %v11830_v35  ;;  %14278 = vst [vmem:[#allocation16_spill] sm:$0xff] %v11832_v47 }
 0xec8   :  { %8239 = vmatprep.subr.bf16.mxu1 %v8050_v9  ;;  %v4701_v9 = vrot.slane %v4668_v17, %v9706_v15 }
 0xec9   :  { %8240 = vmatpush1.bf16.msra.mxu1 %v8049_v19  ;;  %v4697_v19 = vrot.slane %v4668_v17, %v9708_v16 }
 0xeca   :  { %v4570_v14 = vpop.permute.xlu1 %4569  ;;  %v4568_v38 = vpop.permute.xlu0 %4567 }
 0xecb   :  { %v4583_v10 = vsel %vm404_vm2, %v4568_v38, %v4570_v14  ;;  %v4599_v51 = vmul.f32 0.0, %v4568_v38 }
 0xecc   :  { %v4600_v18 = vmul.f32 %v4583_v10, %v11699_v0 }
 0xece   :  { %v9013_v55 = vpack.i.bf16 %v4600_v18, %v4599_v51  ;;  %v4574_v59 = vpop.permute.xlu1 %4573  ;;  %v4572_v52 = vpop.permute.xlu0 %4571 }
 0xecf   :  { %v4584_v49 = vsel %vm404_vm2, %v4570_v14, %v4572_v52  ;;  %v4585_v8 = vsel %vm404_vm2, %v4572_v52, %v4574_v59 }
 0xed0   :  { %v4601_v30 = vmul.f32 %v4584_v49, %v11704_v24  ;;  %v4602_v39 = vmul.f32 %v4585_v8, %v11707_v27  ;;  %9014 = vrot.lane.b32.xlu0 %v9013_v55, %s9607_s29 }
 0xed2   :  { %v9018_v53 = vpack.i.bf16 %v4602_v39, %v4601_v30  ;;  %v4578_v1 = vpop.permute.xlu1 %4577  ;;  %v4576_v32 = vpop.permute.xlu0 %4575 }
 0xed3   :  { %v4586_v61 = vsel %vm404_vm2, %v4574_v59, %v4576_v32  ;;  %v4587_v45 = vsel %vm404_vm2, %v4576_v32, %v4578_v1 }
 0xed4   :  { %v4603_v26 = vmul.f32 %v4586_v61, %v11717_v21  ;;  %v4604_v25 = vmul.f32 %v4587_v45, %v11720_v40  ;;  %9019 = vrot.lane.b32.xlu1 %v9018_v53, %s9607_s29 }
 0xed6   :  { %v9023_v43 = vpack.i.bf16 %v4604_v25, %v4603_v26  ;;  %v4582_v31 = vpop.permute.xlu1 %4581  ;;  %v4580_v28 = vpop.permute.xlu0 %4579 }
 0xed7   :  { %v4588_v48 = vsel %vm404_vm2, %v4578_v1, %v4580_v28  ;;  %v4589_v58 = vsel %vm404_vm2, %v4580_v28, %v4582_v31  ;;  %v4607_v54 = vmul.f32 %v4582_v31, %v11733_v6 }
 0xed8   :  { %v4605_v7 = vmul.f32 %v4588_v48, %v11727_v42  ;;  %v4606_v44 = vmul.f32 %v4589_v58, %v11730_v33  ;;  %9024 = vrot.lane.b32.xlu0 %v9023_v43, %s9607_s29 }
 0xeda   :  { %v9028_v50 = vpack.i.bf16 %v4606_v44, %v4605_v7 }
 0xedc   :  { %4633 = vrot.lane.b32.xlu0 %v4607_v54, %s9607_s29  ;;  %9029 = vrot.lane.b32.xlu1 %v9028_v50, %s9607_s29 }
 0xee0   :  { %4704 = vrot.lane.b32.xlu0 %v4677_v56, %s9602_s24  ;;  %4702 = vrot.lane.b32.xlu1 %v4673_v62, %s9602_s24 }
 0xee4   :  { %4708 = vrot.lane.b32.xlu0 %v4685_v23, %s9602_s24  ;;  %4706 = vrot.lane.b32.xlu1 %v4681_v20, %s9602_s24  ;;  %v4803_v23 = vld [vmem:[#allocation7 + $0x20] sm:$0xff] }
 0xee8   :  { %4712 = vrot.lane.b32.xlu0 %v4693_v37, %s9602_s24  ;;  %4710 = vrot.lane.b32.xlu1 %v4689_v63, %s9602_s24  ;;  %v4812_v63 = vrot.slane %v4803_v23, %v9690_v5 }
 0xeec   :  { %4716 = vrot.lane.b32.xlu0 %v4701_v9, %s9602_s24  ;;  %4714 = vrot.lane.b32.xlu1 %v4697_v19, %s9602_s24  ;;  %v4808_v9 = vrot.slane %v4803_v23, %v9686_v3  ;;  %v4820_v19 = vrot.slane %v4803_v23, %v9688_v4 }
 0xf42   :  { %v11872_v14 = vpop.permute.xlu0 %9014 }
 0xf46   :  { %v11874_v38 = vpop.permute.xlu1 %9019 }
 0xf4a   :  { %v11876_v10 = vpop.permute.xlu0 %9024 }
 0xf4b   :  { %14279 = vst [vmem:[#allocation28_spill] sm:$0xff] %v11876_v10 }
 0xf4e   :  { %v11878_v51 = vpop.permute.xlu1 %9029  ;;  %v11880_v18 = vpop.permute.xlu0 %4633 }
 0xf4f   :  { %14280 = vst [vmem:[#allocation20_spill] sm:$0xff] %v11878_v51  ;;  %14281 = vst [vmem:[#allocation38_spill] sm:$0xff] %v11880_v18 }
 0xf52   :  { %v4703_v55 = vpop.permute.xlu1 %4702  ;;  %v4705_v59 = vpop.permute.xlu0 %4704 }
 0xf53   :  { %v4734_v52 = vmul.f32 0.0, %v4703_v55  ;;  %v4718_v49 = vsel %vm542_vm3, %v4703_v55, %v4705_v59  ;;  %v4816_v55 = vrot.slane %v4803_v23, %v9684_v2 }
 0xf54   :  { %v4735_v8 = vmul.f32 %v4718_v49, %v11699_v0  ;;  %v4836_v49 = vrot.slane %v4803_v23, %v9706_v15 }
 0xf56   :  { %v9033_v30 = vpack.i.bf16 %v4735_v8, %v4734_v52  ;;  %v4707_v39 = vpop.permute.xlu1 %4706  ;;  %v4709_v53 = vpop.permute.xlu0 %4708  ;;  %v4824_v52 = vrot.slane %v4803_v23, %v9700_v12  ;;  %v4832_v8 = vrot.slane %v4803_v23, %v9708_v16 }
 0xf57   :  { %v4719_v1 = vsel %vm542_vm3, %v4705_v59, %v4707_v39  ;;  %v4720_v32 = vsel %vm542_vm3, %v4707_v39, %v4709_v53  ;;  %v4828_v59 = vrot.slane %v4803_v23, %v9698_v11 }
 0xf58   :  { %v4736_v61 = vmul.f32 %v4719_v1, %v11704_v24  ;;  %v4737_v45 = vmul.f32 %v4720_v32, %v11707_v27  ;;  %9034 = vrot.lane.b32.xlu1 %v9033_v30, %s9604_s26  ;;  %v9021_v1 = vunpack.i.l.bf16 %v11874_v38  ;;  %v9017_v32 = vunpack.i.h.bf16 %v11872_v14 }
 0xf5a   :  { %v9038_v26 = vpack.i.bf16 %v4737_v45, %v4736_v61  ;;  %v4711_v25 = vpop.permute.xlu1 %4710  ;;  %v4713_v43 = vpop.permute.xlu0 %4712  ;;  %v9016_v61 = vunpack.i.l.bf16 %v11872_v14 }
 0xf5b   :  { %v4721_v31 = vsel %vm542_vm3, %v4709_v53, %v4711_v25  ;;  %v4722_v28 = vsel %vm542_vm3, %v4711_v25, %v4713_v43 }
 0xf5c   :  { %v4738_v48 = vmul.f32 %v4721_v31, %v11717_v21  ;;  %v4739_v58 = vmul.f32 %v4722_v28, %v11720_v40  ;;  %9039 = vrot.lane.b32.xlu0 %v9038_v26, %s9604_s26  ;;  %v13966_v31 = vunpack.i.h.bf16 %v11876_v10  ;;  %v9026_v28 = vunpack.i.l.bf16 %v11876_v10 }
 0xf5e   :  { %v9043_v7 = vpack.i.bf16 %v4739_v58, %v4738_v48  ;;  %v4715_v44 = vpop.permute.xlu1 %4714  ;;  %v4717_v17 = vpop.permute.xlu0 %4716  ;;  %v4636_v48 = vsel %vm457_vm7, %v9017_v32, %v9021_v1  ;;  %v11936_v23 = vsel %vm457_vm7, %v9026_v28, %v13966_v31 }
 0xf5f   :  { %v4723_v54 = vsel %vm542_vm3, %v4713_v43, %v4715_v44  ;;  %v4724_v50 = vsel %vm542_vm3, %v4715_v44, %v4717_v17  ;;  %v4742_v20 = vmul.f32 %v4717_v17, %v11733_v6  ;;  %v9022_v44 = vunpack.i.h.bf16 %v11874_v38  ;;  %14283 = vst [vmem:[#allocation17_spill] sm:$0xff] %v11936_v23 }
 0xf60   :  { %v4740_v56 = vmul.f32 %v4723_v54, %v11727_v42  ;;  %v4741_v62 = vmul.f32 %v4724_v50, %v11730_v33  ;;  %9044 = vrot.lane.b32.xlu1 %v9043_v7, %s9604_s26  ;;  %v4635_v7 = vsel %vm457_vm7, %v9016_v61, %v9017_v32 }
 0xf62   :  { %v9048_v37 = vpack.i.bf16 %v4741_v62, %v4740_v56 }
 0xf64   :  { %4768 = vrot.lane.b32.xlu1 %v4742_v20, %s9604_s26  ;;  %9049 = vrot.lane.b32.xlu0 %v9048_v37, %s9604_s26  ;;  %v4638_v20 = vsel %vm457_vm7, %v9022_v44, %v9026_v28 }
 0xf68   :  { %4839 = vrot.lane.b32.xlu1 %v4812_v63, %s9603_s25  ;;  %4837 = vrot.lane.b32.xlu0 %v4808_v9, %s9603_s25  ;;  %v4637_v63 = vsel %vm457_vm7, %v9021_v1, %v9022_v44 }
 0xf6c   :  { %4843 = vrot.lane.b32.xlu1 %v4820_v19, %s9603_s25  ;;  %4841 = vrot.lane.b32.xlu0 %v4816_v55, %s9603_s25 }
 0xf70   :  { %4847 = vrot.lane.b32.xlu1 %v4828_v59, %s9603_s25  ;;  %4845 = vrot.lane.b32.xlu0 %v4824_v52, %s9603_s25 }
 0xf74   :  { %4851 = vrot.lane.b32.xlu1 %v4836_v49, %s9603_s25  ;;  %4849 = vrot.lane.b32.xlu0 %v4832_v8, %s9603_s25 }
 0xfca   :  { %v9035_v30 = vpop.permute.xlu1 %9034 }
 0xfcb   :  { %v9037_v39 = vunpack.i.h.bf16 %v9035_v30  ;;  %v9036_v53 = vunpack.i.l.bf16 %v9035_v30 }
 0xfcd   :  { %v4770_v25 = vsel %vm595_vm8, %v9036_v53, %v9037_v39 }
 0xfce   :  { %v9040_v45 = vpop.permute.xlu0 %9039  ;;  %v8055_v56 = vpack.c.bf16 %v4770_v25, %v4635_v7 }
 0xfcf   :  { %v9041_v26 = vunpack.i.l.bf16 %v9040_v45  ;;  %v9042_v43 = vunpack.i.h.bf16 %v9040_v45 }
 0xfd1   :  { %v4771_v58 = vsel %vm595_vm8, %v9037_v39, %v9041_v26  ;;  %v4772_v62 = vsel %vm595_vm8, %v9041_v26, %v9042_v43 }
 0xfd2   :  { %v11928_v17 = vpop.permute.xlu1 %9044  ;;  %v8056_v14 = vpack.c.bf16 %v4771_v58, %v4636_v48  ;;  %v8057_v52 = vpack.c.bf16 %v4772_v62, %v4637_v63 }
 0xfd3   :  { %14282 = vst [vmem:[#allocation18_spill] sm:$0xff] %v11928_v17  ;;  %v13967_v54 = vunpack.i.h.bf16 %v11928_v17  ;;  %v9046_v50 = vunpack.i.l.bf16 %v11928_v17 }
 0xfd4   :  { %8200 = vmatprep.subr.bf16.mxu0 %v8056_v14 }
 0xfd5   :  { %v11941_v38 = vsel %vm595_vm8, %v9046_v50, %v13967_v54  ;;  %8201 = vmatpush1.bf16.msra.mxu0 %v8055_v56  ;;  %v4773_v37 = vsel %vm595_vm8, %v9042_v43, %v9046_v50 }
 0xfd6   :  { %14284 = vst [vmem:[#allocation30_spill] sm:$0xff] %v11941_v38  ;;  %v11946_v9 = vpop.permute.xlu1 %4768  ;;  %v11948_v19 = vpop.permute.xlu0 %9049  ;;  %v8058_v55 = vpack.c.bf16 %v4773_v37, %v4638_v20 }
 0xfd7   :  { %14285 = vst [vmem:[#allocation26_spill] sm:$0xff] %v11946_v9  ;;  %14286 = vst [vmem:[#allocation22_spill] sm:$0xff] %v11948_v19 }
 0xfd8   :  { %8241 = vmatprep.subr.bf16.mxu1 %v8058_v55 }
 0xfd9   :  { %8242 = vmatpush1.bf16.msra.mxu1 %v8057_v52 }
 0xfda   :  { %v4840_v49 = vpop.permute.xlu1 %4839  ;;  %v4838_v8 = vpop.permute.xlu0 %4837 }
 0xfdb   :  { %v4853_v30 = vsel %vm14287_vm11, %v4838_v8, %v4840_v49  ;;  %v4869_v39 = vmul.f32 0.0, %v4838_v8  ;;  %vm14292_vm11 = vmmov %vm14288_vm4 }
 0xfdc   :  { %v4870_v53 = vmul.f32 %v4853_v30, %v11699_v0 }
 0xfde   :  { %v9053_v32 = vpack.i.bf16 %v4870_v53, %v4869_v39  ;;  %v4844_v1 = vpop.permute.xlu1 %4843  ;;  %v4842_v61 = vpop.permute.xlu0 %4841 }
 0xfdf   :  { %v4854_v45 = vsel %vm14288_vm4, %v4840_v49, %v4842_v61  ;;  %v4855_v26 = vsel %vm14289_vm14, %v4842_v61, %v4844_v1  ;;  %v4938_v49 = vld [vmem:[#allocation7 + $0x28] sm:$0xff]  ;;  %vm14296_vm14 = vmmov %vm14288_vm4 }
 0xfe0   :  { %v4871_v25 = vmul.f32 %v4854_v45, %v11704_v24  ;;  %v4872_v43 = vmul.f32 %v4855_v26, %v11707_v27  ;;  %9054 = vrot.lane.b32.xlu0 %v9053_v32, %s9603_s25  ;;  %v4947_v39 = vrot.slane %v4938_v49, %v9690_v5  ;;  %v4943_v53 = vrot.slane %v4938_v49, %v9686_v3 }
 0xfe1   :  { %v4955_v32 = vrot.slane %v4938_v49, %v9688_v4  ;;  %v4963_v61 = vrot.slane %v4938_v49, %v9698_v11  ;;  %v4959_v45 = vrot.slane %v4938_v49, %v9700_v12  ;;  %v4971_v26 = vrot.slane %v4938_v49, %v9706_v15 }
 0xfe2   :  { %v9058_v28 = vpack.i.bf16 %v4872_v43, %v4871_v25  ;;  %v4848_v48 = vpop.permute.xlu1 %4847  ;;  %v4846_v58 = vpop.permute.xlu0 %4845  ;;  %v4967_v25 = vrot.slane %v4938_v49, %v9708_v16 }
 0xfe3   :  { %v4856_v7 = vsel %vm14290_vm15, %v4844_v1, %v4846_v58  ;;  %v4857_v44 = vsel %vm14291_vm12, %v4846_v58, %v4848_v48  ;;  %v4951_v1 = vrot.slane %v4938_v49, %v9684_v2  ;;  %vm14297_vm15 = vmmov %vm14288_vm4 }
 0xfe4   :  { %v4873_v14 = vmul.f32 %v4856_v7, %v11717_v21  ;;  %v4874_v50 = vmul.f32 %v4857_v44, %v11720_v40  ;;  %9059 = vrot.lane.b32.xlu1 %v9058_v28, %s9603_s25  ;;  %vm14299_vm12 = vmmov %vm14288_vm4 }
 0xfe6   :  { %v9063_v56 = vpack.i.bf16 %v4874_v50, %v4873_v14  ;;  %v4852_v62 = vpop.permute.xlu1 %4851  ;;  %v4850_v20 = vpop.permute.xlu0 %4849 }
 0xfe7   :  { %v4858_v37 = vsel %vm14292_vm11, %v4848_v48, %v4850_v20  ;;  %v4859_v63 = vsel %vm14288_vm4, %v4850_v20, %v4852_v62  ;;  %v4877_v8 = vmul.f32 %v4852_v62, %v11733_v6  ;;  %vm14302_vm11 = vmmov %vm14288_vm4 }
 0xfe8   :  { %v4875_v55 = vmul.f32 %v4858_v37, %v11727_v42  ;;  %v4876_v52 = vmul.f32 %v4859_v63, %v11730_v33  ;;  %9064 = vrot.lane.b32.xlu0 %v9063_v56, %s9603_s25 }
 0xfea   :  { %v9068_v30 = vpack.i.bf16 %v4876_v52, %v4875_v55 }
 0xfec   :  { %4903 = vrot.lane.b32.xlu0 %v4877_v8, %s9603_s25  ;;  %9069 = vrot.lane.b32.xlu1 %v9068_v30, %s9603_s25 }
 0xff0   :  { %4974 = vrot.lane.b32.xlu0 %v4947_v39, %s9604_s26  ;;  %4972 = vrot.lane.b32.xlu1 %v4943_v53, %s9604_s26 }
 0xff4   :  { %4978 = vrot.lane.b32.xlu0 %v4955_v32, %s9604_s26  ;;  %4976 = vrot.lane.b32.xlu1 %v4951_v1, %s9604_s26 }
 0xff8   :  { %4982 = vrot.lane.b32.xlu0 %v4963_v61, %s9604_s26  ;;  %4980 = vrot.lane.b32.xlu1 %v4959_v45, %s9604_s26 }
 0xffc   :  { %4986 = vrot.lane.b32.xlu0 %v4971_v26, %s9604_s26  ;;  %4984 = vrot.lane.b32.xlu1 %v4967_v25, %s9604_s26 }
0x1052   :  { %v11988_v43 = vpop.permute.xlu0 %9054 }
0x1056   :  { %v11990_v28 = vpop.permute.xlu1 %9059 }
0x105a   :  { %v11992_v48 = vpop.permute.xlu0 %9064 }
0x105b   :  { %14293 = vst [vmem:[#allocation27_spill] sm:$0xff] %v11992_v48 }
0x105e   :  { %v11994_v58 = vpop.permute.xlu1 %9069  ;;  %v11996_v7 = vpop.permute.xlu0 %4903 }
0x105f   :  { %14294 = vst [vmem:[#allocation46_spill] sm:$0xff] %v11994_v58  ;;  %14295 = vst [vmem:[#allocation25_spill] sm:$0xff] %v11996_v7 }
0x1062   :  { %v4973_v44 = vpop.permute.xlu1 %4972  ;;  %v4975_v14 = vpop.permute.xlu0 %4974 }
0x1063   :  { %v5004_v50 = vmul.f32 0.0, %v4973_v44  ;;  %v4988_v56 = vsel %vm595_vm8, %v4973_v44, %v4975_v14 }
0x1064   :  { %v5005_v62 = vmul.f32 %v4988_v56, %v11699_v0 }
0x1066   :  { %v9073_v20 = vpack.i.bf16 %v5005_v62, %v5004_v50  ;;  %v4977_v37 = vpop.permute.xlu1 %4976  ;;  %v4979_v63 = vpop.permute.xlu0 %4978 }
0x1067   :  { %v4989_v55 = vsel %vm595_vm8, %v4975_v14, %v4977_v37  ;;  %v4990_v52 = vsel %vm595_vm8, %v4977_v37, %v4979_v63 }
0x1068   :  { %v5006_v49 = vmul.f32 %v4989_v55, %v11704_v24  ;;  %v5007_v8 = vmul.f32 %v4990_v52, %v11707_v27  ;;  %9074 = vrot.lane.b32.xlu1 %v9073_v20, %s9602_s24  ;;  %v5073_v20 = vld [vmem:[#allocation7 + $0x30] sm:$0xff] }
0x1069   :  { %v5082_v55 = vrot.slane %v5073_v20, %v9690_v5  ;;  %v5078_v52 = vrot.slane %v5073_v20, %v9686_v3 }
0x106a   :  { %v9078_v30 = vpack.i.bf16 %v5007_v8, %v5006_v49  ;;  %v4981_v39 = vpop.permute.xlu1 %4980  ;;  %v4983_v53 = vpop.permute.xlu0 %4982  ;;  %v5090_v49 = vrot.slane %v5073_v20, %v9688_v4  ;;  %v5086_v8 = vrot.slane %v5073_v20, %v9684_v2 }
0x106b   :  { %v4991_v32 = vsel %vm595_vm8, %v4979_v63, %v4981_v39  ;;  %v4992_v1 = vsel %vm595_vm8, %v4981_v39, %v4983_v53  ;;  %v5094_v39 = vrot.slane %v5073_v20, %v9700_v12 }
0x106c   :  { %v5008_v61 = vmul.f32 %v4991_v32, %v11717_v21  ;;  %v5009_v45 = vmul.f32 %v4992_v1, %v11720_v40  ;;  %9079 = vrot.lane.b32.xlu0 %v9078_v30, %s9602_s24  ;;  %v5098_v30 = vrot.slane %v5073_v20, %v9698_v11  ;;  %v5102_v32 = vrot.slane %v5073_v20, %v9708_v16 }
0x106e   :  { %v9083_v26 = vpack.i.bf16 %v5009_v45, %v5008_v61  ;;  %v4985_v25 = vpop.permute.xlu1 %4984  ;;  %v4987_v44 = vpop.permute.xlu0 %4986 }
0x106f   :  { %v4993_v14 = vsel %vm595_vm8, %v4983_v53, %v4985_v25  ;;  %v4994_v50 = vsel %vm595_vm8, %v4985_v25, %v4987_v44  ;;  %v5012_v37 = vmul.f32 %v4987_v44, %v11733_v6  ;;  %v5106_v53 = vrot.slane %v5073_v20, %v9706_v15 }
0x1070   :  { %v5010_v56 = vmul.f32 %v4993_v14, %v11727_v42  ;;  %v5011_v62 = vmul.f32 %v4994_v50, %v11730_v33  ;;  %9084 = vrot.lane.b32.xlu1 %v9083_v26, %s9602_s24  ;;  %v9061_v26 = vunpack.i.l.bf16 %v11990_v28  ;;  %v9057_v25 = vunpack.i.h.bf16 %v11988_v43 }
0x1071   :  { %v9056_v44 = vunpack.i.l.bf16 %v11988_v43  ;;  %v13964_v20 = vunpack.i.h.bf16 %v11992_v48 }
0x1072   :  { %v9088_v63 = vpack.i.bf16 %v5011_v62, %v5010_v56 }
0x1074   :  { %5038 = vrot.lane.b32.xlu1 %v5012_v37, %s9602_s24  ;;  %9089 = vrot.lane.b32.xlu0 %v9088_v63, %s9602_s24  ;;  %v9066_v37 = vunpack.i.l.bf16 %v11992_v48  ;;  %v4906_v63 = vsel %vm14296_vm14, %v9057_v25, %v9061_v26  ;;  %vm14316_vm14 = vcmask 973824  }
0x1078   :  { %5109 = vrot.lane.b32.xlu1 %v5082_v55, %s9607_s29  ;;  %5107 = vrot.lane.b32.xlu0 %v5078_v52, %s9607_s29  ;;  %v4905_v52 = vsel %vm14297_vm15, %v9056_v44, %v9057_v25  ;;  %vm14317_vm15 = vmmov %vm14316_vm14 }
0x107c   :  { %5113 = vrot.lane.b32.xlu1 %v5090_v49, %s9607_s29  ;;  %5111 = vrot.lane.b32.xlu0 %v5086_v8, %s9607_s29  ;;  %v9062_v49 = vunpack.i.h.bf16 %v11990_v28 }
0x107e   :  { %v4907_v25 = vsel %vm14288_vm4, %v9061_v26, %v9062_v49 }
0x1080   :  { %5117 = vrot.lane.b32.xlu1 %v5098_v30, %s9607_s29  ;;  %5115 = vrot.lane.b32.xlu0 %v5094_v39, %s9607_s29 }
0x1084   :  { %5121 = vrot.lane.b32.xlu1 %v5106_v53, %s9607_s29  ;;  %5119 = vrot.lane.b32.xlu0 %v5102_v32, %s9607_s29 }
0x10da   :  { %v9075_v1 = vpop.permute.xlu1 %9074 }
0x10db   :  { %v9077_v61 = vunpack.i.h.bf16 %v9075_v1  ;;  %v9076_v45 = vunpack.i.l.bf16 %v9075_v1  ;;  %v12052_v1 = vsel %vm14299_vm12, %v9066_v37, %v13964_v20  ;;  %vm14318_vm12 = vmmov %vm14316_vm14 }
0x10dc   :  { %14300 = vst [vmem:[#allocation35_spill] sm:$0xff] %v12052_v1 }
0x10dd   :  { %v5040_v56 = vsel %vm542_vm3, %v9076_v45, %v9077_v61 }
0x10de   :  { %v9080_v14 = vpop.permute.xlu0 %9079  ;;  %v8063_v53 = vpack.c.bf16 %v5040_v56, %v4905_v52 }
0x10df   :  { %v9081_v50 = vunpack.i.l.bf16 %v9080_v14  ;;  %v9082_v62 = vunpack.i.h.bf16 %v9080_v14 }
0x10e1   :  { %v5041_v55 = vsel %vm542_vm3, %v9077_v61, %v9081_v50  ;;  %v5042_v32 = vsel %vm542_vm3, %v9081_v50, %v9082_v62  ;;  %v4908_v61 = vsel %vm14302_vm11, %v9062_v49, %v9066_v37  ;;  %vm14319_vm11 = vmmov %vm14318_vm12 }
0x10e2   :  { %v12044_v8 = vpop.permute.xlu1 %9084  ;;  %v8064_v43 = vpack.c.bf16 %v5041_v55, %v4906_v63  ;;  %v8065_v63 = vpack.c.bf16 %v5042_v32, %v4907_v25  ;;  %vm14320_vm4 = vmmov %vm14319_vm11 }
0x10e3   :  { %14298 = vst [vmem:[#allocation24_spill] sm:$0xff] %v12044_v8  ;;  %v13965_v30 = vunpack.i.h.bf16 %v12044_v8  ;;  %v9086_v39 = vunpack.i.l.bf16 %v12044_v8 }
0x10e4   :  { %8202 = vmatprep.subr.bf16.mxu0 %v8064_v43 }
0x10e5   :  { %v12057_v28 = vsel %vm542_vm3, %v9086_v39, %v13965_v30  ;;  %8203 = vmatpush1.bf16.msra.mxu0 %v8063_v53  ;;  %v5043_v45 = vsel %vm542_vm3, %v9082_v62, %v9086_v39 }
0x10e6   :  { %14301 = vst [vmem:[#allocation33_spill] sm:$0xff] %v12057_v28  ;;  %v12062_v44 = vpop.permute.xlu1 %5038  ;;  %v12064_v14 = vpop.permute.xlu0 %9089  ;;  %v8066_v50 = vpack.c.bf16 %v5043_v45, %v4908_v61 }
0x10e7   :  { %14303 = vst [vmem:[#allocation29_spill] sm:$0xff] %v12062_v44  ;;  %14304 = vst [vmem:[#allocation42_spill] sm:$0xff] %v12064_v14 }
0x10e8   :  { %8243 = vmatprep.subr.bf16.mxu1 %v8066_v50 }
0x10e9   :  { %8244 = vmatpush1.bf16.msra.mxu1 %v8065_v63 }
0x10ea   :  { %v5110_v55 = vpop.permute.xlu1 %5109  ;;  %v5108_v52 = vpop.permute.xlu0 %5107 }
0x10eb   :  { %v5123_v43 = vsel %vm457_vm7, %v5108_v52, %v5110_v55  ;;  %v5139_v37 = vmul.f32 0.0, %v5108_v52 }
0x10ec   :  { %v5140_v62 = vmul.f32 %v5123_v43, %v11699_v0 }
0x10ee   :  { %v9093_v39 = vpack.i.bf16 %v5140_v62, %v5139_v37  ;;  %v5114_v26 = vpop.permute.xlu1 %5113  ;;  %v5112_v49 = vpop.permute.xlu0 %5111 }
0x10ef   :  { %v5124_v53 = vsel %vm457_vm7, %v5110_v55, %v5112_v49  ;;  %v5125_v61 = vsel %vm457_vm7, %v5112_v49, %v5114_v26 }
0x10f0   :  { %v5141_v45 = vmul.f32 %v5124_v53, %v11704_v24  ;;  %v5142_v32 = vmul.f32 %v5125_v61, %v11707_v27  ;;  %9094 = vrot.lane.b32.xlu0 %v9093_v39, %s9601_s23 }
0x10f2   :  { %v9098_v25 = vpack.i.bf16 %v5142_v32, %v5141_v45  ;;  %v5118_v50 = vpop.permute.xlu1 %5117  ;;  %v5116_v63 = vpop.permute.xlu0 %5115 }
0x10f3   :  { %v5126_v52 = vsel %vm457_vm7, %v5114_v26, %v5116_v63  ;;  %v5127_v43 = vsel %vm457_vm7, %v5116_v63, %v5118_v50  ;;  %v5208_v26 = vld [vmem:[#allocation7 + $0x38] sm:$0xff] }
0x10f4   :  { %v5143_v37 = vmul.f32 %v5126_v52, %v11717_v21  ;;  %v5144_v62 = vmul.f32 %v5127_v43, %v11720_v40  ;;  %9099 = vrot.lane.b32.xlu1 %v9098_v25, %s9601_s23  ;;  %v5217_v25 = vrot.slane %v5208_v26, %v9690_v5  ;;  %v5225_v43 = vrot.slane %v5208_v26, %v9688_v4 }
0x10f6   :  { %v9103_v55 = vpack.i.bf16 %v5144_v62, %v5143_v37  ;;  %v5122_v49 = vpop.permute.xlu1 %5121  ;;  %v5120_v53 = vpop.permute.xlu0 %5119  ;;  %v5221_v37 = vrot.slane %v5208_v26, %v9684_v2  ;;  %v5233_v62 = vrot.slane %v5208_v26, %v9698_v11 }
0x10f7   :  { %v5128_v61 = vsel %vm457_vm7, %v5118_v50, %v5120_v53  ;;  %v5129_v39 = vsel %vm457_vm7, %v5120_v53, %v5122_v49  ;;  %v5147_v63 = vmul.f32 %v5122_v49, %v11733_v6  ;;  %v5213_v50 = vrot.slane %v5208_v26, %v9686_v3 }
0x10f8   :  { %v5145_v45 = vmul.f32 %v5128_v61, %v11727_v42  ;;  %v5146_v32 = vmul.f32 %v5129_v39, %v11730_v33  ;;  %9104 = vrot.lane.b32.xlu0 %v9103_v55, %s9601_s23  ;;  %v5229_v55 = vrot.slane %v5208_v26, %v9700_v12  ;;  %v5241_v49 = vrot.slane %v5208_v26, %v9706_v15 }
0x10f9   :  { %v5237_v53 = vrot.slane %v5208_v26, %v9708_v16 }
0x10fa   :  { %v9108_v52 = vpack.i.bf16 %v5146_v32, %v5145_v45 }
0x10fc   :  { %5173 = vrot.lane.b32.xlu0 %v5147_v63, %s9601_s23  ;;  %9109 = vrot.lane.b32.xlu1 %v9108_v52, %s9601_s23 }
0x1100   :  { %5244 = vrot.lane.b32.xlu0 %v5217_v25, %s9606_s28  ;;  %5242 = vrot.lane.b32.xlu1 %v5213_v50, %s9606_s28 }
0x1104   :  { %5248 = vrot.lane.b32.xlu0 %v5225_v43, %s9606_s28  ;;  %5246 = vrot.lane.b32.xlu1 %v5221_v37, %s9606_s28 }
0x1108   :  { %5252 = vrot.lane.b32.xlu0 %v5233_v62, %s9606_s28  ;;  %5250 = vrot.lane.b32.xlu1 %v5229_v55, %s9606_s28 }
0x110c   :  { %5256 = vrot.lane.b32.xlu0 %v5241_v49, %s9606_s28  ;;  %5254 = vrot.lane.b32.xlu1 %v5237_v53, %s9606_s28 }
0x1162   :  { %v12104_v61 = vpop.permute.xlu0 %9094 }
0x1166   :  { %v12106_v39 = vpop.permute.xlu1 %9099 }
0x116a   :  { %v12108_v45 = vpop.permute.xlu0 %9104 }
0x116b   :  { %14305 = vst [vmem:[#allocation39_spill] sm:$0xff] %v12108_v45 }
0x116e   :  { %v12110_v32 = vpop.permute.xlu1 %9109  ;;  %v12112_v63 = vpop.permute.xlu0 %5173 }
0x116f   :  { %14306 = vst [vmem:[#allocation54_spill] sm:$0xff] %v12110_v32  ;;  %14307 = vst [vmem:[#allocation32_spill] sm:$0xff] %v12112_v63 }
0x1172   :  { %v5243_v52 = vpop.permute.xlu1 %5242  ;;  %v5245_v25 = vpop.permute.xlu0 %5244 }
0x1173   :  { %v5274_v50 = vmul.f32 0.0, %v5243_v52  ;;  %v5258_v43 = vsel %vm319_vm6, %v5243_v52, %v5245_v25 }
0x1174   :  { %v5275_v26 = vmul.f32 %v5258_v43, %v11699_v0 }
0x1176   :  { %v9113_v37 = vpack.i.bf16 %v5275_v26, %v5274_v50  ;;  %v5247_v62 = vpop.permute.xlu1 %5246  ;;  %v5249_v55 = vpop.permute.xlu0 %5248 }
0x1177   :  { %v5259_v49 = vsel %vm319_vm6, %v5245_v25, %v5247_v62  ;;  %v5260_v53 = vsel %vm319_vm6, %v5247_v62, %v5249_v55 }
0x1178   :  { %v5276_v56 = vmul.f32 %v5259_v49, %v11704_v24  ;;  %v5277_v59 = vmul.f32 %v5260_v53, %v11707_v27  ;;  %9114 = vrot.lane.b32.xlu1 %v9113_v37, %s9600_s22 }
0x117a   :  { %v9118_v20 = vpack.i.bf16 %v5277_v59, %v5276_v56  ;;  %v5251_v30 = vpop.permute.xlu1 %5250  ;;  %v5253_v41 = vpop.permute.xlu0 %5252 }
0x117b   :  { %v5261_v52 = vsel %vm319_vm6, %v5249_v55, %v5251_v30  ;;  %v5262_v43 = vsel %vm319_vm6, %v5251_v30, %v5253_v41  ;;  %v5343_v30 = vld [vmem:[#allocation7 + $0x40] sm:$0xff] }
0x117c   :  { %v5278_v50 = vmul.f32 %v5261_v52, %v11717_v21  ;;  %v5279_v26 = vmul.f32 %v5262_v43, %v11720_v40  ;;  %9119 = vrot.lane.b32.xlu0 %v9118_v20, %s9600_s22  ;;  %v5352_v20 = vrot.slane %v5343_v30, %v9690_v5  ;;  %v5360_v43 = vrot.slane %v5343_v30, %v9688_v4 }
0x117e   :  { %v9123_v25 = vpack.i.bf16 %v5279_v26, %v5278_v50  ;;  %v5255_v62 = vpop.permute.xlu1 %5254  ;;  %v5257_v49 = vpop.permute.xlu0 %5256  ;;  %v5356_v50 = vrot.slane %v5343_v30, %v9684_v2  ;;  %v5368_v26 = vrot.slane %v5343_v30, %v9698_v11 }
0x117f   :  { %v5263_v53 = vsel %vm319_vm6, %v5253_v41, %v5255_v62  ;;  %v5264_v37 = vsel %vm319_vm6, %v5255_v62, %v5257_v49  ;;  %v5282_v55 = vmul.f32 %v5257_v49, %v11733_v6  ;;  %v5348_v41 = vrot.slane %v5343_v30, %v9686_v3 }
0x1180   :  { %v5280_v59 = vmul.f32 %v5263_v53, %v11727_v42  ;;  %v5281_v56 = vmul.f32 %v5264_v37, %v11730_v33  ;;  %9124 = vrot.lane.b32.xlu1 %v9123_v25, %s9600_s22  ;;  %v5364_v25 = vrot.slane %v5343_v30, %v9700_v12  ;;  %v5376_v62 = vrot.slane %v5343_v30, %v9706_v15 }
0x1181   :  { %v5372_v49 = vrot.slane %v5343_v30, %v9708_v16  ;;  %v13970_v30 = vunpack.i.h.bf16 %v12108_v45 }
0x1182   :  { %v9128_v52 = vpack.i.bf16 %v5281_v56, %v5280_v59  ;;  %v9101_v56 = vunpack.i.l.bf16 %v12106_v39 }
0x1184   :  { %5308 = vrot.lane.b32.xlu1 %v5282_v55, %s9600_s22  ;;  %9129 = vrot.lane.b32.xlu0 %v9128_v52, %s9600_s22  ;;  %v9097_v55 = vunpack.i.h.bf16 %v12104_v61  ;;  %v9096_v52 = vunpack.i.l.bf16 %v12104_v61 }
0x1188   :  { %5379 = vrot.lane.b32.xlu1 %v5352_v20, %s9605_s27  ;;  %5377 = vrot.lane.b32.xlu0 %v5348_v41, %s9605_s27 }
0x118c   :  { %5383 = vrot.lane.b32.xlu1 %v5360_v43, %s9605_s27  ;;  %5381 = vrot.lane.b32.xlu0 %v5356_v50, %s9605_s27 }
0x1190   :  { %5387 = vrot.lane.b32.xlu1 %v5368_v26, %s9605_s27  ;;  %5385 = vrot.lane.b32.xlu0 %v5364_v25, %s9605_s27  ;;  %v9106_v26 = vunpack.i.l.bf16 %v12108_v45  ;;  %v5176_v25 = vsel %vm404_vm2, %v9097_v55, %v9101_v56 }
0x1192   :  { %v12168_v34 = vsel %vm404_vm2, %v9106_v26, %v13970_v30 }
0x1193   :  { %14309 = vst [vmem:[#allocation43_spill] sm:$0xff] %v12168_v34 }
0x1194   :  { %5391 = vrot.lane.b32.xlu1 %v5376_v62, %s9605_s27  ;;  %5389 = vrot.lane.b32.xlu0 %v5372_v49, %s9605_s27  ;;  %v5175_v49 = vsel %vm404_vm2, %v9096_v52, %v9097_v55 }
0x11ea   :  { %v9115_v53 = vpop.permute.xlu1 %9114 }
0x11eb   :  { %v9117_v37 = vunpack.i.h.bf16 %v9115_v53  ;;  %v9116_v59 = vunpack.i.l.bf16 %v9115_v53  ;;  %v9102_v53 = vunpack.i.h.bf16 %v12106_v39 }
0x11ed   :  { %v5310_v43 = vsel %vm266_vm1, %v9116_v59, %v9117_v37  ;;  %v5177_v52 = vsel %vm404_vm2, %v9101_v56, %v9102_v53 }
0x11ee   :  { %v9120_v20 = vpop.permute.xlu0 %9119 }
0x11ef   :  { %v9121_v41 = vunpack.i.l.bf16 %v9120_v20  ;;  %v9122_v50 = vunpack.i.h.bf16 %v9120_v20  ;;  %v8071_v20 = vpack.c.bf16 %v5310_v43, %v5175_v49 }
0x11f1   :  { %v5311_v62 = vsel %vm266_vm1, %v9117_v37, %v9121_v41  ;;  %v5312_v46 = vsel %vm266_vm1, %v9121_v41, %v9122_v50  ;;  %v5178_v37 = vsel %vm404_vm2, %v9102_v53, %v9106_v26 }
0x11f2   :  { %v12160_v31 = vpop.permute.xlu1 %9124  ;;  %v8072_v61 = vpack.c.bf16 %v5311_v62, %v5176_v25  ;;  %v8073_v49 = vpack.c.bf16 %v5312_v46, %v5177_v52 }
0x11f3   :  { %14308 = vst [vmem:[#allocation31_spill] sm:$0xff] %v12160_v31  ;;  %v13971_v54 = vunpack.i.h.bf16 %v12160_v31  ;;  %v9126_v59 = vunpack.i.l.bf16 %v12160_v31 }
0x11f4   :  { %8204 = vmatprep.subr.bf16.mxu0 %v8072_v61 }
0x11f5   :  { %v12173_v39 = vsel %vm266_vm1, %v9126_v59, %v13971_v54  ;;  %8205 = vmatpush1.bf16.msra.mxu0 %v8071_v20  ;;  %v5313_v55 = vsel %vm266_vm1, %v9122_v50, %v9126_v59 }
0x11f6   :  { %14310 = vst [vmem:[#allocation50_spill] sm:$0xff] %v12173_v39  ;;  %v12178_v43 = vpop.permute.xlu1 %5308  ;;  %v12180_v41 = vpop.permute.xlu0 %9129  ;;  %v8074_v25 = vpack.c.bf16 %v5313_v55, %v5178_v37 }
0x11f7   :  { %14311 = vst [vmem:[#allocation40_spill] sm:$0xff] %v12178_v43  ;;  %14312 = vst [vmem:[#allocation47_spill] sm:$0xff] %v12180_v41 }
0x11f8   :  { %8245 = vmatprep.subr.bf16.mxu1 %v8074_v25 }
0x11f9   :  { %8246 = vmatpush1.bf16.msra.mxu1 %v8073_v49 }
0x11fa   :  { %v5380_v61 = vpop.permute.xlu1 %5379  ;;  %v5378_v30 = vpop.permute.xlu0 %5377 }
0x11fb   :  { %v5393_v20 = vsel %vm181_vm5, %v5378_v30, %v5380_v61  ;;  %v5409_v26 = vmul.f32 0.0, %v5378_v30 }
0x11fc   :  { %v5410_v50 = vmul.f32 %v5393_v20, %v11699_v0 }
0x11fe   :  { %v9133_v59 = vpack.i.bf16 %v5410_v50, %v5409_v26  ;;  %v5384_v56 = vpop.permute.xlu1 %5383  ;;  %v5382_v53 = vpop.permute.xlu0 %5381 }
0x11ff   :  { %v5394_v54 = vsel %vm181_vm5, %v5380_v61, %v5382_v53  ;;  %v5395_v37 = vsel %vm181_vm5, %v5382_v53, %v5384_v56 }
0x1200   :  { %v5411_v55 = vmul.f32 %v5394_v54, %v11704_v24  ;;  %v5412_v46 = vmul.f32 %v5395_v37, %v11707_v27  ;;  %9134 = vrot.lane.b32.xlu0 %v9133_v59, %s9599_s5 }
0x1202   :  { %v9138_v52 = vpack.i.bf16 %v5412_v46, %v5411_v55  ;;  %v5388_v25 = vpop.permute.xlu1 %5387  ;;  %v5386_v49 = vpop.permute.xlu0 %5385 }
0x1203   :  { %v5396_v30 = vsel %vm181_vm5, %v5384_v56, %v5386_v49  ;;  %v5397_v20 = vsel %vm181_vm5, %v5386_v49, %v5388_v25  ;;  %v5478_v56 = vld [vmem:[#allocation7 + $0x48] sm:$0xff] }
0x1204   :  { %v5413_v26 = vmul.f32 %v5396_v30, %v11717_v21  ;;  %v5414_v50 = vmul.f32 %v5397_v20, %v11720_v40  ;;  %9139 = vrot.lane.b32.xlu1 %v9138_v52, %s9599_s5  ;;  %v5487_v52 = vrot.slane %v5478_v56, %v9690_v5  ;;  %v5495_v20 = vrot.slane %v5478_v56, %v9688_v4 }
0x1206   :  { %v9143_v61 = vpack.i.bf16 %v5414_v50, %v5413_v26  ;;  %v5392_v53 = vpop.permute.xlu1 %5391  ;;  %v5390_v54 = vpop.permute.xlu0 %5389  ;;  %v5491_v26 = vrot.slane %v5478_v56, %v9684_v2  ;;  %v5503_v50 = vrot.slane %v5478_v56, %v9698_v11 }
0x1207   :  { %v5398_v37 = vsel %vm181_vm5, %v5388_v25, %v5390_v54  ;;  %v5399_v59 = vsel %vm181_vm5, %v5390_v54, %v5392_v53  ;;  %v5417_v49 = vmul.f32 %v5392_v53, %v11733_v6  ;;  %v5483_v25 = vrot.slane %v5478_v56, %v9686_v3 }
0x1208   :  { %v5415_v55 = vmul.f32 %v5398_v37, %v11727_v42  ;;  %v5416_v46 = vmul.f32 %v5399_v59, %v11730_v33  ;;  %9144 = vrot.lane.b32.xlu0 %v9143_v61, %s9599_s5  ;;  %v5499_v61 = vrot.slane %v5478_v56, %v9700_v12  ;;  %v5511_v53 = vrot.slane %v5478_v56, %v9706_v15 }
0x1209   :  { %v5507_v54 = vrot.slane %v5478_v56, %v9708_v16 }
0x120a   :  { %v9148_v30 = vpack.i.bf16 %v5416_v46, %v5415_v55 }
0x120c   :  { %5443 = vrot.lane.b32.xlu0 %v5417_v49, %s9599_s5  ;;  %9149 = vrot.lane.b32.xlu1 %v9148_v30, %s9599_s5 }
0x1210   :  { %5514 = vrot.lane.b32.xlu0 %v5487_v52, %s9608_s30  ;;  %5512 = vrot.lane.b32.xlu1 %v5483_v25, %s9608_s30 }
0x1214   :  { %5518 = vrot.lane.b32.xlu0 %v5495_v20, %s9608_s30  ;;  %5516 = vrot.lane.b32.xlu1 %v5491_v26, %s9608_s30 }
0x1218   :  { %5522 = vrot.lane.b32.xlu0 %v5503_v50, %s9608_s30  ;;  %5520 = vrot.lane.b32.xlu1 %v5499_v61, %s9608_s30 }
0x121c   :  { %5526 = vrot.lane.b32.xlu0 %v5511_v53, %s9608_s30  ;;  %5524 = vrot.lane.b32.xlu1 %v5507_v54, %s9608_s30 }
0x1272   :  { %v12220_v37 = vpop.permute.xlu0 %9134 }
0x1276   :  { %v12222_v59 = vpop.permute.xlu1 %9139 }
0x127a   :  { %v12224_v55 = vpop.permute.xlu0 %9144 }
0x127b   :  { %14313 = vst [vmem:[#allocation62_spill] sm:$0xff] %v12224_v55  ;;  %v14324_v43 = vunpack.i.h.bf16 %v12224_v55 }
0x127e   :  { %v12226_v46 = vpop.permute.xlu1 %9149  ;;  %v12228_v49 = vpop.permute.xlu0 %5443 }
0x127f   :  { %14314 = vst [vmem:[#allocation36_spill] sm:$0xff] %v12226_v46  ;;  %14315 = vst [vmem:[#allocation37_spill] sm:$0xff] %v12228_v49 }
0x1282   :  { %v5513_v30 = vpop.permute.xlu1 %5512  ;;  %v5515_v52 = vpop.permute.xlu0 %5514 }
0x1283   :  { %v5544_v25 = vmul.f32 0.0, %v5513_v30  ;;  %v5528_v20 = vsel %vm14316_vm14, %v5513_v30, %v5515_v52  ;;  %vm14321_vm14 = vmmov %vm14320_vm4 }
0x1284   :  { %v5545_v56 = vmul.f32 %v5528_v20, %v11699_v0 }
0x1286   :  { %v9153_v26 = vpack.i.bf16 %v5545_v56, %v5544_v25  ;;  %v5517_v50 = vpop.permute.xlu1 %5516  ;;  %v5519_v61 = vpop.permute.xlu0 %5518 }
0x1287   :  { %v5529_v53 = vsel %vm14317_vm15, %v5515_v52, %v5517_v50  ;;  %v5530_v54 = vsel %vm14318_vm12, %v5517_v50, %v5519_v61  ;;  %vm14322_vm15 = vmmov %vm14320_vm4  ;;  %vm14329_vm12 = vcmask 982016  }
0x1288   :  { %v5546_v62 = vmul.f32 %v5529_v53, %v11704_v24  ;;  %v5547_v34 = vmul.f32 %v5530_v54, %v11707_v27  ;;  %9154 = vrot.lane.b32.xlu1 %v9153_v26, %s9609_s7 }
0x128a   :  { %v9158_v39 = vpack.i.bf16 %v5547_v34, %v5546_v62  ;;  %v5521_v49 = vpop.permute.xlu1 %5520  ;;  %v5523_v1 = vpop.permute.xlu0 %5522 }
0x128b   :  { %v5531_v30 = vsel %vm14319_vm11, %v5519_v61, %v5521_v49  ;;  %v5532_v20 = vsel %vm14320_vm4, %v5521_v49, %v5523_v1  ;;  %v5613_v49 = vld [vmem:[#allocation7 + $0x50] sm:$0xff]  ;;  %vm14330_vm11 = vmmov %vm14329_vm12 }
0x128c   :  { %v5548_v25 = vmul.f32 %v5531_v30, %v11717_v21  ;;  %v5549_v56 = vmul.f32 %v5532_v20, %v11720_v40  ;;  %9159 = vrot.lane.b32.xlu0 %v9158_v39, %s9609_s7  ;;  %v5622_v39 = vrot.slane %v5613_v49, %v9690_v5  ;;  %v5630_v20 = vrot.slane %v5613_v49, %v9688_v4  ;;  %vm14331_vm4 = vmmov %vm14330_vm11 }
0x128e   :  { %v9163_v52 = vpack.i.bf16 %v5549_v56, %v5548_v25  ;;  %v5525_v50 = vpop.permute.xlu1 %5524  ;;  %v5527_v53 = vpop.permute.xlu0 %5526  ;;  %v5626_v25 = vrot.slane %v5613_v49, %v9684_v2  ;;  %v5638_v56 = vrot.slane %v5613_v49, %v9698_v11 }
0x128f   :  { %v5533_v54 = vsel %vm14321_vm14, %v5523_v1, %v5525_v50  ;;  %v5534_v26 = vsel %vm14322_vm15, %v5525_v50, %v5527_v53  ;;  %v5552_v61 = vmul.f32 %v5527_v53, %v11733_v6  ;;  %v5618_v1 = vrot.slane %v5613_v49, %v9686_v3  ;;  %vm14332_vm14 = vmmov %vm14331_vm4 }
0x1290   :  { %v5550_v34 = vmul.f32 %v5533_v54, %v11727_v42  ;;  %v5551_v62 = vmul.f32 %v5534_v26, %v11730_v33  ;;  %9164 = vrot.lane.b32.xlu1 %v9163_v52, %s9609_s7  ;;  %v5634_v52 = vrot.slane %v5613_v49, %v9700_v12  ;;  %v5646_v50 = vrot.slane %v5613_v49, %v9706_v15  ;;  %vm14333_vm15 = vmmov %vm14331_vm4 }
0x1291   :  { %v5642_v53 = vrot.slane %v5613_v49, %v9708_v16 }
0x1292   :  { %v9168_v30 = vpack.i.bf16 %v5551_v62, %v5550_v34  ;;  %v9141_v62 = vunpack.i.l.bf16 %v12222_v59 }
0x1294   :  { %5578 = vrot.lane.b32.xlu1 %v5552_v61, %s9609_s7  ;;  %9169 = vrot.lane.b32.xlu0 %v9168_v30, %s9609_s7  ;;  %v9137_v61 = vunpack.i.h.bf16 %v12220_v37  ;;  %v9136_v30 = vunpack.i.l.bf16 %v12220_v37 }
0x1298   :  { %5649 = vrot.lane.b32.xlu1 %v5622_v39, %s9610_s8  ;;  %5647 = vrot.lane.b32.xlu0 %v5618_v1, %s9610_s8 }
0x129c   :  { %5653 = vrot.lane.b32.xlu1 %v5630_v20, %s9610_s8  ;;  %5651 = vrot.lane.b32.xlu0 %v5626_v25, %s9610_s8 }
0x12a0   :  { %5657 = vrot.lane.b32.xlu1 %v5638_v56, %s9610_s8  ;;  %5655 = vrot.lane.b32.xlu0 %v5634_v52, %s9610_s8  ;;  %v9146_v56 = vunpack.i.l.bf16 %v12224_v55  ;;  %v5446_v52 = vsel %vm128_vm0, %v9137_v61, %v9141_v62 }
0x12a2   :  { %v12284_v45 = vsel %vm128_vm0, %v9146_v56, %v14324_v43 }
0x12a3   :  { %14325 = vst [vmem:[#allocation41_spill] sm:$0xff] %v12284_v45 }
0x12a4   :  { %5661 = vrot.lane.b32.xlu1 %v5646_v50, %s9610_s8  ;;  %5659 = vrot.lane.b32.xlu0 %v5642_v53, %s9610_s8  ;;  %v5445_v53 = vsel %vm128_vm0, %v9136_v30, %v9137_v61 }
0x12fa   :  { %v9155_v54 = vpop.permute.xlu1 %9154 }
0x12fb   :  { %v9157_v26 = vunpack.i.h.bf16 %v9155_v54  ;;  %v9156_v34 = vunpack.i.l.bf16 %v9155_v54  ;;  %v9142_v54 = vunpack.i.h.bf16 %v12222_v59 }
0x12fd   :  { %v5580_v20 = vsel %vm1414_vm10, %v9156_v34, %v9157_v26  ;;  %v5447_v30 = vsel %vm128_vm0, %v9141_v62, %v9142_v54 }
0x12fe   :  { %v9160_v39 = vpop.permute.xlu0 %9159 }
0x12ff   :  { %v9161_v1 = vunpack.i.l.bf16 %v9160_v39  ;;  %v9162_v25 = vunpack.i.h.bf16 %v9160_v39  ;;  %v8079_v39 = vpack.c.bf16 %v5580_v20, %v5445_v53 }
0x1301   :  { %v5581_v50 = vsel %vm1414_vm10, %v9157_v26, %v9161_v1  ;;  %v5582_v49 = vsel %vm1414_vm10, %v9161_v1, %v9162_v25  ;;  %v5448_v26 = vsel %vm128_vm0, %v9142_v54, %v9146_v56 }
0x1302   :  { %v12276_v28 = vpop.permute.xlu1 %9164  ;;  %v8080_v37 = vpack.c.bf16 %v5581_v50, %v5446_v52  ;;  %v8081_v50 = vpack.c.bf16 %v5582_v49, %v5447_v30 }
0x1303   :  { %14323 = vst [vmem:[#allocation51_spill] sm:$0xff] %v12276_v28  ;;  %v13977_v63 = vunpack.i.h.bf16 %v12276_v28  ;;  %v9166_v34 = vunpack.i.l.bf16 %v12276_v28 }
0x1304   :  { %8206 = vmatprep.subr.bf16.mxu0 %v8080_v37 }
0x1305   :  { %v12289_v59 = vsel %vm1414_vm10, %v9166_v34, %v13977_v63  ;;  %8207 = vmatpush1.bf16.msra.mxu0 %v8079_v39  ;;  %v5583_v61 = vsel %vm1414_vm10, %v9162_v25, %v9166_v34 }
0x1306   :  { %14326 = vst [vmem:[#allocation58_spill] sm:$0xff] %v12289_v59  ;;  %v12294_v20 = vpop.permute.xlu1 %5578  ;;  %v12296_v1 = vpop.permute.xlu0 %9169  ;;  %v8082_v52 = vpack.c.bf16 %v5583_v61, %v5448_v26 }
0x1307   :  { %14327 = vst [vmem:[#allocation48_spill] sm:$0xff] %v12294_v20  ;;  %14328 = vst [vmem:[#allocation55_spill] sm:$0xff] %v12296_v1 }
0x1308   :  { %8247 = vmatprep.subr.bf16.mxu1 %v8082_v52 }
0x1309   :  { %8248 = vmatpush1.bf16.msra.mxu1 %v8081_v50 }
0x130a   :  { %v5650_v53 = vpop.permute.xlu1 %5649  ;;  %v5648_v37 = vpop.permute.xlu0 %5647 }
0x130b   :  { %v5663_v39 = vsel %vm14329_vm12, %v5648_v37, %v5650_v53  ;;  %v5679_v56 = vmul.f32 0.0, %v5648_v37  ;;  %vm14334_vm12 = vmmov %vm14331_vm4 }
0x130c   :  { %v5680_v25 = vmul.f32 %v5663_v39, %v11699_v0 }
0x130e   :  { %v5654_v34 = vpop.permute.xlu1 %5653  ;;  %v5652_v62 = vpop.permute.xlu0 %5651  ;;  %v9173_v54 = vpack.i.bf16 %v5680_v25, %v5679_v56 }
0x130f   :  { %v5664_v63 = vsel %vm14330_vm11, %v5650_v53, %v5652_v62  ;;  %v5665_v26 = vsel %vm14331_vm4, %v5652_v62, %v5654_v34  ;;  %vm14335_vm11 = vmmov %vm14331_vm4  ;;  %vm14339_vm4 = vcmask 990208  }
0x1310   :  { %v5681_v61 = vmul.f32 %v5664_v63, %v11704_v24  ;;  %v5682_v49 = vmul.f32 %v5665_v26, %v11707_v27  ;;  %9174 = vrot.lane.b32.xlu0 %v9173_v54, %s9598_s19 }
0x1312   :  { %v5658_v30 = vpop.permute.xlu1 %5657  ;;  %v5656_v52 = vpop.permute.xlu0 %5655  ;;  %v9178_v50 = vpack.i.bf16 %v5682_v49, %v5681_v61 }
0x1313   :  { %v5666_v37 = vsel %vm14332_vm14, %v5654_v34, %v5656_v52  ;;  %v5667_v39 = vsel %vm14333_vm15, %v5656_v52, %v5658_v30  ;;  %v5748_v34 = vld [vmem:[#allocation7 + $0x58] sm:$0xff]  ;;  %vm14340_vm14 = vmmov %vm14339_vm4 }
0x1314   :  { %v5683_v43 = vmul.f32 %v5666_v37, %v11717_v21  ;;  %v5684_v56 = vmul.f32 %v5667_v39, %v11720_v40  ;;  %9179 = vrot.lane.b32.xlu1 %v9178_v50, %s9598_s19  ;;  %v5765_v50 = vrot.slane %v5748_v34, %v9688_v4  ;;  %v5761_v37 = vrot.slane %v5748_v34, %v9684_v2  ;;  %vm14341_vm15 = vmmov %vm14339_vm4 }
0x1315   :  { %v5773_v39 = vrot.slane %v5748_v34, %v9698_v11 }
0x1316   :  { %v5662_v53 = vpop.permute.xlu1 %5661  ;;  %v5660_v25 = vpop.permute.xlu0 %5659  ;;  %v9183_v63 = vpack.i.bf16 %v5684_v56, %v5683_v43  ;;  %v5757_v43 = vrot.slane %v5748_v34, %v9690_v5  ;;  %v5769_v56 = vrot.slane %v5748_v34, %v9700_v12 }
0x1317   :  { %v5668_v62 = vsel %vm14334_vm12, %v5658_v30, %v5660_v25  ;;  %v5669_v54 = vsel %vm14335_vm11, %v5660_v25, %v5662_v53  ;;  %v5687_v49 = vmul.f32 %v5662_v53, %v11733_v6  ;;  %v5753_v30 = vrot.slane %v5748_v34, %v9686_v3  ;;  %vm14342_vm12 = vmmov %vm14339_vm4 }
0x1318   :  { %v5685_v26 = vmul.f32 %v5668_v62, %v11727_v42  ;;  %v5686_v61 = vmul.f32 %v5669_v54, %v11730_v33  ;;  %9184 = vrot.lane.b32.xlu0 %v9183_v63, %s9598_s19  ;;  %v5781_v53 = vrot.slane %v5748_v34, %v9706_v15  ;;  %v5777_v25 = vrot.slane %v5748_v34, %v9708_v16  ;;  %vm14343_vm11 = vmmov %vm14339_vm4 }
0x131a   :  { %v9188_v52 = vpack.i.bf16 %v5686_v61, %v5685_v26 }
0x131c   :  { %5713 = vrot.lane.b32.xlu0 %v5687_v49, %s9598_s19  ;;  %9189 = vrot.lane.b32.xlu1 %v9188_v52, %s9598_s19 }
0x1320   :  { %5784 = vrot.lane.b32.xlu0 %v5757_v43, %s9611_s9  ;;  %5782 = vrot.lane.b32.xlu1 %v5753_v30, %s9611_s9 }
0x1324   :  { %5788 = vrot.lane.b32.xlu0 %v5765_v50, %s9611_s9  ;;  %5786 = vrot.lane.b32.xlu1 %v5761_v37, %s9611_s9 }
0x1328   :  { %5792 = vrot.lane.b32.xlu0 %v5773_v39, %s9611_s9  ;;  %5790 = vrot.lane.b32.xlu1 %v5769_v56, %s9611_s9 }
0x132c   :  { %5796 = vrot.lane.b32.xlu0 %v5781_v53, %s9611_s9  ;;  %5794 = vrot.lane.b32.xlu1 %v5777_v25, %s9611_s9 }
0x1382   :  { %v12336_v63 = vpop.permute.xlu0 %9174 }
0x1386   :  { %v12338_v62 = vpop.permute.xlu1 %9179 }
0x138a   :  { %v12340_v54 = vpop.permute.xlu0 %9184 }
0x138b   :  { %14336 = vst [vmem:[#allocation70_spill] sm:$0xff] %v12340_v54  ;;  %v14348_v28 = vunpack.i.h.bf16 %v12340_v54 }
0x138e   :  { %v12342_v26 = vpop.permute.xlu1 %9189  ;;  %v12344_v61 = vpop.permute.xlu0 %5713 }
0x138f   :  { %14337 = vst [vmem:[#allocation45_spill] sm:$0xff] %v12342_v26  ;;  %14338 = vst [vmem:[#allocation44_spill] sm:$0xff] %v12344_v61 }
0x1392   :  { %v5783_v49 = vpop.permute.xlu1 %5782  ;;  %v5785_v52 = vpop.permute.xlu0 %5784 }
0x1393   :  { %v5814_v43 = vmul.f32 0.0, %v5783_v49  ;;  %v5798_v30 = vsel %vm14339_vm4, %v5783_v49, %v5785_v52 }
0x1394   :  { %v5815_v34 = vmul.f32 %v5798_v30, %v11699_v0 }
0x1396   :  { %v9193_v50 = vpack.i.bf16 %v5815_v34, %v5814_v43  ;;  %v5787_v37 = vpop.permute.xlu1 %5786  ;;  %v5789_v39 = vpop.permute.xlu0 %5788 }
0x1397   :  { %v5799_v56 = vsel %vm14340_vm14, %v5785_v52, %v5787_v37  ;;  %v5800_v53 = vsel %vm14341_vm15, %v5787_v37, %v5789_v39  ;;  %vm14344_vm14 = vmmov %vm14339_vm4  ;;  %vm14345_vm15 = vcmask 64512  }
0x1398   :  { %v5816_v25 = vmul.f32 %v5799_v56, %v11704_v24  ;;  %v5817_v45 = vmul.f32 %v5800_v53, %v11707_v27  ;;  %9194 = vrot.lane.b32.xlu1 %v9193_v50, %s9612_s10 }
0x139a   :  { %v9198_v59 = vpack.i.bf16 %v5817_v45, %v5816_v25  ;;  %v5791_v61 = vpop.permute.xlu1 %5790  ;;  %v5793_v20 = vpop.permute.xlu0 %5792 }
0x139b   :  { %v5801_v49 = vsel %vm14342_vm12, %v5789_v39, %v5791_v61  ;;  %v5802_v30 = vsel %vm14343_vm11, %v5791_v61, %v5793_v20  ;;  %v5883_v61 = vld [vmem:[#allocation7 + $0x60] sm:$0xff]  ;;  %vm14346_vm12 = vmmov %vm14345_vm15 }
0x139c   :  { %v5818_v43 = vmul.f32 %v5801_v49, %v11717_v21  ;;  %v5819_v34 = vmul.f32 %v5802_v30, %v11720_v40  ;;  %9199 = vrot.lane.b32.xlu0 %v9198_v59, %s9612_s10  ;;  %v5892_v59 = vrot.slane %v5883_v61, %v9690_v5  ;;  %v5900_v30 = vrot.slane %v5883_v61, %v9688_v4  ;;  %vm14349_vm11 = vmmov %vm14346_vm12 }
0x139e   :  { %v9203_v52 = vpack.i.bf16 %v5819_v34, %v5818_v43  ;;  %v5795_v37 = vpop.permute.xlu1 %5794  ;;  %v5797_v56 = vpop.permute.xlu0 %5796  ;;  %v5896_v43 = vrot.slane %v5883_v61, %v9684_v2  ;;  %v5908_v34 = vrot.slane %v5883_v61, %v9698_v11 }
0x139f   :  { %v5803_v53 = vsel %vm14339_vm4, %v5793_v20, %v5795_v37  ;;  %v5804_v50 = vsel %vm14344_vm14, %v5795_v37, %v5797_v56  ;;  %v5822_v39 = vmul.f32 %v5797_v56, %v11733_v6  ;;  %v5888_v20 = vrot.slane %v5883_v61, %v9686_v3  ;;  %vm14352_vm4 = vmmov %vm14349_vm11 }
0x13a0   :  { %v5820_v45 = vmul.f32 %v5803_v53, %v11727_v42  ;;  %v5821_v25 = vmul.f32 %v5804_v50, %v11730_v33  ;;  %9204 = vrot.lane.b32.xlu1 %v9203_v52, %s9612_s10  ;;  %v5904_v52 = vrot.slane %v5883_v61, %v9700_v12  ;;  %v5916_v37 = vrot.slane %v5883_v61, %v9706_v15  ;;  %vm14353_vm14 = vmmov %vm14352_vm4 }
0x13a1   :  { %v5912_v56 = vrot.slane %v5883_v61, %v9708_v16 }
0x13a2   :  { %v9208_v49 = vpack.i.bf16 %v5821_v25, %v5820_v45  ;;  %v9181_v25 = vunpack.i.l.bf16 %v12338_v62 }
0x13a4   :  { %5848 = vrot.lane.b32.xlu1 %v5822_v39, %s9612_s10  ;;  %9209 = vrot.lane.b32.xlu0 %v9208_v49, %s9612_s10  ;;  %v9177_v39 = vunpack.i.h.bf16 %v12336_v63  ;;  %v9176_v49 = vunpack.i.l.bf16 %v12336_v63 }
0x13a8   :  { %5919 = vrot.lane.b32.xlu1 %v5892_v59, %s9613_s11  ;;  %5917 = vrot.lane.b32.xlu0 %v5888_v20, %s9613_s11 }
0x13ac   :  { %5923 = vrot.lane.b32.xlu1 %v5900_v30, %s9613_s11  ;;  %5921 = vrot.lane.b32.xlu0 %v5896_v43, %s9613_s11 }
0x13b0   :  { %5927 = vrot.lane.b32.xlu1 %v5908_v34, %s9613_s11  ;;  %5925 = vrot.lane.b32.xlu0 %v5904_v52, %s9613_s11  ;;  %v9186_v34 = vunpack.i.l.bf16 %v12340_v54  ;;  %v5716_v52 = vsel %vm14345_vm15, %v9177_v39, %v9181_v25  ;;  %vm14356_vm15 = vcmask 1039360  }
0x13b2   :  { %v12400_v46 = vsel %vm14349_vm11, %v9186_v34, %v14348_v28 }
0x13b3   :  { %14350 = vst [vmem:[#allocation49_spill] sm:$0xff] %v12400_v46 }
0x13b4   :  { %5931 = vrot.lane.b32.xlu1 %v5916_v37, %s9613_s11  ;;  %5929 = vrot.lane.b32.xlu0 %v5912_v56, %s9613_s11  ;;  %v5715_v56 = vsel %vm14346_vm12, %v9176_v49, %v9177_v39  ;;  %vm14357_vm12 = vmmov %vm14356_vm15 }
0x13b5   :  { %vm14358_vm11 = vmmov %vm14357_vm12 }
0x140a   :  { %v9195_v53 = vpop.permute.xlu1 %9194 }
0x140b   :  { %v9197_v50 = vunpack.i.h.bf16 %v9195_v53  ;;  %v9196_v45 = vunpack.i.l.bf16 %v9195_v53  ;;  %v9182_v53 = vunpack.i.h.bf16 %v12338_v62 }
0x140d   :  { %v5850_v30 = vsel %vm1690_vm13, %v9196_v45, %v9197_v50  ;;  %v5717_v49 = vsel %vm14353_vm14, %v9181_v25, %v9182_v53 }
0x140e   :  { %v9200_v59 = vpop.permute.xlu0 %9199 }
0x140f   :  { %v9201_v20 = vunpack.i.l.bf16 %v9200_v59  ;;  %v9202_v43 = vunpack.i.h.bf16 %v9200_v59  ;;  %v8087_v59 = vpack.c.bf16 %v5850_v30, %v5715_v56 }
0x1411   :  { %v5851_v37 = vsel %vm1690_vm13, %v9197_v50, %v9201_v20  ;;  %v5852_v61 = vsel %vm1690_vm13, %v9201_v20, %v9202_v43  ;;  %v5718_v50 = vsel %vm14352_vm4, %v9182_v53, %v9186_v34  ;;  %vm14359_vm4 = vmmov %vm14358_vm11 }
0x1412   :  { %v12392_v55 = vpop.permute.xlu1 %9204  ;;  %v8088_v63 = vpack.c.bf16 %v5851_v37, %v5716_v52  ;;  %v8089_v37 = vpack.c.bf16 %v5852_v61, %v5717_v49  ;;  %vm14360_vm14 = vmmov %vm14359_vm4 }
0x1413   :  { %14347 = vst [vmem:[#allocation59_spill] sm:$0xff] %v12392_v55  ;;  %v13984_v26 = vunpack.i.h.bf16 %v12392_v55  ;;  %v9206_v45 = vunpack.i.l.bf16 %v12392_v55  ;;  %v12682_v55 = vld [vmem:[#allocation7 + $0xd0] sm:$0xff] }
0x1414   :  { %8208 = vmatprep.subr.bf16.mxu0 %v8088_v63  ;;  %14376 = vst [vmem:[#allocation64_spill] sm:$0xff] %v12682_v55  ;;  %v7721_v31 = vrot.slane %v12682_v55, %v9688_v4 }
0x1415   :  { %v12405_v62 = vsel %vm1690_vm13, %v9206_v45, %v13984_v26  ;;  %8209 = vmatpush1.bf16.msra.mxu0 %v8087_v59  ;;  %v5853_v39 = vsel %vm1690_vm13, %v9202_v43, %v9206_v45 }
0x1416   :  { %14351 = vst [vmem:[#allocation66_spill] sm:$0xff] %v12405_v62  ;;  %v12410_v30 = vpop.permute.xlu1 %5848  ;;  %v12412_v20 = vpop.permute.xlu0 %9209  ;;  %v8090_v52 = vpack.c.bf16 %v5853_v39, %v5718_v50 }
0x1417   :  { %14354 = vst [vmem:[#allocation56_spill] sm:$0xff] %v12410_v30  ;;  %14355 = vst [vmem:[#allocation63_spill] sm:$0xff] %v12412_v20 }
0x1418   :  { %8249 = vmatprep.subr.bf16.mxu1 %v8090_v52 }
0x1419   :  { %8250 = vmatpush1.bf16.msra.mxu1 %v8089_v37 }
0x141a   :  { %v5920_v56 = vpop.permute.xlu1 %5919  ;;  %v5918_v63 = vpop.permute.xlu0 %5917 }
0x141b   :  { %v5933_v59 = vsel %vm14356_vm15, %v5918_v63, %v5920_v56  ;;  %v5949_v34 = vmul.f32 0.0, %v5918_v63  ;;  %vm14361_vm15 = vmmov %vm14359_vm4 }
0x141c   :  { %v5950_v43 = vmul.f32 %v5933_v59, %v11699_v0 }
0x141e   :  { %v9213_v45 = vpack.i.bf16 %v5950_v43, %v5949_v34  ;;  %v5924_v25 = vpop.permute.xlu1 %5923  ;;  %v5922_v53 = vpop.permute.xlu0 %5921 }
0x141f   :  { %v5934_v26 = vsel %vm14357_vm12, %v5920_v56, %v5922_v53  ;;  %v5935_v50 = vsel %vm14358_vm11, %v5922_v53, %v5924_v25  ;;  %vm14362_vm12 = vmmov %vm14359_vm4  ;;  %vm14363_vm11 = vcmask 7168  }
0x1420   :  { %v5951_v39 = vmul.f32 %v5934_v26, %v11704_v24  ;;  %v5952_v61 = vmul.f32 %v5935_v50, %v11707_v27  ;;  %9214 = vrot.lane.b32.xlu0 %v9213_v45, %s9614_s12 }
0x1422   :  { %v9218_v49 = vpack.i.bf16 %v5952_v61, %v5951_v39  ;;  %v5928_v52 = vpop.permute.xlu1 %5927  ;;  %v5926_v37 = vpop.permute.xlu0 %5925 }
0x1423   :  { %v5936_v63 = vsel %vm14359_vm4, %v5924_v25, %v5926_v37  ;;  %v5937_v59 = vsel %vm14360_vm14, %v5926_v37, %v5928_v52  ;;  %v6084_v25 = vld [vmem:[#allocation7 + $0x70] sm:$0xff]  ;;  %vm14364_vm4 = vmmov %vm14363_vm11 }
0x1424   :  { %v5953_v34 = vmul.f32 %v5936_v63, %v11717_v21  ;;  %v5954_v43 = vmul.f32 %v5937_v59, %v11720_v40  ;;  %9219 = vrot.lane.b32.xlu1 %v9218_v49, %s9614_s12  ;;  %v6093_v49 = vrot.slane %v6084_v25, %v9690_v5  ;;  %v6101_v59 = vrot.slane %v6084_v25, %v9688_v4  ;;  %vm14366_vm14 = vmmov %vm14364_vm4 }
0x1426   :  { %v9223_v56 = vpack.i.bf16 %v5954_v43, %v5953_v34  ;;  %v5932_v53 = vpop.permute.xlu1 %5931  ;;  %v5930_v26 = vpop.permute.xlu0 %5929  ;;  %v6097_v34 = vrot.slane %v6084_v25, %v9684_v2  ;;  %v6109_v43 = vrot.slane %v6084_v25, %v9698_v11 }
0x1427   :  { %v5938_v50 = vsel %vm14361_vm15, %v5928_v52, %v5930_v26  ;;  %v5939_v45 = vsel %vm14362_vm12, %v5930_v26, %v5932_v53  ;;  %v5957_v37 = vmul.f32 %v5932_v53, %v11733_v6  ;;  %v6089_v52 = vrot.slane %v6084_v25, %v9686_v3  ;;  %vm14368_vm15 = vmmov %vm14364_vm4 }
0x1428   :  { %v5955_v39 = vmul.f32 %v5938_v50, %v11727_v42  ;;  %v5956_v61 = vmul.f32 %v5939_v45, %v11730_v33  ;;  %9224 = vrot.lane.b32.xlu0 %v9223_v56, %s9614_s12  ;;  %v6105_v56 = vrot.slane %v6084_v25, %v9700_v12  ;;  %v6117_v53 = vrot.slane %v6084_v25, %v9706_v15  ;;  %v6017_v50 = vld [vmem:[#allocation7 + $0x68] sm:$0xff]  ;;  %vm14370_vm12 = vmmov %vm14364_vm4 }
0x1429   :  { %v6113_v26 = vrot.slane %v6084_v25, %v9708_v16 }
0x142a   :  { %v9228_v63 = vpack.i.bf16 %v5956_v61, %v5955_v39 }
0x142c   :  { %5983 = vrot.lane.b32.xlu0 %v5957_v37, %s9614_s12  ;;  %9229 = vrot.lane.b32.xlu1 %v9228_v63, %s9614_s12  ;;  %v6026_v37 = vrot.slane %v6017_v50, %v9690_v5  ;;  %v6022_v63 = vrot.slane %v6017_v50, %v9686_v3 }
0x142e   :  { %v6060_v25 = vmul.f32 %v6026_v37, %v11704_v24 }
0x1430   :  { %6120 = vrot.lane.b32.xlu0 %v6093_v49, %s9614_s12  ;;  %6118 = vrot.lane.b32.xlu1 %v6089_v52, %s9614_s12 }
0x1434   :  { %6124 = vrot.lane.b32.xlu0 %v6101_v59, %s9614_s12  ;;  %6122 = vrot.lane.b32.xlu1 %v6097_v34, %s9614_s12  ;;  %v6034_v59 = vrot.slane %v6017_v50, %v9688_v4 }
0x1436   :  { %v6062_v37 = vmul.f32 %v6034_v59, %v11717_v21 }
0x1438   :  { %6128 = vrot.lane.b32.xlu0 %v6109_v43, %s9614_s12  ;;  %6126 = vrot.lane.b32.xlu1 %v6105_v56, %s9614_s12  ;;  %v6038_v56 = vrot.slane %v6017_v50, %v9700_v12 }
0x143c   :  { %6132 = vrot.lane.b32.xlu0 %v6117_v53, %s9614_s12  ;;  %6130 = vrot.lane.b32.xlu1 %v6113_v26, %s9614_s12  ;;  %v6059_v26 = vmul.f32 %v6022_v63, %v11699_v0 }
0x1492   :  { %v9215_v45 = vpop.permute.xlu0 %9214 }
0x1493   :  { %v9217_v39 = vunpack.i.h.bf16 %v9215_v45  ;;  %v9216_v61 = vunpack.i.l.bf16 %v9215_v45  ;;  %v6030_v45 = vrot.slane %v6017_v50, %v9684_v2 }
0x1495   :  { %v5985_v34 = vsel %vm14363_vm11, %v9216_v61, %v9217_v39  ;;  %v6061_v63 = vmul.f32 %v6030_v45, %v11707_v27  ;;  %vm14373_vm11 = vmmov %vm14364_vm4 }
0x1496   :  { %v9220_v49 = vpop.permute.xlu1 %9219  ;;  %v8095_v54 = vpack.c.bf16 %v6059_v26, %v5985_v34 }
0x1497   :  { %v9221_v52 = vunpack.i.l.bf16 %v9220_v49  ;;  %v9222_v43 = vunpack.i.h.bf16 %v9220_v49  ;;  %v12468_v49 = vmul.f32 %v6038_v56, %v11720_v40 }
0x1499   :  { %v5986_v53 = vsel %vm14364_vm4, %v9217_v39, %v9221_v52  ;;  %v5987_v61 = vsel %vm14366_vm14, %v9221_v52, %v9222_v43  ;;  %14367 = vst [vmem:[#allocation53_spill] sm:$0xff] %v12468_v49  ;;  %vm14374_vm14 = vmmov %vm14364_vm4  ;;  %v12626_v52 = vld [vmem:[#allocation7 + $0xb8] sm:$0xff]  ;;  %v12660_v49 = vld [vmem:[#allocation7 + $0xc8] sm:$0xff] }
0x149a   :  { %v12461_v28 = vpop.permute.xlu0 %9224  ;;  %v8096_v46 = vpack.c.bf16 %v6060_v25, %v5986_v53  ;;  %v8097_v59 = vpack.c.bf16 %v6061_v63, %v5987_v61 }
0x149b   :  { %14365 = vst [vmem:[#allocation78_spill] sm:$0xff] %v12461_v28  ;;  %v13988_v62 = vunpack.i.h.bf16 %v12461_v28  ;;  %v9226_v30 = vunpack.i.l.bf16 %v12461_v28  ;;  %v7578_v28 = vrot.slane %v12660_v49, %v9690_v5 }
0x149c   :  { %8210 = vmatprep.subr.bf16.mxu0 %v8096_v46 }
0x149d   :  { %v12473_v50 = vsel %vm14368_vm15, %v9226_v30, %v13988_v62  ;;  %8211 = vmatpush1.bf16.msra.mxu0 %v8095_v54  ;;  %v5988_v39 = vsel %vm14370_vm12, %v9222_v43, %v9226_v30  ;;  %v12486_v43 = vld [vmem:[#allocation7 + $0x78] sm:$0xff]  ;;  %vm14379_vm15 = vmmov %vm14364_vm4 }
0x149e   :  { %14369 = vst [vmem:[#allocation52_spill] sm:$0xff] %v12473_v50  ;;  %v12477_v25 = vpop.permute.xlu1 %9229  ;;  %v12479_v34 = vpop.permute.xlu0 %5983  ;;  %v8098_v46 = vpack.c.bf16 %v6062_v37, %v5988_v39  ;;  %v12646_v50 = vld [vmem:[#allocation7 + $0xc0] sm:$0xff]  ;;  %vm14380_vm12 = vmmov %vm14364_vm4 }
0x149f   :  { %14371 = vst [vmem:[#allocation67_spill] sm:$0xff] %v12477_v25  ;;  %14372 = vst [vmem:[#allocation57_spill] sm:$0xff] %v12479_v34  ;;  %v7713_v25 = vrot.slane %v12682_v55, %v9690_v5 }
0x14a0   :  { %8251 = vmatprep.subr.bf16.mxu1 %v8098_v46  ;;  %v6224_v46 = vrot.slane %v12486_v43, %v9686_v3 }
0x14a1   :  { %8252 = vmatpush1.bf16.msra.mxu1 %v8097_v59 }
0x14a2   :  { %v6119_v56 = vpop.permute.xlu1 %6118  ;;  %v6121_v53 = vpop.permute.xlu0 %6120 }
0x14a3   :  { %v6150_v26 = vmul.f32 %v6119_v56, %v11699_v0  ;;  %v6134_v54 = vsel %vm14373_vm11, %v6119_v56, %v6121_v53  ;;  %v6232_v56 = vrot.slane %v12486_v43, %v9684_v2  ;;  %vm14381_vm11 = vcmask 64512  }
0x14a4   :  { %v6151_v30 = vmul.f32 %v6134_v54, %v11704_v24  ;;  %v12510_v54 = vld [vmem:[#allocation7 + $0x80] sm:$0xff] }
0x14a6   :  { %v9233_v45 = vpack.i.bf16 %v6151_v30, %v6150_v26  ;;  %v6123_v62 = vpop.permute.xlu1 %6122  ;;  %v12488_v34 = vpop.permute.xlu0 %6124  ;;  %v6236_v26 = vrot.slane %v12486_v43, %v9688_v4  ;;  %v6363_v30 = vrot.slane %v12510_v54, %v9690_v5 }
0x14a7   :  { %v6135_v37 = vsel %vm14364_vm4, %v6121_v53, %v6123_v62  ;;  %v6136_v61 = vsel %vm14374_vm14, %v6123_v62, %v12488_v34  ;;  %v6228_v62 = vrot.slane %v12486_v43, %v9690_v5  ;;  %v6240_v53 = vrot.slane %v12486_v43, %v9700_v12  ;;  %vm14382_vm4 = vmmov %vm14381_vm11 }
0x14a8   :  { %v6152_v39 = vmul.f32 %v6135_v37, %v11707_v27  ;;  %v6153_v63 = vmul.f32 %v6136_v61, %v11717_v21  ;;  %9234 = vrot.lane.b32.xlu1 %v9233_v45, %s9613_s11  ;;  %v6359_v45 = vrot.slane %v12510_v54, %v9686_v3  ;;  %v6371_v37 = vrot.slane %v12510_v54, %v9688_v4  ;;  %vm14407_vm14 = vmmov %vm14382_vm4 }
0x14a9   :  { %v6367_v61 = vrot.slane %v12510_v54, %v9684_v2 }
0x14aa   :  { %v9238_v59 = vpack.i.bf16 %v6153_v63, %v6152_v39  ;;  %v12524_v39 = vld [vmem:[#allocation7 + $0x88] sm:$0xff] }
0x14ab   :  { %v6494_v63 = vrot.slane %v12524_v39, %v9686_v3  ;;  %v6518_v48 = vrot.slane %v12524_v39, %v9708_v16 }
0x14ac   :  { %6253 = vrot.lane.b32.xlu1 %v6224_v46, %s9612_s10  ;;  %9239 = vrot.lane.b32.xlu0 %v9238_v59, %s9613_s11  ;;  %v6375_v46 = vrot.slane %v12510_v54, %v9700_v12  ;;  %v6502_v59 = vrot.slane %v12524_v39, %v9684_v2 }
0x14b0   :  { %6257 = vrot.lane.b32.xlu1 %v6232_v56, %s9612_s10  ;;  %6255 = vrot.lane.b32.xlu0 %v6228_v62, %s9612_s10  ;;  %v6498_v56 = vrot.slane %v12524_v39, %v9690_v5  ;;  %v6510_v62 = vrot.slane %v12524_v39, %v9700_v12 }
0x14b4   :  { %6261 = vrot.lane.b32.xlu1 %v6240_v53, %s9612_s10  ;;  %6259 = vrot.lane.b32.xlu0 %v6236_v26, %s9612_s10  ;;  %v6506_v53 = vrot.slane %v12524_v39, %v9688_v4  ;;  %v12544_v26 = vld [vmem:[#allocation7 + $0x90] sm:$0xff] }
0x14b8   :  { %6390 = vrot.lane.b32.xlu1 %v6363_v30, %s9598_s19  ;;  %6388 = vrot.lane.b32.xlu0 %v6359_v45, %s9598_s19  ;;  %v6633_v30 = vrot.slane %v12544_v26, %v9690_v5  ;;  %v6629_v45 = vrot.slane %v12544_v26, %v9686_v3 }
0x14bc   :  { %6394 = vrot.lane.b32.xlu1 %v6371_v37, %s9598_s19  ;;  %6392 = vrot.lane.b32.xlu0 %v6367_v61, %s9598_s19  ;;  %v6641_v37 = vrot.slane %v12544_v26, %v9688_v4  ;;  %v6637_v61 = vrot.slane %v12544_v26, %v9684_v2 }
0x14c0   :  { %6523 = vrot.lane.b32.xlu1 %v6494_v63, %s9609_s7  ;;  %6396 = vrot.lane.b32.xlu0 %v6375_v46, %s9598_s19  ;;  %v12558_v63 = vld [vmem:[#allocation7 + $0x98] sm:$0xff] }
0x14c1   :  { %v6764_v46 = vrot.slane %v12558_v63, %v9686_v3 }
0x14c4   :  { %6527 = vrot.lane.b32.xlu1 %v6502_v59, %s9609_s7  ;;  %6525 = vrot.lane.b32.xlu0 %v6498_v56, %s9609_s7  ;;  %v6645_v59 = vrot.slane %v12544_v26, %v9700_v12  ;;  %v6772_v56 = vrot.slane %v12558_v63, %v9684_v2 }
0x14c8   :  { %6531 = vrot.lane.b32.xlu1 %v6510_v62, %s9609_s7  ;;  %6529 = vrot.lane.b32.xlu0 %v6506_v53, %s9609_s7  ;;  %v6768_v62 = vrot.slane %v12558_v63, %v9690_v5  ;;  %v6780_v53 = vrot.slane %v12558_v63, %v9700_v12 }
0x14cc   :  { %6660 = vrot.lane.b32.xlu1 %v6633_v30, %s9599_s5  ;;  %6658 = vrot.lane.b32.xlu0 %v6629_v45, %s9599_s5  ;;  %v6776_v30 = vrot.slane %v12558_v63, %v9688_v4  ;;  %v12578_v45 = vld [vmem:[#allocation7 + $0xa0] sm:$0xff] }
0x14d0   :  { %6664 = vrot.lane.b32.xlu1 %v6641_v37, %s9599_s5  ;;  %6662 = vrot.lane.b32.xlu0 %v6637_v61, %s9599_s5  ;;  %v6903_v37 = vrot.slane %v12578_v45, %v9690_v5  ;;  %v6899_v61 = vrot.slane %v12578_v45, %v9686_v3 }
0x14d4   :  { %6793 = vrot.lane.b32.xlu1 %v6764_v46, %s9600_s22  ;;  %6666 = vrot.lane.b32.xlu0 %v6645_v59, %s9599_s5  ;;  %v6911_v46 = vrot.slane %v12578_v45, %v9688_v4  ;;  %v6907_v59 = vrot.slane %v12578_v45, %v9684_v2 }
0x14d8   :  { %6797 = vrot.lane.b32.xlu1 %v6772_v56, %s9600_s22  ;;  %6795 = vrot.lane.b32.xlu0 %v6768_v62, %s9600_s22  ;;  %v12592_v56 = vld [vmem:[#allocation7 + $0xa8] sm:$0xff] }
0x14d9   :  { %v7034_v62 = vrot.slane %v12592_v56, %v9686_v3 }
0x14dc   :  { %6801 = vrot.lane.b32.xlu1 %v6780_v53, %s9600_s22  ;;  %6799 = vrot.lane.b32.xlu0 %v6776_v30, %s9600_s22  ;;  %v6915_v53 = vrot.slane %v12578_v45, %v9700_v12  ;;  %v7042_v30 = vrot.slane %v12592_v56, %v9684_v2 }
0x14e0   :  { %6930 = vrot.lane.b32.xlu1 %v6903_v37, %s9601_s23  ;;  %6928 = vrot.lane.b32.xlu0 %v6899_v61, %s9601_s23  ;;  %v7038_v37 = vrot.slane %v12592_v56, %v9690_v5  ;;  %v7050_v61 = vrot.slane %v12592_v56, %v9700_v12 }
0x14e4   :  { %6934 = vrot.lane.b32.xlu1 %v6911_v46, %s9601_s23  ;;  %6932 = vrot.lane.b32.xlu0 %v6907_v59, %s9601_s23  ;;  %v7046_v46 = vrot.slane %v12592_v56, %v9688_v4  ;;  %v12612_v59 = vld [vmem:[#allocation7 + $0xb0] sm:$0xff] }
0x14e8   :  { %7063 = vrot.lane.b32.xlu1 %v7034_v62, %s9602_s24  ;;  %6936 = vrot.lane.b32.xlu0 %v6915_v53, %s9601_s23  ;;  %v7173_v62 = vrot.slane %v12612_v59, %v9690_v5  ;;  %v7169_v53 = vrot.slane %v12612_v59, %v9686_v3 }
0x14ec   :  { %7067 = vrot.lane.b32.xlu1 %v7042_v30, %s9602_s24  ;;  %7065 = vrot.lane.b32.xlu0 %v7038_v37, %s9602_s24  ;;  %v7181_v30 = vrot.slane %v12612_v59, %v9688_v4  ;;  %v7177_v37 = vrot.slane %v12612_v59, %v9684_v2 }
0x14f0   :  { %7071 = vrot.lane.b32.xlu1 %v7050_v61, %s9602_s24  ;;  %7069 = vrot.lane.b32.xlu0 %v7046_v46, %s9602_s24  ;;  %v7304_v61 = vrot.slane %v12626_v52, %v9686_v3  ;;  %v7185_v46 = vrot.slane %v12612_v59, %v9700_v12 }
0x14f4   :  { %7200 = vrot.lane.b32.xlu1 %v7173_v62, %s9603_s25  ;;  %7198 = vrot.lane.b32.xlu0 %v7169_v53, %s9603_s25  ;;  %v7312_v62 = vrot.slane %v12626_v52, %v9684_v2  ;;  %v7308_v53 = vrot.slane %v12626_v52, %v9690_v5 }
0x14f8   :  { %7204 = vrot.lane.b32.xlu1 %v7181_v30, %s9603_s25  ;;  %7202 = vrot.lane.b32.xlu0 %v7177_v37, %s9603_s25  ;;  %v7320_v30 = vrot.slane %v12626_v52, %v9700_v12  ;;  %v7316_v37 = vrot.slane %v12626_v52, %v9688_v4 }
0x14fc   :  { %7333 = vrot.lane.b32.xlu1 %v7304_v61, %s9604_s26  ;;  %7206 = vrot.lane.b32.xlu0 %v7185_v46, %s9603_s25  ;;  %v7443_v61 = vrot.slane %v12646_v50, %v9690_v5  ;;  %v7439_v46 = vrot.slane %v12646_v50, %v9686_v3 }
0x1500   :  { %7337 = vrot.lane.b32.xlu1 %v7312_v62, %s9604_s26  ;;  %7335 = vrot.lane.b32.xlu0 %v7308_v53, %s9604_s26  ;;  %v7451_v62 = vrot.slane %v12646_v50, %v9688_v4  ;;  %v7447_v53 = vrot.slane %v12646_v50, %v9684_v2 }
0x1504   :  { %7341 = vrot.lane.b32.xlu1 %v7320_v30, %s9604_s26  ;;  %7339 = vrot.lane.b32.xlu0 %v7316_v37, %s9604_s26  ;;  %v7574_v30 = vrot.slane %v12660_v49, %v9686_v3  ;;  %v7455_v37 = vrot.slane %v12646_v50, %v9700_v12 }
0x1508   :  { %7470 = vrot.lane.b32.xlu1 %v7443_v61, %s9607_s29  ;;  %7468 = vrot.lane.b32.xlu0 %v7439_v46, %s9607_s29  ;;  %v6127_v61 = vpop.permute.xlu1 %6126  ;;  %v7582_v46 = vrot.slane %v12660_v49, %v9684_v2 }
0x1509   :  { %v6137_v7 = vsel %vm14379_vm15, %v12488_v34, %v6127_v61  ;;  %vm14408_vm15 = vmmov %vm14382_vm4 }
0x150a   :  { %v6154_v34 = vmul.f32 %v6137_v7, %v11720_v40 }
0x150c   :  { %7474 = vrot.lane.b32.xlu1 %v7451_v62, %s9607_s29  ;;  %7472 = vrot.lane.b32.xlu0 %v7447_v53, %s9607_s29  ;;  %v12674_v62 = vpop.permute.xlu0 %6128  ;;  %v7590_v53 = vrot.slane %v12660_v49, %v9700_v12 }
0x150d   :  { %14375 = vst [vmem:[#allocation74_spill] sm:$0xff] %v12674_v62  ;;  %v6138_v44 = vsel %vm14380_vm12, %v6127_v61, %v12674_v62  ;;  %vm14410_vm12 = vmmov %vm14382_vm4 }
0x150e   :  { %v6155_v32 = vmul.f32 %v6138_v44, %v11727_v42 }
0x1510   :  { %7603 = vrot.lane.b32.xlu1 %v7574_v30, %s9606_s28  ;;  %7476 = vrot.lane.b32.xlu0 %v7455_v37, %s9607_s29  ;;  %v7586_v30 = vrot.slane %v12660_v49, %v9688_v4  ;;  %v12684_v37 = vpop.permute.xlu1 %6130  ;;  %v6248_v4 = vrot.slane %v12486_v43, %v9708_v16  ;;  %v9243_v7 = vpack.i.bf16 %v6155_v32, %v6154_v34 }
0x1511   :  { %14377 = vst [vmem:[#allocation71_spill] sm:$0xff] %v12684_v37 }
0x1514   :  { %7607 = vrot.lane.b32.xlu1 %v7582_v46, %s9606_s28  ;;  %7605 = vrot.lane.b32.xlu0 %v7578_v28, %s9606_s28  ;;  %v7709_v28 = vrot.slane %v12682_v55, %v9686_v3  ;;  %v12692_v46 = vpop.permute.xlu0 %6132  ;;  %v6244_v3 = vrot.slane %v12486_v43, %v9698_v11 }
0x1515   :  { %14378 = vst [vmem:[#allocation61_spill] sm:$0xff] %v12692_v46 }
0x1518   :  { %7611 = vrot.lane.b32.xlu1 %v7590_v53, %s9606_s28  ;;  %7609 = vrot.lane.b32.xlu0 %v7586_v30, %s9606_s28  ;;  %v7717_v53 = vrot.slane %v12682_v55, %v9684_v2  ;;  %v6252_v2 = vrot.slane %v12486_v43, %v9706_v15  ;;  %v6514_v43 = vrot.slane %v12524_v39, %v9698_v11 }
0x151a   :  { %v12694_v20 = vpop.permute.xlu1 %9234 }
0x151c   :  { %7740 = vrot.lane.b32.xlu1 %v7713_v25, %s9605_s27  ;;  %7738 = vrot.lane.b32.xlu0 %v7709_v28, %s9605_s27  ;;  %v7725_v25 = vrot.slane %v12682_v55, %v9700_v12  ;;  %v6383_v12 = vrot.slane %v12510_v54, %v9708_v16 }
0x151e   :  { %v12702_v30 = vpop.permute.xlu1 %6253  ;;  %v12704_v5 = vpop.permute.xlu0 %9239 }
0x1520   :  { %7744 = vrot.lane.b32.xlu1 %v7721_v31, %s9605_s27  ;;  %7742 = vrot.lane.b32.xlu0 %v7717_v53, %s9605_s27 }
0x1522   :  { %v6258_v28 = vpop.permute.xlu1 %6257  ;;  %v6256_v23 = vpop.permute.xlu0 %6255 }
0x1524   :  { %6263 = vrot.lane.b32.xlu1 %v6244_v3, %s9612_s10  ;;  %7746 = vrot.lane.b32.xlu0 %v7725_v25, %s9605_s27  ;;  %v6379_v3 = vrot.slane %v12510_v54, %v9698_v11 }
0x1526   :  { %v12718_v31 = vpop.permute.xlu1 %6261  ;;  %v6260_v53 = vpop.permute.xlu0 %6259 }
0x1528   :  { %6267 = vrot.lane.b32.xlu1 %v6252_v2, %s9612_s10  ;;  %6265 = vrot.lane.b32.xlu0 %v6248_v4, %s9612_s10  ;;  %v6387_v2 = vrot.slane %v12510_v54, %v9706_v15  ;;  %v6522_v54 = vrot.slane %v12524_v39, %v9706_v15 }
0x152a   :  { %v6391_v25 = vpop.permute.xlu1 %6390  ;;  %v12726_v38 = vpop.permute.xlu0 %6388 }
0x152c   :  { %6400 = vrot.lane.b32.xlu1 %v6383_v12, %s9598_s19  ;;  %6398 = vrot.lane.b32.xlu0 %v6379_v3, %s9598_s19  ;;  %v6269_v12 = vsel %vm1690_vm13, %v12702_v30, %v6256_v23  ;;  %v6270_v3 = vsel %vm1690_vm13, %v6256_v23, %v6258_v28 }
0x152d   :  { %v6286_v61 = vmul.f32 %v6269_v12, %v11704_v24  ;;  %v6287_v8 = vmul.f32 %v6270_v3, %v11707_v27 }
0x152e   :  { %v12734_v4 = vpop.permute.xlu1 %6394  ;;  %v12736_v1 = vpop.permute.xlu0 %6392 }
0x152f   :  { %v9248_v39 = vpack.i.bf16 %v6287_v8, %v6286_v61 }
0x1530   :  { %6533 = vrot.lane.b32.xlu1 %v6514_v43, %s9609_s7  ;;  %6402 = vrot.lane.b32.xlu0 %v6387_v2, %s9598_s19  ;;  %v6271_v43 = vsel %vm1690_vm13, %v6258_v28, %v6260_v53  ;;  %v6272_v2 = vsel %vm1690_vm13, %v6260_v53, %v12718_v31 }
0x1531   :  { %v6288_v44 = vmul.f32 %v6271_v43, %v11717_v21  ;;  %v6289_v12 = vmul.f32 %v6272_v2, %v11720_v40  ;;  %v6405_v43 = vsel %vm14381_vm11, %v6391_v25, %v12736_v1  ;;  %v6788_v2 = vrot.slane %v12558_v63, %v9708_v16  ;;  %vm14411_vm11 = vmmov %vm14382_vm4 }
0x1532   :  { %v12755_v22 = vpop.permute.xlu1 %6523  ;;  %v12757_v23 = vpop.permute.xlu0 %6396 }
0x1533   :  { %v9253_v28 = vpack.i.bf16 %v6289_v12, %v6288_v44 }
0x1534   :  { %6537 = vrot.lane.b32.xlu1 %v6522_v54, %s9609_s7  ;;  %6535 = vrot.lane.b32.xlu0 %v6518_v48, %s9609_s7  ;;  %v6649_v48 = vrot.slane %v12544_v26, %v9698_v11  ;;  %v6657_v54 = vrot.slane %v12544_v26, %v9706_v15 }
0x1536   :  { %v12766_v3 = vpop.permute.xlu1 %6527  ;;  %v6526_v13 = vpop.permute.xlu0 %6525 }
0x1538   :  { %9244 = vrot.lane.b32.xlu0 %v9243_v7, %s9613_s11  ;;  %9249 = vrot.lane.b32.xlu1 %v9248_v39, %s9611_s9  ;;  %v6404_v7 = vsel %vm14382_vm4, %v12726_v38, %v6391_v25  ;;  %v6422_v39 = vmul.f32 %v6405_v43, %v11707_v27 }
0x153a   :  { %v12770_v41 = vpop.permute.xlu1 %6531  ;;  %v12772_v53 = vpop.permute.xlu0 %6529 }
0x153c   :  { %9254 = vrot.lane.b32.xlu0 %v9253_v28, %s9611_s9  ;;  %v6539_v28 = vsel %vm1414_vm10, %v12755_v22, %v6526_v13 }
0x153d   :  { %v6556_v9 = vmul.f32 %v6539_v28, %v11704_v24 }
0x153e   :  { %v12777_v8 = vpop.permute.xlu1 %6660  ;;  %v12779_v32 = vpop.permute.xlu0 %6658 }
0x1540   :  { %6668 = vrot.lane.b32.xlu0 %v6649_v48, %s9599_s5  ;;  %v6540_v48 = vsel %vm1414_vm10, %v6526_v13, %v12766_v3 }
0x1541   :  { %v6557_v25 = vmul.f32 %v6540_v48, %v11707_v27 }
0x1542   :  { %v12784_v34 = vpop.permute.xlu1 %6664  ;;  %v12786_v61 = vpop.permute.xlu0 %6662 }
0x1543   :  { %v9273_v58 = vpack.i.bf16 %v6557_v25, %v6556_v9 }
0x1544   :  { %6672 = vrot.lane.b32.xlu0 %v6657_v54, %s9599_s5  ;;  %v6421_v54 = vmul.f32 %v6404_v7, %v11704_v24 }
0x1546   :  { %v12796_v44 = vpop.permute.xlu1 %6793  ;;  %v12798_v12 = vpop.permute.xlu0 %6666  ;;  %v9263_v18 = vpack.i.bf16 %v6422_v39, %v6421_v54 }
0x1548   :  { %6805 = vrot.lane.b32.xlu0 %v6788_v2, %s9600_s22 }
0x154a   :  { %v12808_v43 = vpop.permute.xlu1 %6797  ;;  %v12810_v10 = vpop.permute.xlu0 %6795 }
0x154c   :  { %9264 = vrot.lane.b32.xlu0 %v9263_v18, %s9610_s8 }
0x154e   :  { %v12813_v17 = vpop.permute.xlu1 %6801  ;;  %v12815_v14 = vpop.permute.xlu0 %6799 }
0x1550   :  { %9274 = vrot.lane.b32.xlu0 %v9273_v58, %s9608_s30 }
0x1552   :  { %v12818_v13 = vpop.permute.xlu1 %6930  ;;  %v12820_v2 = vpop.permute.xlu0 %6928 }
0x1556   :  { %v12822_v7 = vpop.permute.xlu1 %6934  ;;  %v12824_v39 = vpop.permute.xlu0 %6932 }
0x155a   :  { %v12826_v28 = vpop.permute.xlu1 %7063  ;;  %v12828_v48 = vpop.permute.xlu0 %6936 }
0x155e   :  { %v12830_v18 = vpop.permute.xlu1 %7067  ;;  %v12832_v9 = vpop.permute.xlu0 %7065 }
0x1562   :  { %v12834_v54 = vpop.permute.xlu1 %7071  ;;  %v12836_v25 = vpop.permute.xlu0 %7069 }
0x1566   :  { %v12838_v58 = vpop.permute.xlu1 %7200  ;;  %v12840_v51 = vpop.permute.xlu0 %7198 }
0x1567   :  { %14383 = vst [vmem:[#allocation60_spill] sm:$0xff] %v12840_v51 }
0x156a   :  { %v12842_v19 = vpop.permute.xlu1 %7204  ;;  %v12844_v35 = vpop.permute.xlu0 %7202 }
0x156b   :  { %14384 = vst [vmem:[#allocation75_spill] sm:$0xff] %v12842_v19 }
0x156e   :  { %v12846_v36 = vpop.permute.xlu1 %7333  ;;  %v12848_v29 = vpop.permute.xlu0 %7206 }
0x156f   :  { %14385 = vst [vmem:[#allocation65_spill] sm:$0xff] %v12846_v36  ;;  %14386 = vst [vmem:[#allocation81_spill] sm:$0xff] %v12848_v29 }
0x1572   :  { %v12850_v57 = vpop.permute.xlu1 %7337  ;;  %v12852_v60 = vpop.permute.xlu0 %7335 }
0x1573   :  { %14387 = vst [vmem:[#allocation72_spill] sm:$0xff] %v12850_v57  ;;  %14388 = vst [vmem:[#allocation79_spill] sm:$0xff] %v12852_v60 }
0x1576   :  { %v12854_v47 = vpop.permute.xlu1 %7341  ;;  %v12856_v46 = vpop.permute.xlu0 %7339 }
0x1577   :  { %14389 = vst [vmem:[#allocation69_spill] sm:$0xff] %v12854_v47  ;;  %14390 = vst [vmem:[#allocation68_spill] sm:$0xff] %v12856_v46 }
0x157a   :  { %v12858_v62 = vpop.permute.xlu1 %7470  ;;  %v12860_v37 = vpop.permute.xlu0 %7468 }
0x157b   :  { %14391 = vst [vmem:[#allocation73_spill] sm:$0xff] %v12858_v62  ;;  %14392 = vst [vmem:[#allocation77_spill] sm:$0xff] %v12860_v37 }
0x157e   :  { %v12862_v55 = vpop.permute.xlu1 %7474  ;;  %v12864_v19 = vpop.permute.xlu0 %7472 }
0x157f   :  { %14393 = vst [vmem:[#allocation76_spill] sm:$0xff] %v12862_v55  ;;  %14394 = vst [vmem:[#allocation80_spill] sm:$0xff] %v12864_v19 }
0x1582   :  { %v12866_v51 = vpop.permute.xlu1 %7603  ;;  %v12868_v36 = vpop.permute.xlu0 %7476 }
0x1583   :  { %14395 = vst [vmem:[#allocation82_spill] sm:$0xff] %v12866_v51 }
0x1586   :  { %v12870_v29 = vpop.permute.xlu1 %7607  ;;  %v12872_v57 = vpop.permute.xlu0 %7605 }
0x1587   :  { %14396 = vst [vmem:[#allocation83_spill] sm:$0xff] %v12870_v29  ;;  %14397 = vst [vmem:[#allocation84_spill] sm:$0xff] %v12872_v57 }
0x158a   :  { %v12874_v60 = vpop.permute.xlu1 %7611  ;;  %v12876_v47 = vpop.permute.xlu0 %7609 }
0x158b   :  { %14398 = vst [vmem:[#allocation85_spill] sm:$0xff] %v12874_v60  ;;  %14399 = vst [vmem:[#allocation86_spill] sm:$0xff] %v12876_v47  ;;  %v6285_v60 = vmul.f32 %v12702_v30, %v11699_v0 }
0x158e   :  { %v12878_v46 = vpop.permute.xlu1 %7740  ;;  %v12880_v62 = vpop.permute.xlu0 %7738 }
0x158f   :  { %14400 = vst [vmem:[#allocation87_spill] sm:$0xff] %v12878_v46  ;;  %14401 = vst [vmem:[#allocation88_spill] sm:$0xff] %v12880_v62 }
0x1592   :  { %v12882_v37 = vpop.permute.xlu1 %7744  ;;  %v12884_v55 = vpop.permute.xlu0 %7742 }
0x1593   :  { %14402 = vst [vmem:[#allocation89_spill] sm:$0xff] %v12882_v37  ;;  %14403 = vst [vmem:[#allocation90_spill] sm:$0xff] %v12884_v55  ;;  %v6653_v37 = vrot.slane %v12544_v26, %v9708_v16 }
0x1596   :  { %v12886_v19 = vpop.permute.xlu1 %6263  ;;  %v12888_v51 = vpop.permute.xlu0 %7746 }
0x1597   :  { %14404 = vst [vmem:[#allocation91_spill] sm:$0xff] %v12886_v19  ;;  %14405 = vst [vmem:[#allocation92_spill] sm:$0xff] %v12888_v51  ;;  %v6273_v57 = vsel %vm1690_vm13, %v12718_v31, %v12886_v19 }
0x1598   :  { %v6290_v29 = vmul.f32 %v6273_v57, %v11727_v42  ;;  %v6420_v57 = vmul.f32 %v12726_v38, %v11699_v0  ;;  %v6792_v38 = vrot.slane %v12558_v63, %v9706_v15 }
0x159a   :  { %v9258_v46 = vpack.i.bf16 %v6290_v29, %v6285_v60  ;;  %v12896_v47 = vpop.permute.xlu1 %6267  ;;  %v12898_v62 = vpop.permute.xlu0 %6265  ;;  %v6784_v29 = vrot.slane %v12558_v63, %v9698_v11  ;;  %v6542_v63 = vsel %vm1414_vm10, %v12772_v53, %v12770_v41 }
0x159b   :  { %14406 = vst [vmem:[#allocation93_spill] sm:$0xff] %v12896_v47  ;;  %v6407_v47 = vsel %vm14410_vm12, %v12734_v4, %v12757_v23  ;;  %vm14424_vm12 = vcmask 990208  }
0x159c   :  { %9259 = vrot.lane.b32.xlu1 %v9258_v46, %s9611_s9 }
0x159e   :  { %v6401_v51 = vpop.permute.xlu1 %6400  ;;  %v6399_v55 = vpop.permute.xlu0 %6398 }
0x159f   :  { %v6408_v31 = vsel %vm14407_vm14, %v12757_v23, %v6399_v55  ;;  %v6409_v19 = vsel %vm14408_vm15, %v6399_v55, %v6401_v51  ;;  %v6424_v23 = vmul.f32 %v6407_v47, %v11720_v40  ;;  %v6927_v47 = vrot.slane %v12578_v45, %v9706_v15 }
0x15a0   :  { %v6425_v60 = vmul.f32 %v6408_v31, %v11727_v42  ;;  %6670 = vrot.lane.b32.xlu1 %v6653_v37, %s9599_s5  ;;  %v12922_v31 = vmul.f32 %v6409_v19, %v11730_v33  ;;  %v6541_v19 = vsel %vm1414_vm10, %v12766_v3, %v12772_v53  ;;  %vm14419_vm14 = vcmask 1039360  }
0x15a1   :  { %vm14422_vm15 = vmmov %vm14419_vm14 }
0x15a2   :  { %v9283_v46 = vpack.i.bf16 %v6425_v60, %v6420_v57  ;;  %v6534_v30 = vpop.permute.xlu1 %6533  ;;  %v12912_v26 = vpop.permute.xlu0 %6402  ;;  %14412 = vst [vmem:[#allocation95_spill] sm:$0xff] %v12922_v31  ;;  %v6919_v57 = vrot.slane %v12578_v45, %v9698_v11  ;;  %v14421_v31 = vunpack.i.h.bf16 %v12694_v20 }
0x15a3   :  { %14409 = vst [vmem:[#allocation94_spill] sm:$0xff] %v12912_v26  ;;  %v6410_v55 = vsel %vm14411_vm11, %v6401_v51, %v12912_v26  ;;  %v6406_v51 = vsel %vm14382_vm4, %v12736_v1, %v12734_v4  ;;  %v9241_v26 = vunpack.i.l.bf16 %v12704_v5  ;;  %vm14425_vm11 = vmmov %vm14419_vm14 }
0x15a4   :  { %v12925_v37 = vmul.f32 %v6410_v55, %v11733_v6  ;;  %6803 = vrot.lane.b32.xlu1 %v6784_v29, %s9600_s22  ;;  %9284 = vrot.lane.b32.xlu0 %v9283_v46, %s9610_s8  ;;  %v6423_v3 = vmul.f32 %v6406_v51, %v11717_v21  ;;  %v6675_v51 = vsel %vm128_vm0, %v12777_v8, %v12786_v61  ;;  %vm14426_vm4 = vmmov %vm14424_vm12 }
0x15a6   :  { %14413 = vst [vmem:[#allocation96_spill] sm:$0xff] %v12925_v37  ;;  %v12943_v29 = vpop.permute.xlu1 %6537  ;;  %v6536_v46 = vpop.permute.xlu0 %6535  ;;  %v9268_v4 = vpack.i.bf16 %v6424_v23, %v6423_v3  ;;  %v6692_v37 = vmul.f32 %v6675_v51, %v11707_v27 }
0x15a7   :  { %14414 = vst [vmem:[#allocation97_spill] sm:$0xff] %v12943_v29  ;;  %v6544_v55 = vsel %vm1414_vm10, %v6534_v30, %v6536_v46  ;;  %v6545_v1 = vsel %vm1414_vm10, %v6536_v46, %v12943_v29  ;;  %v6558_v46 = vmul.f32 %v6541_v19, %v11717_v21  ;;  %v6559_v29 = vmul.f32 %v6542_v63, %v11720_v40 }
0x15a8   :  { %v12953_v53 = vmul.f32 %v6544_v55, %v11730_v33  ;;  %v12956_v60 = vmul.f32 %v6545_v1, %v11733_v6  ;;  %6807 = vrot.lane.b32.xlu1 %v6792_v38, %s9600_s22  ;;  %6938 = vrot.lane.b32.xlu0 %v6919_v57, %s9601_s23  ;;  %v6674_v55 = vsel %vm128_vm0, %v12779_v32, %v12777_v8  ;;  %v9242_v8 = vunpack.i.h.bf16 %v12704_v5 }
0x15a9   :  { %v6543_v38 = vsel %vm1414_vm10, %v12770_v41, %v6534_v30  ;;  %v7058_v41 = vrot.slane %v12592_v56, %v9708_v16  ;;  %v9278_v30 = vpack.i.bf16 %v6559_v29, %v6558_v46 }
0x15aa   :  { %14415 = vst [vmem:[#allocation98_spill] sm:$0xff] %v12953_v53  ;;  %14416 = vst [vmem:[#allocation99_spill] sm:$0xff] %v12956_v60  ;;  %v12973_v1 = vpop.permute.xlu1 %9249  ;;  %v12975_v19 = vpop.permute.xlu0 %9244  ;;  %v6187_v53 = vsel %vm14422_vm15, %v14421_v31, %v9241_v26  ;;  %v6560_v29 = vmul.f32 %v6543_v38, %v11727_v42 }
0x15ab   :  { %14417 = vst [vmem:[#allocation100_spill] sm:$0xff] %v12973_v1  ;;  %14418 = vst [vmem:[#allocation101_spill] sm:$0xff] %v12975_v19  ;;  %v9252_v63 = vunpack.i.h.bf16 %v12973_v1  ;;  %v14049_v23 = vunpack.i.h.bf16 %v12975_v19  ;;  %v9246_v3 = vunpack.i.l.bf16 %v12975_v19  ;;  %v14423_v5 = vunpack.i.l.bf16 %v12973_v1 }
0x15ac   :  { %9269 = vrot.lane.b32.xlu1 %v9268_v4, %s9610_s8  ;;  %6942 = vrot.lane.b32.xlu0 %v6927_v47, %s9601_s23  ;;  %v6691_v4 = vmul.f32 %v6674_v55, %v11704_v24  ;;  %v6809_v47 = vsel %vm266_vm1, %v12796_v44, %v12810_v10  ;;  %v6810_v19 = vsel %vm266_vm1, %v12810_v10, %v12808_v43  ;;  %vm14428_vm15 = vmmov %vm14426_vm4 }
0x15ad   :  { %v12990_v57 = vsel %vm14419_vm14, %v9246_v3, %v14049_v23  ;;  %v6322_v51 = vsel %vm14424_vm12, %v14423_v5, %v9252_v63  ;;  %v6188_v5 = vsel %vm14425_vm11, %v9241_v26, %v9242_v8  ;;  %v6555_v55 = vmul.f32 %v12755_v22, %v11699_v0  ;;  %vm14427_vm14 = vmmov %vm14425_vm11 }
0x15ae   :  { %14420 = vst [vmem:[#allocation102_spill] sm:$0xff] %v12990_v57  ;;  %v13003_v46 = vpop.permute.xlu0 %9254  ;;  %v8104_v23 = vpack.c.bf16 %v6322_v51, %v6187_v53  ;;  %v9293_v57 = vpack.i.bf16 %v6692_v37, %v6691_v4  ;;  %v6826_v53 = vmul.f32 %v6809_v47, %v11704_v24  ;;  %v6189_v10 = vsel %vm14427_vm14, %v9242_v8, %v9246_v3 }
0x15af   :  { %v9257_v31 = vunpack.i.h.bf16 %v13003_v46  ;;  %v9256_v60 = vunpack.i.l.bf16 %v13003_v46  ;;  %v6827_v26 = vmul.f32 %v6810_v19, %v11707_v27  ;;  %v9288_v1 = vpack.i.bf16 %v6560_v29, %v6555_v55 }
0x15b0   :  { %9279 = vrot.lane.b32.xlu1 %v9278_v30, %s9608_s30  ;;  %7075 = vrot.lane.b32.xlu0 %v7058_v41, %s9602_s24  ;;  %v6676_v8 = vsel %vm128_vm0, %v12786_v61, %v12784_v34  ;;  %v6812_v47 = vsel %vm266_vm1, %v12815_v14, %v12813_v17  ;;  %v6944_v55 = vsel %vm404_vm2, %v12820_v2, %v12818_v13  ;;  %vm14429_vm12 = vcmask 523264  }
0x15b1   :  { %v6323_v38 = vsel %vm14426_vm4, %v9252_v63, %v9256_v60  ;;  %8212 = vmatprep.subr.bf16.mxu0 %v8104_v23  ;;  %v6324_v51 = vsel %vm14428_vm15, %v9256_v60, %v9257_v31  ;;  %v6923_v63 = vrot.slane %v12578_v45, %v9708_v16  ;;  %v9303_v60 = vpack.i.bf16 %v6827_v26, %v6826_v53  ;;  %vm14431_vm11 = vmmov %vm14429_vm12 }
0x15b2   :  { %v8105_v22 = vpack.c.bf16 %v6323_v38, %v6188_v5  ;;  %v13022_v37 = vpop.permute.xlu0 %6668  ;;  %v8106_v30 = vpack.c.bf16 %v6324_v51, %v6189_v10  ;;  %v6690_v23 = vmul.f32 %v12779_v32, %v11699_v0  ;;  %v6677_v45 = vsel %vm128_vm0, %v12784_v34, %v12798_v12  ;;  %vm14437_vm4 = vmmov %vm14431_vm11 }
0x15b3   :  { %v6678_v41 = vsel %vm128_vm0, %v12798_v12, %v13022_v37  ;;  %v7189_v32 = vrot.slane %v12612_v59, %v9698_v11  ;;  %v6694_v4 = vmul.f32 %v6677_v45, %v11720_v40  ;;  %v6811_v12 = vsel %vm266_vm1, %v12808_v43, %v12815_v14  ;;  %vm14439_vm14 = vmmov %vm14437_vm4 }
0x15b4   :  { %9289 = vrot.lane.b32.xlu1 %v9288_v1, %s9608_s30  ;;  %9294 = vrot.lane.b32.xlu0 %v9293_v57, %s9605_s27  ;;  %v6695_v19 = vmul.f32 %v6678_v41, %v11727_v42  ;;  %v7054_v1 = vrot.slane %v12592_v56, %v9698_v11  ;;  %v7062_v57 = vrot.slane %v12592_v56, %v9706_v15  ;;  %vm14453_vm15 = vcmask 7168  }
0x15b5   :  { %8253 = vmatprep.subr.bf16.mxu1 %v8106_v30  ;;  %v6693_v29 = vmul.f32 %v6676_v8, %v11717_v21  ;;  %v7197_v56 = vrot.slane %v12612_v59, %v9706_v15  ;;  %v6828_v61 = vmul.f32 %v6811_v12, %v11717_v21  ;;  %v6829_v5 = vmul.f32 %v6812_v47, %v11720_v40  ;;  %v14430_v8 = vld [vmem:[#allocation60_spill] sm:$0xff] }
0x15b6   :  { %8254 = vmatpush1.bf16.msra.mxu1 %v8105_v22  ;;  %v9313_v3 = vpack.i.bf16 %v6695_v19, %v6690_v23  ;;  %v6945_v43 = vsel %vm404_vm2, %v12818_v13, %v12824_v39  ;;  %v7328_v14 = vrot.slane %v12626_v52, %v9708_v16  ;;  %v7079_v10 = vsel %vm542_vm3, %v12826_v28, %v12832_v9 }
0x15b7   :  { %v9298_v34 = vpack.i.bf16 %v6694_v4, %v6693_v29  ;;  %v9308_v53 = vpack.i.bf16 %v6829_v5, %v6828_v61  ;;  %v6962_v38 = vmul.f32 %v6945_v43, %v11707_v27  ;;  %v7080_v51 = vsel %vm542_vm3, %v12832_v9, %v12830_v18  ;;  %v14432_v29 = vld [vmem:[#allocation79_spill] sm:$0xff]  ;;  %v14434_v61 = vld [vmem:[#allocation72_spill] sm:$0xff] }
0x15b8   :  { %6940 = vrot.lane.b32.xlu1 %v6923_v63, %s9601_s23  ;;  %9304 = vrot.lane.b32.xlu0 %v9303_v60, %s9606_s28  ;;  %v6961_v26 = vmul.f32 %v6944_v55, %v11704_v24  ;;  %v6825_v13 = vmul.f32 %v12796_v44, %v11699_v0  ;;  %v7096_v30 = vmul.f32 %v7079_v10, %v11704_v24 }
0x15b9   :  { %v7097_v41 = vmul.f32 %v7080_v51, %v11707_v27  ;;  %v7193_v9 = vrot.slane %v12612_v59, %v9708_v16  ;;  %v7324_v44 = vrot.slane %v12626_v52, %v9698_v11  ;;  %v6960_v60 = vmul.f32 %v12820_v2, %v11699_v0 }
0x15ba   :  { %v9318_v22 = vpack.i.bf16 %v6962_v38, %v6961_v26  ;;  %v6947_v19 = vsel %vm404_vm2, %v12822_v7, %v12828_v48  ;;  %v7332_v59 = vrot.slane %v12626_v52, %v9706_v15  ;;  %v7459_v23 = vrot.slane %v12646_v50, %v9698_v11  ;;  %v14435_v26 = vld [vmem:[#allocation81_spill] sm:$0xff] }
0x15bb   :  { %v9328_v63 = vpack.i.bf16 %v7097_v41, %v7096_v30  ;;  %v6964_v2 = vmul.f32 %v6947_v19, %v11720_v40  ;;  %v7082_v45 = vsel %vm542_vm3, %v12836_v25, %v12834_v54  ;;  %v7467_v52 = vrot.slane %v12646_v50, %v9706_v15  ;;  %v14438_v30 = vld [vmem:[#allocation64_spill] sm:$0xff]  ;;  %v14441_v19 = vld [vmem:[#allocation69_spill] sm:$0xff] }
0x15bc   :  { %7073 = vrot.lane.b32.xlu1 %v7054_v1, %s9602_s24  ;;  %9314 = vrot.lane.b32.xlu0 %v9313_v3, %s9605_s27  ;;  %v6946_v1 = vsel %vm404_vm2, %v12824_v39, %v12822_v7  ;;  %v7081_v3 = vsel %vm542_vm3, %v12830_v18, %v12836_v25  ;;  %v7215_v18 = vsel %vm14429_vm12, %v12838_v58, %v12844_v35  ;;  %vm14455_vm12 = vmmov %vm14453_vm15 }
0x15bd   :  { %v7098_v39 = vmul.f32 %v7081_v3, %v11717_v21  ;;  %v7598_v25 = vrot.slane %v12660_v49, %v9708_v16  ;;  %v7214_v4 = vsel %vm14431_vm11, %v14430_v8, %v12838_v58  ;;  %v7232_v47 = vmul.f32 %v7215_v18, %v11707_v27 }
0x15be   :  { %v7350_v5 = vsel %vm595_vm8, %v14432_v29, %v14434_v61  ;;  %v7231_v43 = vmul.f32 %v7214_v4, %v11704_v24  ;;  %v7095_v58 = vmul.f32 %v12826_v28, %v11699_v0  ;;  %v7463_v38 = vrot.slane %v12646_v50, %v9708_v16 }
0x15bf   :  { %v7594_v28 = vrot.slane %v12660_v49, %v9698_v11  ;;  %v7230_v51 = vmul.f32 %v14430_v8, %v11699_v0  ;;  %v7602_v50 = vrot.slane %v12660_v49, %v9706_v15  ;;  %v7729_v41 = vrot.slane %v14438_v30, %v9698_v11 }
0x15c0   :  { %7077 = vrot.lane.b32.xlu1 %v7062_v57, %s9602_s24  ;;  %7208 = vrot.lane.b32.xlu0 %v7189_v32, %s9603_s25  ;;  %v6963_v57 = vmul.f32 %v6946_v1, %v11717_v21  ;;  %v7099_v32 = vmul.f32 %v7082_v45, %v11720_v40  ;;  %vm14462_vm11 = vcmask 719872  }
0x15c2   :  { %v9323_v7 = vpack.i.bf16 %v6964_v2, %v6963_v57  ;;  %v9333_v12 = vpack.i.bf16 %v7099_v32, %v7098_v39  ;;  %v14443_v2 = vld [vmem:[#allocation80_spill] sm:$0xff]  ;;  %v14444_v39 = vld [vmem:[#allocation86_spill] sm:$0xff]  ;;  %v14445_v32 = vld [vmem:[#allocation83_spill] sm:$0xff] }
0x15c3   :  { %v7621_v18 = vsel %vm319_vm6, %v14445_v32, %v14444_v39 }
0x15c4   :  { %9299 = vrot.lane.b32.xlu1 %v9298_v34, %s9605_s27  ;;  %7212 = vrot.lane.b32.xlu0 %v7197_v56, %s9603_s25  ;;  %v14433_v56 = vld [vmem:[#allocation65_spill] sm:$0xff] }
0x15c5   :  { %v7349_v34 = vsel %vm595_vm8, %v14433_v56, %v14432_v29  ;;  %v7638_v29 = vmul.f32 %v7621_v18, %v11717_v21  ;;  %v14459_v18 = vld [vmem:[#allocation91_spill] sm:$0xff] }
0x15c6   :  { %v7366_v55 = vmul.f32 %v7349_v34, %v11704_v24 }
0x15c8   :  { %9309 = vrot.lane.b32.xlu1 %v9308_v53, %s9606_s28  ;;  %7345 = vrot.lane.b32.xlu0 %v7328_v14, %s9604_s26  ;;  %v9338_v14 = vpack.i.bf16 %v7232_v47, %v7231_v43  ;;  %v7367_v53 = vmul.f32 %v7350_v5, %v11707_v27  ;;  %v7365_v5 = vmul.f32 %v14433_v56, %v11699_v0 }
0x15c9   :  { %v7733_v56 = vrot.slane %v14438_v30, %v9708_v16 }
0x15ca   :  { %v9348_v10 = vpack.i.bf16 %v7367_v53, %v7366_v55  ;;  %v14448_v55 = vld [vmem:[#allocation90_spill] sm:$0xff]  ;;  %v14449_v53 = vld [vmem:[#allocation87_spill] sm:$0xff] }
0x15cc   :  { %6843 = vrot.lane.b32.xlu1 %v6825_v13, %s9606_s28  ;;  %9319 = vrot.lane.b32.xlu0 %v9318_v22, %s9607_s29  ;;  %v14436_v13 = vld [vmem:[#allocation75_spill] sm:$0xff] }
0x15cd   :  { %v7217_v22 = vsel %vm14437_vm4, %v14436_v13, %v14435_v26  ;;  %vm14463_vm4 = vmmov %vm14462_vm11 }
0x15d0   :  { %7210 = vrot.lane.b32.xlu1 %v7193_v9, %s9603_s25  ;;  %9329 = vrot.lane.b32.xlu0 %v9328_v63, %s9604_s26  ;;  %v7216_v9 = vsel %vm14439_vm14, %v12844_v35, %v14436_v13  ;;  %v7234_v63 = vmul.f32 %v7217_v22, %v11720_v40  ;;  %v7737_v35 = vrot.slane %v14438_v30, %v9706_v15  ;;  %v14452_v13 = vld [vmem:[#allocation74_spill] sm:$0xff]  ;;  %vm14469_vm14 = vcmask 1039360  }
0x15d1   :  { %v7233_v1 = vmul.f32 %v7216_v9, %v11717_v21  ;;  %v14456_v9 = vld [vmem:[#allocation77_spill] sm:$0xff] }
0x15d3   :  { %v9343_v45 = vpack.i.bf16 %v7234_v63, %v7233_v1  ;;  %v14458_v1 = vld [vmem:[#allocation84_spill] sm:$0xff] }
0x15d4   :  { %7343 = vrot.lane.b32.xlu1 %v7324_v44, %s9604_s26  ;;  %6978 = vrot.lane.b32.xlu0 %v6960_v60, %s9607_s29  ;;  %v14440_v44 = vld [vmem:[#allocation68_spill] sm:$0xff] }
0x15d5   :  { %v7351_v60 = vsel %vm595_vm8, %v14434_v61, %v14440_v44  ;;  %v13202_v61 = vpop.permute.xlu0 %6672 }
0x15d6   :  { %v7368_v57 = vmul.f32 %v7351_v60, %v11717_v21  ;;  %v14457_v60 = vld [vmem:[#allocation82_spill] sm:$0xff] }
0x15d8   :  { %7347 = vrot.lane.b32.xlu1 %v7332_v59, %s9604_s26  ;;  %7478 = vrot.lane.b32.xlu0 %v7459_v23, %s9607_s29  ;;  %v7352_v59 = vsel %vm595_vm8, %v14440_v44, %v14441_v19  ;;  %v14442_v23 = vld [vmem:[#allocation76_spill] sm:$0xff] }
0x15d9   :  { %v7487_v49 = vsel %vm457_vm7, %v14442_v23, %v12868_v36  ;;  %v7486_v3 = vsel %vm457_vm7, %v14443_v2, %v14442_v23 }
0x15da   :  { %v7503_v4 = vmul.f32 %v7486_v3, %v11717_v21 }
0x15dc   :  { %9324 = vrot.lane.b32.xlu1 %v9323_v7, %s9607_s29  ;;  %7482 = vrot.lane.b32.xlu0 %v7467_v52, %s9607_s29  ;;  %v7369_v52 = vmul.f32 %v7352_v59, %v11720_v40  ;;  %v7504_v7 = vmul.f32 %v7487_v49, %v11720_v40  ;;  %v7635_v59 = vmul.f32 %v14457_v60, %v11699_v0  ;;  %v13235_v49 = vpop.permute.xlu0 %6805 }
0x15de   :  { %v9363_v47 = vpack.i.bf16 %v7504_v7, %v7503_v4 }
0x15e0   :  { %9334 = vrot.lane.b32.xlu1 %v9333_v12, %s9604_s26  ;;  %7615 = vrot.lane.b32.xlu0 %v7598_v25, %s9606_s28  ;;  %v14446_v25 = vld [vmem:[#allocation85_spill] sm:$0xff]  ;;  %v9353_v12 = vpack.i.bf16 %v7369_v52, %v7368_v57 }
0x15e1   :  { %v7622_v8 = vsel %vm319_vm6, %v14444_v39, %v14446_v25 }
0x15e2   :  { %v7639_v34 = vmul.f32 %v7622_v8, %v11720_v40  ;;  %v14460_v8 = vld [vmem:[#allocation93_spill] sm:$0xff] }
0x15e3   :  { %v6275_v4 = vsel %vm1690_vm13, %v12898_v62, %v14460_v8 }
0x15e4   :  { %7113 = vrot.lane.b32.xlu1 %v7095_v58, %s9604_s26  ;;  %9339 = vrot.lane.b32.xlu0 %v9338_v14, %s9603_s25  ;;  %v9373_v43 = vpack.i.bf16 %v7639_v34, %v7638_v29  ;;  %v14447_v58 = vld [vmem:[#allocation73_spill] sm:$0xff] }
0x15e5   :  { %v7485_v14 = vsel %vm457_vm7, %v14447_v58, %v14443_v2  ;;  %v7484_v63 = vsel %vm457_vm7, %v14456_v9, %v14447_v58  ;;  %v7620_v2 = vsel %vm319_vm6, %v14458_v1, %v14445_v32  ;;  %v6274_v32 = vsel %vm1690_vm13, %v14459_v18, %v12898_v62 }
0x15e6   :  { %v7502_v44 = vmul.f32 %v7485_v14, %v11707_v27  ;;  %v7501_v3 = vmul.f32 %v7484_v63, %v11704_v24  ;;  %v7637_v7 = vmul.f32 %v7620_v2, %v11707_v27  ;;  %v6291_v34 = vmul.f32 %v6274_v32, %v11730_v33 }
0x15e7   :  { %v7500_v62 = vmul.f32 %v14456_v9, %v11699_v0 }
0x15e8   :  { %7480 = vrot.lane.b32.xlu1 %v7463_v38, %s9607_s29  ;;  %9349 = vrot.lane.b32.xlu0 %v9348_v10, %s9602_s24  ;;  %v7755_v38 = vsel %vm181_vm5, %v14449_v53, %v14448_v55  ;;  %v14450_v10 = vld [vmem:[#allocation89_spill] sm:$0xff]  ;;  %v9358_v57 = vpack.i.bf16 %v7502_v44, %v7501_v3 }
0x15e9   :  { %v7772_v23 = vmul.f32 %v7755_v38, %v11707_v27  ;;  %v6292_v27 = vmul.f32 %v6275_v4, %v11733_v6 }
0x15ec   :  { %7613 = vrot.lane.b32.xlu1 %v7594_v28, %s9606_s28  ;;  %7248 = vrot.lane.b32.xlu0 %v7230_v51, %s9603_s25  ;;  %v7756_v28 = vsel %vm181_vm5, %v14448_v55, %v14450_v10  ;;  %v14451_v51 = vld [vmem:[#allocation71_spill] sm:$0xff]  ;;  %v9393_v55 = vpack.i.bf16 %v6292_v27, %v6291_v34 }
0x15ed   :  { %v6139_v22 = vsel %vm14453_vm15, %v14452_v13, %v14451_v51  ;;  %v7773_v30 = vmul.f32 %v7756_v28, %v11717_v21  ;;  %v13277_v28 = vld [vmem:[%s13885_s3] sm:$0xff]  ;;  %v14464_v13 = vld [vmem:[#allocation92_spill] sm:$0xff]  ;;  %vm14472_vm15 = vcmask 990208  }
0x15ef   :  { %v9383_v39 = vpack.i.bf16 %v7773_v30, %v7772_v23  ;;  %v14466_v23 = vld [vmem:[#allocation95_spill] sm:$0xff] }
0x15f0   :  { %7617 = vrot.lane.b32.xlu1 %v7602_v50, %s9606_s28  ;;  %7748 = vrot.lane.b32.xlu0 %v7729_v41, %s9605_s27  ;;  %v14454_v50 = vld [vmem:[#allocation61_spill] sm:$0xff] }
0x15f1   :  { %v6140_v41 = vsel %vm14455_vm12, %v14451_v51, %v14454_v50  ;;  %vm14473_vm12 = vmmov %vm14472_vm15 }
0x15f2   :  { %v6157_v21 = vmul.f32 %v6140_v41, %v11733_v6 }
0x15f4   :  { %9344 = vrot.lane.b32.xlu1 %v9343_v45, %s9603_s25  ;;  %7752 = vrot.lane.b32.xlu0 %v7737_v35, %s9605_s27  ;;  %v7619_v35 = vsel %vm319_vm6, %v14457_v60, %v14458_v1  ;;  %v6156_v45 = vmul.f32 %v6139_v22, %v11730_v33  ;;  %v7757_v22 = vsel %vm181_vm5, %v14450_v10, %v14464_v13  ;;  %v14468_v1 = vunpack.i.h.bf16 %v12694_v20 }
0x15f5   :  { %v7636_v52 = vmul.f32 %v7619_v35, %v11704_v24  ;;  %v14470_v35 = vld [vmem:[#allocation100_spill] sm:$0xff] }
0x15f6   :  { %v14471_v2 = vunpack.i.l.bf16 %v14470_v35  ;;  %v14482_v35 = vld [vmem:[#allocation97_spill] sm:$0xff] }
0x15f7   :  { %v9368_v29 = vpack.i.bf16 %v7637_v7, %v7636_v52  ;;  %v14475_v52 = vld [vmem:[#allocation102_spill] sm:$0xff] }
0x15f8   :  { %9354 = vrot.lane.b32.xlu1 %v9353_v12, %s9602_s24  ;;  %9364 = vrot.lane.b32.xlu0 %v9363_v47, %s9601_s23  ;;  %v13256_v12 = vpop.permute.xlu0 %9264  ;;  %v9388_v47 = vpack.i.bf16 %v6157_v21, %v6156_v45 }
0x15f9   :  { %v9267_v9 = vunpack.i.h.bf16 %v13256_v12  ;;  %v9266_v63 = vunpack.i.l.bf16 %v13256_v12 }
0x15fc   :  { %7383 = vrot.lane.b32.xlu1 %v7365_v5, %s9602_s24  ;;  %9374 = vrot.lane.b32.xlu0 %v9373_v43, %s9600_s22  ;;  %v14461_v5 = vld [vmem:[#allocation88_spill] sm:$0xff]  ;;  %v13272_v38 = vpop.permute.xlu0 %9274 }
0x15fd   :  { %v7754_v43 = vsel %vm181_vm5, %v14461_v5, %v14449_v53  ;;  %v7770_v58 = vmul.f32 %v14461_v5, %v11699_v0  ;;  %v13281_v53 = vcombine.high %v13277_v28, %v13277_v28  ;;  %v9236_v0 = vunpack.i.l.bf16 %v12694_v20 }
0x15fe   :  { %v7771_v14 = vmul.f32 %v7754_v43, %v11704_v24  ;;  %v9277_v24 = vunpack.i.h.bf16 %v13272_v38  ;;  %v7774_v20 = vmul.f32 %v7757_v22, %v11720_v40  ;;  %v14477_v40 = vld [vmem:[#allocation99_spill] sm:$0xff] }
0x15ff   :  { %8423 = vmatprep.mubr.msk.bf16.mxu0 %vm14462_vm11, %v13281_v53  ;;  %8425 = vmatprep.mubr.msk.bf16.mxu1 %vm14463_vm4, %v13281_v53  ;;  %v6186_v10 = vsel %vm14469_vm14, %v9236_v0, %v14468_v1  ;;  %vm14474_vm11 = vcmask 973824   ;;  %vm14476_vm4 = vcmask 982016  }
0x1600   :  { %7750 = vrot.lane.b32.xlu1 %v7733_v56, %s9605_s27  ;;  %7653 = vrot.lane.b32.xlu0 %v7635_v59, %s9600_s22  ;;  %v9276_v56 = vunpack.i.l.bf16 %v13272_v38  ;;  %v9378_v51 = vpack.i.bf16 %v7771_v14, %v7770_v58  ;;  %v14465_v59 = vld [vmem:[#allocation96_spill] sm:$0xff]  ;;  %vm14481_vm14 = vmmov %vm14476_vm4 }
0x1601   :  { %v14467_v30 = vpack.i.bf16 %v14465_v59, %v14466_v23 }
0x1602   :  { %v6592_v21 = vsel %vm14474_vm11, %v9276_v56, %v9277_v24 }
0x1604   :  { %9359 = vrot.lane.b32.xlu1 %v9358_v57, %s9601_s23  ;;  %9384 = vrot.lane.b32.xlu0 %v9383_v39, %s9599_s5 }
0x1608   :  { %9369 = vrot.lane.b32.xlu1 %v9368_v29, %s9600_s22  ;;  %9389 = vrot.lane.b32.xlu0 %v9388_v47, %s9613_s11  ;;  %v14478_v47 = vld [vmem:[#allocation98_spill] sm:$0xff] }
0x1609   :  { %v14479_v29 = vpack.i.bf16 %v14477_v40, %v14478_v47 }
0x160c   :  { %7518 = vrot.lane.b32.xlu1 %v7500_v62, %s9601_s23  ;;  %9394 = vrot.lane.b32.xlu0 %v9393_v55, %s9611_s9 }
0x160e   :  { %v13295_v41 = vpop.permute.xlu1 %9259 }
0x160f   :  { %v9262_v44 = vunpack.i.h.bf16 %v13295_v41  ;;  %v9261_v60 = vunpack.i.l.bf16 %v13295_v41 }
0x1610   :  { %9379 = vrot.lane.b32.xlu1 %v9378_v51, %s9599_s5  ;;  %9399 = vrot.lane.b32.xlu0 %v14467_v30, %s9610_s8 }
0x1611   :  { %v6321_v3 = vsel %vm14472_vm15, %v9261_v60, %v14471_v2  ;;  %v13317_v45 = vsel %vm14473_vm12, %v9257_v31, %v9262_v44  ;;  %v6457_v31 = vsel %vm14476_vm4, %v9266_v63, %v9267_v9  ;;  %v6563_v2 = vmul.f32 0.0, %v14482_v35  ;;  %vm14483_vm15 = vmmov %vm14476_vm4 }
0x1612   :  { %v8103_v57 = vpack.c.bf16 %v6321_v3, %v6186_v10  ;;  %v6671_v39 = vpop.permute.xlu1 %6670  ;;  %v8112_v34 = vpack.c.bf16 %v6592_v21, %v6457_v31  ;;  %vm14484_vm12 = vmmov %vm14474_vm11 }
0x1613   :  { %v6679_v18 = vsel %vm128_vm0, %v13022_v37, %v6671_v39  ;;  %v6680_v46 = vsel %vm128_vm0, %v6671_v39, %v13202_v61  ;;  %v6158_v37 = vmul.f32 0.0, %v14454_v50  ;;  %v6293_v50 = vmul.f32 0.0, %v14460_v8  ;;  %vm14485_vm11 = vmmov %vm14476_vm4 }
0x1614   :  { %v6696_v32 = vmul.f32 %v6679_v18, %v11730_v33  ;;  %v6697_v4 = vmul.f32 %v6680_v46, %v11733_v6  ;;  %7796 = vrot.lane.b32.xlu1 %v7774_v20, %s9599_s5  ;;  %9404 = vrot.lane.b32.xlu0 %v14479_v29, %s9608_s30  ;;  %v6698_v18 = vmul.f32 0.0, %v13202_v61  ;;  %vm14486_vm4 = vmmov %vm14484_vm12 }
0x1615   :  { %8213 = vmatpush1.bf16.msra.mxu0 %v8103_v57 }
0x1616   :  { %v9408_v27 = vpack.i.bf16 %v6697_v4, %v6696_v32  ;;  %8214 = vmatprep.subr.bf16.mxu0 %v8112_v34  ;;  %v6804_v5 = vpop.permute.xlu1 %6803  ;;  %v13342_v43 = vpop.permute.xlu0 %9284 }
0x1617   :  { %v6813_v62 = vsel %vm266_vm1, %v12813_v17, %v6804_v5  ;;  %v6814_v58 = vsel %vm266_vm1, %v6804_v5, %v13235_v49  ;;  %v14480_v17 = vld [vmem:[#allocation94_spill] sm:$0xff]  ;;  %v9287_v30 = vunpack.i.h.bf16 %v13342_v43  ;;  %v9286_v46 = vunpack.i.l.bf16 %v13342_v43 }
0x1618   :  { %v6830_v14 = vmul.f32 %v6813_v62, %v11727_v42  ;;  %v6831_v55 = vmul.f32 %v6814_v58, %v11730_v33  ;;  %6184 = vrot.lane.b32.xlu1 %v6158_v37, %s9613_s11  ;;  %9409 = vrot.lane.b32.xlu0 %v9408_v27, %s9605_s27  ;;  %v6428_v60 = vmul.f32 0.0, %v14480_v17 }
0x161a   :  { %v9413_v0 = vpack.i.bf16 %v6831_v55, %v6830_v14  ;;  %v6808_v51 = vpop.permute.xlu1 %6807  ;;  %v6939_v22 = vpop.permute.xlu0 %6938 }
0x161b   :  { %v6815_v20 = vsel %vm266_vm1, %v13235_v49, %v6808_v51  ;;  %v6833_v47 = vmul.f32 0.0, %v6808_v51  ;;  %v6948_v5 = vsel %vm404_vm2, %v12828_v48, %v6939_v22 }
0x161c   :  { %6319 = vrot.lane.b32.xlu1 %v6293_v50, %s9611_s9  ;;  %9414 = vrot.lane.b32.xlu0 %v9413_v0, %s9606_s28  ;;  %v6832_v49 = vmul.f32 %v6815_v20, %v11733_v6 }
0x161e   :  { %v9270_v59 = vpop.permute.xlu1 %9269  ;;  %v6943_v23 = vpop.permute.xlu0 %6942 }
0x161f   :  { %v9272_v1 = vunpack.i.h.bf16 %v9270_v59  ;;  %v9271_v10 = vunpack.i.l.bf16 %v9270_v59  ;;  %v6968_v55 = vmul.f32 0.0, %v6943_v23  ;;  %v6965_v59 = vmul.f32 %v6948_v5, %v11727_v42 }
0x1620   :  { %6454 = vrot.lane.b32.xlu1 %v6428_v60, %s9610_s8 }
0x1621   :  { %v13361_v8 = vsel %vm14481_vm14, %v9272_v1, %v9287_v30  ;;  %v6458_v31 = vsel %vm14483_vm15, %v9267_v9, %v9271_v10  ;;  %v6459_v4 = vsel %vm14485_vm11, %v9271_v10, %v9272_v1  ;;  %vm14487_vm14 = vmmov %vm14485_vm11  ;;  %vm14490_vm11 = vcmask 523264  }
0x1622   :  { %v9280_v3 = vpop.permute.xlu1 %9279  ;;  %v7076_v21 = vpop.permute.xlu0 %7075  ;;  %vm14488_vm15 = vmmov %vm14486_vm4 }
0x1623   :  { %v9282_v57 = vunpack.i.h.bf16 %v9280_v3  ;;  %v9281_v39 = vunpack.i.l.bf16 %v9280_v3 }
0x1624   :  { %6589 = vrot.lane.b32.xlu1 %v6563_v2, %s9608_s30 }
0x1625   :  { %v6593_v32 = vsel %vm14484_vm12, %v9277_v24, %v9281_v39  ;;  %v6594_v40 = vsel %vm14486_vm4, %v9281_v39, %v9282_v57  ;;  %v6456_v24 = vsel %vm14487_vm14, %v9286_v46, %v9266_v63  ;;  %vm14489_vm12 = vmmov %vm14486_vm4  ;;  %v9418_v63 = vpack.i.bf16 %v6833_v47, %v6832_v49 }
0x1626   :  { %v8113_v29 = vpack.c.bf16 %v6593_v32, %v6458_v31  ;;  %v13376_v34 = vpop.permute.xlu1 %9289  ;;  %v13378_v61 = vpop.permute.xlu0 %9294  ;;  %v8114_v37 = vpack.c.bf16 %v6594_v40, %v6459_v4  ;;  %vm14491_vm4 = vmmov %vm14490_vm11 }
0x1627   :  { %v9292_v27 = vunpack.i.h.bf16 %v13376_v34  ;;  %v9291_v9 = vunpack.i.l.bf16 %v13376_v34  ;;  %v9297_v14 = vunpack.i.h.bf16 %v13378_v61  ;;  %v9296_v12 = vunpack.i.l.bf16 %v13378_v61  ;;  %vm14492_vm14 = vmmov %vm14491_vm4 }
0x1628   :  { %6724 = vrot.lane.b32.xlu1 %v6698_v18, %s9605_s27  ;;  %8255 = vmatprep.subr.bf16.mxu1 %v8114_v37 }
0x1629   :  { %v6591_v62 = vsel %vm14488_vm15, %v9291_v9, %v9276_v56  ;;  %v13394_v58 = vsel %vm14489_vm12, %v9282_v57, %v9292_v27  ;;  %8256 = vmatpush1.bf16.msra.mxu1 %v8113_v29  ;;  %v6727_v35 = vsel %vm181_vm5, %v9296_v12, %v9297_v14  ;;  %vm14493_vm15 = vmmov %vm14491_vm4 }
0x162a   :  { %v8111_v48 = vpack.c.bf16 %v6591_v62, %v6456_v24  ;;  %v6941_v0 = vpop.permute.xlu1 %6940  ;;  %v9305_v38 = vpop.permute.xlu0 %9304  ;;  %vm14494_vm12 = vmmov %vm14491_vm4 }
0x162b   :  { %v6949_v56 = vsel %vm404_vm2, %v6939_v22, %v6941_v0  ;;  %v6950_v51 = vsel %vm404_vm2, %v6941_v0, %v6943_v23  ;;  %v9307_v17 = vunpack.i.h.bf16 %v9305_v38  ;;  %v9306_v60 = vunpack.i.l.bf16 %v9305_v38 }
0x162c   :  { %v6966_v1 = vmul.f32 %v6949_v56, %v11730_v33  ;;  %v6967_v10 = vmul.f32 %v6950_v51, %v11733_v6  ;;  %9419 = vrot.lane.b32.xlu1 %v9418_v63, %s9606_s28  ;;  %8215 = vmatpush1.bf16.msra.mxu0 %v8111_v48 }
0x162d   :  { %v6862_v2 = vsel %vm319_vm6, %v9306_v60, %v9307_v17 }
0x162e   :  { %v9423_v3 = vpack.i.bf16 %v6966_v1, %v6965_v59  ;;  %v9428_v20 = vpack.i.bf16 %v6968_v55, %v6967_v10  ;;  %v7074_v22 = vpop.permute.xlu1 %7073  ;;  %v13408_v57 = vpop.permute.xlu0 %9314  ;;  %v8120_v23 = vpack.c.bf16 %v6862_v2, %v6727_v35 }
0x162f   :  { %v7083_v39 = vsel %vm542_vm3, %v12834_v54, %v7074_v22  ;;  %v7084_v18 = vsel %vm542_vm3, %v7074_v22, %v7076_v21  ;;  %v14061_v9 = vunpack.i.h.bf16 %v13408_v57  ;;  %v9316_v55 = vunpack.i.l.bf16 %v13408_v57 }
0x1630   :  { %v7100_v46 = vmul.f32 %v7083_v39, %v11727_v42  ;;  %v7101_v31 = vmul.f32 %v7084_v18, %v11730_v33  ;;  %9424 = vrot.lane.b32.xlu0 %v9423_v3, %s9607_s29  ;;  %9429 = vrot.lane.b32.xlu1 %v9428_v20, %s9607_s29 }
0x1631   :  { %8216 = vmatprep.subr.bf16.mxu0 %v8120_v23  ;;  %v6726_v3 = vsel %vm181_vm5, %v9316_v55, %v9296_v12 }
0x1632   :  { %v9433_v32 = vpack.i.bf16 %v7101_v31, %v7100_v46  ;;  %v7078_v4 = vpop.permute.xlu1 %7077  ;;  %v7209_v40 = vpop.permute.xlu0 %7208 }
0x1633   :  { %v7085_v49 = vsel %vm542_vm3, %v7076_v21, %v7078_v4  ;;  %v7103_v47 = vmul.f32 0.0, %v7078_v4 }
0x1634   :  { %v7102_v29 = vmul.f32 %v7085_v49, %v11733_v6  ;;  %9434 = vrot.lane.b32.xlu0 %v9433_v32, %s9604_s26 }
0x1636   :  { %v9438_v54 = vpack.i.bf16 %v7103_v47, %v7102_v29  ;;  %v9300_v61 = vpop.permute.xlu1 %9299  ;;  %v7213_v37 = vpop.permute.xlu0 %7212 }
0x1637   :  { %v9302_v24 = vunpack.i.h.bf16 %v9300_v61  ;;  %v9301_v5 = vunpack.i.l.bf16 %v9300_v61  ;;  %v7238_v39 = vmul.f32 0.0, %v7213_v37 }
0x1638   :  { %9439 = vrot.lane.b32.xlu1 %v9438_v54, %s9604_s26 }
0x1639   :  { %v13425_v62 = vsel %vm181_vm5, %v9302_v24, %v14061_v9  ;;  %v6728_v38 = vsel %vm181_vm5, %v9297_v14, %v9301_v5  ;;  %v6729_v51 = vsel %vm181_vm5, %v9301_v5, %v9302_v24  ;;  %v7218_v14 = vsel %vm14490_vm11, %v14435_v26, %v7209_v40  ;;  %vm14495_vm11 = vmmov %vm14491_vm4  ;;  %v14522_v9 = vld [vmem:[#allocation13_spill] sm:$0xff] }
0x163a   :  { %v13427_v21 = vpop.permute.xlu1 %9309  ;;  %v7346_v63 = vpop.permute.xlu0 %7345 }
0x163b   :  { %v14060_v48 = vunpack.i.h.bf16 %v13427_v21  ;;  %v9311_v0 = vunpack.i.l.bf16 %v13427_v21 }
0x163d   :  { %v6863_v56 = vsel %vm319_vm6, %v9307_v17, %v9311_v0  ;;  %v6864_v59 = vsel %vm319_vm6, %v9311_v0, %v14060_v48 }
0x163e   :  { %v8121_v1 = vpack.c.bf16 %v6863_v56, %v6728_v38  ;;  %v6844_v10 = vpop.permute.xlu1 %6843  ;;  %v9320_v35 = vpop.permute.xlu0 %9319  ;;  %v8122_v2 = vpack.c.bf16 %v6864_v59, %v6729_v51 }
0x163f   :  { %v6861_v20 = vsel %vm319_vm6, %v6844_v10, %v9306_v60  ;;  %v9322_v17 = vunpack.i.h.bf16 %v9320_v35  ;;  %v9321_v23 = vunpack.i.l.bf16 %v9320_v35  ;;  %v7235_v60 = vmul.f32 %v7218_v14, %v11727_v42 }
0x1640   :  { %v8119_v22 = vpack.c.bf16 %v6861_v20, %v6726_v3  ;;  %8257 = vmatprep.subr.bf16.mxu1 %v8122_v2 }
0x1641   :  { %8258 = vmatpush1.bf16.msra.mxu1 %v8121_v1  ;;  %v6997_v26 = vsel %vm457_vm7, %v9321_v23, %v9322_v17 }
0x1642   :  { %v7211_v18 = vpop.permute.xlu1 %7210  ;;  %v9330_v46 = vpop.permute.xlu0 %9329  ;;  %8217 = vmatpush1.bf16.msra.mxu0 %v8119_v22 }
0x1643   :  { %v7219_v31 = vsel %vm14491_vm4, %v7209_v40, %v7211_v18  ;;  %v7220_v32 = vsel %vm14492_vm14, %v7211_v18, %v7213_v37  ;;  %v9332_v4 = vunpack.i.h.bf16 %v9330_v46  ;;  %v9331_v12 = vunpack.i.l.bf16 %v9330_v46 }
0x1644   :  { %v7236_v49 = vmul.f32 %v7219_v31, %v11730_v33  ;;  %v7237_v47 = vmul.f32 %v7220_v32, %v11733_v6  ;;  %vm14500_vm14 = vcmask 1039360  }
0x1645   :  { %v7132_v29 = vsel %vm595_vm8, %v9331_v12, %v9332_v4 }
0x1646   :  { %v9443_v54 = vpack.i.bf16 %v7236_v49, %v7235_v60  ;;  %v9448_v61 = vpack.i.bf16 %v7238_v39, %v7237_v47  ;;  %v7344_v24 = vpop.permute.xlu1 %7343  ;;  %v6979_v5 = vpop.permute.xlu0 %6978  ;;  %v8128_v55 = vpack.c.bf16 %v7132_v29, %v6997_v26 }
0x1647   :  { %v7353_v40 = vsel %vm595_vm8, %v14441_v19, %v7344_v24  ;;  %v7354_v37 = vsel %vm595_vm8, %v7344_v24, %v7346_v63 }
0x1648   :  { %v7370_v0 = vmul.f32 %v7353_v40, %v11727_v42  ;;  %v7371_v38 = vmul.f32 %v7354_v37, %v11730_v33  ;;  %9444 = vrot.lane.b32.xlu0 %v9443_v54, %s9603_s25  ;;  %9449 = vrot.lane.b32.xlu1 %v9448_v61, %s9603_s25  ;;  %v6996_v54 = vsel %vm457_vm7, %v6979_v5, %v9321_v23 }
0x1649   :  { %8218 = vmatprep.subr.bf16.mxu0 %v8128_v55 }
0x164a   :  { %v9453_v56 = vpack.i.bf16 %v7371_v38, %v7370_v0  ;;  %v7348_v51 = vpop.permute.xlu1 %7347  ;;  %v7479_v59 = vpop.permute.xlu0 %7478 }
0x164b   :  { %v7355_v1 = vsel %vm595_vm8, %v7346_v63, %v7348_v51  ;;  %v7373_v10 = vmul.f32 0.0, %v7348_v51 }
0x164c   :  { %v7372_v35 = vmul.f32 %v7355_v1, %v11733_v6  ;;  %9454 = vrot.lane.b32.xlu0 %v9453_v56, %s9602_s24 }
0x164e   :  { %v9458_v19 = vpack.i.bf16 %v7373_v10, %v7372_v35  ;;  %v13459_v2 = vpop.permute.xlu1 %9324  ;;  %v7483_v3 = vpop.permute.xlu0 %7482 }
0x164f   :  { %v14058_v20 = vunpack.i.h.bf16 %v13459_v2  ;;  %v9326_v22 = vunpack.i.l.bf16 %v13459_v2  ;;  %v7508_v40 = vmul.f32 0.0, %v7483_v3 }
0x1650   :  { %9459 = vrot.lane.b32.xlu1 %v9458_v19, %s9602_s24 }
0x1651   :  { %v6998_v46 = vsel %vm457_vm7, %v9322_v17, %v9326_v22  ;;  %v6999_v32 = vsel %vm457_vm7, %v9326_v22, %v14058_v20 }
0x1652   :  { %v13464_v14 = vpop.permute.xlu1 %9334  ;;  %v7616_v39 = vpop.permute.xlu0 %7615 }
0x1653   :  { %v14059_v63 = vunpack.i.h.bf16 %v13464_v14  ;;  %v9336_v18 = vunpack.i.l.bf16 %v13464_v14 }
0x1655   :  { %v7133_v31 = vsel %vm595_vm8, %v9332_v4, %v9336_v18  ;;  %v7134_v60 = vsel %vm595_vm8, %v9336_v18, %v14059_v63  ;;  %v7488_v4 = vsel %vm457_vm7, %v12868_v36, %v7479_v59 }
0x1656   :  { %v8129_v49 = vpack.c.bf16 %v7133_v31, %v6998_v46  ;;  %v7114_v47 = vpop.permute.xlu1 %7113  ;;  %v13476_v26 = vpop.permute.xlu0 %9339  ;;  %v8130_v29 = vpack.c.bf16 %v7134_v60, %v6999_v32  ;;  %v7505_v56 = vmul.f32 %v7488_v4, %v11727_v42 }
0x1657   :  { %v7131_v61 = vsel %vm595_vm8, %v7114_v47, %v9331_v12  ;;  %v9342_v24 = vunpack.i.h.bf16 %v13476_v26  ;;  %v9341_v55 = vunpack.i.l.bf16 %v13476_v26 }
0x1658   :  { %v8127_v17 = vpack.c.bf16 %v7131_v61, %v6996_v54  ;;  %8259 = vmatprep.subr.bf16.mxu1 %v8130_v29 }
0x1659   :  { %8260 = vmatpush1.bf16.msra.mxu1 %v8129_v49  ;;  %v7267_v1 = vsel %vm14493_vm15, %v9341_v55, %v9342_v24  ;;  %vm14501_vm15 = vcmask 990208  }
0x165a   :  { %v7481_v37 = vpop.permute.xlu1 %7480  ;;  %v9350_v0 = vpop.permute.xlu0 %9349  ;;  %8219 = vmatpush1.bf16.msra.mxu0 %v8127_v17 }
0x165b   :  { %v7489_v38 = vsel %vm457_vm7, %v7479_v59, %v7481_v37  ;;  %v7490_v23 = vsel %vm457_vm7, %v7481_v37, %v7483_v3  ;;  %v9352_v5 = vunpack.i.h.bf16 %v9350_v0  ;;  %v9351_v12 = vunpack.i.l.bf16 %v9350_v0 }
0x165c   :  { %v7506_v51 = vmul.f32 %v7489_v38, %v11730_v33  ;;  %v7507_v36 = vmul.f32 %v7490_v23, %v11733_v6 }
0x165d   :  { %v7402_v10 = vsel %vm542_vm3, %v9351_v12, %v9352_v5 }
0x165e   :  { %v9463_v35 = vpack.i.bf16 %v7506_v51, %v7505_v56  ;;  %v9468_v19 = vpack.i.bf16 %v7508_v40, %v7507_v36  ;;  %v7614_v22 = vpop.permute.xlu1 %7613  ;;  %v7249_v18 = vpop.permute.xlu0 %7248  ;;  %v8136_v46 = vpack.c.bf16 %v7402_v10, %v7267_v1 }
0x165f   :  { %v7623_v59 = vsel %vm319_vm6, %v14446_v25, %v7614_v22  ;;  %v7624_v3 = vsel %vm319_vm6, %v7614_v22, %v7616_v39 }
0x1660   :  { %v7640_v31 = vmul.f32 %v7623_v59, %v11727_v42  ;;  %v7641_v32 = vmul.f32 %v7624_v3, %v11730_v33  ;;  %9464 = vrot.lane.b32.xlu0 %v9463_v35, %s9601_s23  ;;  %9469 = vrot.lane.b32.xlu1 %v9468_v19, %s9601_s23 }
0x1661   :  { %8220 = vmatprep.subr.bf16.mxu0 %v8136_v46 }
0x1662   :  { %v9473_v60 = vpack.i.bf16 %v7641_v32, %v7640_v31  ;;  %v7618_v49 = vpop.permute.xlu1 %7617  ;;  %v7749_v47 = vpop.permute.xlu0 %7748 }
0x1663   :  { %v7625_v26 = vsel %vm319_vm6, %v7616_v39, %v7618_v49  ;;  %v7643_v29 = vmul.f32 0.0, %v7618_v49  ;;  %v7758_v32 = vsel %vm181_vm5, %v14464_v13, %v7749_v47 }
0x1664   :  { %v7642_v54 = vmul.f32 %v7625_v26, %v11733_v6  ;;  %9474 = vrot.lane.b32.xlu0 %v9473_v60, %s9600_s22  ;;  %v7775_v13 = vmul.f32 %v7758_v32, %v11727_v42 }
0x1666   :  { %v9478_v25 = vpack.i.bf16 %v7643_v29, %v7642_v54  ;;  %v13501_v61 = vpop.permute.xlu1 %9344  ;;  %v7753_v17 = vpop.permute.xlu0 %7752 }
0x1667   :  { %v14057_v4 = vunpack.i.h.bf16 %v13501_v61  ;;  %v9346_v40 = vunpack.i.l.bf16 %v13501_v61 }
0x1668   :  { %9479 = vrot.lane.b32.xlu1 %v9478_v25, %s9600_s22 }
0x1669   :  { %v7268_v23 = vsel %vm14494_vm12, %v9342_v24, %v9346_v40  ;;  %v7269_v56 = vsel %vm14495_vm11, %v9346_v40, %v14057_v4  ;;  %v7266_v24 = vsel %vm14491_vm4, %v7249_v18, %v9341_v55  ;;  %v7778_v18 = vmul.f32 0.0, %v7753_v17 }
0x166a   :  { %v13506_v37 = vpop.permute.xlu1 %9354  ;;  %v13508_v0 = vpop.permute.xlu0 %9364  ;;  %vm14513_vm12 = vcmask 982016   ;;  %vm14514_vm11 = vcmask 973824   ;;  %vm14526_vm4 = vcmask 719872  }
0x166b   :  { %v14056_v39 = vunpack.i.h.bf16 %v13506_v37  ;;  %v9356_v38 = vunpack.i.l.bf16 %v13506_v37  ;;  %v14055_v36 = vunpack.i.h.bf16 %v13508_v0  ;;  %v9366_v1 = vunpack.i.l.bf16 %v13508_v0 }
0x166d   :  { %v7403_v51 = vsel %vm542_vm3, %v9352_v5, %v9356_v38  ;;  %v7404_v10 = vsel %vm542_vm3, %v9356_v38, %v14056_v39  ;;  %v7539_v60 = vsel %vm404_vm2, %v9366_v1, %v14055_v36 }
0x166e   :  { %v8137_v35 = vpack.c.bf16 %v7403_v51, %v7268_v23  ;;  %v7384_v19 = vpop.permute.xlu1 %7383  ;;  %v13522_v22 = vpop.permute.xlu0 %9374  ;;  %v8138_v46 = vpack.c.bf16 %v7404_v10, %v7269_v56 }
0x166f   :  { %v7401_v59 = vsel %vm542_vm3, %v7384_v19, %v9351_v12  ;;  %v14054_v3 = vunpack.i.h.bf16 %v13522_v22  ;;  %v9376_v5 = vunpack.i.l.bf16 %v13522_v22 }
0x1670   :  { %v8135_v31 = vpack.c.bf16 %v7401_v59, %v7266_v24  ;;  %8261 = vmatprep.subr.bf16.mxu1 %v8138_v46 }
0x1671   :  { %8262 = vmatpush1.bf16.msra.mxu1 %v8137_v35  ;;  %v7674_v55 = vsel %vm266_vm1, %v9376_v5, %v14054_v3  ;;  %v14508_v3 = vld [vmem:[#allocation22_spill] sm:$0xff] }
0x1672   :  { %v7751_v12 = vpop.permute.xlu1 %7750  ;;  %v7654_v49 = vpop.permute.xlu0 %7653  ;;  %8221 = vmatpush1.bf16.msra.mxu0 %v8135_v31  ;;  %v8146_v26 = vpack.c.bf16 %v7674_v55, %v7539_v60 }
0x1673   :  { %v7759_v29 = vsel %vm181_vm5, %v7749_v47, %v7751_v12  ;;  %v7760_v54 = vsel %vm181_vm5, %v7751_v12, %v7753_v17  ;;  %v8159_v47 = vld [vmem:[%s13886_s4] sm:$0xff]  ;;  %s9616_s4 = smov [#allocation9]  }
0x1674   :  { %v7776_v25 = vmul.f32 %v7759_v29, %v11730_v33  ;;  %v7777_v40 = vmul.f32 %v7760_v54, %v11733_v6  ;;  %8263 = vmatprep.subr.bf16.mxu1 %v8146_v26  ;;  %s8400_s18 = sshll.u32 %s9616_s4, 4  ;;  %s8401_s18 = int_to_ptr.vmem [resolvable:$true] %s8400_s18 }
0x1675   :  { %s9567_s0 = scalar_lea.vmem %s8401_s18, 1024  ;;  %p9572_p3 = scmp.lt.s32.totalorder %s8401_s18, %s8401_s18 }
0x1676   :  { %v9483_v38 = vpack.i.bf16 %v7776_v25, %v7775_v13  ;;  %v9488_v23 = vpack.i.bf16 %v7778_v18, %v7777_v40  ;;  %v9360_v56 = vpop.permute.xlu1 %9359  ;;  %v9385_v51 = vpop.permute.xlu0 %9384  ;;  %v14496_v18 = vld [vmem:[#allocation16_spill] sm:$0xff]  ;;  %p9568_p2 = scmp.ne.s32.totalorder %s8401_s18, %s9567_s0  ;;  %p9573_p4 = scmp.lt.s32.totalorder %s9567_s0, %s9567_s0 }
0x1677   :  { %v9362_v10 = vunpack.i.h.bf16 %v9360_v56  ;;  %v9361_v35 = vunpack.i.l.bf16 %v9360_v56  ;;  %v9011_v12 = vunpack.i.l.bf16 %v14496_v18  ;;  %v9387_v26 = vunpack.i.h.bf16 %v9385_v51 }
0x1678   :  { %9484 = vrot.lane.b32.xlu0 %v9483_v38, %s9599_s5  ;;  %9489 = vrot.lane.b32.xlu1 %v9488_v23, %s9599_s5  ;;  %v9386_v40 = vunpack.i.l.bf16 %v9385_v51  ;;  %v14497_v23 = vld [vmem:[#allocation15_spill] sm:$0xff]  ;;  %p9574_p5 = por %p9573_p4, %p9572_p3 }
0x1679   :  { %v7538_v59 = vsel %vm404_vm2, %v9362_v10, %v9366_v1  ;;  %v7537_v60 = vsel %vm404_vm2, %v9361_v35, %v9362_v10  ;;  %v8992_v56 = vunpack.i.h.bf16 %v14497_v23  ;;  %v8991_v10 = vunpack.i.l.bf16 %v14497_v23 }
0x167a   :  { %v9370_v17 = vpop.permute.xlu1 %9369  ;;  %v13546_v19 = vpop.permute.xlu0 %9389  ;;  %p9575_p6 = pnand %p9574_p5, %p9568_p2 }
0x167b   :  { %v9372_v46 = vunpack.i.h.bf16 %v9370_v17  ;;  %v9371_v24 = vunpack.i.l.bf16 %v9370_v17  ;;  %v14064_v32 = vunpack.i.l.bf16 %v13546_v19 }
0x167c   :  { %8162 = vperm.xlu0 %8972, %v8159_v47   ;;  %v9012_v47 = vunpack.i.h.bf16 %v14496_v18  ;;  %v14502_v18 = vld [vmem:[#allocation14_spill] sm:$0xff] }
0x167d   :  { %v7673_v31 = vsel %vm266_vm1, %v9372_v46, %v9376_v5  ;;  %v7672_v55 = vsel %vm266_vm1, %v9371_v24, %v9372_v46  ;;  %v7671_v38 = vsel %vm266_vm1, %v7654_v49, %v9371_v24  ;;  %v14498_v46 = vld [vmem:[#allocation101_spill] sm:$0xff] }
0x167e   :  { %v8145_v29 = vpack.c.bf16 %v7673_v31, %v7538_v59  ;;  %v7519_v54 = vpop.permute.xlu1 %7518  ;;  %v13554_v13 = vpop.permute.xlu0 %9394  ;;  %v8144_v25 = vpack.c.bf16 %v7672_v55, %v7537_v60  ;;  %v14499_v59 = vunpack.i.h.bf16 %v14498_v46  ;;  %v14507_v46 = vld [vmem:[#allocation19_spill] sm:$0xff] }
0x167f   :  { %v7536_v1 = vsel %vm404_vm2, %v7519_v54, %v9361_v35  ;;  %v9396_v5 = vunpack.i.l.bf16 %v13554_v13 }
0x1680   :  { %v8143_v17 = vpack.c.bf16 %v7671_v38, %v7536_v1  ;;  %8222 = vmatprep.subr.bf16.mxu0 %v8144_v25  ;;  %8264 = vmatpush1.bf16.msra.mxu1 %v8145_v29  ;;  %v13567_v51 = vsel %vm14500_vm14, %v14499_v59, %v14064_v32  ;;  %v14503_v29 = vunpack.i.h.bf16 %v14502_v18  ;;  %v7808_v25 = vsel %vm128_vm0, %v9386_v40, %v9387_v26  ;;  %v14504_v1 = vld [vmem:[#allocation34_spill] sm:$0xff]  ;;  %v14505_v38 = vld [vmem:[#allocation21_spill] sm:$0xff] }
0x1681   :  { %v13574_v49 = vsel %vm14501_vm15, %v9262_v44, %v9396_v5  ;;  %v4372_v41 = vsel %vm181_vm5, %v8992_v56, %v14504_v1  ;;  %v4506_v44 = vsel %vm319_vm6, %v9011_v12, %v9012_v47  ;;  %v14506_v23 = vunpack.i.h.bf16 %v14505_v38  ;;  %vm14532_vm15 = vmmov %vm14526_vm4 }
0x1682   :  { %v9380_v35 = vpop.permute.xlu1 %9379  ;;  %v13576_v24 = vpop.permute.xlu0 %9399  ;;  %8223 = vmatpush1.bf16.msra.mxu0 %v8143_v17  ;;  %v4505_v54 = vsel %vm319_vm6, %v14503_v29, %v9011_v12  ;;  %v4507_v59 = vsel %vm319_vm6, %v9012_v47, %v14507_v46  ;;  %v8153_v20 = vpack.c.bf16 %v7808_v25, %v7808_v25  ;;  %v9052_v47 = vunpack.i.h.bf16 %v14508_v3 }
0x1683   :  { %v9382_v60 = vunpack.i.h.bf16 %v9380_v35  ;;  %v9381_v55 = vunpack.i.l.bf16 %v9380_v35  ;;  %v4370_v17 = vsel %vm181_vm5, %v14506_v23, %v8991_v10  ;;  %v9051_v35 = vunpack.i.l.bf16 %v14508_v3  ;;  %v14509_v23 = vld [vmem:[#allocation20_spill] sm:$0xff]  ;;  %v14511_v3 = vld [vmem:[#allocation18_spill] sm:$0xff] }
0x1684   :  { %v14063_v29 = vunpack.i.l.bf16 %v13576_v24  ;;  %v8052_v38 = vpack.c.bf16 %v4505_v54, %v4370_v17  ;;  %v9031_v63 = vunpack.i.l.bf16 %v14509_v23  ;;  %v9032_v50 = vunpack.i.h.bf16 %v14509_v23  ;;  %v14510_v54 = vld [vmem:[#allocation42_spill] sm:$0xff] }
0x1685   :  { %v7807_v18 = vsel %vm128_vm0, %v9382_v60, %v9386_v40  ;;  %v7806_v36 = vsel %vm128_vm0, %v9381_v55, %v9382_v60  ;;  %v9091_v25 = vunpack.i.l.bf16 %v14510_v54  ;;  %v14512_v17 = vunpack.i.h.bf16 %v14511_v3 }
0x1686   :  { %v8152_v39 = vpack.c.bf16 %v7807_v18, %v7807_v18  ;;  %v13596_v4 = vpop.permute.xlu1 %7796  ;;  %v13598_v1 = vpop.permute.xlu0 %9404  ;;  %v8151_v12 = vpack.c.bf16 %v7806_v36, %v7806_v36  ;;  %v13610_v36 = vcombine.low %v13277_v28, %v13277_v28  ;;  %v13621_v18 = vsel %vm14513_vm12, %v9287_v30, %v14063_v29  ;;  %v14524_v30 = vld [vmem:[#allocation24_spill] sm:$0xff] }
0x1687   :  { %v7809_v46 = vsel %vm128_vm0, %v9387_v26, %v13596_v4  ;;  %v14062_v40 = vunpack.i.l.bf16 %v13598_v1  ;;  %v4775_v26 = vsel %vm595_vm8, %v14512_v17, %v9051_v35  ;;  %v8181_v23 = vsel %vm4033_vm9, %v8153_v20, 0 }
0x1688   :  { %v8154_v60 = vpack.c.bf16 %v7809_v46, %v7809_v46  ;;  %8422 = vmatprep.subr.msk.bf16.mxu0 %vm4033_vm9, %v8152_v39  ;;  %v8175_v55 = vsel %vm4033_vm9, %v8151_v12, 0  ;;  %v4371_v39 = vsel %vm181_vm5, %v8991_v10, %v8992_v56  ;;  %v8054_v43 = vpack.c.bf16 %v4507_v59, %v4372_v41  ;;  %v14515_v46 = vld [vmem:[#allocation46_spill] sm:$0xff] }
0x1689   :  { %8225 = vmatpush1.bf16.msra.mxu0 %v8175_v55  ;;  %v13628_v28 = vsel %vm14514_vm11, %v9292_v27, %v14062_v40  ;;  %v9071_v55 = vunpack.i.l.bf16 %v14515_v46  ;;  %v9092_v34 = vunpack.i.h.bf16 %v14510_v54  ;;  %v14516_v27 = vld [vmem:[#allocation28_spill] sm:$0xff]  ;;  %v14518_v10 = vld [vmem:[#allocation26_spill] sm:$0xff]  ;;  %v8053_v41 = vpack.c.bf16 %v4506_v44, %v4371_v39 }
0x168a   :  { %v13631_v12 = vpop.permute.xlu1 %6184  ;;  %8424 = vmatprep.subr.msk.bf16.mxu1 %vm4033_vm9, %v8154_v60  ;;  %8280 = vmatprep.subr.bf16.mxu0 %v8052_v38  ;;  %v14517_v3 = vunpack.i.h.bf16 %v14516_v27  ;;  %v4777_v17 = vsel %vm595_vm8, %v9052_v47, %v14518_v10  ;;  %v14519_v60 = vld [vmem:[#allocation38_spill] sm:$0xff]  ;;  %v4776_v59 = vsel %vm595_vm8, %v9051_v35, %v9052_v47  ;;  %v9072_v54 = vunpack.i.h.bf16 %v14515_v46  ;;  %v14521_v27 = vld [vmem:[#allocation23_spill] sm:$0xff] }
0x168b   :  { %8266 = vmatpush1.bf16.msra.mxu1 %v8181_v23  ;;  %v4642_v38 = vsel %vm457_vm7, %v9032_v50, %v14519_v60  ;;  %v14520_v23 = vld [vmem:[#allocation47_spill] sm:$0xff]  ;;  %v14525_v10 = vunpack.i.h.bf16 %v14524_v30  ;;  %v14527_v47 = vld [vmem:[#allocation54_spill] sm:$0xff]  ;;  %vm14530_vm14 = vcmask 523264  }
0x168c   :  { %v4640_v56 = vsel %vm457_vm7, %v14517_v3, %v9031_v63  ;;  %8231 = vmatmul.mubr.bf16.vlgmr.msra.gmra.mrb[8].mxu0 %v13610_v36  ;;  %8321 = vmatprep.subr.bf16.mxu1 %v8054_v43  ;;  %v9131_v48 = vunpack.i.l.bf16 %v14520_v23  ;;  %v14523_v3 = vpack.c.bf16 %v14521_v27, %v14522_v9  ;;  %v8062_v35 = vpack.c.bf16 %v4777_v17, %v4642_v38  ;;  %v14528_v43 = vld [vmem:[#allocation27_spill] sm:$0xff]  ;;  %v14533_v38 = vld [vmem:[#allocation25_spill] sm:$0xff]  ;;  %vm14534_vm12 = vmmov %vm14530_vm14 }
0x168d   :  { %v8060_v20 = vpack.c.bf16 %v4775_v26, %v4640_v56  ;;  %v5045_v7 = vsel %vm542_vm3, %v14525_v10, %v9091_v25  ;;  %8427 = vmatprep.mubr.msk.bf16.mxu0 %vm14526_vm4, %v13281_v53  ;;  %v4641_v26 = vsel %vm457_vm7, %v9031_v63, %v9032_v50  ;;  %v9111_v39 = vunpack.i.l.bf16 %v14527_v47  ;;  %v14531_v56 = vld [vmem:[#allocation29_spill] sm:$0xff]  ;;  %vm14541_vm11 = vmmov %vm14534_vm12 }
0x168e   :  { %8281 = vmatpush1.bf16.msra.mxu0 %v14523_v3  ;;  %v13659_v44 = vpop.permute.xlu1 %6319  ;;  %8272 = vmatmul.mubr.bf16.vlgmr.msra.gmra.mrb[8].mxu1 %v13610_v36  ;;  %v9132_v9 = vunpack.i.h.bf16 %v14520_v23  ;;  %v14529_v30 = vunpack.i.h.bf16 %v14528_v43  ;;  %v5047_v60 = vsel %vm542_vm3, %v9092_v34, %v14531_v56  ;;  %v9112_v50 = vunpack.i.h.bf16 %v14527_v47  ;;  %v14535_v23 = vld [vmem:[#allocation55_spill] sm:$0xff]  ;;  %v14536_v3 = vld [vmem:[#allocation30_spill] sm:$0xff]  ;;  %v14537_v10 = vld [vmem:[#allocation17_spill] sm:$0xff] }
0x168f   :  { %8282 = vmatprep.subr.bf16.mxu0 %v8060_v20  ;;  %8322 = vmatpush1.bf16.msra.mxu1 %v8053_v41  ;;  %v8061_v17 = vpack.c.bf16 %v4776_v59, %v4641_v26  ;;  %v4912_v20 = vsel %vm14534_vm12, %v9072_v54, %v14533_v38  ;;  %v5046_v41 = vsel %vm542_vm3, %v9091_v25, %v9092_v34  ;;  %v9171_v27 = vunpack.i.l.bf16 %v14535_v23  ;;  %v14542_v59 = vld [vmem:[#allocation36_spill] sm:$0xff]  ;;  %v14543_v34 = vld [vmem:[#allocation39_spill] sm:$0xff] }
0x1690   :  { %v4910_v46 = vsel %vm14530_vm14, %v14529_v30, %v9071_v55  ;;  %8429 = vmatprep.mubr.msk.bf16.mxu1 %vm14532_vm15, %v13281_v53  ;;  %8323 = vmatprep.subr.bf16.mxu1 %v8062_v35  ;;  %v14538_v43 = vpack.c.bf16 %v14536_v3, %v14537_v10  ;;  %v14539_v30 = vld [vmem:[#allocation31_spill] sm:$0xff]  ;;  %v4911_v47 = vsel %vm14541_vm11, %v9071_v55, %v9072_v54  ;;  %v9151_v26 = vunpack.i.l.bf16 %v14542_v59  ;;  %v14545_v3 = vld [vmem:[#allocation40_spill] sm:$0xff] }
0x1691   :  { %v8068_v63 = vpack.c.bf16 %v5045_v7, %v4910_v46  ;;  %v14540_v56 = vunpack.i.h.bf16 %v14539_v30  ;;  %v8070_v7 = vpack.c.bf16 %v5047_v60, %v4912_v20  ;;  %v9172_v25 = vunpack.i.h.bf16 %v14535_v23  ;;  %v14547_v20 = vld [vmem:[#allocation63_spill] sm:$0xff] }
0x1692   :  { %8283 = vmatpush1.bf16.msra.mxu0 %v14538_v43  ;;  %v13683_v35 = vpop.permute.xlu1 %6454  ;;  %v14544_v46 = vunpack.i.h.bf16 %v14543_v34  ;;  %v5317_v10 = vsel %vm266_vm1, %v9132_v9, %v14545_v3  ;;  %v14546_v43 = vld [vmem:[#allocation32_spill] sm:$0xff]  ;;  %v8069_v54 = vpack.c.bf16 %v5046_v41, %v4911_v47  ;;  %v5316_v60 = vsel %vm266_vm1, %v9131_v48, %v9132_v9  ;;  %v14554_v47 = vld [vmem:[#allocation62_spill] sm:$0xff] }
0x1693   :  { %v5315_v53 = vsel %vm266_vm1, %v14540_v56, %v9131_v48  ;;  %8284 = vmatprep.subr.bf16.mxu0 %v8068_v63  ;;  %8324 = vmatpush1.bf16.msra.mxu1 %v8061_v17  ;;  %v5182_v30 = vsel %vm404_vm2, %v9112_v50, %v14546_v43  ;;  %v9152_v63 = vunpack.i.h.bf16 %v14542_v59  ;;  %v9211_v23 = vunpack.i.l.bf16 %v14547_v20  ;;  %v14548_v17 = vld [vmem:[#allocation33_spill] sm:$0xff]  ;;  %v14549_v56 = vld [vmem:[#allocation35_spill] sm:$0xff] }
0x1694   :  { %v5180_v38 = vsel %vm404_vm2, %v14544_v46, %v9111_v39  ;;  %8325 = vmatprep.subr.bf16.mxu1 %v8070_v7  ;;  %v14550_v34 = vpack.c.bf16 %v14548_v17, %v14549_v56  ;;  %v14551_v46 = vld [vmem:[#allocation51_spill] sm:$0xff]  ;;  %v5181_v29 = vsel %vm404_vm2, %v9111_v39, %v9112_v50  ;;  %v8078_v41 = vpack.c.bf16 %v5317_v10, %v5182_v30  ;;  %v13713_v56 = vpop.permute.xlu0 %9409  ;;  %v14557_v50 = vld [vmem:[#allocation37_spill] sm:$0xff] }
0x1695   :  { %v8076_v55 = vpack.c.bf16 %v5315_v53, %v5180_v38  ;;  %v14552_v40 = vunpack.i.h.bf16 %v14551_v46  ;;  %v14553_v53 = vld [vmem:[#allocation45_spill] sm:$0xff]  ;;  %v9212_v9 = vunpack.i.h.bf16 %v14547_v20  ;;  %v14555_v7 = vunpack.i.h.bf16 %v14554_v47  ;;  %v14556_v38 = vld [vmem:[#allocation48_spill] sm:$0xff]  ;;  %v14562_v47 = vld [vmem:[#allocation59_spill] sm:$0xff] }
0x1696   :  { %8285 = vmatpush1.bf16.msra.mxu0 %v14550_v34  ;;  %v13704_v43 = vpop.permute.xlu1 %6589  ;;  %v9191_v48 = vunpack.i.l.bf16 %v14553_v53  ;;  %v5587_v17 = vsel %vm1414_vm10, %v9172_v25, %v14556_v38  ;;  %v8077_v39 = vpack.c.bf16 %v5316_v60, %v5181_v29  ;;  %v5452_v10 = vsel %vm128_vm0, %v9152_v63, %v14557_v50  ;;  %v14560_v34 = vld [vmem:[#allocation43_spill] sm:$0xff] }
0x1697   :  { %v5585_v3 = vsel %vm1414_vm10, %v14552_v40, %v9171_v27  ;;  %8286 = vmatprep.subr.bf16.mxu0 %v8076_v55  ;;  %8326 = vmatpush1.bf16.msra.mxu1 %v8069_v54  ;;  %v5450_v59 = vsel %vm128_vm0, %v14555_v7, %v9151_v26  ;;  %v9192_v30 = vunpack.i.h.bf16 %v14553_v53  ;;  %v14558_v55 = vld [vmem:[#allocation67_spill] sm:$0xff]  ;;  %v14559_v54 = vld [vmem:[#allocation50_spill] sm:$0xff]  ;;  %v14563_v7 = vunpack.i.h.bf16 %v14562_v47 }
0x1698   :  { %8327 = vmatprep.subr.bf16.mxu1 %v8078_v41  ;;  %v8084_v40 = vpack.c.bf16 %v5585_v3, %v5450_v59  ;;  %v9231_v20 = vunpack.i.l.bf16 %v14558_v55  ;;  %v14561_v46 = vpack.c.bf16 %v14559_v54, %v14560_v34  ;;  %v5586_v32 = vsel %vm1414_vm10, %v9171_v27, %v9172_v25  ;;  %v9522_v60 = vld [vmem:[#allocation7 + $0x68] sm:$0xff]  ;;  %v14564_v59 = vld [vmem:[#allocation70_spill] sm:$0xff]  ;;  %v14567_v34 = vld [vmem:[#allocation56_spill] sm:$0xff]  ;;  %v13746_v31 = vpop.permute.xlu0 %9414 }
0x1699   :  { %v5855_v38 = vsel %vm1690_vm13, %v14563_v7, %v9211_v23  ;;  %v8086_v29 = vpack.c.bf16 %v5587_v17, %v5452_v10  ;;  %v6042_v3 = vrot.slane %v9522_v60, %v9698_v11  ;;  %v9232_v53 = vunpack.i.h.bf16 %v14558_v55  ;;  %v14568_v17 = vld [vmem:[#allocation44_spill] sm:$0xff]  ;;  %v14570_v11 = vld [vmem:[#allocation58_spill] sm:$0xff]  ;;  %v14571_v10 = vld [vmem:[#allocation41_spill] sm:$0xff] }
0x169a   :  { %8287 = vmatpush1.bf16.msra.mxu0 %v14561_v46  ;;  %v13726_v41 = vpop.permute.xlu1 %6724  ;;  %v14565_v50 = vunpack.i.h.bf16 %v14564_v59  ;;  %vm14566_vm4 = vcmask 64512   ;;  %v5857_v46 = vsel %vm1690_vm13, %v9212_v9, %v14567_v34  ;;  %v5451_v47 = vsel %vm128_vm0, %v9151_v26, %v9152_v63  ;;  %v14573_v7 = vld [vmem:[#allocation78_spill] sm:$0xff] }
0x169b   :  { %8288 = vmatprep.subr.bf16.mxu0 %v8084_v40  ;;  %8328 = vmatpush1.bf16.msra.mxu1 %v8077_v39  ;;  %v6050_v27 = vrot.slane %v9522_v60, %v9706_v15  ;;  %vm14569_vm10 = vmmov %vm14566_vm4  ;;  %v14572_v55 = vpack.c.bf16 %v14570_v11, %v14571_v10  ;;  %v8085_v39 = vpack.c.bf16 %v5586_v32, %v5451_v47  ;;  %v14574_v59 = vunpack.i.h.bf16 %v14573_v7 }
0x169c   :  { %v5720_v54 = vsel %vm14566_vm4, %v14565_v50, %v9191_v48  ;;  %8329 = vmatprep.subr.bf16.mxu1 %v8086_v29  ;;  %v5722_v40 = vsel %vm14569_vm10, %v9192_v30, %v14568_v17  ;;  %vm14575_vm14 = vcmask 7168   ;;  %v5856_v34 = vsel %vm1690_vm13, %v9211_v23, %v9212_v9  ;;  %vm14578_vm12 = vmmov %vm14566_vm4 }
0x169d   :  { %v8092_v25 = vpack.c.bf16 %v5855_v38, %v5720_v54  ;;  %v5990_v50 = vsel %vm14575_vm14, %v14574_v59, %v9231_v20  ;;  %v8094_v15 = vpack.c.bf16 %v5857_v46, %v5722_v40  ;;  %v6064_v26 = vmul.f32 %v6042_v3, %v11727_v42  ;;  %v14576_v38 = vld [vmem:[#allocation57_spill] sm:$0xff]  ;;  %vm14577_vm15 = vmmov %vm14575_vm14 }
0x169e   :  { %8289 = vmatpush1.bf16.msra.mxu0 %v14572_v55  ;;  %v6046_v63 = vrot.slane %v9522_v60, %v9708_v16  ;;  %v5992_v29 = vsel %vm14577_vm15, %v9232_v53, %v14576_v38  ;;  %v5721_v32 = vsel %vm14578_vm12, %v9191_v48, %v9192_v30  ;;  %v6066_v54 = vmul.f32 %v6050_v27, %v11733_v6  ;;  %v13754_v47 = vpop.permute.xlu1 %9419  ;;  %vm14579_vm13 = vmmov %vm14575_vm14  ;;  %v14581_v42 = vld [vmem:[#allocation49_spill] sm:$0xff] }
0x169f   :  { %8290 = vmatprep.subr.bf16.mxu0 %v8092_v25  ;;  %8330 = vmatpush1.bf16.msra.mxu1 %v8085_v39  ;;  %v8100_v23 = vpack.c.bf16 %v6064_v26, %v5990_v50  ;;  %v5991_v9 = vsel %vm14579_vm13, %v9231_v20, %v9232_v53  ;;  %v9397_v46 = vunpack.i.h.bf16 %v13554_v13  ;;  %v14580_v25 = vld [vmem:[#allocation66_spill] sm:$0xff]  ;;  %v8093_v16 = vpack.c.bf16 %v5856_v34, %v5721_v32  ;;  %v14586_v55 = vld [vmem:[#allocation53_spill] sm:$0xff] }
0x16a0   :  { %8331 = vmatprep.subr.bf16.mxu1 %v8094_v15  ;;  %v14582_v3 = vpack.c.bf16 %v14580_v25, %v14581_v42  ;;  %v8102_v60 = vpack.c.bf16 %v6066_v54, %v5992_v29  ;;  %v6065_v48 = vmul.f32 %v6046_v63, %v11730_v33  ;;  %v9392_v6 = vunpack.i.h.bf16 %v13546_v19 }
0x16a1   :  { %vm14583_vm11 = vcmask 990208   ;;  %v9402_v20 = vunpack.i.h.bf16 %v13576_v24  ;;  %v9407_v53 = vunpack.i.h.bf16 %v13598_v1  ;;  %vm14585_vm10 = vcmask 1039360  }
0x16a2   :  { %8291 = vmatpush1.bf16.msra.mxu0 %v14582_v3  ;;  %v13761_v17 = vpop.permute.xlu0 %9424  ;;  %v6328_v30 = vsel %vm14583_vm11, %v9397_v46, %v13659_v44  ;;  %v8101_v27 = vpack.c.bf16 %v6065_v48, %v5991_v9  ;;  %vm14584_vm4 = vmmov %vm14583_vm11  ;;  %v6193_v11 = vsel %vm14585_vm10, %v9392_v6, %v13631_v12  ;;  %v9417_v33 = vunpack.i.h.bf16 %v13746_v31  ;;  %v14587_v44 = vld [vmem:[#allocation52_spill] sm:$0xff]  ;;  %v9430_v34 = vpop.permute.xlu1 %9429 }
0x16a3   :  { %8292 = vmatprep.subr.bf16.mxu0 %v8100_v23  ;;  %8332 = vmatpush1.bf16.msra.mxu1 %v8093_v16  ;;  %v6327_v40 = vsel %vm14584_vm4, %v9396_v5, %v9397_v46  ;;  %v9416_v10 = vunpack.i.l.bf16 %v13746_v31  ;;  %v14588_v39 = vpack.c.bf16 %v14586_v55, %v14587_v44  ;;  %v9411_v7 = vunpack.i.l.bf16 %v13713_v56  ;;  %vm14591_vm14 = vmmov %vm14585_vm10 }
0x16a4   :  { %8333 = vmatprep.subr.bf16.mxu1 %v8102_v60  ;;  %v8110_v59 = vpack.c.bf16 %v6328_v30, %v6193_v11  ;;  %v9422_v50 = vunpack.i.h.bf16 %v13754_v47  ;;  %v9421_v13 = vunpack.i.l.bf16 %v13754_v47  ;;  %v14589_v12 = vpack.c.bf16 %v13574_v49, %v13567_v51 }
0x16a5   :  { %v14590_v15 = vunpack.i.l.bf16 %v13546_v19  ;;  %vm14592_vm15 = vcmask 973824   ;;  %v14593_v38 = vunpack.i.l.bf16 %v13576_v24  ;;  %vm14594_vm12 = vcmask 982016  }
0x16a6   :  { %8293 = vmatpush1.bf16.msra.mxu0 %v14588_v39  ;;  %v9435_v5 = vpop.permute.xlu0 %9434  ;;  %v6598_v26 = vsel %vm14592_vm15, %v9407_v53, %v13704_v43  ;;  %v14595_v32 = vunpack.i.l.bf16 %v13598_v1  ;;  %vm14596_vm13 = vmmov %vm14592_vm15  ;;  %v14598_v47 = vpack.c.bf16 %v13317_v45, %v14475_v52  ;;  %v6866_v43 = vsel %vm319_vm6, %v9416_v10, %v9417_v33 }
0x16a7   :  { %8294 = vmatprep.subr.bf16.mxu0 %v14589_v12  ;;  %v6192_v31 = vsel %vm14591_vm14, %v14590_v15, %v9392_v6  ;;  %8334 = vmatpush1.bf16.msra.mxu1 %v8101_v27  ;;  %v6462_v29 = vsel %vm14594_vm12, %v14593_v38, %v9402_v20  ;;  %vm14597_vm11 = vmmov %vm14594_vm12  ;;  %v9437_v19 = vunpack.i.h.bf16 %v9435_v5  ;;  %v9436_v49 = vunpack.i.l.bf16 %v9435_v5 }
0x16a8   :  { %v8109_v63 = vpack.c.bf16 %v6327_v40, %v6192_v31  ;;  %v6597_v54 = vsel %vm14596_vm13, %v14595_v32, %v9407_v53  ;;  %8335 = vmatprep.subr.bf16.mxu1 %v8110_v59  ;;  %v6463_v51 = vsel %vm14597_vm11, %v9402_v20, %v13683_v35  ;;  %v9412_v24 = vunpack.i.h.bf16 %v13713_v56 }
0x16a9   :  { %v8118_v23 = vpack.c.bf16 %v6598_v26, %v6463_v51  ;;  %v14599_v1 = vpack.c.bf16 %v13628_v28, %v13621_v18  ;;  %v14600_v46 = vunpack.i.h.bf16 %v13408_v57  ;;  %v6868_v25 = vsel %vm319_vm6, %v9421_v13, %v9422_v50 }
0x16aa   :  { %8295 = vmatpush1.bf16.msra.mxu0 %v14598_v47  ;;  %v9440_v9 = vpop.permute.xlu1 %9439  ;;  %v9427_v42 = vunpack.i.h.bf16 %v13761_v17  ;;  %v9426_v45 = vunpack.i.l.bf16 %v13761_v17  ;;  %v8117_v56 = vpack.c.bf16 %v6597_v54, %v6462_v29  ;;  %v14601_v16 = vunpack.i.h.bf16 %v13427_v21 }
0x16ab   :  { %8296 = vmatprep.subr.bf16.mxu0 %v14599_v1  ;;  %v6731_v35 = vsel %vm181_vm5, %v14600_v46, %v9411_v7  ;;  %v9442_v52 = vunpack.i.h.bf16 %v9440_v9  ;;  %v9441_v3 = vunpack.i.l.bf16 %v9440_v9  ;;  %8336 = vmatpush1.bf16.msra.mxu1 %v8109_v63  ;;  %v6733_v57 = vsel %vm181_vm5, %v9412_v24, %v13726_v41 }
0x16ac   :  { %v6865_v60 = vsel %vm319_vm6, %v14601_v16, %v9416_v10  ;;  %8337 = vmatprep.subr.bf16.mxu1 %v8118_v23  ;;  %v8124_v18 = vpack.c.bf16 %v6866_v43, %v6731_v35  ;;  %v9432_v28 = vunpack.i.h.bf16 %v9430_v34  ;;  %v9431_v48 = vunpack.i.l.bf16 %v9430_v34 }
0x16ad   :  { %v14602_v6 = vpack.c.bf16 %v13394_v58, %v13361_v8  ;;  %v7136_v17 = vsel %vm595_vm8, %v9436_v49, %v9437_v19  ;;  %v6867_v30 = vsel %vm319_vm6, %v9417_v33, %v9421_v13  ;;  %v8126_v20 = vpack.c.bf16 %v6868_v25, %v6733_v57 }
0x16ae   :  { %v8123_v21 = vpack.c.bf16 %v6865_v60, %v13425_v62  ;;  %v7001_v53 = vsel %vm457_vm7, %v9426_v45, %v9427_v42  ;;  %v7138_v27 = vsel %vm595_vm8, %v9441_v3, %v9442_v52  ;;  %v6732_v41 = vsel %vm181_vm5, %v9411_v7, %v9412_v24 }
0x16af   :  { %8297 = vmatpush1.bf16.msra.mxu0 %v14602_v6  ;;  %8338 = vmatpush1.bf16.msra.mxu1 %v8117_v56  ;;  %v14603_v40 = vunpack.i.h.bf16 %v13464_v14  ;;  %v8132_v58 = vpack.c.bf16 %v7136_v17, %v7001_v53  ;;  %v8125_v11 = vpack.c.bf16 %v6867_v30, %v6732_v41  ;;  %v7003_v33 = vsel %vm457_vm7, %v9431_v48, %v9432_v28 }
0x16b0   :  { %8298 = vmatprep.subr.bf16.mxu0 %v8124_v18  ;;  %8339 = vmatprep.subr.bf16.mxu1 %v8126_v20  ;;  %v14604_v10 = vunpack.i.h.bf16 %v13459_v2  ;;  %v7137_v55 = vsel %vm595_vm8, %v9437_v19, %v9441_v3  ;;  %v8134_v44 = vpack.c.bf16 %v7138_v27, %v7003_v33  ;;  %v7002_v14 = vsel %vm457_vm7, %v9427_v42, %v9431_v48 }
0x16b1   :  { %v7135_v8 = vsel %vm595_vm8, %v14603_v40, %v9436_v49  ;;  %v8133_v7 = vpack.c.bf16 %v7137_v55, %v7002_v14  ;;  %v14605_v26 = vunpack.i.h.bf16 %v13501_v61  ;;  %vm14606_vm5 = vcmask 523264  }
0x16b2   :  { %v7000_v62 = vsel %vm457_vm7, %v14604_v10, %v9426_v45  ;;  %v14607_v38 = vunpack.i.h.bf16 %v13506_v37  ;;  %vm14608_vm6 = vmmov %vm14606_vm5  ;;  %v14611_v60 = vunpack.i.h.bf16 %v13508_v0  ;;  %v14612_v57 = vunpack.i.h.bf16 %v13522_v22 }
0x16b3   :  { %8299 = vmatpush1.bf16.msra.mxu0 %v8123_v21  ;;  %v8131_v39 = vpack.c.bf16 %v7135_v8, %v7000_v62  ;;  %8340 = vmatpush1.bf16.msra.mxu1 %v8125_v11  ;;  %vm14609_vm7 = vmmov %vm14606_vm5 }
0x16b4   :  { %8300 = vmatprep.subr.bf16.mxu0 %v8132_v58  ;;  %8341 = vmatprep.subr.bf16.mxu1 %v8134_v44  ;;  %vm14610_vm8 = vmmov %vm14606_vm5 }
0x16b7   :  { %8301 = vmatpush1.bf16.msra.mxu0 %v8131_v39  ;;  %8342 = vmatpush1.bf16.msra.mxu1 %v8133_v7 }
0x16ba   :  { %v9445_v59 = vpop.permute.xlu0 %9444  ;;  %v9450_v50 = vpop.permute.xlu1 %9449 }
0x16bb   :  { %v9447_v13 = vunpack.i.h.bf16 %v9445_v59  ;;  %v9446_v34 = vunpack.i.l.bf16 %v9445_v59  ;;  %v9452_v15 = vunpack.i.h.bf16 %v9450_v50  ;;  %v9451_v31 = vunpack.i.l.bf16 %v9450_v50 }
0x16bd   :  { %v7270_v63 = vsel %vm14606_vm5, %v14605_v26, %v9446_v34  ;;  %v7271_v32 = vsel %vm14608_vm6, %v9446_v34, %v9447_v13  ;;  %v7272_v24 = vsel %vm14609_vm7, %v9447_v13, %v9451_v31  ;;  %v7273_v23 = vsel %vm14610_vm8, %v9451_v31, %v9452_v15 }
0x16be   :  { %v9455_v5 = vpop.permute.xlu0 %9454 }
0x16bf   :  { %v9457_v2 = vunpack.i.h.bf16 %v9455_v5  ;;  %v9456_v12 = vunpack.i.l.bf16 %v9455_v5 }
0x16c1   :  { %v7405_v29 = vsel %vm542_vm3, %v14607_v38, %v9456_v12  ;;  %v7406_v54 = vsel %vm542_vm3, %v9456_v12, %v9457_v2 }
0x16c2   :  { %v8139_v51 = vpack.c.bf16 %v7405_v29, %v7270_v63  ;;  %v9460_v19 = vpop.permute.xlu1 %9459  ;;  %v8140_v49 = vpack.c.bf16 %v7406_v54, %v7271_v32 }
0x16c3   :  { %v9462_v47 = vunpack.i.h.bf16 %v9460_v19  ;;  %v9461_v43 = vunpack.i.l.bf16 %v9460_v19 }
0x16c4   :  { %8302 = vmatprep.subr.bf16.mxu0 %v8140_v49 }
0x16c5   :  { %v7407_v61 = vsel %vm542_vm3, %v9457_v2, %v9461_v43  ;;  %8303 = vmatpush1.bf16.msra.mxu0 %v8139_v51  ;;  %v7408_v37 = vsel %vm542_vm3, %v9461_v43, %v9462_v47 }
0x16c6   :  { %v8141_v9 = vpack.c.bf16 %v7407_v61, %v7272_v24  ;;  %v8142_v1 = vpack.c.bf16 %v7408_v37, %v7273_v23 }
0x16c8   :  { %8343 = vmatprep.subr.bf16.mxu1 %v8142_v1 }
0x16c9   :  { %8344 = vmatpush1.bf16.msra.mxu1 %v8141_v9 }
0x16d2   :  { %v9465_v46 = vpop.permute.xlu0 %9464  ;;  %v9470_v35 = vpop.permute.xlu1 %9469 }
0x16d3   :  { %v9467_v25 = vunpack.i.h.bf16 %v9465_v46  ;;  %v9466_v42 = vunpack.i.l.bf16 %v9465_v46  ;;  %v9472_v56 = vunpack.i.h.bf16 %v9470_v35  ;;  %v9471_v16 = vunpack.i.l.bf16 %v9470_v35 }
0x16d5   :  { %v7540_v18 = vsel %vm404_vm2, %v14611_v60, %v9466_v42  ;;  %v7541_v48 = vsel %vm404_vm2, %v9466_v42, %v9467_v25  ;;  %v7542_v27 = vsel %vm404_vm2, %v9467_v25, %v9471_v16  ;;  %v7543_v41 = vsel %vm404_vm2, %v9471_v16, %v9472_v56 }
0x16d6   :  { %v9475_v45 = vpop.permute.xlu0 %9474 }
0x16d7   :  { %v9477_v52 = vunpack.i.h.bf16 %v9475_v45  ;;  %v9476_v3 = vunpack.i.l.bf16 %v9475_v45 }
0x16d9   :  { %v7675_v28 = vsel %vm266_vm1, %v14612_v57, %v9476_v3  ;;  %v7676_v6 = vsel %vm266_vm1, %v9476_v3, %v9477_v52 }
0x16da   :  { %v8147_v17 = vpack.c.bf16 %v7675_v28, %v7540_v18  ;;  %v9480_v30 = vpop.permute.xlu1 %9479  ;;  %v8148_v20 = vpack.c.bf16 %v7676_v6, %v7541_v48 }
0x16db   :  { %v9482_v21 = vunpack.i.h.bf16 %v9480_v30  ;;  %v9481_v53 = vunpack.i.l.bf16 %v9480_v30 }
0x16dc   :  { %8304 = vmatprep.subr.bf16.mxu0 %v8148_v20 }
0x16dd   :  { %v7677_v0 = vsel %vm266_vm1, %v9477_v52, %v9481_v53  ;;  %8305 = vmatpush1.bf16.msra.mxu0 %v8147_v17  ;;  %v7678_v22 = vsel %vm266_vm1, %v9481_v53, %v9482_v21 }
0x16de   :  { %v8149_v40 = vpack.c.bf16 %v7677_v0, %v7542_v27  ;;  %v8150_v8 = vpack.c.bf16 %v7678_v22, %v7543_v41 }
0x16e0   :  { %8345 = vmatprep.subr.bf16.mxu1 %v8150_v8 }
0x16e1   :  { %8346 = vmatpush1.bf16.msra.mxu1 %v8149_v40 }
0x16ea   :  { %v9490_v58 = vpop.permute.xlu1 %9489  ;;  %v9485_v11 = vpop.permute.xlu0 %9484 }
0x16eb   :  { %v9492_v33 = vunpack.i.h.bf16 %v9490_v58  ;;  %v9491_v10 = vunpack.i.l.bf16 %v9490_v58  ;;  %v9487_v62 = vunpack.i.h.bf16 %v9485_v11  ;;  %v9486_v55 = vunpack.i.l.bf16 %v9485_v11 }
0x16ed   :  { %v7813_v44 = vsel %vm128_vm0, %v9491_v10, %v9492_v33  ;;  %v7811_v39 = vsel %vm128_vm0, %v9486_v55, %v9487_v62  ;;  %v7810_v14 = vsel %vm128_vm0, %v13596_v4, %v9486_v55  ;;  %v7812_v7 = vsel %vm128_vm0, %v9487_v62, %v9491_v10 }
0x16ee   :  { %v8158_v59 = vpack.c.bf16 %v7813_v44, %v7813_v44  ;;  %v8156_v50 = vpack.c.bf16 %v7811_v39, %v7811_v39  ;;  %v8155_v13 = vpack.c.bf16 %v7810_v14, %v7810_v14  ;;  %v8157_v34 = vpack.c.bf16 %v7812_v7, %v7812_v7 }
0x16f0   :  { %8426 = vmatprep.subr.msk.bf16.mxu0 %vm4033_vm9, %v8156_v50  ;;  %8428 = vmatprep.subr.msk.bf16.mxu1 %vm4033_vm9, %v8158_v59  ;;  %v8187_v5 = vsel %vm4033_vm9, %v8155_v13, 0  ;;  %v8193_v2 = vsel %vm4033_vm9, %v8157_v34, 0 }
0x16f1   :  { %8307 = vmatpush1.bf16.msra.mxu0 %v8187_v5  ;;  %8348 = vmatpush1.bf16.msra.mxu1 %v8193_v2 }
0x16f4   :  { %8313 = vmatmul.mubr.bf16.vlgmr.msra.gmra.mrb[12].mxu0 %v13610_v36  ;;  %8354 = vmatmul.mubr.bf16.vlgmr.msra.gmra.mrb[12].mxu1 %v13610_v36 }
0x16fb   :  { %v8163_v4 = vpop.permute.xlu0 %8162 }
0x175f   :  { %v8232_v12 = vpop.f32.mrb[8].mxu0 }
0x1760   :  { %v8233_v15 = vadd.f32 %v8232_v12, %v8163_v4  ;;  %v8234_v31 = vpop.f32.mrb[9].mxu0 }
0x1761   :  { %v8235_v26 = vadd.f32 %v8234_v31, %v8163_v4  ;;  %v8273_v63 = vpop.f32.mrb[8].mxu1  ;;  %v8236_v38 = vpop.f32.mrb[10].mxu0 }
0x1762   :  { %vm8362_vm0 = vcmp.ge.f32.partialorder %v8233_v15, 0.0  ;;  %v8370_v29 = vmul.f32 0.01, %v8233_v15  ;;  %v8274_v32 = vadd.f32 %v8273_v63, %v8163_v4  ;;  %v8275_v54 = vpop.f32.mrb[9].mxu1  ;;  %v8237_v51 = vpop.f32.mrb[11].mxu0 }
0x1763   :  { %vm8363_vm1 = vcmp.ge.f32.partialorder %v8235_v26, 0.0  ;;  %v8371_v19 = vmul.f32 0.01, %v8235_v26  ;;  %v8276_v49 = vadd.f32 %v8275_v54, %v8163_v4  ;;  %v8277_v47 = vpop.f32.mrb[10].mxu1 }
0x1764   :  { %v8378_v43 = vsel %vm8362_vm0, %v8233_v15, %v8370_v29  ;;  %vm8364_vm2 = vcmp.ge.f32.partialorder %v8274_v32, 0.0  ;;  %v8372_v24 = vmul.f32 0.01, %v8274_v32  ;;  %v8278_v36 = vpop.f32.mrb[11].mxu1 }
0x1765   :  { %8386 = vst [vmem:[#allocation9] sm:$0xff] %v8378_v43  ;;  %v8379_v61 = vsel %vm8363_vm1, %v8235_v26, %v8371_v19  ;;  %vm8365_vm3 = vcmp.ge.f32.partialorder %v8276_v49, 0.0  ;;  %v8373_v23 = vmul.f32 0.01, %v8276_v49 }
0x1766   :  { %8387 = vst [vmem:[#allocation9 + $0x8] sm:$0xff] %v8379_v61  ;;  %v8380_v37 = vsel %vm8364_vm2, %v8274_v32, %v8372_v24 }
0x1767   :  { %8388 = vst [vmem:[#allocation9 + $0x10] sm:$0xff] %v8380_v37  ;;  %v8381_v9 = vsel %vm8365_vm3, %v8276_v49, %v8373_v23 }
0x1768   :  { %8389 = vst [vmem:[#allocation9 + $0x18] sm:$0xff] %v8381_v9 }
0x17c7   :  { %v8314_v1 = vpop.f32.mrb[12].mxu0  ;;  %v8355_v46 = vpop.f32.mrb[12].mxu1 }
0x17c8   :  { %v8315_v35 = vadd.f32 %v8314_v1, %v8163_v4  ;;  %v8356_v25 = vadd.f32 %v8355_v46, %v8163_v4  ;;  %v8316_v42 = vpop.f32.mrb[13].mxu0  ;;  %v8357_v45 = vpop.f32.mrb[13].mxu1 }
0x17c9   :  { %v8317_v52 = vadd.f32 %v8316_v42, %v8163_v4  ;;  %v8358_v3 = vadd.f32 %v8357_v45, %v8163_v4  ;;  %v8318_v56 = vpop.f32.mrb[14].mxu0  ;;  %v8359_v16 = vpop.f32.mrb[14].mxu1 }
0x17ca   :  { %vm8366_vm9 = vcmp.ge.f32.partialorder %v8315_v35, 0.0  ;;  %v8374_v60 = vmul.f32 0.01, %v8315_v35  ;;  %vm8368_vm4 = vcmp.ge.f32.partialorder %v8356_v25, 0.0  ;;  %v8376_v18 = vmul.f32 0.01, %v8356_v25 }
0x17cb   :  { %vm8367_vm10 = vcmp.ge.f32.partialorder %v8317_v52, 0.0  ;;  %v8375_v57 = vmul.f32 0.01, %v8317_v52  ;;  %vm8369_vm14 = vcmp.ge.f32.partialorder %v8358_v3, 0.0  ;;  %v8377_v28 = vmul.f32 0.01, %v8358_v3 }
0x17cc   :  { %v8382_v48 = vsel %vm8366_vm9, %v8315_v35, %v8374_v60  ;;  %v8384_v6 = vsel %vm8368_vm4, %v8356_v25, %v8376_v18  ;;  %v8319_v17 = vpop.f32.mrb[15].mxu0  ;;  %v8360_v30 = vpop.f32.mrb[15].mxu1 }
0x17cd   :  { %8390 = vst [vmem:[#allocation9 + $0x20] sm:$0xff] %v8382_v48  ;;  %8392 = vst [vmem:[#allocation9 + $0x30] sm:$0xff] %v8384_v6  ;;  %v8383_v20 = vsel %vm8367_vm10, %v8317_v52, %v8375_v57  ;;  %v8385_v21 = vsel %vm8369_vm14, %v8358_v3, %v8377_v28 }
0x17ce   :  { %8391 = vst [vmem:[#allocation9 + $0x28] sm:$0xff] %v8383_v20  ;;  %8393 = vst [vmem:[#allocation9 + $0x38] sm:$0xff] %v8385_v21 }
0x17cf   :  { %9578 = shalt.err (!%p9575_p6)
}
0x17d0   :  { %s9579_s21 = scalar_lea.hbm %s13888_s6, 1024 }
0x17d1   :  { %p9580_p7 = scmp.ne.s32.totalorder %s13888_s6, %s9579_s21  ;;  %p9583_p8 = scmp.lt.u32.totalorder %s9579_s21, %s13888_s6 }
0x17d3   :  { %p9585_p9 = pnand %p9583_p8, %p9580_p7 }
0x17d5   :  { %9588 = shalt.err (!%p9585_p9)
}
0x17d6   :  { %8403 = dma.vmem_to_hbm [thread:$0]  %s8401_s18, 1024, %s13888_s6, [#allocation6]  }
0x17d7   :  { %9593 = dma.done.wait [#allocation6], 1024  }
0x17d8   :  { %9594 = vsyncadd [#allocation6], 4294966272 }
0x17d9   :  { %8407 = vsyncpa [#allocation5], 1 }
0x17da   :  { %8408 = vsyncpa [#allocation8], 1 }
0x17db   :  { %8409 = vsyncpa [#allocation6], 1 }

</bundles_post_ra>
